<compile_context>
chip_gen: v6e
topology: v6e:2x2x1
jax: 0.10.0
libtpu: 0.0.40
codegen_flags: <defaults>
</compile_context>

<pallas_src>
import math
import jax
import jax.numpy as jnp
from jax import lax
from jax.experimental import pallas as pl
from jax.experimental.pallas import tpu as pltpu

# ----- model hyper-parameters (small, consistent with the module defaults) -----
BATCH = 16
VIRTUAL_BATCH_SIZE = 8            # GBN chunk size; batch is a multiple of it
INPUT_DIM = 16
OUTPUT_DIM = 3
N_D = 4
N_A = 4
N_STEPS = 3
GAMMA = 1.3
EPSILON = 1e-15                   # TabNet epsilon for log(M + eps)
BN_EPS = 1e-5                     # torch BatchNorm1d default eps
N_H = N_D + N_A                   # hidden width of feature transformers (8)
ATT_DIM = INPUT_DIM               # group_attention_matrix=None -> identity
N_TRANSFORMERS = N_STEPS + 1      # initial_splitter + one per step
N_GLU_LAYERS = N_TRANSFORMERS * 4  # 4 GLU layers (with own BN) per transformer
N_HH_FCS = 1 + N_TRANSFORMERS * 2  # shared fc1 + 2 independent fcs per transformer
SQRT_HALF = math.sqrt(0.5)
SPARSEMAX_ITERS = 30              # tau range width 1.0 -> 2^-30 ~ exact in f32


# ----------------------------- kernel helpers -----------------------------
def _batchnorm_train(z, g, b):
    # training-mode BatchNorm1d over the virtual batch: batch stats, biased var.
    # One-pass stats (two independent sublane reduces) + folded scale/shift.
    inv_n = 1.0 / z.shape[0]
    mean = jnp.sum(z, axis=0, keepdims=True) * inv_n
    mean_sq = jnp.sum(z * z, axis=0, keepdims=True) * inv_n
    var = mean_sq - mean * mean
    scale = g * lax.rsqrt(var + BN_EPS)
    shift = b - mean * scale
    return z * scale + shift


def _sparsemax(z, n_iter=SPARSEMAX_ITERS):
    # Exact sparsemax: find tau with sum(max(z - tau, 0)) = 1 by bisection
    # (tau in [max(z) - 1, max(z)], g(tau) monotone decreasing).
    z_max = jnp.max(z, axis=-1, keepdims=True)
    lo = z_max - 1.0
    hi = z_max

    def body(_, carry):
        lo, hi = carry
        tau = 0.5 * (lo + hi)
        s = jnp.sum(jnp.maximum(z - tau, 0.0), axis=-1, keepdims=True)
        big = s > 1.0
        return jnp.where(big, tau, lo), jnp.where(big, hi, tau)

    lo, hi = lax.fori_loop(0, n_iter, body, (lo, hi), unroll=True)
    tau = 0.5 * (lo + hi)
    return jnp.maximum(z - tau, 0.0)


# ------------------------------ the kernel ------------------------------
def tabnet_kernel(
    x_ref,       # (VBS, D)                 one virtual batch
    bn0_ref,     # (2, D)                   [gamma; beta] of initial_bn
    ws0_ref,     # (2, D, N_H)              shared fc0 split [lin; gate]
    whh_ref,     # (2, N_HH_FCS, N_H, N_H)  shared fc1 + independent fcs, split
    glu_bn_ref,  # (4, N_GLU_LAYERS, N_H)   [g_lin; g_gate; b_lin; b_gate]
    watt_ref,    # (N_STEPS, N_H, ATT_DIM)  attentive fcs, zero-padded n_d rows
    att_bn_ref,  # (2, N_STEPS, ATT_DIM)    [gamma; beta]
    wfinal_ref,  # (N_H, OUTPUT_DIM)        final mapping, zero-padded n_a rows
    out_ref,     # (VBS, OUTPUT_DIM)
    mloss_ref,   # (1, 1, 1)                per-virtual-batch M_loss
):
    x = x_ref[...]
    vbs = x.shape[0]

    x_bn = _batchnorm_train(x, bn0_ref[0:1, :], bn0_ref[1:2, :])

    ws0_lin = ws0_ref[0]
    ws0_gate = ws0_ref[1]

    def glu(h, w_lin, w_gate, p):
        # fc -> GBN -> lin * sigmoid(gate), with lin/gate halves kept in
        # separate vregs (no lane slicing).  BN is per-column, so splitting
        # the 2H-wide BN into two H-wide BNs is exact.
        lin = jnp.dot(h, w_lin, preferred_element_type=jnp.float32)
        gate = jnp.dot(h, w_gate, preferred_element_type=jnp.float32)
        lin = _batchnorm_train(lin, glu_bn_ref[0, p:p + 1, :], glu_bn_ref[2, p:p + 1, :])
        gate = _batchnorm_train(gate, glu_bn_ref[1, p:p + 1, :], glu_bn_ref[3, p:p + 1, :])
        return lin * jax.nn.sigmoid(gate)

    def feat_transformer(h, t):
        base = 4 * t
        # shared GLU block (first=True, n_glu=2): shared fc0 then shared fc1
        h0 = glu(h, ws0_lin, ws0_gate, base)
        h1 = glu(h0, whh_ref[0, 0], whh_ref[1, 0], base + 1)
        y = (h0 + h1) * SQRT_HALF
        # independent GLU block (first=False, n_glu=2)
        for j in range(2):
            idx = 1 + 2 * t + j
            z = glu(y, whh_ref[0, idx], whh_ref[1, idx], base + 2 + j)
            y = (y + z) * SQRT_HALF
        return y

    # encoder.  `att` / `res` keep the full n_d+n_a width; the n_d/n_a split is
    # folded into the zero-padded rows of watt / wfinal (no lane slicing).
    att = feat_transformer(x_bn, 0)
    prior = jnp.ones((vbs, ATT_DIM), jnp.float32)
    res = jnp.zeros((vbs, N_H), jnp.float32)
    m_loss = jnp.zeros((1, 1), jnp.float32)

    for step in range(N_STEPS):
        # attentive transformer: fc (padded) -> GBN -> * prior -> sparsemax
        a = jnp.dot(att, watt_ref[step], preferred_element_type=jnp.float32)
        a = _batchnorm_train(a, att_bn_ref[0, step:step + 1, :],
                             att_bn_ref[1, step:step + 1, :])
        a = a * prior
        M = _sparsemax(a)

        ent = jnp.sum(M * jnp.log(M + EPSILON), axis=1, keepdims=True)  # (VBS, 1)
        m_loss = m_loss + jnp.mean(ent, axis=0, keepdims=True)

        prior = (GAMMA - M) * prior
        # group_attention_matrix is the identity here -> M_feature_level == M
        masked_x = M * x_bn
        out = feat_transformer(masked_x, step + 1)
        res = res + jnp.maximum(out, 0.0)   # ReLU; only n_d rows survive wfinal pad
        att = out

    m_loss = m_loss * (1.0 / N_STEPS)

    out_ref[...] = jnp.dot(res, wfinal_ref[...], preferred_element_type=jnp.float32)
    mloss_ref[0] = m_loss


# ------------------------------ wrapper ------------------------------
def tabnet_forward(x, params):
    bn0, ws0, whh, glu_bn, watt, att_bn, wfinal = params
    batch = x.shape[0]
    assert batch % VIRTUAL_BATCH_SIZE == 0, "batch must be a multiple of the virtual batch"
    n_vb = batch // VIRTUAL_BATCH_SIZE

    def const(ndim):
        return lambda i: (0,) * ndim

    out, mloss_vb = pl.pallas_call(
        tabnet_kernel,
        grid=(n_vb,),
        in_specs=[
            pl.BlockSpec((VIRTUAL_BATCH_SIZE, INPUT_DIM), lambda i: (i, 0)),
            pl.BlockSpec(bn0.shape, const(2)),
            pl.BlockSpec(ws0.shape, const(3)),
            pl.BlockSpec(whh.shape, const(4)),
            pl.BlockSpec(glu_bn.shape, const(3)),
            pl.BlockSpec(watt.shape, const(3)),
            pl.BlockSpec(att_bn.shape, const(3)),
            pl.BlockSpec(wfinal.shape, const(2)),
        ],
        out_specs=(
            pl.BlockSpec((VIRTUAL_BATCH_SIZE, OUTPUT_DIM), lambda i: (i, 0)),
            pl.BlockSpec((1, 1, 1), lambda i: (i, 0, 0)),
        ),
        out_shape=(
            jax.ShapeDtypeStruct((batch, OUTPUT_DIM), jnp.float32),
            jax.ShapeDtypeStruct((n_vb, 1, 1), jnp.float32),
        ),
        compiler_params=pltpu.CompilerParams(
            dimension_semantics=("parallel",)),
    )(x, bn0, ws0, whh, glu_bn, watt, att_bn, wfinal)

    # equal-size virtual batches -> batch mean == mean of per-VB means (exact)
    m_loss = jnp.mean(mloss_vb)
    return out, m_loss


# --------------------------- parameter init ---------------------------
def _xavier_normal(key, out_dim, in_dim, gain):
    std = gain * math.sqrt(2.0 / (in_dim + out_dim))
    return std * jax.random.normal(key, (out_dim, in_dim), jnp.float32)


def init_params(key):
    keys = iter(jax.random.split(key, 16))

    glu_gain_in = math.sqrt((INPUT_DIM + 2 * N_H) / math.sqrt(INPUT_DIM))
    glu_gain_h = math.sqrt((N_H + 2 * N_H) / math.sqrt(N_H))
    att_gain = math.sqrt((N_A + ATT_DIM) / math.sqrt(4 * N_A))
    fin_gain = math.sqrt((N_D + OUTPUT_DIM) / math.sqrt(4 * N_D))

    # torch-convention [out, in] weights
    w_s0 = _xavier_normal(next(keys), 2 * N_H, INPUT_DIM, glu_gain_in)       # shared fc0
    w_hh = [_xavier_normal(next(keys), 2 * N_H, N_H, glu_gain_h)
            for _ in range(N_HH_FCS)]                                        # fc1 + independent
    w_att = [_xavier_normal(next(keys), ATT_DIM, N_A, att_gain)
             for _ in range(N_STEPS)]
    w_fin = _xavier_normal(next(keys), OUTPUT_DIM, N_D, fin_gain)

    # pre-transpose + split GLU fcs into (lin, gate) halves once (hoisted out of forward)
    def split_glu(w):  # [2H, in] -> ([in, H], [in, H])
        wt = w.T
        return wt[:, :N_H], wt[:, N_H:]

    s0_lin, s0_gate = split_glu(w_s0)
    ws0 = jnp.stack([s0_lin, s0_gate])                                        # (2, D, H)

    hh_lin, hh_gate = zip(*(split_glu(w) for w in w_hh))
    whh = jnp.stack([jnp.stack(hh_lin), jnp.stack(hh_gate)])                  # (2, 9, H, H)

    # attentive fcs: transpose to [n_a, att_dim], zero-pad the n_d rows so the
    # full-width transformer output can be used without lane slicing
    watt = jnp.stack([
        jnp.concatenate([jnp.zeros((N_D, ATT_DIM), jnp.float32), w.T], axis=0)
        for w in w_att])                                                      # (3, H, ATT)

    # final mapping: transpose to [n_d, out], zero-pad the n_a rows
    wfinal = jnp.concatenate(
        [w_fin.T, jnp.zeros((N_A, OUTPUT_DIM), jnp.float32)], axis=0)         # (H, OUT)

    # fresh-init BN params (gamma=1, beta=0), packed
    bn0 = jnp.concatenate([jnp.ones((1, INPUT_DIM), jnp.float32),
                           jnp.zeros((1, INPUT_DIM), jnp.float32)], axis=0)   # (2, D)
    glu_bn = jnp.concatenate([
        jnp.ones((2, N_GLU_LAYERS, N_H), jnp.float32),    # gamma_lin, gamma_gate
        jnp.zeros((2, N_GLU_LAYERS, N_H), jnp.float32),   # beta_lin, beta_gate
    ], axis=0)                                                                # (4, 16, H)
    att_bn = jnp.concatenate([
        jnp.ones((1, N_STEPS, ATT_DIM), jnp.float32),
        jnp.zeros((1, N_STEPS, ATT_DIM), jnp.float32)], axis=0)               # (2, 3, ATT)

    # TODO(synk): BatchNorm running-stat (momentum) updates are training-time
    # bookkeeping and do not affect the forward output; not implemented.
    return (bn0, ws0, whh, glu_bn, watt, att_bn, wfinal)


if __name__ == "__main__":
    key = jax.random.PRNGKey(0)
    kx, kp = jax.random.split(key)
    x = jax.random.normal(kx, (BATCH, INPUT_DIM), jnp.float32)
    params = init_params(kp)

    fwd = jax.jit(tabnet_forward)
    out, m_loss = fwd(x, params)
    jax.block_until_ready((out, m_loss))

    assert out.shape == (BATCH, OUTPUT_DIM) and out.dtype == jnp.float32
    assert bool(jnp.all(jnp.isfinite(out))) and bool(jnp.isfinite(m_loss))
    print("KERNEL_OK")
</pallas_src>

<mosaic_0001>
module attributes {stable_mosaic.version = 11 : i64} {
  func.func @tabnet_kernel(%arg0: i32, %arg1: memref<8x16xf32, #tpu.memory_space<vmem>>, %arg2: memref<2x16xf32, #tpu.memory_space<vmem>>, %arg3: memref<2x16x8xf32, #tpu.memory_space<vmem>>, %arg4: memref<2x9x8x8xf32, #tpu.memory_space<vmem>>, %arg5: memref<4x16x8xf32, #tpu.memory_space<vmem>>, %arg6: memref<3x8x16xf32, #tpu.memory_space<vmem>>, %arg7: memref<2x3x16xf32, #tpu.memory_space<vmem>>, %arg8: memref<8x3xf32, #tpu.memory_space<vmem>>, %arg9: memref<8x3xf32, #tpu.memory_space<vmem>>, %arg10: memref<1x1x1xf32, #tpu.memory_space<vmem>>) attributes {dimension_semantics = [#tpu.dimension_semantics<parallel>], iteration_bounds = array<i64: 2>, scalar_prefetch = 0 : i64, scratch_operands = 0 : i64, tpu.core_type = #tpu.core_type<tc>, window_params = [{transform_indices = @transform_0, window_bounds = array<i64: 8, 16>}, {pipeline_mode = #tpu.pipeline_mode<synchronous>, transform_indices = @transform_1, window_bounds = array<i64: 2, 16>}, {pipeline_mode = #tpu.pipeline_mode<synchronous>, transform_indices = @transform_2, window_bounds = array<i64: 2, 16, 8>}, {pipeline_mode = #tpu.pipeline_mode<synchronous>, transform_indices = @transform_3, window_bounds = array<i64: 2, 9, 8, 8>}, {pipeline_mode = #tpu.pipeline_mode<synchronous>, transform_indices = @transform_4, window_bounds = array<i64: 4, 16, 8>}, {pipeline_mode = #tpu.pipeline_mode<synchronous>, transform_indices = @transform_5, window_bounds = array<i64: 3, 8, 16>}, {pipeline_mode = #tpu.pipeline_mode<synchronous>, transform_indices = @transform_6, window_bounds = array<i64: 2, 3, 16>}, {pipeline_mode = #tpu.pipeline_mode<synchronous>, transform_indices = @transform_7, window_bounds = array<i64: 8, 3>}, {transform_indices = @transform_8, window_bounds = array<i64: 8, 3>}, {transform_indices = @transform_9, window_bounds = array<i64: 1, 1, 1>}]} {
    %c0 = arith.constant 0 : index
    %c0_0 = arith.constant 0 : index
    %0 = vector.load %arg1[%c0, %c0_0] : memref<8x16xf32, #tpu.memory_space<vmem>>, vector<8x16xf32>
    %c0_1 = arith.constant 0 : index
    %c0_2 = arith.constant 0 : index
    %1 = vector.load %arg2[%c0_1, %c0_2] : memref<2x16xf32, #tpu.memory_space<vmem>>, vector<1x16xf32>
    %c1 = arith.constant 1 : index
    %c0_3 = arith.constant 0 : index
    %2 = vector.load %arg2[%c1, %c0_3] : memref<2x16xf32, #tpu.memory_space<vmem>>, vector<1x16xf32>
    %cst = arith.constant dense<0.000000e+00> : vector<16xf32>
    %3 = vector.multi_reduction <add>, %0, %cst [0] : vector<8x16xf32> to vector<16xf32>
    %4 = vector.shape_cast %3 : vector<16xf32> to vector<1x16xf32>
    %cst_4 = arith.constant 1.250000e-01 : f32
    %5 = vector.broadcast %cst_4 : f32 to vector<1x16xf32>
    %6 = arith.mulf %4, %5 : vector<1x16xf32>
    %7 = arith.mulf %0, %0 : vector<8x16xf32>
    %cst_5 = arith.constant dense<0.000000e+00> : vector<16xf32>
    %8 = vector.multi_reduction <add>, %7, %cst_5 [0] : vector<8x16xf32> to vector<16xf32>
    %9 = vector.shape_cast %8 : vector<16xf32> to vector<1x16xf32>
    %cst_6 = arith.constant 1.250000e-01 : f32
    %10 = vector.broadcast %cst_6 : f32 to vector<1x16xf32>
    %11 = arith.mulf %9, %10 : vector<1x16xf32>
    %12 = arith.mulf %6, %6 : vector<1x16xf32>
    %13 = arith.subf %11, %12 : vector<1x16xf32>
    %cst_7 = arith.constant 9.99999974E-6 : f32
    %14 = vector.broadcast %cst_7 : f32 to vector<1x16xf32>
    %15 = arith.addf %13, %14 : vector<1x16xf32>
    %16 = math.rsqrt %15 : vector<1x16xf32>
    %17 = arith.mulf %1, %16 : vector<1x16xf32>
    %18 = arith.mulf %6, %17 : vector<1x16xf32>
    %19 = arith.subf %2, %18 : vector<1x16xf32>
    %20 = vector.broadcast %17 : vector<1x16xf32> to vector<8x16xf32>
    %21 = arith.mulf %0, %20 : vector<8x16xf32>
    %22 = vector.broadcast %19 : vector<1x16xf32> to vector<8x16xf32>
    %23 = arith.addf %21, %22 : vector<8x16xf32>
    %c0_8 = arith.constant 0 : index
    %c0_9 = arith.constant 0 : index
    %c0_10 = arith.constant 0 : index
    %24 = vector.load %arg3[%c0_8, %c0_9, %c0_10] : memref<2x16x8xf32, #tpu.memory_space<vmem>>, vector<1x16x8xf32>
    %25 = vector.shape_cast %24 : vector<1x16x8xf32> to vector<16x8xf32>
    %c1_11 = arith.constant 1 : index
    %c0_12 = arith.constant 0 : index
    %c0_13 = arith.constant 0 : index
    %26 = vector.load %arg3[%c1_11, %c0_12, %c0_13] : memref<2x16x8xf32, #tpu.memory_space<vmem>>, vector<1x16x8xf32>
    %27 = vector.shape_cast %26 : vector<1x16x8xf32> to vector<16x8xf32>
    %cst_14 = arith.constant dense<0.000000e+00> : vector<8x8xf32>
    %28 = tpu.matmul %23, %25, %cst_14 {dimension_numbers = #tpu.dot_dimension_numbers<[1], [0], [0], [1], [0, 0, 1, 1], [], []>} : vector<8x16xf32>, vector<16x8xf32>, vector<8x8xf32> -> vector<8x8xf32>
    %cst_15 = arith.constant dense<0.000000e+00> : vector<8x8xf32>
    %29 = tpu.matmul %23, %27, %cst_15 {dimension_numbers = #tpu.dot_dimension_numbers<[1], [0], [0], [1], [0, 0, 1, 1], [], []>} : vector<8x16xf32>, vector<16x8xf32>, vector<8x8xf32> -> vector<8x8xf32>
    %c0_16 = arith.constant 0 : index
    %c0_17 = arith.constant 0 : index
    %c0_18 = arith.constant 0 : index
    %30 = vector.load %arg5[%c0_16, %c0_17, %c0_18] : memref<4x16x8xf32, #tpu.memory_space<vmem>>, vector<1x1x8xf32>
    %31 = vector.shape_cast %30 : vector<1x1x8xf32> to vector<1x8xf32>
    %c2 = arith.constant 2 : index
    %c0_19 = arith.constant 0 : index
    %c0_20 = arith.constant 0 : index
    %32 = vector.load %arg5[%c2, %c0_19, %c0_20] : memref<4x16x8xf32, #tpu.memory_space<vmem>>, vector<1x1x8xf32>
    %33 = vector.shape_cast %32 : vector<1x1x8xf32> to vector<1x8xf32>
    %cst_21 = arith.constant dense<0.000000e+00> : vector<8xf32>
    %34 = vector.multi_reduction <add>, %28, %cst_21 [0] : vector<8x8xf32> to vector<8xf32>
    %35 = vector.shape_cast %34 : vector<8xf32> to vector<1x8xf32>
    %cst_22 = arith.constant 1.250000e-01 : f32
    %36 = vector.broadcast %cst_22 : f32 to vector<1x8xf32>
    %37 = arith.mulf %35, %36 : vector<1x8xf32>
    %38 = arith.mulf %28, %28 : vector<8x8xf32>
    %cst_23 = arith.constant dense<0.000000e+00> : vector<8xf32>
    %39 = vector.multi_reduction <add>, %38, %cst_23 [0] : vector<8x8xf32> to vector<8xf32>
    %40 = vector.shape_cast %39 : vector<8xf32> to vector<1x8xf32>
    %cst_24 = arith.constant 1.250000e-01 : f32
    %41 = vector.broadcast %cst_24 : f32 to vector<1x8xf32>
    %42 = arith.mulf %40, %41 : vector<1x8xf32>
    %43 = arith.mulf %37, %37 : vector<1x8xf32>
    %44 = arith.subf %42, %43 : vector<1x8xf32>
    %cst_25 = arith.constant 9.99999974E-6 : f32
    %45 = vector.broadcast %cst_25 : f32 to vector<1x8xf32>
    %46 = arith.addf %44, %45 : vector<1x8xf32>
    %47 = math.rsqrt %46 : vector<1x8xf32>
    %48 = arith.mulf %31, %47 : vector<1x8xf32>
    %49 = arith.mulf %37, %48 : vector<1x8xf32>
    %50 = arith.subf %33, %49 : vector<1x8xf32>
    %51 = vector.broadcast %48 : vector<1x8xf32> to vector<8x8xf32>
    %52 = arith.mulf %28, %51 : vector<8x8xf32>
    %53 = vector.broadcast %50 : vector<1x8xf32> to vector<8x8xf32>
    %54 = arith.addf %52, %53 : vector<8x8xf32>
    %c1_26 = arith.constant 1 : index
    %c0_27 = arith.constant 0 : index
    %c0_28 = arith.constant 0 : index
    %55 = vector.load %arg5[%c1_26, %c0_27, %c0_28] : memref<4x16x8xf32, #tpu.memory_space<vmem>>, vector<1x1x8xf32>
    %56 = vector.shape_cast %55 : vector<1x1x8xf32> to vector<1x8xf32>
    %c3 = arith.constant 3 : index
    %c0_29 = arith.constant 0 : index
    %c0_30 = arith.constant 0 : index
    %57 = vector.load %arg5[%c3, %c0_29, %c0_30] : memref<4x16x8xf32, #tpu.memory_space<vmem>>, vector<1x1x8xf32>
    %58 = vector.shape_cast %57 : vector<1x1x8xf32> to vector<1x8xf32>
    %cst_31 = arith.constant dense<0.000000e+00> : vector<8xf32>
    %59 = vector.multi_reduction <add>, %29, %cst_31 [0] : vector<8x8xf32> to vector<8xf32>
    %60 = vector.shape_cast %59 : vector<8xf32> to vector<1x8xf32>
    %cst_32 = arith.constant 1.250000e-01 : f32
    %61 = vector.broadcast %cst_32 : f32 to vector<1x8xf32>
    %62 = arith.mulf %60, %61 : vector<1x8xf32>
    %63 = arith.mulf %29, %29 : vector<8x8xf32>
    %cst_33 = arith.constant dense<0.000000e+00> : vector<8xf32>
    %64 = vector.multi_reduction <add>, %63, %cst_33 [0] : vector<8x8xf32> to vector<8xf32>
    %65 = vector.shape_cast %64 : vector<8xf32> to vector<1x8xf32>
    %cst_34 = arith.constant 1.250000e-01 : f32
    %66 = vector.broadcast %cst_34 : f32 to vector<1x8xf32>
    %67 = arith.mulf %65, %66 : vector<1x8xf32>
    %68 = arith.mulf %62, %62 : vector<1x8xf32>
    %69 = arith.subf %67, %68 : vector<1x8xf32>
    %cst_35 = arith.constant 9.99999974E-6 : f32
    %70 = vector.broadcast %cst_35 : f32 to vector<1x8xf32>
    %71 = arith.addf %69, %70 : vector<1x8xf32>
    %72 = math.rsqrt %71 : vector<1x8xf32>
    %73 = arith.mulf %56, %72 : vector<1x8xf32>
    %74 = arith.mulf %62, %73 : vector<1x8xf32>
    %75 = arith.subf %58, %74 : vector<1x8xf32>
    %76 = vector.broadcast %73 : vector<1x8xf32> to vector<8x8xf32>
    %77 = arith.mulf %29, %76 : vector<8x8xf32>
    %78 = vector.broadcast %75 : vector<1x8xf32> to vector<8x8xf32>
    %79 = arith.addf %77, %78 : vector<8x8xf32>
    %80 = arith.negf %79 : vector<8x8xf32>
    %81 = math.exp %80 : vector<8x8xf32>
    %cst_36 = arith.constant 1.000000e+00 : f32
    %82 = vector.broadcast %cst_36 : f32 to vector<8x8xf32>
    %83 = arith.addf %82, %81 : vector<8x8xf32>
    %84 = arith.divf %82, %83 : vector<8x8xf32>
    %85 = arith.mulf %54, %84 : vector<8x8xf32>
    %c0_37 = arith.constant 0 : index
    %c0_38 = arith.constant 0 : index
    %c0_39 = arith.constant 0 : index
    %c0_40 = arith.constant 0 : index
    %86 = vector.load %arg4[%c0_37, %c0_38, %c0_39, %c0_40] : memref<2x9x8x8xf32, #tpu.memory_space<vmem>>, vector<1x1x8x8xf32>
    %87 = vector.shape_cast %86 : vector<1x1x8x8xf32> to vector<8x8xf32>
    %c1_41 = arith.constant 1 : index
    %c0_42 = arith.constant 0 : index
    %c0_43 = arith.constant 0 : index
    %c0_44 = arith.constant 0 : index
    %88 = vector.load %arg4[%c1_41, %c0_42, %c0_43, %c0_44] : memref<2x9x8x8xf32, #tpu.memory_space<vmem>>, vector<1x1x8x8xf32>
    %89 = vector.shape_cast %88 : vector<1x1x8x8xf32> to vector<8x8xf32>
    %cst_45 = arith.constant dense<0.000000e+00> : vector<8x8xf32>
    %90 = tpu.matmul %85, %87, %cst_45 {dimension_numbers = #tpu.dot_dimension_numbers<[1], [0], [0], [1], [0, 0, 1, 1], [], []>} : vector<8x8xf32>, vector<8x8xf32>, vector<8x8xf32> -> vector<8x8xf32>
    %cst_46 = arith.constant dense<0.000000e+00> : vector<8x8xf32>
    %91 = tpu.matmul %85, %89, %cst_46 {dimension_numbers = #tpu.dot_dimension_numbers<[1], [0], [0], [1], [0, 0, 1, 1], [], []>} : vector<8x8xf32>, vector<8x8xf32>, vector<8x8xf32> -> vector<8x8xf32>
    %c0_47 = arith.constant 0 : index
    %c1_48 = arith.constant 1 : index
    %c0_49 = arith.constant 0 : index
    %92 = vector.load %arg5[%c0_47, %c1_48, %c0_49] : memref<4x16x8xf32, #tpu.memory_space<vmem>>, vector<1x1x8xf32>
    %93 = vector.shape_cast %92 : vector<1x1x8xf32> to vector<1x8xf32>
    %c2_50 = arith.constant 2 : index
    %c1_51 = arith.constant 1 : index
    %c0_52 = arith.constant 0 : index
    %94 = vector.load %arg5[%c2_50, %c1_51, %c0_52] : memref<4x16x8xf32, #tpu.memory_space<vmem>>, vector<1x1x8xf32>
    %95 = vector.shape_cast %94 : vector<1x1x8xf32> to vector<1x8xf32>
    %cst_53 = arith.constant dense<0.000000e+00> : vector<8xf32>
    %96 = vector.multi_reduction <add>, %90, %cst_53 [0] : vector<8x8xf32> to vector<8xf32>
    %97 = vector.shape_cast %96 : vector<8xf32> to vector<1x8xf32>
    %cst_54 = arith.constant 1.250000e-01 : f32
    %98 = vector.broadcast %cst_54 : f32 to vector<1x8xf32>
    %99 = arith.mulf %97, %98 : vector<1x8xf32>
    %100 = arith.mulf %90, %90 : vector<8x8xf32>
    %cst_55 = arith.constant dense<0.000000e+00> : vector<8xf32>
    %101 = vector.multi_reduction <add>, %100, %cst_55 [0] : vector<8x8xf32> to vector<8xf32>
    %102 = vector.shape_cast %101 : vector<8xf32> to vector<1x8xf32>
    %cst_56 = arith.constant 1.250000e-01 : f32
    %103 = vector.broadcast %cst_56 : f32 to vector<1x8xf32>
    %104 = arith.mulf %102, %103 : vector<1x8xf32>
    %105 = arith.mulf %99, %99 : vector<1x8xf32>
    %106 = arith.subf %104, %105 : vector<1x8xf32>
    %cst_57 = arith.constant 9.99999974E-6 : f32
    %107 = vector.broadcast %cst_57 : f32 to vector<1x8xf32>
    %108 = arith.addf %106, %107 : vector<1x8xf32>
    %109 = math.rsqrt %108 : vector<1x8xf32>
    %110 = arith.mulf %93, %109 : vector<1x8xf32>
    %111 = arith.mulf %99, %110 : vector<1x8xf32>
    %112 = arith.subf %95, %111 : vector<1x8xf32>
    %113 = vector.broadcast %110 : vector<1x8xf32> to vector<8x8xf32>
    %114 = arith.mulf %90, %113 : vector<8x8xf32>
    %115 = vector.broadcast %112 : vector<1x8xf32> to vector<8x8xf32>
    %116 = arith.addf %114, %115 : vector<8x8xf32>
    %c1_58 = arith.constant 1 : index
    %c1_59 = arith.constant 1 : index
    %c0_60 = arith.constant 0 : index
    %117 = vector.load %arg5[%c1_58, %c1_59, %c0_60] : memref<4x16x8xf32, #tpu.memory_space<vmem>>, vector<1x1x8xf32>
    %118 = vector.shape_cast %117 : vector<1x1x8xf32> to vector<1x8xf32>
    %c3_61 = arith.constant 3 : index
    %c1_62 = arith.constant 1 : index
    %c0_63 = arith.constant 0 : index
    %119 = vector.load %arg5[%c3_61, %c1_62, %c0_63] : memref<4x16x8xf32, #tpu.memory_space<vmem>>, vector<1x1x8xf32>
    %120 = vector.shape_cast %119 : vector<1x1x8xf32> to vector<1x8xf32>
    %cst_64 = arith.constant dense<0.000000e+00> : vector<8xf32>
    %121 = vector.multi_reduction <add>, %91, %cst_64 [0] : vector<8x8xf32> to vector<8xf32>
    %122 = vector.shape_cast %121 : vector<8xf32> to vector<1x8xf32>
    %cst_65 = arith.constant 1.250000e-01 : f32
    %123 = vector.broadcast %cst_65 : f32 to vector<1x8xf32>
    %124 = arith.mulf %122, %123 : vector<1x8xf32>
    %125 = arith.mulf %91, %91 : vector<8x8xf32>
    %cst_66 = arith.constant dense<0.000000e+00> : vector<8xf32>
    %126 = vector.multi_reduction <add>, %125, %cst_66 [0] : vector<8x8xf32> to vector<8xf32>
    %127 = vector.shape_cast %126 : vector<8xf32> to vector<1x8xf32>
    %cst_67 = arith.constant 1.250000e-01 : f32
    %128 = vector.broadcast %cst_67 : f32 to vector<1x8xf32>
    %129 = arith.mulf %127, %128 : vector<1x8xf32>
    %130 = arith.mulf %124, %124 : vector<1x8xf32>
    %131 = arith.subf %129, %130 : vector<1x8xf32>
    %cst_68 = arith.constant 9.99999974E-6 : f32
    %132 = vector.broadcast %cst_68 : f32 to vector<1x8xf32>
    %133 = arith.addf %131, %132 : vector<1x8xf32>
    %134 = math.rsqrt %133 : vector<1x8xf32>
    %135 = arith.mulf %118, %134 : vector<1x8xf32>
    %136 = arith.mulf %124, %135 : vector<1x8xf32>
    %137 = arith.subf %120, %136 : vector<1x8xf32>
    %138 = vector.broadcast %135 : vector<1x8xf32> to vector<8x8xf32>
    %139 = arith.mulf %91, %138 : vector<8x8xf32>
    %140 = vector.broadcast %137 : vector<1x8xf32> to vector<8x8xf32>
    %141 = arith.addf %139, %140 : vector<8x8xf32>
    %142 = arith.negf %141 : vector<8x8xf32>
    %143 = math.exp %142 : vector<8x8xf32>
    %cst_69 = arith.constant 1.000000e+00 : f32
    %144 = vector.broadcast %cst_69 : f32 to vector<8x8xf32>
    %145 = arith.addf %144, %143 : vector<8x8xf32>
    %146 = arith.divf %144, %145 : vector<8x8xf32>
    %147 = arith.mulf %116, %146 : vector<8x8xf32>
    %148 = arith.addf %85, %147 : vector<8x8xf32>
    %cst_70 = arith.constant 0.707106769 : f32
    %149 = vector.broadcast %cst_70 : f32 to vector<8x8xf32>
    %150 = arith.mulf %148, %149 : vector<8x8xf32>
    %c0_71 = arith.constant 0 : index
    %c1_72 = arith.constant 1 : index
    %c0_73 = arith.constant 0 : index
    %c0_74 = arith.constant 0 : index
    %151 = vector.load %arg4[%c0_71, %c1_72, %c0_73, %c0_74] : memref<2x9x8x8xf32, #tpu.memory_space<vmem>>, vector<1x1x8x8xf32>
    %152 = vector.shape_cast %151 : vector<1x1x8x8xf32> to vector<8x8xf32>
    %c1_75 = arith.constant 1 : index
    %c1_76 = arith.constant 1 : index
    %c0_77 = arith.constant 0 : index
    %c0_78 = arith.constant 0 : index
    %153 = vector.load %arg4[%c1_75, %c1_76, %c0_77, %c0_78] : memref<2x9x8x8xf32, #tpu.memory_space<vmem>>, vector<1x1x8x8xf32>
    %154 = vector.shape_cast %153 : vector<1x1x8x8xf32> to vector<8x8xf32>
    %cst_79 = arith.constant dense<0.000000e+00> : vector<8x8xf32>
    %155 = tpu.matmul %150, %152, %cst_79 {dimension_numbers = #tpu.dot_dimension_numbers<[1], [0], [0], [1], [0, 0, 1, 1], [], []>} : vector<8x8xf32>, vector<8x8xf32>, vector<8x8xf32> -> vector<8x8xf32>
    %cst_80 = arith.constant dense<0.000000e+00> : vector<8x8xf32>
    %156 = tpu.matmul %150, %154, %cst_80 {dimension_numbers = #tpu.dot_dimension_numbers<[1], [0], [0], [1], [0, 0, 1, 1], [], []>} : vector<8x8xf32>, vector<8x8xf32>, vector<8x8xf32> -> vector<8x8xf32>
    %c0_81 = arith.constant 0 : index
    %c2_82 = arith.constant 2 : index
    %c0_83 = arith.constant 0 : index
    %157 = vector.load %arg5[%c0_81, %c2_82, %c0_83] : memref<4x16x8xf32, #tpu.memory_space<vmem>>, vector<1x1x8xf32>
    %158 = vector.shape_cast %157 : vector<1x1x8xf32> to vector<1x8xf32>
    %c2_84 = arith.constant 2 : index
    %c2_85 = arith.constant 2 : index
    %c0_86 = arith.constant 0 : index
    %159 = vector.load %arg5[%c2_84, %c2_85, %c0_86] : memref<4x16x8xf32, #tpu.memory_space<vmem>>, vector<1x1x8xf32>
    %160 = vector.shape_cast %159 : vector<1x1x8xf32> to vector<1x8xf32>
    %cst_87 = arith.constant dense<0.000000e+00> : vector<8xf32>
    %161 = vector.multi_reduction <add>, %155, %cst_87 [0] : vector<8x8xf32> to vector<8xf32>
    %162 = vector.shape_cast %161 : vector<8xf32> to vector<1x8xf32>
    %cst_88 = arith.constant 1.250000e-01 : f32
    %163 = vector.broadcast %cst_88 : f32 to vector<1x8xf32>
    %164 = arith.mulf %162, %163 : vector<1x8xf32>
    %165 = arith.mulf %155, %155 : vector<8x8xf32>
    %cst_89 = arith.constant dense<0.000000e+00> : vector<8xf32>
    %166 = vector.multi_reduction <add>, %165, %cst_89 [0] : vector<8x8xf32> to vector<8xf32>
    %167 = vector.shape_cast %166 : vector<8xf32> to vector<1x8xf32>
    %cst_90 = arith.constant 1.250000e-01 : f32
    %168 = vector.broadcast %cst_90 : f32 to vector<1x8xf32>
    %169 = arith.mulf %167, %168 : vector<1x8xf32>
    %170 = arith.mulf %164, %164 : vector<1x8xf32>
    %171 = arith.subf %169, %170 : vector<1x8xf32>
    %cst_91 = arith.constant 9.99999974E-6 : f32
    %172 = vector.broadcast %cst_91 : f32 to vector<1x8xf32>
    %173 = arith.addf %171, %172 : vector<1x8xf32>
    %174 = math.rsqrt %173 : vector<1x8xf32>
    %175 = arith.mulf %158, %174 : vector<1x8xf32>
    %176 = arith.mulf %164, %175 : vector<1x8xf32>
    %177 = arith.subf %160, %176 : vector<1x8xf32>
    %178 = vector.broadcast %175 : vector<1x8xf32> to vector<8x8xf32>
    %179 = arith.mulf %155, %178 : vector<8x8xf32>
    %180 = vector.broadcast %177 : vector<1x8xf32> to vector<8x8xf32>
    %181 = arith.addf %179, %180 : vector<8x8xf32>
    %c1_92 = arith.constant 1 : index
    %c2_93 = arith.constant 2 : index
    %c0_94 = arith.constant 0 : index
    %182 = vector.load %arg5[%c1_92, %c2_93, %c0_94] : memref<4x16x8xf32, #tpu.memory_space<vmem>>, vector<1x1x8xf32>
    %183 = vector.shape_cast %182 : vector<1x1x8xf32> to vector<1x8xf32>
    %c3_95 = arith.constant 3 : index
    %c2_96 = arith.constant 2 : index
    %c0_97 = arith.constant 0 : index
    %184 = vector.load %arg5[%c3_95, %c2_96, %c0_97] : memref<4x16x8xf32, #tpu.memory_space<vmem>>, vector<1x1x8xf32>
    %185 = vector.shape_cast %184 : vector<1x1x8xf32> to vector<1x8xf32>
    %cst_98 = arith.constant dense<0.000000e+00> : vector<8xf32>
    %186 = vector.multi_reduction <add>, %156, %cst_98 [0] : vector<8x8xf32> to vector<8xf32>
    %187 = vector.shape_cast %186 : vector<8xf32> to vector<1x8xf32>
    %cst_99 = arith.constant 1.250000e-01 : f32
    %188 = vector.broadcast %cst_99 : f32 to vector<1x8xf32>
    %189 = arith.mulf %187, %188 : vector<1x8xf32>
    %190 = arith.mulf %156, %156 : vector<8x8xf32>
    %cst_100 = arith.constant dense<0.000000e+00> : vector<8xf32>
    %191 = vector.multi_reduction <add>, %190, %cst_100 [0] : vector<8x8xf32> to vector<8xf32>
    %192 = vector.shape_cast %191 : vector<8xf32> to vector<1x8xf32>
    %cst_101 = arith.constant 1.250000e-01 : f32
    %193 = vector.broadcast %cst_101 : f32 to vector<1x8xf32>
    %194 = arith.mulf %192, %193 : vector<1x8xf32>
    %195 = arith.mulf %189, %189 : vector<1x8xf32>
    %196 = arith.subf %194, %195 : vector<1x8xf32>
    %cst_102 = arith.constant 9.99999974E-6 : f32
    %197 = vector.broadcast %cst_102 : f32 to vector<1x8xf32>
    %198 = arith.addf %196, %197 : vector<1x8xf32>
    %199 = math.rsqrt %198 : vector<1x8xf32>
    %200 = arith.mulf %183, %199 : vector<1x8xf32>
    %201 = arith.mulf %189, %200 : vector<1x8xf32>
    %202 = arith.subf %185, %201 : vector<1x8xf32>
    %203 = vector.broadcast %200 : vector<1x8xf32> to vector<8x8xf32>
    %204 = arith.mulf %156, %203 : vector<8x8xf32>
    %205 = vector.broadcast %202 : vector<1x8xf32> to vector<8x8xf32>
    %206 = arith.addf %204, %205 : vector<8x8xf32>
    %207 = arith.negf %206 : vector<8x8xf32>
    %208 = math.exp %207 : vector<8x8xf32>
    %cst_103 = arith.constant 1.000000e+00 : f32
    %209 = vector.broadcast %cst_103 : f32 to vector<8x8xf32>
    %210 = arith.addf %209, %208 : vector<8x8xf32>
    %211 = arith.divf %209, %210 : vector<8x8xf32>
    %212 = arith.mulf %181, %211 : vector<8x8xf32>
    %213 = arith.addf %150, %212 : vector<8x8xf32>
    %cst_104 = arith.constant 0.707106769 : f32
    %214 = vector.broadcast %cst_104 : f32 to vector<8x8xf32>
    %215 = arith.mulf %213, %214 : vector<8x8xf32>
    %c0_105 = arith.constant 0 : index
    %c2_106 = arith.constant 2 : index
    %c0_107 = arith.constant 0 : index
    %c0_108 = arith.constant 0 : index
    %216 = vector.load %arg4[%c0_105, %c2_106, %c0_107, %c0_108] : memref<2x9x8x8xf32, #tpu.memory_space<vmem>>, vector<1x1x8x8xf32>
    %217 = vector.shape_cast %216 : vector<1x1x8x8xf32> to vector<8x8xf32>
    %c1_109 = arith.constant 1 : index
    %c2_110 = arith.constant 2 : index
    %c0_111 = arith.constant 0 : index
    %c0_112 = arith.constant 0 : index
    %218 = vector.load %arg4[%c1_109, %c2_110, %c0_111, %c0_112] : memref<2x9x8x8xf32, #tpu.memory_space<vmem>>, vector<1x1x8x8xf32>
    %219 = vector.shape_cast %218 : vector<1x1x8x8xf32> to vector<8x8xf32>
    %cst_113 = arith.constant dense<0.000000e+00> : vector<8x8xf32>
    %220 = tpu.matmul %215, %217, %cst_113 {dimension_numbers = #tpu.dot_dimension_numbers<[1], [0], [0], [1], [0, 0, 1, 1], [], []>} : vector<8x8xf32>, vector<8x8xf32>, vector<8x8xf32> -> vector<8x8xf32>
    %cst_114 = arith.constant dense<0.000000e+00> : vector<8x8xf32>
    %221 = tpu.matmul %215, %219, %cst_114 {dimension_numbers = #tpu.dot_dimension_numbers<[1], [0], [0], [1], [0, 0, 1, 1], [], []>} : vector<8x8xf32>, vector<8x8xf32>, vector<8x8xf32> -> vector<8x8xf32>
    %c0_115 = arith.constant 0 : index
    %c3_116 = arith.constant 3 : index
    %c0_117 = arith.constant 0 : index
    %222 = vector.load %arg5[%c0_115, %c3_116, %c0_117] : memref<4x16x8xf32, #tpu.memory_space<vmem>>, vector<1x1x8xf32>
    %223 = vector.shape_cast %222 : vector<1x1x8xf32> to vector<1x8xf32>
    %c2_118 = arith.constant 2 : index
    %c3_119 = arith.constant 3 : index
    %c0_120 = arith.constant 0 : index
    %224 = vector.load %arg5[%c2_118, %c3_119, %c0_120] : memref<4x16x8xf32, #tpu.memory_space<vmem>>, vector<1x1x8xf32>
    %225 = vector.shape_cast %224 : vector<1x1x8xf32> to vector<1x8xf32>
    %cst_121 = arith.constant dense<0.000000e+00> : vector<8xf32>
    %226 = vector.multi_reduction <add>, %220, %cst_121 [0] : vector<8x8xf32> to vector<8xf32>
    %227 = vector.shape_cast %226 : vector<8xf32> to vector<1x8xf32>
    %cst_122 = arith.constant 1.250000e-01 : f32
    %228 = vector.broadcast %cst_122 : f32 to vector<1x8xf32>
    %229 = arith.mulf %227, %228 : vector<1x8xf32>
    %230 = arith.mulf %220, %220 : vector<8x8xf32>
    %cst_123 = arith.constant dense<0.000000e+00> : vector<8xf32>
    %231 = vector.multi_reduction <add>, %230, %cst_123 [0] : vector<8x8xf32> to vector<8xf32>
    %232 = vector.shape_cast %231 : vector<8xf32> to vector<1x8xf32>
    %cst_124 = arith.constant 1.250000e-01 : f32
    %233 = vector.broadcast %cst_124 : f32 to vector<1x8xf32>
    %234 = arith.mulf %232, %233 : vector<1x8xf32>
    %235 = arith.mulf %229, %229 : vector<1x8xf32>
    %236 = arith.subf %234, %235 : vector<1x8xf32>
    %cst_125 = arith.constant 9.99999974E-6 : f32
    %237 = vector.broadcast %cst_125 : f32 to vector<1x8xf32>
    %238 = arith.addf %236, %237 : vector<1x8xf32>
    %239 = math.rsqrt %238 : vector<1x8xf32>
    %240 = arith.mulf %223, %239 : vector<1x8xf32>
    %241 = arith.mulf %229, %240 : vector<1x8xf32>
    %242 = arith.subf %225, %241 : vector<1x8xf32>
    %243 = vector.broadcast %240 : vector<1x8xf32> to vector<8x8xf32>
    %244 = arith.mulf %220, %243 : vector<8x8xf32>
    %245 = vector.broadcast %242 : vector<1x8xf32> to vector<8x8xf32>
    %246 = arith.addf %244, %245 : vector<8x8xf32>
    %c1_126 = arith.constant 1 : index
    %c3_127 = arith.constant 3 : index
    %c0_128 = arith.constant 0 : index
    %247 = vector.load %arg5[%c1_126, %c3_127, %c0_128] : memref<4x16x8xf32, #tpu.memory_space<vmem>>, vector<1x1x8xf32>
    %248 = vector.shape_cast %247 : vector<1x1x8xf32> to vector<1x8xf32>
    %c3_129 = arith.constant 3 : index
    %c3_130 = arith.constant 3 : index
    %c0_131 = arith.constant 0 : index
    %249 = vector.load %arg5[%c3_129, %c3_130, %c0_131] : memref<4x16x8xf32, #tpu.memory_space<vmem>>, vector<1x1x8xf32>
    %250 = vector.shape_cast %249 : vector<1x1x8xf32> to vector<1x8xf32>
    %cst_132 = arith.constant dense<0.000000e+00> : vector<8xf32>
    %251 = vector.multi_reduction <add>, %221, %cst_132 [0] : vector<8x8xf32> to vector<8xf32>
    %252 = vector.shape_cast %251 : vector<8xf32> to vector<1x8xf32>
    %cst_133 = arith.constant 1.250000e-01 : f32
    %253 = vector.broadcast %cst_133 : f32 to vector<1x8xf32>
    %254 = arith.mulf %252, %253 : vector<1x8xf32>
    %255 = arith.mulf %221, %221 : vector<8x8xf32>
    %cst_134 = arith.constant dense<0.000000e+00> : vector<8xf32>
    %256 = vector.multi_reduction <add>, %255, %cst_134 [0] : vector<8x8xf32> to vector<8xf32>
    %257 = vector.shape_cast %256 : vector<8xf32> to vector<1x8xf32>
    %cst_135 = arith.constant 1.250000e-01 : f32
    %258 = vector.broadcast %cst_135 : f32 to vector<1x8xf32>
    %259 = arith.mulf %257, %258 : vector<1x8xf32>
    %260 = arith.mulf %254, %254 : vector<1x8xf32>
    %261 = arith.subf %259, %260 : vector<1x8xf32>
    %cst_136 = arith.constant 9.99999974E-6 : f32
    %262 = vector.broadcast %cst_136 : f32 to vector<1x8xf32>
    %263 = arith.addf %261, %262 : vector<1x8xf32>
    %264 = math.rsqrt %263 : vector<1x8xf32>
    %265 = arith.mulf %248, %264 : vector<1x8xf32>
    %266 = arith.mulf %254, %265 : vector<1x8xf32>
    %267 = arith.subf %250, %266 : vector<1x8xf32>
    %268 = vector.broadcast %265 : vector<1x8xf32> to vector<8x8xf32>
    %269 = arith.mulf %221, %268 : vector<8x8xf32>
    %270 = vector.broadcast %267 : vector<1x8xf32> to vector<8x8xf32>
    %271 = arith.addf %269, %270 : vector<8x8xf32>
    %272 = arith.negf %271 : vector<8x8xf32>
    %273 = math.exp %272 : vector<8x8xf32>
    %cst_137 = arith.constant 1.000000e+00 : f32
    %274 = vector.broadcast %cst_137 : f32 to vector<8x8xf32>
    %275 = arith.addf %274, %273 : vector<8x8xf32>
    %276 = arith.divf %274, %275 : vector<8x8xf32>
    %277 = arith.mulf %246, %276 : vector<8x8xf32>
    %278 = arith.addf %215, %277 : vector<8x8xf32>
    %cst_138 = arith.constant 0.707106769 : f32
    %279 = vector.broadcast %cst_138 : f32 to vector<8x8xf32>
    %280 = arith.mulf %278, %279 : vector<8x8xf32>
    %cst_139 = arith.constant 1.000000e+00 : f32
    %281 = vector.broadcast %cst_139 : f32 to vector<8x16xf32>
    %cst_140 = arith.constant 0.000000e+00 : f32
    %282 = vector.broadcast %cst_140 : f32 to vector<8x8xf32>
    %cst_141 = arith.constant 0.000000e+00 : f32
    %283 = vector.broadcast %cst_141 : f32 to vector<1x1xf32>
    %c0_142 = arith.constant 0 : index
    %c0_143 = arith.constant 0 : index
    %c0_144 = arith.constant 0 : index
    %284 = vector.load %arg6[%c0_142, %c0_143, %c0_144] : memref<3x8x16xf32, #tpu.memory_space<vmem>>, vector<1x8x16xf32>
    %285 = vector.shape_cast %284 : vector<1x8x16xf32> to vector<8x16xf32>
    %cst_145 = arith.constant dense<0.000000e+00> : vector<8x16xf32>
    %286 = tpu.matmul %280, %285, %cst_145 {dimension_numbers = #tpu.dot_dimension_numbers<[1], [0], [0], [1], [0, 0, 1, 1], [], []>} : vector<8x8xf32>, vector<8x16xf32>, vector<8x16xf32> -> vector<8x16xf32>
    %c0_146 = arith.constant 0 : index
    %c0_147 = arith.constant 0 : index
    %c0_148 = arith.constant 0 : index
    %287 = vector.load %arg7[%c0_146, %c0_147, %c0_148] : memref<2x3x16xf32, #tpu.memory_space<vmem>>, vector<1x1x16xf32>
    %288 = vector.shape_cast %287 : vector<1x1x16xf32> to vector<1x16xf32>
    %c1_149 = arith.constant 1 : index
    %c0_150 = arith.constant 0 : index
    %c0_151 = arith.constant 0 : index
    %289 = vector.load %arg7[%c1_149, %c0_150, %c0_151] : memref<2x3x16xf32, #tpu.memory_space<vmem>>, vector<1x1x16xf32>
    %290 = vector.shape_cast %289 : vector<1x1x16xf32> to vector<1x16xf32>
    %cst_152 = arith.constant dense<0.000000e+00> : vector<16xf32>
    %291 = vector.multi_reduction <add>, %286, %cst_152 [0] : vector<8x16xf32> to vector<16xf32>
    %292 = vector.shape_cast %291 : vector<16xf32> to vector<1x16xf32>
    %cst_153 = arith.constant 1.250000e-01 : f32
    %293 = vector.broadcast %cst_153 : f32 to vector<1x16xf32>
    %294 = arith.mulf %292, %293 : vector<1x16xf32>
    %295 = arith.mulf %286, %286 : vector<8x16xf32>
    %cst_154 = arith.constant dense<0.000000e+00> : vector<16xf32>
    %296 = vector.multi_reduction <add>, %295, %cst_154 [0] : vector<8x16xf32> to vector<16xf32>
    %297 = vector.shape_cast %296 : vector<16xf32> to vector<1x16xf32>
    %cst_155 = arith.constant 1.250000e-01 : f32
    %298 = vector.broadcast %cst_155 : f32 to vector<1x16xf32>
    %299 = arith.mulf %297, %298 : vector<1x16xf32>
    %300 = arith.mulf %294, %294 : vector<1x16xf32>
    %301 = arith.subf %299, %300 : vector<1x16xf32>
    %cst_156 = arith.constant 9.99999974E-6 : f32
    %302 = vector.broadcast %cst_156 : f32 to vector<1x16xf32>
    %303 = arith.addf %301, %302 : vector<1x16xf32>
    %304 = math.rsqrt %303 : vector<1x16xf32>
    %305 = arith.mulf %288, %304 : vector<1x16xf32>
    %306 = arith.mulf %294, %305 : vector<1x16xf32>
    %307 = arith.subf %290, %306 : vector<1x16xf32>
    %308 = vector.broadcast %305 : vector<1x16xf32> to vector<8x16xf32>
    %309 = arith.mulf %286, %308 : vector<8x16xf32>
    %310 = vector.broadcast %307 : vector<1x16xf32> to vector<8x16xf32>
    %311 = arith.addf %309, %310 : vector<8x16xf32>
    %312 = arith.mulf %311, %281 : vector<8x16xf32>
    %cst_157 = arith.constant dense<0xFF800000> : vector<8xf32>
    %313 = vector.multi_reduction <maximumf>, %312, %cst_157 [1] : vector<8x16xf32> to vector<8xf32>
    %314 = vector.shape_cast %313 : vector<8xf32> to vector<8x1xf32>
    %cst_158 = arith.constant 1.000000e+00 : f32
    %315 = vector.broadcast %cst_158 : f32 to vector<8x1xf32>
    %316 = arith.subf %314, %315 : vector<8x1xf32>
    %c0_i32 = arith.constant 0 : i32
    %317 = arith.addf %316, %314 : vector<8x1xf32>
    %cst_159 = arith.constant 5.000000e-01 : f32
    %318 = vector.broadcast %cst_159 : f32 to vector<8x1xf32>
    %319 = arith.mulf %318, %317 : vector<8x1xf32>
    %320 = vector.broadcast %319 : vector<8x1xf32> to vector<8x16xf32>
    %321 = arith.subf %312, %320 : vector<8x16xf32>
    %cst_160 = arith.constant 0.000000e+00 : f32
    %322 = vector.broadcast %cst_160 : f32 to vector<8x16xf32>
    %323 = arith.maximumf %321, %322 : vector<8x16xf32>
    %cst_161 = arith.constant dense<0.000000e+00> : vector<8xf32>
    %324 = vector.multi_reduction <add>, %323, %cst_161 [1] : vector<8x16xf32> to vector<8xf32>
    %325 = vector.shape_cast %324 : vector<8xf32> to vector<8x1xf32>
    %cst_162 = arith.constant 1.000000e+00 : f32
    %326 = vector.broadcast %cst_162 : f32 to vector<8x1xf32>
    %327 = arith.cmpf ogt, %325, %326 : vector<8x1xf32>
    %328 = arith.select %327, %319, %316 : vector<8x1xi1>, vector<8x1xf32>
    %329 = arith.select %327, %314, %319 : vector<8x1xi1>, vector<8x1xf32>
    %c1_i32 = arith.constant 1 : i32
    %330 = arith.addf %328, %329 : vector<8x1xf32>
    %cst_163 = arith.constant 5.000000e-01 : f32
    %331 = vector.broadcast %cst_163 : f32 to vector<8x1xf32>
    %332 = arith.mulf %331, %330 : vector<8x1xf32>
    %333 = vector.broadcast %332 : vector<8x1xf32> to vector<8x16xf32>
    %334 = arith.subf %312, %333 : vector<8x16xf32>
    %cst_164 = arith.constant 0.000000e+00 : f32
    %335 = vector.broadcast %cst_164 : f32 to vector<8x16xf32>
    %336 = arith.maximumf %334, %335 : vector<8x16xf32>
    %cst_165 = arith.constant dense<0.000000e+00> : vector<8xf32>
    %337 = vector.multi_reduction <add>, %336, %cst_165 [1] : vector<8x16xf32> to vector<8xf32>
    %338 = vector.shape_cast %337 : vector<8xf32> to vector<8x1xf32>
    %cst_166 = arith.constant 1.000000e+00 : f32
    %339 = vector.broadcast %cst_166 : f32 to vector<8x1xf32>
    %340 = arith.cmpf ogt, %338, %339 : vector<8x1xf32>
    %341 = arith.select %340, %332, %328 : vector<8x1xi1>, vector<8x1xf32>
    %342 = arith.select %340, %329, %332 : vector<8x1xi1>, vector<8x1xf32>
    %c2_i32 = arith.constant 2 : i32
    %343 = arith.addf %341, %342 : vector<8x1xf32>
    %cst_167 = arith.constant 5.000000e-01 : f32
    %344 = vector.broadcast %cst_167 : f32 to vector<8x1xf32>
    %345 = arith.mulf %344, %343 : vector<8x1xf32>
    %346 = vector.broadcast %345 : vector<8x1xf32> to vector<8x16xf32>
    %347 = arith.subf %312, %346 : vector<8x16xf32>
    %cst_168 = arith.constant 0.000000e+00 : f32
    %348 = vector.broadcast %cst_168 : f32 to vector<8x16xf32>
    %349 = arith.maximumf %347, %348 : vector<8x16xf32>
    %cst_169 = arith.constant dense<0.000000e+00> : vector<8xf32>
    %350 = vector.multi_reduction <add>, %349, %cst_169 [1] : vector<8x16xf32> to vector<8xf32>
    %351 = vector.shape_cast %350 : vector<8xf32> to vector<8x1xf32>
    %cst_170 = arith.constant 1.000000e+00 : f32
    %352 = vector.broadcast %cst_170 : f32 to vector<8x1xf32>
    %353 = arith.cmpf ogt, %351, %352 : vector<8x1xf32>
    %354 = arith.select %353, %345, %341 : vector<8x1xi1>, vector<8x1xf32>
    %355 = arith.select %353, %342, %345 : vector<8x1xi1>, vector<8x1xf32>
    %c3_i32 = arith.constant 3 : i32
    %356 = arith.addf %354, %355 : vector<8x1xf32>
    %cst_171 = arith.constant 5.000000e-01 : f32
    %357 = vector.broadcast %cst_171 : f32 to vector<8x1xf32>
    %358 = arith.mulf %357, %356 : vector<8x1xf32>
    %359 = vector.broadcast %358 : vector<8x1xf32> to vector<8x16xf32>
    %360 = arith.subf %312, %359 : vector<8x16xf32>
    %cst_172 = arith.constant 0.000000e+00 : f32
    %361 = vector.broadcast %cst_172 : f32 to vector<8x16xf32>
    %362 = arith.maximumf %360, %361 : vector<8x16xf32>
    %cst_173 = arith.constant dense<0.000000e+00> : vector<8xf32>
    %363 = vector.multi_reduction <add>, %362, %cst_173 [1] : vector<8x16xf32> to vector<8xf32>
    %364 = vector.shape_cast %363 : vector<8xf32> to vector<8x1xf32>
    %cst_174 = arith.constant 1.000000e+00 : f32
    %365 = vector.broadcast %cst_174 : f32 to vector<8x1xf32>
    %366 = arith.cmpf ogt, %364, %365 : vector<8x1xf32>
    %367 = arith.select %366, %358, %354 : vector<8x1xi1>, vector<8x1xf32>
    %368 = arith.select %366, %355, %358 : vector<8x1xi1>, vector<8x1xf32>
    %c4_i32 = arith.constant 4 : i32
    %369 = arith.addf %367, %368 : vector<8x1xf32>
    %cst_175 = arith.constant 5.000000e-01 : f32
    %370 = vector.broadcast %cst_175 : f32 to vector<8x1xf32>
    %371 = arith.mulf %370, %369 : vector<8x1xf32>
    %372 = vector.broadcast %371 : vector<8x1xf32> to vector<8x16xf32>
    %373 = arith.subf %312, %372 : vector<8x16xf32>
    %cst_176 = arith.constant 0.000000e+00 : f32
    %374 = vector.broadcast %cst_176 : f32 to vector<8x16xf32>
    %375 = arith.maximumf %373, %374 : vector<8x16xf32>
    %cst_177 = arith.constant dense<0.000000e+00> : vector<8xf32>
    %376 = vector.multi_reduction <add>, %375, %cst_177 [1] : vector<8x16xf32> to vector<8xf32>
    %377 = vector.shape_cast %376 : vector<8xf32> to vector<8x1xf32>
    %cst_178 = arith.constant 1.000000e+00 : f32
    %378 = vector.broadcast %cst_178 : f32 to vector<8x1xf32>
    %379 = arith.cmpf ogt, %377, %378 : vector<8x1xf32>
    %380 = arith.select %379, %371, %367 : vector<8x1xi1>, vector<8x1xf32>
    %381 = arith.select %379, %368, %371 : vector<8x1xi1>, vector<8x1xf32>
    %c5_i32 = arith.constant 5 : i32
    %382 = arith.addf %380, %381 : vector<8x1xf32>
    %cst_179 = arith.constant 5.000000e-01 : f32
    %383 = vector.broadcast %cst_179 : f32 to vector<8x1xf32>
    %384 = arith.mulf %383, %382 : vector<8x1xf32>
    %385 = vector.broadcast %384 : vector<8x1xf32> to vector<8x16xf32>
    %386 = arith.subf %312, %385 : vector<8x16xf32>
    %cst_180 = arith.constant 0.000000e+00 : f32
    %387 = vector.broadcast %cst_180 : f32 to vector<8x16xf32>
    %388 = arith.maximumf %386, %387 : vector<8x16xf32>
    %cst_181 = arith.constant dense<0.000000e+00> : vector<8xf32>
    %389 = vector.multi_reduction <add>, %388, %cst_181 [1] : vector<8x16xf32> to vector<8xf32>
    %390 = vector.shape_cast %389 : vector<8xf32> to vector<8x1xf32>
    %cst_182 = arith.constant 1.000000e+00 : f32
    %391 = vector.broadcast %cst_182 : f32 to vector<8x1xf32>
    %392 = arith.cmpf ogt, %390, %391 : vector<8x1xf32>
    %393 = arith.select %392, %384, %380 : vector<8x1xi1>, vector<8x1xf32>
    %394 = arith.select %392, %381, %384 : vector<8x1xi1>, vector<8x1xf32>
    %c6_i32 = arith.constant 6 : i32
    %395 = arith.addf %393, %394 : vector<8x1xf32>
    %cst_183 = arith.constant 5.000000e-01 : f32
    %396 = vector.broadcast %cst_183 : f32 to vector<8x1xf32>
    %397 = arith.mulf %396, %395 : vector<8x1xf32>
    %398 = vector.broadcast %397 : vector<8x1xf32> to vector<8x16xf32>
    %399 = arith.subf %312, %398 : vector<8x16xf32>
    %cst_184 = arith.constant 0.000000e+00 : f32
    %400 = vector.broadcast %cst_184 : f32 to vector<8x16xf32>
    %401 = arith.maximumf %399, %400 : vector<8x16xf32>
    %cst_185 = arith.constant dense<0.000000e+00> : vector<8xf32>
    %402 = vector.multi_reduction <add>, %401, %cst_185 [1] : vector<8x16xf32> to vector<8xf32>
    %403 = vector.shape_cast %402 : vector<8xf32> to vector<8x1xf32>
    %cst_186 = arith.constant 1.000000e+00 : f32
    %404 = vector.broadcast %cst_186 : f32 to vector<8x1xf32>
    %405 = arith.cmpf ogt, %403, %404 : vector<8x1xf32>
    %406 = arith.select %405, %397, %393 : vector<8x1xi1>, vector<8x1xf32>
    %407 = arith.select %405, %394, %397 : vector<8x1xi1>, vector<8x1xf32>
    %c7_i32 = arith.constant 7 : i32
    %408 = arith.addf %406, %407 : vector<8x1xf32>
    %cst_187 = arith.constant 5.000000e-01 : f32
    %409 = vector.broadcast %cst_187 : f32 to vector<8x1xf32>
    %410 = arith.mulf %409, %408 : vector<8x1xf32>
    %411 = vector.broadcast %410 : vector<8x1xf32> to vector<8x16xf32>
    %412 = arith.subf %312, %411 : vector<8x16xf32>
    %cst_188 = arith.constant 0.000000e+00 : f32
    %413 = vector.broadcast %cst_188 : f32 to vector<8x16xf32>
    %414 = arith.maximumf %412, %413 : vector<8x16xf32>
    %cst_189 = arith.constant dense<0.000000e+00> : vector<8xf32>
    %415 = vector.multi_reduction <add>, %414, %cst_189 [1] : vector<8x16xf32> to vector<8xf32>
    %416 = vector.shape_cast %415 : vector<8xf32> to vector<8x1xf32>
    %cst_190 = arith.constant 1.000000e+00 : f32
    %417 = vector.broadcast %cst_190 : f32 to vector<8x1xf32>
    %418 = arith.cmpf ogt, %416, %417 : vector<8x1xf32>
    %419 = arith.select %418, %410, %406 : vector<8x1xi1>, vector<8x1xf32>
    %420 = arith.select %418, %407, %410 : vector<8x1xi1>, vector<8x1xf32>
    %c8_i32 = arith.constant 8 : i32
    %421 = arith.addf %419, %420 : vector<8x1xf32>
    %cst_191 = arith.constant 5.000000e-01 : f32
    %422 = vector.broadcast %cst_191 : f32 to vector<8x1xf32>
    %423 = arith.mulf %422, %421 : vector<8x1xf32>
    %424 = vector.broadcast %423 : vector<8x1xf32> to vector<8x16xf32>
    %425 = arith.subf %312, %424 : vector<8x16xf32>
    %cst_192 = arith.constant 0.000000e+00 : f32
    %426 = vector.broadcast %cst_192 : f32 to vector<8x16xf32>
    %427 = arith.maximumf %425, %426 : vector<8x16xf32>
    %cst_193 = arith.constant dense<0.000000e+00> : vector<8xf32>
    %428 = vector.multi_reduction <add>, %427, %cst_193 [1] : vector<8x16xf32> to vector<8xf32>
    %429 = vector.shape_cast %428 : vector<8xf32> to vector<8x1xf32>
    %cst_194 = arith.constant 1.000000e+00 : f32
    %430 = vector.broadcast %cst_194 : f32 to vector<8x1xf32>
    %431 = arith.cmpf ogt, %429, %430 : vector<8x1xf32>
    %432 = arith.select %431, %423, %419 : vector<8x1xi1>, vector<8x1xf32>
    %433 = arith.select %431, %420, %423 : vector<8x1xi1>, vector<8x1xf32>
    %c9_i32 = arith.constant 9 : i32
    %434 = arith.addf %432, %433 : vector<8x1xf32>
    %cst_195 = arith.constant 5.000000e-01 : f32
    %435 = vector.broadcast %cst_195 : f32 to vector<8x1xf32>
    %436 = arith.mulf %435, %434 : vector<8x1xf32>
    %437 = vector.broadcast %436 : vector<8x1xf32> to vector<8x16xf32>
    %438 = arith.subf %312, %437 : vector<8x16xf32>
    %cst_196 = arith.constant 0.000000e+00 : f32
    %439 = vector.broadcast %cst_196 : f32 to vector<8x16xf32>
    %440 = arith.maximumf %438, %439 : vector<8x16xf32>
    %cst_197 = arith.constant dense<0.000000e+00> : vector<8xf32>
    %441 = vector.multi_reduction <add>, %440, %cst_197 [1] : vector<8x16xf32> to vector<8xf32>
    %442 = vector.shape_cast %441 : vector<8xf32> to vector<8x1xf32>
    %cst_198 = arith.constant 1.000000e+00 : f32
    %443 = vector.broadcast %cst_198 : f32 to vector<8x1xf32>
    %444 = arith.cmpf ogt, %442, %443 : vector<8x1xf32>
    %445 = arith.select %444, %436, %432 : vector<8x1xi1>, vector<8x1xf32>
    %446 = arith.select %444, %433, %436 : vector<8x1xi1>, vector<8x1xf32>
    %c10_i32 = arith.constant 10 : i32
    %447 = arith.addf %445, %446 : vector<8x1xf32>
    %cst_199 = arith.constant 5.000000e-01 : f32
    %448 = vector.broadcast %cst_199 : f32 to vector<8x1xf32>
    %449 = arith.mulf %448, %447 : vector<8x1xf32>
    %450 = vector.broadcast %449 : vector<8x1xf32> to vector<8x16xf32>
    %451 = arith.subf %312, %450 : vector<8x16xf32>
    %cst_200 = arith.constant 0.000000e+00 : f32
    %452 = vector.broadcast %cst_200 : f32 to vector<8x16xf32>
    %453 = arith.maximumf %451, %452 : vector<8x16xf32>
    %cst_201 = arith.constant dense<0.000000e+00> : vector<8xf32>
    %454 = vector.multi_reduction <add>, %453, %cst_201 [1] : vector<8x16xf32> to vector<8xf32>
    %455 = vector.shape_cast %454 : vector<8xf32> to vector<8x1xf32>
    %cst_202 = arith.constant 1.000000e+00 : f32
    %456 = vector.broadcast %cst_202 : f32 to vector<8x1xf32>
    %457 = arith.cmpf ogt, %455, %456 : vector<8x1xf32>
    %458 = arith.select %457, %449, %445 : vector<8x1xi1>, vector<8x1xf32>
    %459 = arith.select %457, %446, %449 : vector<8x1xi1>, vector<8x1xf32>
    %c11_i32 = arith.constant 11 : i32
    %460 = arith.addf %458, %459 : vector<8x1xf32>
    %cst_203 = arith.constant 5.000000e-01 : f32
    %461 = vector.broadcast %cst_203 : f32 to vector<8x1xf32>
    %462 = arith.mulf %461, %460 : vector<8x1xf32>
    %463 = vector.broadcast %462 : vector<8x1xf32> to vector<8x16xf32>
    %464 = arith.subf %312, %463 : vector<8x16xf32>
    %cst_204 = arith.constant 0.000000e+00 : f32
    %465 = vector.broadcast %cst_204 : f32 to vector<8x16xf32>
    %466 = arith.maximumf %464, %465 : vector<8x16xf32>
    %cst_205 = arith.constant dense<0.000000e+00> : vector<8xf32>
    %467 = vector.multi_reduction <add>, %466, %cst_205 [1] : vector<8x16xf32> to vector<8xf32>
    %468 = vector.shape_cast %467 : vector<8xf32> to vector<8x1xf32>
    %cst_206 = arith.constant 1.000000e+00 : f32
    %469 = vector.broadcast %cst_206 : f32 to vector<8x1xf32>
    %470 = arith.cmpf ogt, %468, %469 : vector<8x1xf32>
    %471 = arith.select %470, %462, %458 : vector<8x1xi1>, vector<8x1xf32>
    %472 = arith.select %470, %459, %462 : vector<8x1xi1>, vector<8x1xf32>
    %c12_i32 = arith.constant 12 : i32
    %473 = arith.addf %471, %472 : vector<8x1xf32>
    %cst_207 = arith.constant 5.000000e-01 : f32
    %474 = vector.broadcast %cst_207 : f32 to vector<8x1xf32>
    %475 = arith.mulf %474, %473 : vector<8x1xf32>
    %476 = vector.broadcast %475 : vector<8x1xf32> to vector<8x16xf32>
    %477 = arith.subf %312, %476 : vector<8x16xf32>
    %cst_208 = arith.constant 0.000000e+00 : f32
    %478 = vector.broadcast %cst_208 : f32 to vector<8x16xf32>
    %479 = arith.maximumf %477, %478 : vector<8x16xf32>
    %cst_209 = arith.constant dense<0.000000e+00> : vector<8xf32>
    %480 = vector.multi_reduction <add>, %479, %cst_209 [1] : vector<8x16xf32> to vector<8xf32>
    %481 = vector.shape_cast %480 : vector<8xf32> to vector<8x1xf32>
    %cst_210 = arith.constant 1.000000e+00 : f32
    %482 = vector.broadcast %cst_210 : f32 to vector<8x1xf32>
    %483 = arith.cmpf ogt, %481, %482 : vector<8x1xf32>
    %484 = arith.select %483, %475, %471 : vector<8x1xi1>, vector<8x1xf32>
    %485 = arith.select %483, %472, %475 : vector<8x1xi1>, vector<8x1xf32>
    %c13_i32 = arith.constant 13 : i32
    %486 = arith.addf %484, %485 : vector<8x1xf32>
    %cst_211 = arith.constant 5.000000e-01 : f32
    %487 = vector.broadcast %cst_211 : f32 to vector<8x1xf32>
    %488 = arith.mulf %487, %486 : vector<8x1xf32>
    %489 = vector.broadcast %488 : vector<8x1xf32> to vector<8x16xf32>
    %490 = arith.subf %312, %489 : vector<8x16xf32>
    %cst_212 = arith.constant 0.000000e+00 : f32
    %491 = vector.broadcast %cst_212 : f32 to vector<8x16xf32>
    %492 = arith.maximumf %490, %491 : vector<8x16xf32>
    %cst_213 = arith.constant dense<0.000000e+00> : vector<8xf32>
    %493 = vector.multi_reduction <add>, %492, %cst_213 [1] : vector<8x16xf32> to vector<8xf32>
    %494 = vector.shape_cast %493 : vector<8xf32> to vector<8x1xf32>
    %cst_214 = arith.constant 1.000000e+00 : f32
    %495 = vector.broadcast %cst_214 : f32 to vector<8x1xf32>
    %496 = arith.cmpf ogt, %494, %495 : vector<8x1xf32>
    %497 = arith.select %496, %488, %484 : vector<8x1xi1>, vector<8x1xf32>
    %498 = arith.select %496, %485, %488 : vector<8x1xi1>, vector<8x1xf32>
    %c14_i32 = arith.constant 14 : i32
    %499 = arith.addf %497, %498 : vector<8x1xf32>
    %cst_215 = arith.constant 5.000000e-01 : f32
    %500 = vector.broadcast %cst_215 : f32 to vector<8x1xf32>
    %501 = arith.mulf %500, %499 : vector<8x1xf32>
    %502 = vector.broadcast %501 : vector<8x1xf32> to vector<8x16xf32>
    %503 = arith.subf %312, %502 : vector<8x16xf32>
    %cst_216 = arith.constant 0.000000e+00 : f32
    %504 = vector.broadcast %cst_216 : f32 to vector<8x16xf32>
    %505 = arith.maximumf %503, %504 : vector<8x16xf32>
    %cst_217 = arith.constant dense<0.000000e+00> : vector<8xf32>
    %506 = vector.multi_reduction <add>, %505, %cst_217 [1] : vector<8x16xf32> to vector<8xf32>
    %507 = vector.shape_cast %506 : vector<8xf32> to vector<8x1xf32>
    %cst_218 = arith.constant 1.000000e+00 : f32
    %508 = vector.broadcast %cst_218 : f32 to vector<8x1xf32>
    %509 = arith.cmpf ogt, %507, %508 : vector<8x1xf32>
    %510 = arith.select %509, %501, %497 : vector<8x1xi1>, vector<8x1xf32>
    %511 = arith.select %509, %498, %501 : vector<8x1xi1>, vector<8x1xf32>
    %c15_i32 = arith.constant 15 : i32
    %512 = arith.addf %510, %511 : vector<8x1xf32>
    %cst_219 = arith.constant 5.000000e-01 : f32
    %513 = vector.broadcast %cst_219 : f32 to vector<8x1xf32>
    %514 = arith.mulf %513, %512 : vector<8x1xf32>
    %515 = vector.broadcast %514 : vector<8x1xf32> to vector<8x16xf32>
    %516 = arith.subf %312, %515 : vector<8x16xf32>
    %cst_220 = arith.constant 0.000000e+00 : f32
    %517 = vector.broadcast %cst_220 : f32 to vector<8x16xf32>
    %518 = arith.maximumf %516, %517 : vector<8x16xf32>
    %cst_221 = arith.constant dense<0.000000e+00> : vector<8xf32>
    %519 = vector.multi_reduction <add>, %518, %cst_221 [1] : vector<8x16xf32> to vector<8xf32>
    %520 = vector.shape_cast %519 : vector<8xf32> to vector<8x1xf32>
    %cst_222 = arith.constant 1.000000e+00 : f32
    %521 = vector.broadcast %cst_222 : f32 to vector<8x1xf32>
    %522 = arith.cmpf ogt, %520, %521 : vector<8x1xf32>
    %523 = arith.select %522, %514, %510 : vector<8x1xi1>, vector<8x1xf32>
    %524 = arith.select %522, %511, %514 : vector<8x1xi1>, vector<8x1xf32>
    %c16_i32 = arith.constant 16 : i32
    %525 = arith.addf %523, %524 : vector<8x1xf32>
    %cst_223 = arith.constant 5.000000e-01 : f32
    %526 = vector.broadcast %cst_223 : f32 to vector<8x1xf32>
    %527 = arith.mulf %526, %525 : vector<8x1xf32>
    %528 = vector.broadcast %527 : vector<8x1xf32> to vector<8x16xf32>
    %529 = arith.subf %312, %528 : vector<8x16xf32>
    %cst_224 = arith.constant 0.000000e+00 : f32
    %530 = vector.broadcast %cst_224 : f32 to vector<8x16xf32>
    %531 = arith.maximumf %529, %530 : vector<8x16xf32>
    %cst_225 = arith.constant dense<0.000000e+00> : vector<8xf32>
    %532 = vector.multi_reduction <add>, %531, %cst_225 [1] : vector<8x16xf32> to vector<8xf32>
    %533 = vector.shape_cast %532 : vector<8xf32> to vector<8x1xf32>
    %cst_226 = arith.constant 1.000000e+00 : f32
    %534 = vector.broadcast %cst_226 : f32 to vector<8x1xf32>
    %535 = arith.cmpf ogt, %533, %534 : vector<8x1xf32>
    %536 = arith.select %535, %527, %523 : vector<8x1xi1>, vector<8x1xf32>
    %537 = arith.select %535, %524, %527 : vector<8x1xi1>, vector<8x1xf32>
    %c17_i32 = arith.constant 17 : i32
    %538 = arith.addf %536, %537 : vector<8x1xf32>
    %cst_227 = arith.constant 5.000000e-01 : f32
    %539 = vector.broadcast %cst_227 : f32 to vector<8x1xf32>
    %540 = arith.mulf %539, %538 : vector<8x1xf32>
    %541 = vector.broadcast %540 : vector<8x1xf32> to vector<8x16xf32>
    %542 = arith.subf %312, %541 : vector<8x16xf32>
    %cst_228 = arith.constant 0.000000e+00 : f32
    %543 = vector.broadcast %cst_228 : f32 to vector<8x16xf32>
    %544 = arith.maximumf %542, %543 : vector<8x16xf32>
    %cst_229 = arith.constant dense<0.000000e+00> : vector<8xf32>
    %545 = vector.multi_reduction <add>, %544, %cst_229 [1] : vector<8x16xf32> to vector<8xf32>
    %546 = vector.shape_cast %545 : vector<8xf32> to vector<8x1xf32>
    %cst_230 = arith.constant 1.000000e+00 : f32
    %547 = vector.broadcast %cst_230 : f32 to vector<8x1xf32>
    %548 = arith.cmpf ogt, %546, %547 : vector<8x1xf32>
    %549 = arith.select %548, %540, %536 : vector<8x1xi1>, vector<8x1xf32>
    %550 = arith.select %548, %537, %540 : vector<8x1xi1>, vector<8x1xf32>
    %c18_i32 = arith.constant 18 : i32
    %551 = arith.addf %549, %550 : vector<8x1xf32>
    %cst_231 = arith.constant 5.000000e-01 : f32
    %552 = vector.broadcast %cst_231 : f32 to vector<8x1xf32>
    %553 = arith.mulf %552, %551 : vector<8x1xf32>
    %554 = vector.broadcast %553 : vector<8x1xf32> to vector<8x16xf32>
    %555 = arith.subf %312, %554 : vector<8x16xf32>
    %cst_232 = arith.constant 0.000000e+00 : f32
    %556 = vector.broadcast %cst_232 : f32 to vector<8x16xf32>
    %557 = arith.maximumf %555, %556 : vector<8x16xf32>
    %cst_233 = arith.constant dense<0.000000e+00> : vector<8xf32>
    %558 = vector.multi_reduction <add>, %557, %cst_233 [1] : vector<8x16xf32> to vector<8xf32>
    %559 = vector.shape_cast %558 : vector<8xf32> to vector<8x1xf32>
    %cst_234 = arith.constant 1.000000e+00 : f32
    %560 = vector.broadcast %cst_234 : f32 to vector<8x1xf32>
    %561 = arith.cmpf ogt, %559, %560 : vector<8x1xf32>
    %562 = arith.select %561, %553, %549 : vector<8x1xi1>, vector<8x1xf32>
    %563 = arith.select %561, %550, %553 : vector<8x1xi1>, vector<8x1xf32>
    %c19_i32 = arith.constant 19 : i32
    %564 = arith.addf %562, %563 : vector<8x1xf32>
    %cst_235 = arith.constant 5.000000e-01 : f32
    %565 = vector.broadcast %cst_235 : f32 to vector<8x1xf32>
    %566 = arith.mulf %565, %564 : vector<8x1xf32>
    %567 = vector.broadcast %566 : vector<8x1xf32> to vector<8x16xf32>
    %568 = arith.subf %312, %567 : vector<8x16xf32>
    %cst_236 = arith.constant 0.000000e+00 : f32
    %569 = vector.broadcast %cst_236 : f32 to vector<8x16xf32>
    %570 = arith.maximumf %568, %569 : vector<8x16xf32>
    %cst_237 = arith.constant dense<0.000000e+00> : vector<8xf32>
    %571 = vector.multi_reduction <add>, %570, %cst_237 [1] : vector<8x16xf32> to vector<8xf32>
    %572 = vector.shape_cast %571 : vector<8xf32> to vector<8x1xf32>
    %cst_238 = arith.constant 1.000000e+00 : f32
    %573 = vector.broadcast %cst_238 : f32 to vector<8x1xf32>
    %574 = arith.cmpf ogt, %572, %573 : vector<8x1xf32>
    %575 = arith.select %574, %566, %562 : vector<8x1xi1>, vector<8x1xf32>
    %576 = arith.select %574, %563, %566 : vector<8x1xi1>, vector<8x1xf32>
    %c20_i32 = arith.constant 20 : i32
    %577 = arith.addf %575, %576 : vector<8x1xf32>
    %cst_239 = arith.constant 5.000000e-01 : f32
    %578 = vector.broadcast %cst_239 : f32 to vector<8x1xf32>
    %579 = arith.mulf %578, %577 : vector<8x1xf32>
    %580 = vector.broadcast %579 : vector<8x1xf32> to vector<8x16xf32>
    %581 = arith.subf %312, %580 : vector<8x16xf32>
    %cst_240 = arith.constant 0.000000e+00 : f32
    %582 = vector.broadcast %cst_240 : f32 to vector<8x16xf32>
    %583 = arith.maximumf %581, %582 : vector<8x16xf32>
    %cst_241 = arith.constant dense<0.000000e+00> : vector<8xf32>
    %584 = vector.multi_reduction <add>, %583, %cst_241 [1] : vector<8x16xf32> to vector<8xf32>
    %585 = vector.shape_cast %584 : vector<8xf32> to vector<8x1xf32>
    %cst_242 = arith.constant 1.000000e+00 : f32
    %586 = vector.broadcast %cst_242 : f32 to vector<8x1xf32>
    %587 = arith.cmpf ogt, %585, %586 : vector<8x1xf32>
    %588 = arith.select %587, %579, %575 : vector<8x1xi1>, vector<8x1xf32>
    %589 = arith.select %587, %576, %579 : vector<8x1xi1>, vector<8x1xf32>
    %c21_i32 = arith.constant 21 : i32
    %590 = arith.addf %588, %589 : vector<8x1xf32>
    %cst_243 = arith.constant 5.000000e-01 : f32
    %591 = vector.broadcast %cst_243 : f32 to vector<8x1xf32>
    %592 = arith.mulf %591, %590 : vector<8x1xf32>
    %593 = vector.broadcast %592 : vector<8x1xf32> to vector<8x16xf32>
    %594 = arith.subf %312, %593 : vector<8x16xf32>
    %cst_244 = arith.constant 0.000000e+00 : f32
    %595 = vector.broadcast %cst_244 : f32 to vector<8x16xf32>
    %596 = arith.maximumf %594, %595 : vector<8x16xf32>
    %cst_245 = arith.constant dense<0.000000e+00> : vector<8xf32>
    %597 = vector.multi_reduction <add>, %596, %cst_245 [1] : vector<8x16xf32> to vector<8xf32>
    %598 = vector.shape_cast %597 : vector<8xf32> to vector<8x1xf32>
    %cst_246 = arith.constant 1.000000e+00 : f32
    %599 = vector.broadcast %cst_246 : f32 to vector<8x1xf32>
    %600 = arith.cmpf ogt, %598, %599 : vector<8x1xf32>
    %601 = arith.select %600, %592, %588 : vector<8x1xi1>, vector<8x1xf32>
    %602 = arith.select %600, %589, %592 : vector<8x1xi1>, vector<8x1xf32>
    %c22_i32 = arith.constant 22 : i32
    %603 = arith.addf %601, %602 : vector<8x1xf32>
    %cst_247 = arith.constant 5.000000e-01 : f32
    %604 = vector.broadcast %cst_247 : f32 to vector<8x1xf32>
    %605 = arith.mulf %604, %603 : vector<8x1xf32>
    %606 = vector.broadcast %605 : vector<8x1xf32> to vector<8x16xf32>
    %607 = arith.subf %312, %606 : vector<8x16xf32>
    %cst_248 = arith.constant 0.000000e+00 : f32
    %608 = vector.broadcast %cst_248 : f32 to vector<8x16xf32>
    %609 = arith.maximumf %607, %608 : vector<8x16xf32>
    %cst_249 = arith.constant dense<0.000000e+00> : vector<8xf32>
    %610 = vector.multi_reduction <add>, %609, %cst_249 [1] : vector<8x16xf32> to vector<8xf32>
    %611 = vector.shape_cast %610 : vector<8xf32> to vector<8x1xf32>
    %cst_250 = arith.constant 1.000000e+00 : f32
    %612 = vector.broadcast %cst_250 : f32 to vector<8x1xf32>
    %613 = arith.cmpf ogt, %611, %612 : vector<8x1xf32>
    %614 = arith.select %613, %605, %601 : vector<8x1xi1>, vector<8x1xf32>
    %615 = arith.select %613, %602, %605 : vector<8x1xi1>, vector<8x1xf32>
    %c23_i32 = arith.constant 23 : i32
    %616 = arith.addf %614, %615 : vector<8x1xf32>
    %cst_251 = arith.constant 5.000000e-01 : f32
    %617 = vector.broadcast %cst_251 : f32 to vector<8x1xf32>
    %618 = arith.mulf %617, %616 : vector<8x1xf32>
    %619 = vector.broadcast %618 : vector<8x1xf32> to vector<8x16xf32>
    %620 = arith.subf %312, %619 : vector<8x16xf32>
    %cst_252 = arith.constant 0.000000e+00 : f32
    %621 = vector.broadcast %cst_252 : f32 to vector<8x16xf32>
    %622 = arith.maximumf %620, %621 : vector<8x16xf32>
    %cst_253 = arith.constant dense<0.000000e+00> : vector<8xf32>
    %623 = vector.multi_reduction <add>, %622, %cst_253 [1] : vector<8x16xf32> to vector<8xf32>
    %624 = vector.shape_cast %623 : vector<8xf32> to vector<8x1xf32>
    %cst_254 = arith.constant 1.000000e+00 : f32
    %625 = vector.broadcast %cst_254 : f32 to vector<8x1xf32>
    %626 = arith.cmpf ogt, %624, %625 : vector<8x1xf32>
    %627 = arith.select %626, %618, %614 : vector<8x1xi1>, vector<8x1xf32>
    %628 = arith.select %626, %615, %618 : vector<8x1xi1>, vector<8x1xf32>
    %c24_i32 = arith.constant 24 : i32
    %629 = arith.addf %627, %628 : vector<8x1xf32>
    %cst_255 = arith.constant 5.000000e-01 : f32
    %630 = vector.broadcast %cst_255 : f32 to vector<8x1xf32>
    %631 = arith.mulf %630, %629 : vector<8x1xf32>
    %632 = vector.broadcast %631 : vector<8x1xf32> to vector<8x16xf32>
    %633 = arith.subf %312, %632 : vector<8x16xf32>
    %cst_256 = arith.constant 0.000000e+00 : f32
    %634 = vector.broadcast %cst_256 : f32 to vector<8x16xf32>
    %635 = arith.maximumf %633, %634 : vector<8x16xf32>
    %cst_257 = arith.constant dense<0.000000e+00> : vector<8xf32>
    %636 = vector.multi_reduction <add>, %635, %cst_257 [1] : vector<8x16xf32> to vector<8xf32>
    %637 = vector.shape_cast %636 : vector<8xf32> to vector<8x1xf32>
    %cst_258 = arith.constant 1.000000e+00 : f32
    %638 = vector.broadcast %cst_258 : f32 to vector<8x1xf32>
    %639 = arith.cmpf ogt, %637, %638 : vector<8x1xf32>
    %640 = arith.select %639, %631, %627 : vector<8x1xi1>, vector<8x1xf32>
    %641 = arith.select %639, %628, %631 : vector<8x1xi1>, vector<8x1xf32>
    %c25_i32 = arith.constant 25 : i32
    %642 = arith.addf %640, %641 : vector<8x1xf32>
    %cst_259 = arith.constant 5.000000e-01 : f32
    %643 = vector.broadcast %cst_259 : f32 to vector<8x1xf32>
    %644 = arith.mulf %643, %642 : vector<8x1xf32>
    %645 = vector.broadcast %644 : vector<8x1xf32> to vector<8x16xf32>
    %646 = arith.subf %312, %645 : vector<8x16xf32>
    %cst_260 = arith.constant 0.000000e+00 : f32
    %647 = vector.broadcast %cst_260 : f32 to vector<8x16xf32>
    %648 = arith.maximumf %646, %647 : vector<8x16xf32>
    %cst_261 = arith.constant dense<0.000000e+00> : vector<8xf32>
    %649 = vector.multi_reduction <add>, %648, %cst_261 [1] : vector<8x16xf32> to vector<8xf32>
    %650 = vector.shape_cast %649 : vector<8xf32> to vector<8x1xf32>
    %cst_262 = arith.constant 1.000000e+00 : f32
    %651 = vector.broadcast %cst_262 : f32 to vector<8x1xf32>
    %652 = arith.cmpf ogt, %650, %651 : vector<8x1xf32>
    %653 = arith.select %652, %644, %640 : vector<8x1xi1>, vector<8x1xf32>
    %654 = arith.select %652, %641, %644 : vector<8x1xi1>, vector<8x1xf32>
    %c26_i32 = arith.constant 26 : i32
    %655 = arith.addf %653, %654 : vector<8x1xf32>
    %cst_263 = arith.constant 5.000000e-01 : f32
    %656 = vector.broadcast %cst_263 : f32 to vector<8x1xf32>
    %657 = arith.mulf %656, %655 : vector<8x1xf32>
    %658 = vector.broadcast %657 : vector<8x1xf32> to vector<8x16xf32>
    %659 = arith.subf %312, %658 : vector<8x16xf32>
    %cst_264 = arith.constant 0.000000e+00 : f32
    %660 = vector.broadcast %cst_264 : f32 to vector<8x16xf32>
    %661 = arith.maximumf %659, %660 : vector<8x16xf32>
    %cst_265 = arith.constant dense<0.000000e+00> : vector<8xf32>
    %662 = vector.multi_reduction <add>, %661, %cst_265 [1] : vector<8x16xf32> to vector<8xf32>
    %663 = vector.shape_cast %662 : vector<8xf32> to vector<8x1xf32>
    %cst_266 = arith.constant 1.000000e+00 : f32
    %664 = vector.broadcast %cst_266 : f32 to vector<8x1xf32>
    %665 = arith.cmpf ogt, %663, %664 : vector<8x1xf32>
    %666 = arith.select %665, %657, %653 : vector<8x1xi1>, vector<8x1xf32>
    %667 = arith.select %665, %654, %657 : vector<8x1xi1>, vector<8x1xf32>
    %c27_i32 = arith.constant 27 : i32
    %668 = arith.addf %666, %667 : vector<8x1xf32>
    %cst_267 = arith.constant 5.000000e-01 : f32
    %669 = vector.broadcast %cst_267 : f32 to vector<8x1xf32>
    %670 = arith.mulf %669, %668 : vector<8x1xf32>
    %671 = vector.broadcast %670 : vector<8x1xf32> to vector<8x16xf32>
    %672 = arith.subf %312, %671 : vector<8x16xf32>
    %cst_268 = arith.constant 0.000000e+00 : f32
    %673 = vector.broadcast %cst_268 : f32 to vector<8x16xf32>
    %674 = arith.maximumf %672, %673 : vector<8x16xf32>
    %cst_269 = arith.constant dense<0.000000e+00> : vector<8xf32>
    %675 = vector.multi_reduction <add>, %674, %cst_269 [1] : vector<8x16xf32> to vector<8xf32>
    %676 = vector.shape_cast %675 : vector<8xf32> to vector<8x1xf32>
    %cst_270 = arith.constant 1.000000e+00 : f32
    %677 = vector.broadcast %cst_270 : f32 to vector<8x1xf32>
    %678 = arith.cmpf ogt, %676, %677 : vector<8x1xf32>
    %679 = arith.select %678, %670, %666 : vector<8x1xi1>, vector<8x1xf32>
    %680 = arith.select %678, %667, %670 : vector<8x1xi1>, vector<8x1xf32>
    %c28_i32 = arith.constant 28 : i32
    %681 = arith.addf %679, %680 : vector<8x1xf32>
    %cst_271 = arith.constant 5.000000e-01 : f32
    %682 = vector.broadcast %cst_271 : f32 to vector<8x1xf32>
    %683 = arith.mulf %682, %681 : vector<8x1xf32>
    %684 = vector.broadcast %683 : vector<8x1xf32> to vector<8x16xf32>
    %685 = arith.subf %312, %684 : vector<8x16xf32>
    %cst_272 = arith.constant 0.000000e+00 : f32
    %686 = vector.broadcast %cst_272 : f32 to vector<8x16xf32>
    %687 = arith.maximumf %685, %686 : vector<8x16xf32>
    %cst_273 = arith.constant dense<0.000000e+00> : vector<8xf32>
    %688 = vector.multi_reduction <add>, %687, %cst_273 [1] : vector<8x16xf32> to vector<8xf32>
    %689 = vector.shape_cast %688 : vector<8xf32> to vector<8x1xf32>
    %cst_274 = arith.constant 1.000000e+00 : f32
    %690 = vector.broadcast %cst_274 : f32 to vector<8x1xf32>
    %691 = arith.cmpf ogt, %689, %690 : vector<8x1xf32>
    %692 = arith.select %691, %683, %679 : vector<8x1xi1>, vector<8x1xf32>
    %693 = arith.select %691, %680, %683 : vector<8x1xi1>, vector<8x1xf32>
    %c29_i32 = arith.constant 29 : i32
    %694 = arith.addf %692, %693 : vector<8x1xf32>
    %cst_275 = arith.constant 5.000000e-01 : f32
    %695 = vector.broadcast %cst_275 : f32 to vector<8x1xf32>
    %696 = arith.mulf %695, %694 : vector<8x1xf32>
    %697 = vector.broadcast %696 : vector<8x1xf32> to vector<8x16xf32>
    %698 = arith.subf %312, %697 : vector<8x16xf32>
    %cst_276 = arith.constant 0.000000e+00 : f32
    %699 = vector.broadcast %cst_276 : f32 to vector<8x16xf32>
    %700 = arith.maximumf %698, %699 : vector<8x16xf32>
    %cst_277 = arith.constant dense<0.000000e+00> : vector<8xf32>
    %701 = vector.multi_reduction <add>, %700, %cst_277 [1] : vector<8x16xf32> to vector<8xf32>
    %702 = vector.shape_cast %701 : vector<8xf32> to vector<8x1xf32>
    %cst_278 = arith.constant 1.000000e+00 : f32
    %703 = vector.broadcast %cst_278 : f32 to vector<8x1xf32>
    %704 = arith.cmpf ogt, %702, %703 : vector<8x1xf32>
    %705 = arith.select %704, %696, %692 : vector<8x1xi1>, vector<8x1xf32>
    %706 = arith.select %704, %693, %696 : vector<8x1xi1>, vector<8x1xf32>
    %707 = arith.addf %705, %706 : vector<8x1xf32>
    %cst_279 = arith.constant 5.000000e-01 : f32
    %708 = vector.broadcast %cst_279 : f32 to vector<8x1xf32>
    %709 = arith.mulf %708, %707 : vector<8x1xf32>
    %710 = vector.broadcast %709 : vector<8x1xf32> to vector<8x16xf32>
    %711 = arith.subf %312, %710 : vector<8x16xf32>
    %cst_280 = arith.constant 0.000000e+00 : f32
    %712 = vector.broadcast %cst_280 : f32 to vector<8x16xf32>
    %713 = arith.maximumf %711, %712 : vector<8x16xf32>
    %cst_281 = arith.constant 1.000000e-15 : f32
    %714 = vector.broadcast %cst_281 : f32 to vector<8x16xf32>
    %715 = arith.addf %713, %714 : vector<8x16xf32>
    %716 = math.log %715 : vector<8x16xf32>
    %717 = arith.mulf %713, %716 : vector<8x16xf32>
    %cst_282 = arith.constant dense<0.000000e+00> : vector<8xf32>
    %718 = vector.multi_reduction <add>, %717, %cst_282 [1] : vector<8x16xf32> to vector<8xf32>
    %719 = vector.shape_cast %718 : vector<8xf32> to vector<8x1xf32>
    %cst_283 = arith.constant dense<0.000000e+00> : vector<1xf32>
    %720 = vector.multi_reduction <add>, %719, %cst_283 [0] : vector<8x1xf32> to vector<1xf32>
    %721 = vector.shape_cast %720 : vector<1xf32> to vector<1x1xf32>
    %cst_284 = arith.constant 8.000000e+00 : f32
    %722 = vector.broadcast %cst_284 : f32 to vector<1x1xf32>
    %723 = arith.divf %721, %722 : vector<1x1xf32>
    %724 = arith.addf %283, %723 : vector<1x1xf32>
    %cst_285 = arith.constant 1.300000e+00 : f32
    %725 = vector.broadcast %cst_285 : f32 to vector<8x16xf32>
    %726 = arith.subf %725, %713 : vector<8x16xf32>
    %727 = arith.mulf %726, %281 : vector<8x16xf32>
    %728 = arith.mulf %713, %23 : vector<8x16xf32>
    %cst_286 = arith.constant dense<0.000000e+00> : vector<8x8xf32>
    %729 = tpu.matmul %728, %25, %cst_286 {dimension_numbers = #tpu.dot_dimension_numbers<[1], [0], [0], [1], [0, 0, 1, 1], [], []>} : vector<8x16xf32>, vector<16x8xf32>, vector<8x8xf32> -> vector<8x8xf32>
    %cst_287 = arith.constant dense<0.000000e+00> : vector<8x8xf32>
    %730 = tpu.matmul %728, %27, %cst_287 {dimension_numbers = #tpu.dot_dimension_numbers<[1], [0], [0], [1], [0, 0, 1, 1], [], []>} : vector<8x16xf32>, vector<16x8xf32>, vector<8x8xf32> -> vector<8x8xf32>
    %c0_288 = arith.constant 0 : index
    %c4 = arith.constant 4 : index
    %c0_289 = arith.constant 0 : index
    %731 = vector.load %arg5[%c0_288, %c4, %c0_289] : memref<4x16x8xf32, #tpu.memory_space<vmem>>, vector<1x1x8xf32>
    %732 = vector.shape_cast %731 : vector<1x1x8xf32> to vector<1x8xf32>
    %c2_290 = arith.constant 2 : index
    %c4_291 = arith.constant 4 : index
    %c0_292 = arith.constant 0 : index
    %733 = vector.load %arg5[%c2_290, %c4_291, %c0_292] : memref<4x16x8xf32, #tpu.memory_space<vmem>>, vector<1x1x8xf32>
    %734 = vector.shape_cast %733 : vector<1x1x8xf32> to vector<1x8xf32>
    %cst_293 = arith.constant dense<0.000000e+00> : vector<8xf32>
    %735 = vector.multi_reduction <add>, %729, %cst_293 [0] : vector<8x8xf32> to vector<8xf32>
    %736 = vector.shape_cast %735 : vector<8xf32> to vector<1x8xf32>
    %cst_294 = arith.constant 1.250000e-01 : f32
    %737 = vector.broadcast %cst_294 : f32 to vector<1x8xf32>
    %738 = arith.mulf %736, %737 : vector<1x8xf32>
    %739 = arith.mulf %729, %729 : vector<8x8xf32>
    %cst_295 = arith.constant dense<0.000000e+00> : vector<8xf32>
    %740 = vector.multi_reduction <add>, %739, %cst_295 [0] : vector<8x8xf32> to vector<8xf32>
    %741 = vector.shape_cast %740 : vector<8xf32> to vector<1x8xf32>
    %cst_296 = arith.constant 1.250000e-01 : f32
    %742 = vector.broadcast %cst_296 : f32 to vector<1x8xf32>
    %743 = arith.mulf %741, %742 : vector<1x8xf32>
    %744 = arith.mulf %738, %738 : vector<1x8xf32>
    %745 = arith.subf %743, %744 : vector<1x8xf32>
    %cst_297 = arith.constant 9.99999974E-6 : f32
    %746 = vector.broadcast %cst_297 : f32 to vector<1x8xf32>
    %747 = arith.addf %745, %746 : vector<1x8xf32>
    %748 = math.rsqrt %747 : vector<1x8xf32>
    %749 = arith.mulf %732, %748 : vector<1x8xf32>
    %750 = arith.mulf %738, %749 : vector<1x8xf32>
    %751 = arith.subf %734, %750 : vector<1x8xf32>
    %752 = vector.broadcast %749 : vector<1x8xf32> to vector<8x8xf32>
    %753 = arith.mulf %729, %752 : vector<8x8xf32>
    %754 = vector.broadcast %751 : vector<1x8xf32> to vector<8x8xf32>
    %755 = arith.addf %753, %754 : vector<8x8xf32>
    %c1_298 = arith.constant 1 : index
    %c4_299 = arith.constant 4 : index
    %c0_300 = arith.constant 0 : index
    %756 = vector.load %arg5[%c1_298, %c4_299, %c0_300] : memref<4x16x8xf32, #tpu.memory_space<vmem>>, vector<1x1x8xf32>
    %757 = vector.shape_cast %756 : vector<1x1x8xf32> to vector<1x8xf32>
    %c3_301 = arith.constant 3 : index
    %c4_302 = arith.constant 4 : index
    %c0_303 = arith.constant 0 : index
    %758 = vector.load %arg5[%c3_301, %c4_302, %c0_303] : memref<4x16x8xf32, #tpu.memory_space<vmem>>, vector<1x1x8xf32>
    %759 = vector.shape_cast %758 : vector<1x1x8xf32> to vector<1x8xf32>
    %cst_304 = arith.constant dense<0.000000e+00> : vector<8xf32>
    %760 = vector.multi_reduction <add>, %730, %cst_304 [0] : vector<8x8xf32> to vector<8xf32>
    %761 = vector.shape_cast %760 : vector<8xf32> to vector<1x8xf32>
    %cst_305 = arith.constant 1.250000e-01 : f32
    %762 = vector.broadcast %cst_305 : f32 to vector<1x8xf32>
    %763 = arith.mulf %761, %762 : vector<1x8xf32>
    %764 = arith.mulf %730, %730 : vector<8x8xf32>
    %cst_306 = arith.constant dense<0.000000e+00> : vector<8xf32>
    %765 = vector.multi_reduction <add>, %764, %cst_306 [0] : vector<8x8xf32> to vector<8xf32>
    %766 = vector.shape_cast %765 : vector<8xf32> to vector<1x8xf32>
    %cst_307 = arith.constant 1.250000e-01 : f32
    %767 = vector.broadcast %cst_307 : f32 to vector<1x8xf32>
    %768 = arith.mulf %766, %767 : vector<1x8xf32>
    %769 = arith.mulf %763, %763 : vector<1x8xf32>
    %770 = arith.subf %768, %769 : vector<1x8xf32>
    %cst_308 = arith.constant 9.99999974E-6 : f32
    %771 = vector.broadcast %cst_308 : f32 to vector<1x8xf32>
    %772 = arith.addf %770, %771 : vector<1x8xf32>
    %773 = math.rsqrt %772 : vector<1x8xf32>
    %774 = arith.mulf %757, %773 : vector<1x8xf32>
    %775 = arith.mulf %763, %774 : vector<1x8xf32>
    %776 = arith.subf %759, %775 : vector<1x8xf32>
    %777 = vector.broadcast %774 : vector<1x8xf32> to vector<8x8xf32>
    %778 = arith.mulf %730, %777 : vector<8x8xf32>
    %779 = vector.broadcast %776 : vector<1x8xf32> to vector<8x8xf32>
    %780 = arith.addf %778, %779 : vector<8x8xf32>
    %781 = arith.negf %780 : vector<8x8xf32>
    %782 = math.exp %781 : vector<8x8xf32>
    %cst_309 = arith.constant 1.000000e+00 : f32
    %783 = vector.broadcast %cst_309 : f32 to vector<8x8xf32>
    %784 = arith.addf %783, %782 : vector<8x8xf32>
    %785 = arith.divf %783, %784 : vector<8x8xf32>
    %786 = arith.mulf %755, %785 : vector<8x8xf32>
    %c0_310 = arith.constant 0 : index
    %c0_311 = arith.constant 0 : index
    %c0_312 = arith.constant 0 : index
    %c0_313 = arith.constant 0 : index
    %787 = vector.load %arg4[%c0_310, %c0_311, %c0_312, %c0_313] : memref<2x9x8x8xf32, #tpu.memory_space<vmem>>, vector<1x1x8x8xf32>
    %788 = vector.shape_cast %787 : vector<1x1x8x8xf32> to vector<8x8xf32>
    %c1_314 = arith.constant 1 : index
    %c0_315 = arith.constant 0 : index
    %c0_316 = arith.constant 0 : index
    %c0_317 = arith.constant 0 : index
    %789 = vector.load %arg4[%c1_314, %c0_315, %c0_316, %c0_317] : memref<2x9x8x8xf32, #tpu.memory_space<vmem>>, vector<1x1x8x8xf32>
    %790 = vector.shape_cast %789 : vector<1x1x8x8xf32> to vector<8x8xf32>
    %cst_318 = arith.constant dense<0.000000e+00> : vector<8x8xf32>
    %791 = tpu.matmul %786, %788, %cst_318 {dimension_numbers = #tpu.dot_dimension_numbers<[1], [0], [0], [1], [0, 0, 1, 1], [], []>} : vector<8x8xf32>, vector<8x8xf32>, vector<8x8xf32> -> vector<8x8xf32>
    %cst_319 = arith.constant dense<0.000000e+00> : vector<8x8xf32>
    %792 = tpu.matmul %786, %790, %cst_319 {dimension_numbers = #tpu.dot_dimension_numbers<[1], [0], [0], [1], [0, 0, 1, 1], [], []>} : vector<8x8xf32>, vector<8x8xf32>, vector<8x8xf32> -> vector<8x8xf32>
    %c0_320 = arith.constant 0 : index
    %c5 = arith.constant 5 : index
    %c0_321 = arith.constant 0 : index
    %793 = vector.load %arg5[%c0_320, %c5, %c0_321] : memref<4x16x8xf32, #tpu.memory_space<vmem>>, vector<1x1x8xf32>
    %794 = vector.shape_cast %793 : vector<1x1x8xf32> to vector<1x8xf32>
    %c2_322 = arith.constant 2 : index
    %c5_323 = arith.constant 5 : index
    %c0_324 = arith.constant 0 : index
    %795 = vector.load %arg5[%c2_322, %c5_323, %c0_324] : memref<4x16x8xf32, #tpu.memory_space<vmem>>, vector<1x1x8xf32>
    %796 = vector.shape_cast %795 : vector<1x1x8xf32> to vector<1x8xf32>
    %cst_325 = arith.constant dense<0.000000e+00> : vector<8xf32>
    %797 = vector.multi_reduction <add>, %791, %cst_325 [0] : vector<8x8xf32> to vector<8xf32>
    %798 = vector.shape_cast %797 : vector<8xf32> to vector<1x8xf32>
    %cst_326 = arith.constant 1.250000e-01 : f32
    %799 = vector.broadcast %cst_326 : f32 to vector<1x8xf32>
    %800 = arith.mulf %798, %799 : vector<1x8xf32>
    %801 = arith.mulf %791, %791 : vector<8x8xf32>
    %cst_327 = arith.constant dense<0.000000e+00> : vector<8xf32>
    %802 = vector.multi_reduction <add>, %801, %cst_327 [0] : vector<8x8xf32> to vector<8xf32>
    %803 = vector.shape_cast %802 : vector<8xf32> to vector<1x8xf32>
    %cst_328 = arith.constant 1.250000e-01 : f32
    %804 = vector.broadcast %cst_328 : f32 to vector<1x8xf32>
    %805 = arith.mulf %803, %804 : vector<1x8xf32>
    %806 = arith.mulf %800, %800 : vector<1x8xf32>
    %807 = arith.subf %805, %806 : vector<1x8xf32>
    %cst_329 = arith.constant 9.99999974E-6 : f32
    %808 = vector.broadcast %cst_329 : f32 to vector<1x8xf32>
    %809 = arith.addf %807, %808 : vector<1x8xf32>
    %810 = math.rsqrt %809 : vector<1x8xf32>
    %811 = arith.mulf %794, %810 : vector<1x8xf32>
    %812 = arith.mulf %800, %811 : vector<1x8xf32>
    %813 = arith.subf %796, %812 : vector<1x8xf32>
    %814 = vector.broadcast %811 : vector<1x8xf32> to vector<8x8xf32>
    %815 = arith.mulf %791, %814 : vector<8x8xf32>
    %816 = vector.broadcast %813 : vector<1x8xf32> to vector<8x8xf32>
    %817 = arith.addf %815, %816 : vector<8x8xf32>
    %c1_330 = arith.constant 1 : index
    %c5_331 = arith.constant 5 : index
    %c0_332 = arith.constant 0 : index
    %818 = vector.load %arg5[%c1_330, %c5_331, %c0_332] : memref<4x16x8xf32, #tpu.memory_space<vmem>>, vector<1x1x8xf32>
    %819 = vector.shape_cast %818 : vector<1x1x8xf32> to vector<1x8xf32>
    %c3_333 = arith.constant 3 : index
    %c5_334 = arith.constant 5 : index
    %c0_335 = arith.constant 0 : index
    %820 = vector.load %arg5[%c3_333, %c5_334, %c0_335] : memref<4x16x8xf32, #tpu.memory_space<vmem>>, vector<1x1x8xf32>
    %821 = vector.shape_cast %820 : vector<1x1x8xf32> to vector<1x8xf32>
    %cst_336 = arith.constant dense<0.000000e+00> : vector<8xf32>
    %822 = vector.multi_reduction <add>, %792, %cst_336 [0] : vector<8x8xf32> to vector<8xf32>
    %823 = vector.shape_cast %822 : vector<8xf32> to vector<1x8xf32>
    %cst_337 = arith.constant 1.250000e-01 : f32
    %824 = vector.broadcast %cst_337 : f32 to vector<1x8xf32>
    %825 = arith.mulf %823, %824 : vector<1x8xf32>
    %826 = arith.mulf %792, %792 : vector<8x8xf32>
    %cst_338 = arith.constant dense<0.000000e+00> : vector<8xf32>
    %827 = vector.multi_reduction <add>, %826, %cst_338 [0] : vector<8x8xf32> to vector<8xf32>
    %828 = vector.shape_cast %827 : vector<8xf32> to vector<1x8xf32>
    %cst_339 = arith.constant 1.250000e-01 : f32
    %829 = vector.broadcast %cst_339 : f32 to vector<1x8xf32>
    %830 = arith.mulf %828, %829 : vector<1x8xf32>
    %831 = arith.mulf %825, %825 : vector<1x8xf32>
    %832 = arith.subf %830, %831 : vector<1x8xf32>
    %cst_340 = arith.constant 9.99999974E-6 : f32
    %833 = vector.broadcast %cst_340 : f32 to vector<1x8xf32>
    %834 = arith.addf %832, %833 : vector<1x8xf32>
    %835 = math.rsqrt %834 : vector<1x8xf32>
    %836 = arith.mulf %819, %835 : vector<1x8xf32>
    %837 = arith.mulf %825, %836 : vector<1x8xf32>
    %838 = arith.subf %821, %837 : vector<1x8xf32>
    %839 = vector.broadcast %836 : vector<1x8xf32> to vector<8x8xf32>
    %840 = arith.mulf %792, %839 : vector<8x8xf32>
    %841 = vector.broadcast %838 : vector<1x8xf32> to vector<8x8xf32>
    %842 = arith.addf %840, %841 : vector<8x8xf32>
    %843 = arith.negf %842 : vector<8x8xf32>
    %844 = math.exp %843 : vector<8x8xf32>
    %cst_341 = arith.constant 1.000000e+00 : f32
    %845 = vector.broadcast %cst_341 : f32 to vector<8x8xf32>
    %846 = arith.addf %845, %844 : vector<8x8xf32>
    %847 = arith.divf %845, %846 : vector<8x8xf32>
    %848 = arith.mulf %817, %847 : vector<8x8xf32>
    %849 = arith.addf %786, %848 : vector<8x8xf32>
    %cst_342 = arith.constant 0.707106769 : f32
    %850 = vector.broadcast %cst_342 : f32 to vector<8x8xf32>
    %851 = arith.mulf %849, %850 : vector<8x8xf32>
    %c0_343 = arith.constant 0 : index
    %c3_344 = arith.constant 3 : index
    %c0_345 = arith.constant 0 : index
    %c0_346 = arith.constant 0 : index
    %852 = vector.load %arg4[%c0_343, %c3_344, %c0_345, %c0_346] : memref<2x9x8x8xf32, #tpu.memory_space<vmem>>, vector<1x1x8x8xf32>
    %853 = vector.shape_cast %852 : vector<1x1x8x8xf32> to vector<8x8xf32>
    %c1_347 = arith.constant 1 : index
    %c3_348 = arith.constant 3 : index
    %c0_349 = arith.constant 0 : index
    %c0_350 = arith.constant 0 : index
    %854 = vector.load %arg4[%c1_347, %c3_348, %c0_349, %c0_350] : memref<2x9x8x8xf32, #tpu.memory_space<vmem>>, vector<1x1x8x8xf32>
    %855 = vector.shape_cast %854 : vector<1x1x8x8xf32> to vector<8x8xf32>
    %cst_351 = arith.constant dense<0.000000e+00> : vector<8x8xf32>
    %856 = tpu.matmul %851, %853, %cst_351 {dimension_numbers = #tpu.dot_dimension_numbers<[1], [0], [0], [1], [0, 0, 1, 1], [], []>} : vector<8x8xf32>, vector<8x8xf32>, vector<8x8xf32> -> vector<8x8xf32>
    %cst_352 = arith.constant dense<0.000000e+00> : vector<8x8xf32>
    %857 = tpu.matmul %851, %855, %cst_352 {dimension_numbers = #tpu.dot_dimension_numbers<[1], [0], [0], [1], [0, 0, 1, 1], [], []>} : vector<8x8xf32>, vector<8x8xf32>, vector<8x8xf32> -> vector<8x8xf32>
    %c0_353 = arith.constant 0 : index
    %c6 = arith.constant 6 : index
    %c0_354 = arith.constant 0 : index
    %858 = vector.load %arg5[%c0_353, %c6, %c0_354] : memref<4x16x8xf32, #tpu.memory_space<vmem>>, vector<1x1x8xf32>
    %859 = vector.shape_cast %858 : vector<1x1x8xf32> to vector<1x8xf32>
    %c2_355 = arith.constant 2 : index
    %c6_356 = arith.constant 6 : index
    %c0_357 = arith.constant 0 : index
    %860 = vector.load %arg5[%c2_355, %c6_356, %c0_357] : memref<4x16x8xf32, #tpu.memory_space<vmem>>, vector<1x1x8xf32>
    %861 = vector.shape_cast %860 : vector<1x1x8xf32> to vector<1x8xf32>
    %cst_358 = arith.constant dense<0.000000e+00> : vector<8xf32>
    %862 = vector.multi_reduction <add>, %856, %cst_358 [0] : vector<8x8xf32> to vector<8xf32>
    %863 = vector.shape_cast %862 : vector<8xf32> to vector<1x8xf32>
    %cst_359 = arith.constant 1.250000e-01 : f32
    %864 = vector.broadcast %cst_359 : f32 to vector<1x8xf32>
    %865 = arith.mulf %863, %864 : vector<1x8xf32>
    %866 = arith.mulf %856, %856 : vector<8x8xf32>
    %cst_360 = arith.constant dense<0.000000e+00> : vector<8xf32>
    %867 = vector.multi_reduction <add>, %866, %cst_360 [0] : vector<8x8xf32> to vector<8xf32>
    %868 = vector.shape_cast %867 : vector<8xf32> to vector<1x8xf32>
    %cst_361 = arith.constant 1.250000e-01 : f32
    %869 = vector.broadcast %cst_361 : f32 to vector<1x8xf32>
    %870 = arith.mulf %868, %869 : vector<1x8xf32>
    %871 = arith.mulf %865, %865 : vector<1x8xf32>
    %872 = arith.subf %870, %871 : vector<1x8xf32>
    %cst_362 = arith.constant 9.99999974E-6 : f32
    %873 = vector.broadcast %cst_362 : f32 to vector<1x8xf32>
    %874 = arith.addf %872, %873 : vector<1x8xf32>
    %875 = math.rsqrt %874 : vector<1x8xf32>
    %876 = arith.mulf %859, %875 : vector<1x8xf32>
    %877 = arith.mulf %865, %876 : vector<1x8xf32>
    %878 = arith.subf %861, %877 : vector<1x8xf32>
    %879 = vector.broadcast %876 : vector<1x8xf32> to vector<8x8xf32>
    %880 = arith.mulf %856, %879 : vector<8x8xf32>
    %881 = vector.broadcast %878 : vector<1x8xf32> to vector<8x8xf32>
    %882 = arith.addf %880, %881 : vector<8x8xf32>
    %c1_363 = arith.constant 1 : index
    %c6_364 = arith.constant 6 : index
    %c0_365 = arith.constant 0 : index
    %883 = vector.load %arg5[%c1_363, %c6_364, %c0_365] : memref<4x16x8xf32, #tpu.memory_space<vmem>>, vector<1x1x8xf32>
    %884 = vector.shape_cast %883 : vector<1x1x8xf32> to vector<1x8xf32>
    %c3_366 = arith.constant 3 : index
    %c6_367 = arith.constant 6 : index
    %c0_368 = arith.constant 0 : index
    %885 = vector.load %arg5[%c3_366, %c6_367, %c0_368] : memref<4x16x8xf32, #tpu.memory_space<vmem>>, vector<1x1x8xf32>
    %886 = vector.shape_cast %885 : vector<1x1x8xf32> to vector<1x8xf32>
    %cst_369 = arith.constant dense<0.000000e+00> : vector<8xf32>
    %887 = vector.multi_reduction <add>, %857, %cst_369 [0] : vector<8x8xf32> to vector<8xf32>
    %888 = vector.shape_cast %887 : vector<8xf32> to vector<1x8xf32>
    %cst_370 = arith.constant 1.250000e-01 : f32
    %889 = vector.broadcast %cst_370 : f32 to vector<1x8xf32>
    %890 = arith.mulf %888, %889 : vector<1x8xf32>
    %891 = arith.mulf %857, %857 : vector<8x8xf32>
    %cst_371 = arith.constant dense<0.000000e+00> : vector<8xf32>
    %892 = vector.multi_reduction <add>, %891, %cst_371 [0] : vector<8x8xf32> to vector<8xf32>
    %893 = vector.shape_cast %892 : vector<8xf32> to vector<1x8xf32>
    %cst_372 = arith.constant 1.250000e-01 : f32
    %894 = vector.broadcast %cst_372 : f32 to vector<1x8xf32>
    %895 = arith.mulf %893, %894 : vector<1x8xf32>
    %896 = arith.mulf %890, %890 : vector<1x8xf32>
    %897 = arith.subf %895, %896 : vector<1x8xf32>
    %cst_373 = arith.constant 9.99999974E-6 : f32
    %898 = vector.broadcast %cst_373 : f32 to vector<1x8xf32>
    %899 = arith.addf %897, %898 : vector<1x8xf32>
    %900 = math.rsqrt %899 : vector<1x8xf32>
    %901 = arith.mulf %884, %900 : vector<1x8xf32>
    %902 = arith.mulf %890, %901 : vector<1x8xf32>
    %903 = arith.subf %886, %902 : vector<1x8xf32>
    %904 = vector.broadcast %901 : vector<1x8xf32> to vector<8x8xf32>
    %905 = arith.mulf %857, %904 : vector<8x8xf32>
    %906 = vector.broadcast %903 : vector<1x8xf32> to vector<8x8xf32>
    %907 = arith.addf %905, %906 : vector<8x8xf32>
    %908 = arith.negf %907 : vector<8x8xf32>
    %909 = math.exp %908 : vector<8x8xf32>
    %cst_374 = arith.constant 1.000000e+00 : f32
    %910 = vector.broadcast %cst_374 : f32 to vector<8x8xf32>
    %911 = arith.addf %910, %909 : vector<8x8xf32>
    %912 = arith.divf %910, %911 : vector<8x8xf32>
    %913 = arith.mulf %882, %912 : vector<8x8xf32>
    %914 = arith.addf %851, %913 : vector<8x8xf32>
    %cst_375 = arith.constant 0.707106769 : f32
    %915 = vector.broadcast %cst_375 : f32 to vector<8x8xf32>
    %916 = arith.mulf %914, %915 : vector<8x8xf32>
    %c0_376 = arith.constant 0 : index
    %c4_377 = arith.constant 4 : index
    %c0_378 = arith.constant 0 : index
    %c0_379 = arith.constant 0 : index
    %917 = vector.load %arg4[%c0_376, %c4_377, %c0_378, %c0_379] : memref<2x9x8x8xf32, #tpu.memory_space<vmem>>, vector<1x1x8x8xf32>
    %918 = vector.shape_cast %917 : vector<1x1x8x8xf32> to vector<8x8xf32>
    %c1_380 = arith.constant 1 : index
    %c4_381 = arith.constant 4 : index
    %c0_382 = arith.constant 0 : index
    %c0_383 = arith.constant 0 : index
    %919 = vector.load %arg4[%c1_380, %c4_381, %c0_382, %c0_383] : memref<2x9x8x8xf32, #tpu.memory_space<vmem>>, vector<1x1x8x8xf32>
    %920 = vector.shape_cast %919 : vector<1x1x8x8xf32> to vector<8x8xf32>
    %cst_384 = arith.constant dense<0.000000e+00> : vector<8x8xf32>
    %921 = tpu.matmul %916, %918, %cst_384 {dimension_numbers = #tpu.dot_dimension_numbers<[1], [0], [0], [1], [0, 0, 1, 1], [], []>} : vector<8x8xf32>, vector<8x8xf32>, vector<8x8xf32> -> vector<8x8xf32>
    %cst_385 = arith.constant dense<0.000000e+00> : vector<8x8xf32>
    %922 = tpu.matmul %916, %920, %cst_385 {dimension_numbers = #tpu.dot_dimension_numbers<[1], [0], [0], [1], [0, 0, 1, 1], [], []>} : vector<8x8xf32>, vector<8x8xf32>, vector<8x8xf32> -> vector<8x8xf32>
    %c0_386 = arith.constant 0 : index
    %c7 = arith.constant 7 : index
    %c0_387 = arith.constant 0 : index
    %923 = vector.load %arg5[%c0_386, %c7, %c0_387] : memref<4x16x8xf32, #tpu.memory_space<vmem>>, vector<1x1x8xf32>
    %924 = vector.shape_cast %923 : vector<1x1x8xf32> to vector<1x8xf32>
    %c2_388 = arith.constant 2 : index
    %c7_389 = arith.constant 7 : index
    %c0_390 = arith.constant 0 : index
    %925 = vector.load %arg5[%c2_388, %c7_389, %c0_390] : memref<4x16x8xf32, #tpu.memory_space<vmem>>, vector<1x1x8xf32>
    %926 = vector.shape_cast %925 : vector<1x1x8xf32> to vector<1x8xf32>
    %cst_391 = arith.constant dense<0.000000e+00> : vector<8xf32>
    %927 = vector.multi_reduction <add>, %921, %cst_391 [0] : vector<8x8xf32> to vector<8xf32>
    %928 = vector.shape_cast %927 : vector<8xf32> to vector<1x8xf32>
    %cst_392 = arith.constant 1.250000e-01 : f32
    %929 = vector.broadcast %cst_392 : f32 to vector<1x8xf32>
    %930 = arith.mulf %928, %929 : vector<1x8xf32>
    %931 = arith.mulf %921, %921 : vector<8x8xf32>
    %cst_393 = arith.constant dense<0.000000e+00> : vector<8xf32>
    %932 = vector.multi_reduction <add>, %931, %cst_393 [0] : vector<8x8xf32> to vector<8xf32>
    %933 = vector.shape_cast %932 : vector<8xf32> to vector<1x8xf32>
    %cst_394 = arith.constant 1.250000e-01 : f32
    %934 = vector.broadcast %cst_394 : f32 to vector<1x8xf32>
    %935 = arith.mulf %933, %934 : vector<1x8xf32>
    %936 = arith.mulf %930, %930 : vector<1x8xf32>
    %937 = arith.subf %935, %936 : vector<1x8xf32>
    %cst_395 = arith.constant 9.99999974E-6 : f32
    %938 = vector.broadcast %cst_395 : f32 to vector<1x8xf32>
    %939 = arith.addf %937, %938 : vector<1x8xf32>
    %940 = math.rsqrt %939 : vector<1x8xf32>
    %941 = arith.mulf %924, %940 : vector<1x8xf32>
    %942 = arith.mulf %930, %941 : vector<1x8xf32>
    %943 = arith.subf %926, %942 : vector<1x8xf32>
    %944 = vector.broadcast %941 : vector<1x8xf32> to vector<8x8xf32>
    %945 = arith.mulf %921, %944 : vector<8x8xf32>
    %946 = vector.broadcast %943 : vector<1x8xf32> to vector<8x8xf32>
    %947 = arith.addf %945, %946 : vector<8x8xf32>
    %c1_396 = arith.constant 1 : index
    %c7_397 = arith.constant 7 : index
    %c0_398 = arith.constant 0 : index
    %948 = vector.load %arg5[%c1_396, %c7_397, %c0_398] : memref<4x16x8xf32, #tpu.memory_space<vmem>>, vector<1x1x8xf32>
    %949 = vector.shape_cast %948 : vector<1x1x8xf32> to vector<1x8xf32>
    %c3_399 = arith.constant 3 : index
    %c7_400 = arith.constant 7 : index
    %c0_401 = arith.constant 0 : index
    %950 = vector.load %arg5[%c3_399, %c7_400, %c0_401] : memref<4x16x8xf32, #tpu.memory_space<vmem>>, vector<1x1x8xf32>
    %951 = vector.shape_cast %950 : vector<1x1x8xf32> to vector<1x8xf32>
    %cst_402 = arith.constant dense<0.000000e+00> : vector<8xf32>
    %952 = vector.multi_reduction <add>, %922, %cst_402 [0] : vector<8x8xf32> to vector<8xf32>
    %953 = vector.shape_cast %952 : vector<8xf32> to vector<1x8xf32>
    %cst_403 = arith.constant 1.250000e-01 : f32
    %954 = vector.broadcast %cst_403 : f32 to vector<1x8xf32>
    %955 = arith.mulf %953, %954 : vector<1x8xf32>
    %956 = arith.mulf %922, %922 : vector<8x8xf32>
    %cst_404 = arith.constant dense<0.000000e+00> : vector<8xf32>
    %957 = vector.multi_reduction <add>, %956, %cst_404 [0] : vector<8x8xf32> to vector<8xf32>
    %958 = vector.shape_cast %957 : vector<8xf32> to vector<1x8xf32>
    %cst_405 = arith.constant 1.250000e-01 : f32
    %959 = vector.broadcast %cst_405 : f32 to vector<1x8xf32>
    %960 = arith.mulf %958, %959 : vector<1x8xf32>
    %961 = arith.mulf %955, %955 : vector<1x8xf32>
    %962 = arith.subf %960, %961 : vector<1x8xf32>
    %cst_406 = arith.constant 9.99999974E-6 : f32
    %963 = vector.broadcast %cst_406 : f32 to vector<1x8xf32>
    %964 = arith.addf %962, %963 : vector<1x8xf32>
    %965 = math.rsqrt %964 : vector<1x8xf32>
    %966 = arith.mulf %949, %965 : vector<1x8xf32>
    %967 = arith.mulf %955, %966 : vector<1x8xf32>
    %968 = arith.subf %951, %967 : vector<1x8xf32>
    %969 = vector.broadcast %966 : vector<1x8xf32> to vector<8x8xf32>
    %970 = arith.mulf %922, %969 : vector<8x8xf32>
    %971 = vector.broadcast %968 : vector<1x8xf32> to vector<8x8xf32>
    %972 = arith.addf %970, %971 : vector<8x8xf32>
    %973 = arith.negf %972 : vector<8x8xf32>
    %974 = math.exp %973 : vector<8x8xf32>
    %cst_407 = arith.constant 1.000000e+00 : f32
    %975 = vector.broadcast %cst_407 : f32 to vector<8x8xf32>
    %976 = arith.addf %975, %974 : vector<8x8xf32>
    %977 = arith.divf %975, %976 : vector<8x8xf32>
    %978 = arith.mulf %947, %977 : vector<8x8xf32>
    %979 = arith.addf %916, %978 : vector<8x8xf32>
    %cst_408 = arith.constant 0.707106769 : f32
    %980 = vector.broadcast %cst_408 : f32 to vector<8x8xf32>
    %981 = arith.mulf %979, %980 : vector<8x8xf32>
    %cst_409 = arith.constant 0.000000e+00 : f32
    %982 = vector.broadcast %cst_409 : f32 to vector<8x8xf32>
    %983 = arith.maximumf %981, %982 : vector<8x8xf32>
    %984 = arith.addf %282, %983 : vector<8x8xf32>
    %c1_410 = arith.constant 1 : index
    %c0_411 = arith.constant 0 : index
    %c0_412 = arith.constant 0 : index
    %985 = vector.load %arg6[%c1_410, %c0_411, %c0_412] : memref<3x8x16xf32, #tpu.memory_space<vmem>>, vector<1x8x16xf32>
    %986 = vector.shape_cast %985 : vector<1x8x16xf32> to vector<8x16xf32>
    %cst_413 = arith.constant dense<0.000000e+00> : vector<8x16xf32>
    %987 = tpu.matmul %981, %986, %cst_413 {dimension_numbers = #tpu.dot_dimension_numbers<[1], [0], [0], [1], [0, 0, 1, 1], [], []>} : vector<8x8xf32>, vector<8x16xf32>, vector<8x16xf32> -> vector<8x16xf32>
    %c0_414 = arith.constant 0 : index
    %c1_415 = arith.constant 1 : index
    %c0_416 = arith.constant 0 : index
    %988 = vector.load %arg7[%c0_414, %c1_415, %c0_416] : memref<2x3x16xf32, #tpu.memory_space<vmem>>, vector<1x1x16xf32>
    %989 = vector.shape_cast %988 : vector<1x1x16xf32> to vector<1x16xf32>
    %c1_417 = arith.constant 1 : index
    %c1_418 = arith.constant 1 : index
    %c0_419 = arith.constant 0 : index
    %990 = vector.load %arg7[%c1_417, %c1_418, %c0_419] : memref<2x3x16xf32, #tpu.memory_space<vmem>>, vector<1x1x16xf32>
    %991 = vector.shape_cast %990 : vector<1x1x16xf32> to vector<1x16xf32>
    %cst_420 = arith.constant dense<0.000000e+00> : vector<16xf32>
    %992 = vector.multi_reduction <add>, %987, %cst_420 [0] : vector<8x16xf32> to vector<16xf32>
    %993 = vector.shape_cast %992 : vector<16xf32> to vector<1x16xf32>
    %cst_421 = arith.constant 1.250000e-01 : f32
    %994 = vector.broadcast %cst_421 : f32 to vector<1x16xf32>
    %995 = arith.mulf %993, %994 : vector<1x16xf32>
    %996 = arith.mulf %987, %987 : vector<8x16xf32>
    %cst_422 = arith.constant dense<0.000000e+00> : vector<16xf32>
    %997 = vector.multi_reduction <add>, %996, %cst_422 [0] : vector<8x16xf32> to vector<16xf32>
    %998 = vector.shape_cast %997 : vector<16xf32> to vector<1x16xf32>
    %cst_423 = arith.constant 1.250000e-01 : f32
    %999 = vector.broadcast %cst_423 : f32 to vector<1x16xf32>
    %1000 = arith.mulf %998, %999 : vector<1x16xf32>
    %1001 = arith.mulf %995, %995 : vector<1x16xf32>
    %1002 = arith.subf %1000, %1001 : vector<1x16xf32>
    %cst_424 = arith.constant 9.99999974E-6 : f32
    %1003 = vector.broadcast %cst_424 : f32 to vector<1x16xf32>
    %1004 = arith.addf %1002, %1003 : vector<1x16xf32>
    %1005 = math.rsqrt %1004 : vector<1x16xf32>
    %1006 = arith.mulf %989, %1005 : vector<1x16xf32>
    %1007 = arith.mulf %995, %1006 : vector<1x16xf32>
    %1008 = arith.subf %991, %1007 : vector<1x16xf32>
    %1009 = vector.broadcast %1006 : vector<1x16xf32> to vector<8x16xf32>
    %1010 = arith.mulf %987, %1009 : vector<8x16xf32>
    %1011 = vector.broadcast %1008 : vector<1x16xf32> to vector<8x16xf32>
    %1012 = arith.addf %1010, %1011 : vector<8x16xf32>
    %1013 = arith.mulf %1012, %727 : vector<8x16xf32>
    %cst_425 = arith.constant dense<0xFF800000> : vector<8xf32>
    %1014 = vector.multi_reduction <maximumf>, %1013, %cst_425 [1] : vector<8x16xf32> to vector<8xf32>
    %1015 = vector.shape_cast %1014 : vector<8xf32> to vector<8x1xf32>
    %cst_426 = arith.constant 1.000000e+00 : f32
    %1016 = vector.broadcast %cst_426 : f32 to vector<8x1xf32>
    %1017 = arith.subf %1015, %1016 : vector<8x1xf32>
    %c0_i32_427 = arith.constant 0 : i32
    %1018 = arith.addf %1017, %1015 : vector<8x1xf32>
    %cst_428 = arith.constant 5.000000e-01 : f32
    %1019 = vector.broadcast %cst_428 : f32 to vector<8x1xf32>
    %1020 = arith.mulf %1019, %1018 : vector<8x1xf32>
    %1021 = vector.broadcast %1020 : vector<8x1xf32> to vector<8x16xf32>
    %1022 = arith.subf %1013, %1021 : vector<8x16xf32>
    %cst_429 = arith.constant 0.000000e+00 : f32
    %1023 = vector.broadcast %cst_429 : f32 to vector<8x16xf32>
    %1024 = arith.maximumf %1022, %1023 : vector<8x16xf32>
    %cst_430 = arith.constant dense<0.000000e+00> : vector<8xf32>
    %1025 = vector.multi_reduction <add>, %1024, %cst_430 [1] : vector<8x16xf32> to vector<8xf32>
    %1026 = vector.shape_cast %1025 : vector<8xf32> to vector<8x1xf32>
    %cst_431 = arith.constant 1.000000e+00 : f32
    %1027 = vector.broadcast %cst_431 : f32 to vector<8x1xf32>
    %1028 = arith.cmpf ogt, %1026, %1027 : vector<8x1xf32>
    %1029 = arith.select %1028, %1020, %1017 : vector<8x1xi1>, vector<8x1xf32>
    %1030 = arith.select %1028, %1015, %1020 : vector<8x1xi1>, vector<8x1xf32>
    %c1_i32_432 = arith.constant 1 : i32
    %1031 = arith.addf %1029, %1030 : vector<8x1xf32>
    %cst_433 = arith.constant 5.000000e-01 : f32
    %1032 = vector.broadcast %cst_433 : f32 to vector<8x1xf32>
    %1033 = arith.mulf %1032, %1031 : vector<8x1xf32>
    %1034 = vector.broadcast %1033 : vector<8x1xf32> to vector<8x16xf32>
    %1035 = arith.subf %1013, %1034 : vector<8x16xf32>
    %cst_434 = arith.constant 0.000000e+00 : f32
    %1036 = vector.broadcast %cst_434 : f32 to vector<8x16xf32>
    %1037 = arith.maximumf %1035, %1036 : vector<8x16xf32>
    %cst_435 = arith.constant dense<0.000000e+00> : vector<8xf32>
    %1038 = vector.multi_reduction <add>, %1037, %cst_435 [1] : vector<8x16xf32> to vector<8xf32>
    %1039 = vector.shape_cast %1038 : vector<8xf32> to vector<8x1xf32>
    %cst_436 = arith.constant 1.000000e+00 : f32
    %1040 = vector.broadcast %cst_436 : f32 to vector<8x1xf32>
    %1041 = arith.cmpf ogt, %1039, %1040 : vector<8x1xf32>
    %1042 = arith.select %1041, %1033, %1029 : vector<8x1xi1>, vector<8x1xf32>
    %1043 = arith.select %1041, %1030, %1033 : vector<8x1xi1>, vector<8x1xf32>
    %c2_i32_437 = arith.constant 2 : i32
    %1044 = arith.addf %1042, %1043 : vector<8x1xf32>
    %cst_438 = arith.constant 5.000000e-01 : f32
    %1045 = vector.broadcast %cst_438 : f32 to vector<8x1xf32>
    %1046 = arith.mulf %1045, %1044 : vector<8x1xf32>
    %1047 = vector.broadcast %1046 : vector<8x1xf32> to vector<8x16xf32>
    %1048 = arith.subf %1013, %1047 : vector<8x16xf32>
    %cst_439 = arith.constant 0.000000e+00 : f32
    %1049 = vector.broadcast %cst_439 : f32 to vector<8x16xf32>
    %1050 = arith.maximumf %1048, %1049 : vector<8x16xf32>
    %cst_440 = arith.constant dense<0.000000e+00> : vector<8xf32>
    %1051 = vector.multi_reduction <add>, %1050, %cst_440 [1] : vector<8x16xf32> to vector<8xf32>
    %1052 = vector.shape_cast %1051 : vector<8xf32> to vector<8x1xf32>
    %cst_441 = arith.constant 1.000000e+00 : f32
    %1053 = vector.broadcast %cst_441 : f32 to vector<8x1xf32>
    %1054 = arith.cmpf ogt, %1052, %1053 : vector<8x1xf32>
    %1055 = arith.select %1054, %1046, %1042 : vector<8x1xi1>, vector<8x1xf32>
    %1056 = arith.select %1054, %1043, %1046 : vector<8x1xi1>, vector<8x1xf32>
    %c3_i32_442 = arith.constant 3 : i32
    %1057 = arith.addf %1055, %1056 : vector<8x1xf32>
    %cst_443 = arith.constant 5.000000e-01 : f32
    %1058 = vector.broadcast %cst_443 : f32 to vector<8x1xf32>
    %1059 = arith.mulf %1058, %1057 : vector<8x1xf32>
    %1060 = vector.broadcast %1059 : vector<8x1xf32> to vector<8x16xf32>
    %1061 = arith.subf %1013, %1060 : vector<8x16xf32>
    %cst_444 = arith.constant 0.000000e+00 : f32
    %1062 = vector.broadcast %cst_444 : f32 to vector<8x16xf32>
    %1063 = arith.maximumf %1061, %1062 : vector<8x16xf32>
    %cst_445 = arith.constant dense<0.000000e+00> : vector<8xf32>
    %1064 = vector.multi_reduction <add>, %1063, %cst_445 [1] : vector<8x16xf32> to vector<8xf32>
    %1065 = vector.shape_cast %1064 : vector<8xf32> to vector<8x1xf32>
    %cst_446 = arith.constant 1.000000e+00 : f32
    %1066 = vector.broadcast %cst_446 : f32 to vector<8x1xf32>
    %1067 = arith.cmpf ogt, %1065, %1066 : vector<8x1xf32>
    %1068 = arith.select %1067, %1059, %1055 : vector<8x1xi1>, vector<8x1xf32>
    %1069 = arith.select %1067, %1056, %1059 : vector<8x1xi1>, vector<8x1xf32>
    %c4_i32_447 = arith.constant 4 : i32
    %1070 = arith.addf %1068, %1069 : vector<8x1xf32>
    %cst_448 = arith.constant 5.000000e-01 : f32
    %1071 = vector.broadcast %cst_448 : f32 to vector<8x1xf32>
    %1072 = arith.mulf %1071, %1070 : vector<8x1xf32>
    %1073 = vector.broadcast %1072 : vector<8x1xf32> to vector<8x16xf32>
    %1074 = arith.subf %1013, %1073 : vector<8x16xf32>
    %cst_449 = arith.constant 0.000000e+00 : f32
    %1075 = vector.broadcast %cst_449 : f32 to vector<8x16xf32>
    %1076 = arith.maximumf %1074, %1075 : vector<8x16xf32>
    %cst_450 = arith.constant dense<0.000000e+00> : vector<8xf32>
    %1077 = vector.multi_reduction <add>, %1076, %cst_450 [1] : vector<8x16xf32> to vector<8xf32>
    %1078 = vector.shape_cast %1077 : vector<8xf32> to vector<8x1xf32>
    %cst_451 = arith.constant 1.000000e+00 : f32
    %1079 = vector.broadcast %cst_451 : f32 to vector<8x1xf32>
    %1080 = arith.cmpf ogt, %1078, %1079 : vector<8x1xf32>
    %1081 = arith.select %1080, %1072, %1068 : vector<8x1xi1>, vector<8x1xf32>
    %1082 = arith.select %1080, %1069, %1072 : vector<8x1xi1>, vector<8x1xf32>
    %c5_i32_452 = arith.constant 5 : i32
    %1083 = arith.addf %1081, %1082 : vector<8x1xf32>
    %cst_453 = arith.constant 5.000000e-01 : f32
    %1084 = vector.broadcast %cst_453 : f32 to vector<8x1xf32>
    %1085 = arith.mulf %1084, %1083 : vector<8x1xf32>
    %1086 = vector.broadcast %1085 : vector<8x1xf32> to vector<8x16xf32>
    %1087 = arith.subf %1013, %1086 : vector<8x16xf32>
    %cst_454 = arith.constant 0.000000e+00 : f32
    %1088 = vector.broadcast %cst_454 : f32 to vector<8x16xf32>
    %1089 = arith.maximumf %1087, %1088 : vector<8x16xf32>
    %cst_455 = arith.constant dense<0.000000e+00> : vector<8xf32>
    %1090 = vector.multi_reduction <add>, %1089, %cst_455 [1] : vector<8x16xf32> to vector<8xf32>
    %1091 = vector.shape_cast %1090 : vector<8xf32> to vector<8x1xf32>
    %cst_456 = arith.constant 1.000000e+00 : f32
    %1092 = vector.broadcast %cst_456 : f32 to vector<8x1xf32>
    %1093 = arith.cmpf ogt, %1091, %1092 : vector<8x1xf32>
    %1094 = arith.select %1093, %1085, %1081 : vector<8x1xi1>, vector<8x1xf32>
    %1095 = arith.select %1093, %1082, %1085 : vector<8x1xi1>, vector<8x1xf32>
    %c6_i32_457 = arith.constant 6 : i32
    %1096 = arith.addf %1094, %1095 : vector<8x1xf32>
    %cst_458 = arith.constant 5.000000e-01 : f32
    %1097 = vector.broadcast %cst_458 : f32 to vector<8x1xf32>
    %1098 = arith.mulf %1097, %1096 : vector<8x1xf32>
    %1099 = vector.broadcast %1098 : vector<8x1xf32> to vector<8x16xf32>
    %1100 = arith.subf %1013, %1099 : vector<8x16xf32>
    %cst_459 = arith.constant 0.000000e+00 : f32
    %1101 = vector.broadcast %cst_459 : f32 to vector<8x16xf32>
    %1102 = arith.maximumf %1100, %1101 : vector<8x16xf32>
    %cst_460 = arith.constant dense<0.000000e+00> : vector<8xf32>
    %1103 = vector.multi_reduction <add>, %1102, %cst_460 [1] : vector<8x16xf32> to vector<8xf32>
    %1104 = vector.shape_cast %1103 : vector<8xf32> to vector<8x1xf32>
    %cst_461 = arith.constant 1.000000e+00 : f32
    %1105 = vector.broadcast %cst_461 : f32 to vector<8x1xf32>
    %1106 = arith.cmpf ogt, %1104, %1105 : vector<8x1xf32>
    %1107 = arith.select %1106, %1098, %1094 : vector<8x1xi1>, vector<8x1xf32>
    %1108 = arith.select %1106, %1095, %1098 : vector<8x1xi1>, vector<8x1xf32>
    %c7_i32_462 = arith.constant 7 : i32
    %1109 = arith.addf %1107, %1108 : vector<8x1xf32>
    %cst_463 = arith.constant 5.000000e-01 : f32
    %1110 = vector.broadcast %cst_463 : f32 to vector<8x1xf32>
    %1111 = arith.mulf %1110, %1109 : vector<8x1xf32>
    %1112 = vector.broadcast %1111 : vector<8x1xf32> to vector<8x16xf32>
    %1113 = arith.subf %1013, %1112 : vector<8x16xf32>
    %cst_464 = arith.constant 0.000000e+00 : f32
    %1114 = vector.broadcast %cst_464 : f32 to vector<8x16xf32>
    %1115 = arith.maximumf %1113, %1114 : vector<8x16xf32>
    %cst_465 = arith.constant dense<0.000000e+00> : vector<8xf32>
    %1116 = vector.multi_reduction <add>, %1115, %cst_465 [1] : vector<8x16xf32> to vector<8xf32>
    %1117 = vector.shape_cast %1116 : vector<8xf32> to vector<8x1xf32>
    %cst_466 = arith.constant 1.000000e+00 : f32
    %1118 = vector.broadcast %cst_466 : f32 to vector<8x1xf32>
    %1119 = arith.cmpf ogt, %1117, %1118 : vector<8x1xf32>
    %1120 = arith.select %1119, %1111, %1107 : vector<8x1xi1>, vector<8x1xf32>
    %1121 = arith.select %1119, %1108, %1111 : vector<8x1xi1>, vector<8x1xf32>
    %c8_i32_467 = arith.constant 8 : i32
    %1122 = arith.addf %1120, %1121 : vector<8x1xf32>
    %cst_468 = arith.constant 5.000000e-01 : f32
    %1123 = vector.broadcast %cst_468 : f32 to vector<8x1xf32>
    %1124 = arith.mulf %1123, %1122 : vector<8x1xf32>
    %1125 = vector.broadcast %1124 : vector<8x1xf32> to vector<8x16xf32>
    %1126 = arith.subf %1013, %1125 : vector<8x16xf32>
    %cst_469 = arith.constant 0.000000e+00 : f32
    %1127 = vector.broadcast %cst_469 : f32 to vector<8x16xf32>
    %1128 = arith.maximumf %1126, %1127 : vector<8x16xf32>
    %cst_470 = arith.constant dense<0.000000e+00> : vector<8xf32>
    %1129 = vector.multi_reduction <add>, %1128, %cst_470 [1] : vector<8x16xf32> to vector<8xf32>
    %1130 = vector.shape_cast %1129 : vector<8xf32> to vector<8x1xf32>
    %cst_471 = arith.constant 1.000000e+00 : f32
    %1131 = vector.broadcast %cst_471 : f32 to vector<8x1xf32>
    %1132 = arith.cmpf ogt, %1130, %1131 : vector<8x1xf32>
    %1133 = arith.select %1132, %1124, %1120 : vector<8x1xi1>, vector<8x1xf32>
    %1134 = arith.select %1132, %1121, %1124 : vector<8x1xi1>, vector<8x1xf32>
    %c9_i32_472 = arith.constant 9 : i32
    %1135 = arith.addf %1133, %1134 : vector<8x1xf32>
    %cst_473 = arith.constant 5.000000e-01 : f32
    %1136 = vector.broadcast %cst_473 : f32 to vector<8x1xf32>
    %1137 = arith.mulf %1136, %1135 : vector<8x1xf32>
    %1138 = vector.broadcast %1137 : vector<8x1xf32> to vector<8x16xf32>
    %1139 = arith.subf %1013, %1138 : vector<8x16xf32>
    %cst_474 = arith.constant 0.000000e+00 : f32
    %1140 = vector.broadcast %cst_474 : f32 to vector<8x16xf32>
    %1141 = arith.maximumf %1139, %1140 : vector<8x16xf32>
    %cst_475 = arith.constant dense<0.000000e+00> : vector<8xf32>
    %1142 = vector.multi_reduction <add>, %1141, %cst_475 [1] : vector<8x16xf32> to vector<8xf32>
    %1143 = vector.shape_cast %1142 : vector<8xf32> to vector<8x1xf32>
    %cst_476 = arith.constant 1.000000e+00 : f32
    %1144 = vector.broadcast %cst_476 : f32 to vector<8x1xf32>
    %1145 = arith.cmpf ogt, %1143, %1144 : vector<8x1xf32>
    %1146 = arith.select %1145, %1137, %1133 : vector<8x1xi1>, vector<8x1xf32>
    %1147 = arith.select %1145, %1134, %1137 : vector<8x1xi1>, vector<8x1xf32>
    %c10_i32_477 = arith.constant 10 : i32
    %1148 = arith.addf %1146, %1147 : vector<8x1xf32>
    %cst_478 = arith.constant 5.000000e-01 : f32
    %1149 = vector.broadcast %cst_478 : f32 to vector<8x1xf32>
    %1150 = arith.mulf %1149, %1148 : vector<8x1xf32>
    %1151 = vector.broadcast %1150 : vector<8x1xf32> to vector<8x16xf32>
    %1152 = arith.subf %1013, %1151 : vector<8x16xf32>
    %cst_479 = arith.constant 0.000000e+00 : f32
    %1153 = vector.broadcast %cst_479 : f32 to vector<8x16xf32>
    %1154 = arith.maximumf %1152, %1153 : vector<8x16xf32>
    %cst_480 = arith.constant dense<0.000000e+00> : vector<8xf32>
    %1155 = vector.multi_reduction <add>, %1154, %cst_480 [1] : vector<8x16xf32> to vector<8xf32>
    %1156 = vector.shape_cast %1155 : vector<8xf32> to vector<8x1xf32>
    %cst_481 = arith.constant 1.000000e+00 : f32
    %1157 = vector.broadcast %cst_481 : f32 to vector<8x1xf32>
    %1158 = arith.cmpf ogt, %1156, %1157 : vector<8x1xf32>
    %1159 = arith.select %1158, %1150, %1146 : vector<8x1xi1>, vector<8x1xf32>
    %1160 = arith.select %1158, %1147, %1150 : vector<8x1xi1>, vector<8x1xf32>
    %c11_i32_482 = arith.constant 11 : i32
    %1161 = arith.addf %1159, %1160 : vector<8x1xf32>
    %cst_483 = arith.constant 5.000000e-01 : f32
    %1162 = vector.broadcast %cst_483 : f32 to vector<8x1xf32>
    %1163 = arith.mulf %1162, %1161 : vector<8x1xf32>
    %1164 = vector.broadcast %1163 : vector<8x1xf32> to vector<8x16xf32>
    %1165 = arith.subf %1013, %1164 : vector<8x16xf32>
    %cst_484 = arith.constant 0.000000e+00 : f32
    %1166 = vector.broadcast %cst_484 : f32 to vector<8x16xf32>
    %1167 = arith.maximumf %1165, %1166 : vector<8x16xf32>
    %cst_485 = arith.constant dense<0.000000e+00> : vector<8xf32>
    %1168 = vector.multi_reduction <add>, %1167, %cst_485 [1] : vector<8x16xf32> to vector<8xf32>
    %1169 = vector.shape_cast %1168 : vector<8xf32> to vector<8x1xf32>
    %cst_486 = arith.constant 1.000000e+00 : f32
    %1170 = vector.broadcast %cst_486 : f32 to vector<8x1xf32>
    %1171 = arith.cmpf ogt, %1169, %1170 : vector<8x1xf32>
    %1172 = arith.select %1171, %1163, %1159 : vector<8x1xi1>, vector<8x1xf32>
    %1173 = arith.select %1171, %1160, %1163 : vector<8x1xi1>, vector<8x1xf32>
    %c12_i32_487 = arith.constant 12 : i32
    %1174 = arith.addf %1172, %1173 : vector<8x1xf32>
    %cst_488 = arith.constant 5.000000e-01 : f32
    %1175 = vector.broadcast %cst_488 : f32 to vector<8x1xf32>
    %1176 = arith.mulf %1175, %1174 : vector<8x1xf32>
    %1177 = vector.broadcast %1176 : vector<8x1xf32> to vector<8x16xf32>
    %1178 = arith.subf %1013, %1177 : vector<8x16xf32>
    %cst_489 = arith.constant 0.000000e+00 : f32
    %1179 = vector.broadcast %cst_489 : f32 to vector<8x16xf32>
    %1180 = arith.maximumf %1178, %1179 : vector<8x16xf32>
    %cst_490 = arith.constant dense<0.000000e+00> : vector<8xf32>
    %1181 = vector.multi_reduction <add>, %1180, %cst_490 [1] : vector<8x16xf32> to vector<8xf32>
    %1182 = vector.shape_cast %1181 : vector<8xf32> to vector<8x1xf32>
    %cst_491 = arith.constant 1.000000e+00 : f32
    %1183 = vector.broadcast %cst_491 : f32 to vector<8x1xf32>
    %1184 = arith.cmpf ogt, %1182, %1183 : vector<8x1xf32>
    %1185 = arith.select %1184, %1176, %1172 : vector<8x1xi1>, vector<8x1xf32>
    %1186 = arith.select %1184, %1173, %1176 : vector<8x1xi1>, vector<8x1xf32>
    %c13_i32_492 = arith.constant 13 : i32
    %1187 = arith.addf %1185, %1186 : vector<8x1xf32>
    %cst_493 = arith.constant 5.000000e-01 : f32
    %1188 = vector.broadcast %cst_493 : f32 to vector<8x1xf32>
    %1189 = arith.mulf %1188, %1187 : vector<8x1xf32>
    %1190 = vector.broadcast %1189 : vector<8x1xf32> to vector<8x16xf32>
    %1191 = arith.subf %1013, %1190 : vector<8x16xf32>
    %cst_494 = arith.constant 0.000000e+00 : f32
    %1192 = vector.broadcast %cst_494 : f32 to vector<8x16xf32>
    %1193 = arith.maximumf %1191, %1192 : vector<8x16xf32>
    %cst_495 = arith.constant dense<0.000000e+00> : vector<8xf32>
    %1194 = vector.multi_reduction <add>, %1193, %cst_495 [1] : vector<8x16xf32> to vector<8xf32>
    %1195 = vector.shape_cast %1194 : vector<8xf32> to vector<8x1xf32>
    %cst_496 = arith.constant 1.000000e+00 : f32
    %1196 = vector.broadcast %cst_496 : f32 to vector<8x1xf32>
    %1197 = arith.cmpf ogt, %1195, %1196 : vector<8x1xf32>
    %1198 = arith.select %1197, %1189, %1185 : vector<8x1xi1>, vector<8x1xf32>
    %1199 = arith.select %1197, %1186, %1189 : vector<8x1xi1>, vector<8x1xf32>
    %c14_i32_497 = arith.constant 14 : i32
    %1200 = arith.addf %1198, %1199 : vector<8x1xf32>
    %cst_498 = arith.constant 5.000000e-01 : f32
    %1201 = vector.broadcast %cst_498 : f32 to vector<8x1xf32>
    %1202 = arith.mulf %1201, %1200 : vector<8x1xf32>
    %1203 = vector.broadcast %1202 : vector<8x1xf32> to vector<8x16xf32>
    %1204 = arith.subf %1013, %1203 : vector<8x16xf32>
    %cst_499 = arith.constant 0.000000e+00 : f32
    %1205 = vector.broadcast %cst_499 : f32 to vector<8x16xf32>
    %1206 = arith.maximumf %1204, %1205 : vector<8x16xf32>
    %cst_500 = arith.constant dense<0.000000e+00> : vector<8xf32>
    %1207 = vector.multi_reduction <add>, %1206, %cst_500 [1] : vector<8x16xf32> to vector<8xf32>
    %1208 = vector.shape_cast %1207 : vector<8xf32> to vector<8x1xf32>
    %cst_501 = arith.constant 1.000000e+00 : f32
    %1209 = vector.broadcast %cst_501 : f32 to vector<8x1xf32>
    %1210 = arith.cmpf ogt, %1208, %1209 : vector<8x1xf32>
    %1211 = arith.select %1210, %1202, %1198 : vector<8x1xi1>, vector<8x1xf32>
    %1212 = arith.select %1210, %1199, %1202 : vector<8x1xi1>, vector<8x1xf32>
    %c15_i32_502 = arith.constant 15 : i32
    %1213 = arith.addf %1211, %1212 : vector<8x1xf32>
    %cst_503 = arith.constant 5.000000e-01 : f32
    %1214 = vector.broadcast %cst_503 : f32 to vector<8x1xf32>
    %1215 = arith.mulf %1214, %1213 : vector<8x1xf32>
    %1216 = vector.broadcast %1215 : vector<8x1xf32> to vector<8x16xf32>
    %1217 = arith.subf %1013, %1216 : vector<8x16xf32>
    %cst_504 = arith.constant 0.000000e+00 : f32
    %1218 = vector.broadcast %cst_504 : f32 to vector<8x16xf32>
    %1219 = arith.maximumf %1217, %1218 : vector<8x16xf32>
    %cst_505 = arith.constant dense<0.000000e+00> : vector<8xf32>
    %1220 = vector.multi_reduction <add>, %1219, %cst_505 [1] : vector<8x16xf32> to vector<8xf32>
    %1221 = vector.shape_cast %1220 : vector<8xf32> to vector<8x1xf32>
    %cst_506 = arith.constant 1.000000e+00 : f32
    %1222 = vector.broadcast %cst_506 : f32 to vector<8x1xf32>
    %1223 = arith.cmpf ogt, %1221, %1222 : vector<8x1xf32>
    %1224 = arith.select %1223, %1215, %1211 : vector<8x1xi1>, vector<8x1xf32>
    %1225 = arith.select %1223, %1212, %1215 : vector<8x1xi1>, vector<8x1xf32>
    %c16_i32_507 = arith.constant 16 : i32
    %1226 = arith.addf %1224, %1225 : vector<8x1xf32>
    %cst_508 = arith.constant 5.000000e-01 : f32
    %1227 = vector.broadcast %cst_508 : f32 to vector<8x1xf32>
    %1228 = arith.mulf %1227, %1226 : vector<8x1xf32>
    %1229 = vector.broadcast %1228 : vector<8x1xf32> to vector<8x16xf32>
    %1230 = arith.subf %1013, %1229 : vector<8x16xf32>
    %cst_509 = arith.constant 0.000000e+00 : f32
    %1231 = vector.broadcast %cst_509 : f32 to vector<8x16xf32>
    %1232 = arith.maximumf %1230, %1231 : vector<8x16xf32>
    %cst_510 = arith.constant dense<0.000000e+00> : vector<8xf32>
    %1233 = vector.multi_reduction <add>, %1232, %cst_510 [1] : vector<8x16xf32> to vector<8xf32>
    %1234 = vector.shape_cast %1233 : vector<8xf32> to vector<8x1xf32>
    %cst_511 = arith.constant 1.000000e+00 : f32
    %1235 = vector.broadcast %cst_511 : f32 to vector<8x1xf32>
    %1236 = arith.cmpf ogt, %1234, %1235 : vector<8x1xf32>
    %1237 = arith.select %1236, %1228, %1224 : vector<8x1xi1>, vector<8x1xf32>
    %1238 = arith.select %1236, %1225, %1228 : vector<8x1xi1>, vector<8x1xf32>
    %c17_i32_512 = arith.constant 17 : i32
    %1239 = arith.addf %1237, %1238 : vector<8x1xf32>
    %cst_513 = arith.constant 5.000000e-01 : f32
    %1240 = vector.broadcast %cst_513 : f32 to vector<8x1xf32>
    %1241 = arith.mulf %1240, %1239 : vector<8x1xf32>
    %1242 = vector.broadcast %1241 : vector<8x1xf32> to vector<8x16xf32>
    %1243 = arith.subf %1013, %1242 : vector<8x16xf32>
    %cst_514 = arith.constant 0.000000e+00 : f32
    %1244 = vector.broadcast %cst_514 : f32 to vector<8x16xf32>
    %1245 = arith.maximumf %1243, %1244 : vector<8x16xf32>
    %cst_515 = arith.constant dense<0.000000e+00> : vector<8xf32>
    %1246 = vector.multi_reduction <add>, %1245, %cst_515 [1] : vector<8x16xf32> to vector<8xf32>
    %1247 = vector.shape_cast %1246 : vector<8xf32> to vector<8x1xf32>
    %cst_516 = arith.constant 1.000000e+00 : f32
    %1248 = vector.broadcast %cst_516 : f32 to vector<8x1xf32>
    %1249 = arith.cmpf ogt, %1247, %1248 : vector<8x1xf32>
    %1250 = arith.select %1249, %1241, %1237 : vector<8x1xi1>, vector<8x1xf32>
    %1251 = arith.select %1249, %1238, %1241 : vector<8x1xi1>, vector<8x1xf32>
    %c18_i32_517 = arith.constant 18 : i32
    %1252 = arith.addf %1250, %1251 : vector<8x1xf32>
    %cst_518 = arith.constant 5.000000e-01 : f32
    %1253 = vector.broadcast %cst_518 : f32 to vector<8x1xf32>
    %1254 = arith.mulf %1253, %1252 : vector<8x1xf32>
    %1255 = vector.broadcast %1254 : vector<8x1xf32> to vector<8x16xf32>
    %1256 = arith.subf %1013, %1255 : vector<8x16xf32>
    %cst_519 = arith.constant 0.000000e+00 : f32
    %1257 = vector.broadcast %cst_519 : f32 to vector<8x16xf32>
    %1258 = arith.maximumf %1256, %1257 : vector<8x16xf32>
    %cst_520 = arith.constant dense<0.000000e+00> : vector<8xf32>
    %1259 = vector.multi_reduction <add>, %1258, %cst_520 [1] : vector<8x16xf32> to vector<8xf32>
    %1260 = vector.shape_cast %1259 : vector<8xf32> to vector<8x1xf32>
    %cst_521 = arith.constant 1.000000e+00 : f32
    %1261 = vector.broadcast %cst_521 : f32 to vector<8x1xf32>
    %1262 = arith.cmpf ogt, %1260, %1261 : vector<8x1xf32>
    %1263 = arith.select %1262, %1254, %1250 : vector<8x1xi1>, vector<8x1xf32>
    %1264 = arith.select %1262, %1251, %1254 : vector<8x1xi1>, vector<8x1xf32>
    %c19_i32_522 = arith.constant 19 : i32
    %1265 = arith.addf %1263, %1264 : vector<8x1xf32>
    %cst_523 = arith.constant 5.000000e-01 : f32
    %1266 = vector.broadcast %cst_523 : f32 to vector<8x1xf32>
    %1267 = arith.mulf %1266, %1265 : vector<8x1xf32>
    %1268 = vector.broadcast %1267 : vector<8x1xf32> to vector<8x16xf32>
    %1269 = arith.subf %1013, %1268 : vector<8x16xf32>
    %cst_524 = arith.constant 0.000000e+00 : f32
    %1270 = vector.broadcast %cst_524 : f32 to vector<8x16xf32>
    %1271 = arith.maximumf %1269, %1270 : vector<8x16xf32>
    %cst_525 = arith.constant dense<0.000000e+00> : vector<8xf32>
    %1272 = vector.multi_reduction <add>, %1271, %cst_525 [1] : vector<8x16xf32> to vector<8xf32>
    %1273 = vector.shape_cast %1272 : vector<8xf32> to vector<8x1xf32>
    %cst_526 = arith.constant 1.000000e+00 : f32
    %1274 = vector.broadcast %cst_526 : f32 to vector<8x1xf32>
    %1275 = arith.cmpf ogt, %1273, %1274 : vector<8x1xf32>
    %1276 = arith.select %1275, %1267, %1263 : vector<8x1xi1>, vector<8x1xf32>
    %1277 = arith.select %1275, %1264, %1267 : vector<8x1xi1>, vector<8x1xf32>
    %c20_i32_527 = arith.constant 20 : i32
    %1278 = arith.addf %1276, %1277 : vector<8x1xf32>
    %cst_528 = arith.constant 5.000000e-01 : f32
    %1279 = vector.broadcast %cst_528 : f32 to vector<8x1xf32>
    %1280 = arith.mulf %1279, %1278 : vector<8x1xf32>
    %1281 = vector.broadcast %1280 : vector<8x1xf32> to vector<8x16xf32>
    %1282 = arith.subf %1013, %1281 : vector<8x16xf32>
    %cst_529 = arith.constant 0.000000e+00 : f32
    %1283 = vector.broadcast %cst_529 : f32 to vector<8x16xf32>
    %1284 = arith.maximumf %1282, %1283 : vector<8x16xf32>
    %cst_530 = arith.constant dense<0.000000e+00> : vector<8xf32>
    %1285 = vector.multi_reduction <add>, %1284, %cst_530 [1] : vector<8x16xf32> to vector<8xf32>
    %1286 = vector.shape_cast %1285 : vector<8xf32> to vector<8x1xf32>
    %cst_531 = arith.constant 1.000000e+00 : f32
    %1287 = vector.broadcast %cst_531 : f32 to vector<8x1xf32>
    %1288 = arith.cmpf ogt, %1286, %1287 : vector<8x1xf32>
    %1289 = arith.select %1288, %1280, %1276 : vector<8x1xi1>, vector<8x1xf32>
    %1290 = arith.select %1288, %1277, %1280 : vector<8x1xi1>, vector<8x1xf32>
    %c21_i32_532 = arith.constant 21 : i32
    %1291 = arith.addf %1289, %1290 : vector<8x1xf32>
    %cst_533 = arith.constant 5.000000e-01 : f32
    %1292 = vector.broadcast %cst_533 : f32 to vector<8x1xf32>
    %1293 = arith.mulf %1292, %1291 : vector<8x1xf32>
    %1294 = vector.broadcast %1293 : vector<8x1xf32> to vector<8x16xf32>
    %1295 = arith.subf %1013, %1294 : vector<8x16xf32>
    %cst_534 = arith.constant 0.000000e+00 : f32
    %1296 = vector.broadcast %cst_534 : f32 to vector<8x16xf32>
    %1297 = arith.maximumf %1295, %1296 : vector<8x16xf32>
    %cst_535 = arith.constant dense<0.000000e+00> : vector<8xf32>
    %1298 = vector.multi_reduction <add>, %1297, %cst_535 [1] : vector<8x16xf32> to vector<8xf32>
    %1299 = vector.shape_cast %1298 : vector<8xf32> to vector<8x1xf32>
    %cst_536 = arith.constant 1.000000e+00 : f32
    %1300 = vector.broadcast %cst_536 : f32 to vector<8x1xf32>
    %1301 = arith.cmpf ogt, %1299, %1300 : vector<8x1xf32>
    %1302 = arith.select %1301, %1293, %1289 : vector<8x1xi1>, vector<8x1xf32>
    %1303 = arith.select %1301, %1290, %1293 : vector<8x1xi1>, vector<8x1xf32>
    %c22_i32_537 = arith.constant 22 : i32
    %1304 = arith.addf %1302, %1303 : vector<8x1xf32>
    %cst_538 = arith.constant 5.000000e-01 : f32
    %1305 = vector.broadcast %cst_538 : f32 to vector<8x1xf32>
    %1306 = arith.mulf %1305, %1304 : vector<8x1xf32>
    %1307 = vector.broadcast %1306 : vector<8x1xf32> to vector<8x16xf32>
    %1308 = arith.subf %1013, %1307 : vector<8x16xf32>
    %cst_539 = arith.constant 0.000000e+00 : f32
    %1309 = vector.broadcast %cst_539 : f32 to vector<8x16xf32>
    %1310 = arith.maximumf %1308, %1309 : vector<8x16xf32>
    %cst_540 = arith.constant dense<0.000000e+00> : vector<8xf32>
    %1311 = vector.multi_reduction <add>, %1310, %cst_540 [1] : vector<8x16xf32> to vector<8xf32>
    %1312 = vector.shape_cast %1311 : vector<8xf32> to vector<8x1xf32>
    %cst_541 = arith.constant 1.000000e+00 : f32
    %1313 = vector.broadcast %cst_541 : f32 to vector<8x1xf32>
    %1314 = arith.cmpf ogt, %1312, %1313 : vector<8x1xf32>
    %1315 = arith.select %1314, %1306, %1302 : vector<8x1xi1>, vector<8x1xf32>
    %1316 = arith.select %1314, %1303, %1306 : vector<8x1xi1>, vector<8x1xf32>
    %c23_i32_542 = arith.constant 23 : i32
    %1317 = arith.addf %1315, %1316 : vector<8x1xf32>
    %cst_543 = arith.constant 5.000000e-01 : f32
    %1318 = vector.broadcast %cst_543 : f32 to vector<8x1xf32>
    %1319 = arith.mulf %1318, %1317 : vector<8x1xf32>
    %1320 = vector.broadcast %1319 : vector<8x1xf32> to vector<8x16xf32>
    %1321 = arith.subf %1013, %1320 : vector<8x16xf32>
    %cst_544 = arith.constant 0.000000e+00 : f32
    %1322 = vector.broadcast %cst_544 : f32 to vector<8x16xf32>
    %1323 = arith.maximumf %1321, %1322 : vector<8x16xf32>
    %cst_545 = arith.constant dense<0.000000e+00> : vector<8xf32>
    %1324 = vector.multi_reduction <add>, %1323, %cst_545 [1] : vector<8x16xf32> to vector<8xf32>
    %1325 = vector.shape_cast %1324 : vector<8xf32> to vector<8x1xf32>
    %cst_546 = arith.constant 1.000000e+00 : f32
    %1326 = vector.broadcast %cst_546 : f32 to vector<8x1xf32>
    %1327 = arith.cmpf ogt, %1325, %1326 : vector<8x1xf32>
    %1328 = arith.select %1327, %1319, %1315 : vector<8x1xi1>, vector<8x1xf32>
    %1329 = arith.select %1327, %1316, %1319 : vector<8x1xi1>, vector<8x1xf32>
    %c24_i32_547 = arith.constant 24 : i32
    %1330 = arith.addf %1328, %1329 : vector<8x1xf32>
    %cst_548 = arith.constant 5.000000e-01 : f32
    %1331 = vector.broadcast %cst_548 : f32 to vector<8x1xf32>
    %1332 = arith.mulf %1331, %1330 : vector<8x1xf32>
    %1333 = vector.broadcast %1332 : vector<8x1xf32> to vector<8x16xf32>
    %1334 = arith.subf %1013, %1333 : vector<8x16xf32>
    %cst_549 = arith.constant 0.000000e+00 : f32
    %1335 = vector.broadcast %cst_549 : f32 to vector<8x16xf32>
    %1336 = arith.maximumf %1334, %1335 : vector<8x16xf32>
    %cst_550 = arith.constant dense<0.000000e+00> : vector<8xf32>
    %1337 = vector.multi_reduction <add>, %1336, %cst_550 [1] : vector<8x16xf32> to vector<8xf32>
    %1338 = vector.shape_cast %1337 : vector<8xf32> to vector<8x1xf32>
    %cst_551 = arith.constant 1.000000e+00 : f32
    %1339 = vector.broadcast %cst_551 : f32 to vector<8x1xf32>
    %1340 = arith.cmpf ogt, %1338, %1339 : vector<8x1xf32>
    %1341 = arith.select %1340, %1332, %1328 : vector<8x1xi1>, vector<8x1xf32>
    %1342 = arith.select %1340, %1329, %1332 : vector<8x1xi1>, vector<8x1xf32>
    %c25_i32_552 = arith.constant 25 : i32
    %1343 = arith.addf %1341, %1342 : vector<8x1xf32>
    %cst_553 = arith.constant 5.000000e-01 : f32
    %1344 = vector.broadcast %cst_553 : f32 to vector<8x1xf32>
    %1345 = arith.mulf %1344, %1343 : vector<8x1xf32>
    %1346 = vector.broadcast %1345 : vector<8x1xf32> to vector<8x16xf32>
    %1347 = arith.subf %1013, %1346 : vector<8x16xf32>
    %cst_554 = arith.constant 0.000000e+00 : f32
    %1348 = vector.broadcast %cst_554 : f32 to vector<8x16xf32>
    %1349 = arith.maximumf %1347, %1348 : vector<8x16xf32>
    %cst_555 = arith.constant dense<0.000000e+00> : vector<8xf32>
    %1350 = vector.multi_reduction <add>, %1349, %cst_555 [1] : vector<8x16xf32> to vector<8xf32>
    %1351 = vector.shape_cast %1350 : vector<8xf32> to vector<8x1xf32>
    %cst_556 = arith.constant 1.000000e+00 : f32
    %1352 = vector.broadcast %cst_556 : f32 to vector<8x1xf32>
    %1353 = arith.cmpf ogt, %1351, %1352 : vector<8x1xf32>
    %1354 = arith.select %1353, %1345, %1341 : vector<8x1xi1>, vector<8x1xf32>
    %1355 = arith.select %1353, %1342, %1345 : vector<8x1xi1>, vector<8x1xf32>
    %c26_i32_557 = arith.constant 26 : i32
    %1356 = arith.addf %1354, %1355 : vector<8x1xf32>
    %cst_558 = arith.constant 5.000000e-01 : f32
    %1357 = vector.broadcast %cst_558 : f32 to vector<8x1xf32>
    %1358 = arith.mulf %1357, %1356 : vector<8x1xf32>
    %1359 = vector.broadcast %1358 : vector<8x1xf32> to vector<8x16xf32>
    %1360 = arith.subf %1013, %1359 : vector<8x16xf32>
    %cst_559 = arith.constant 0.000000e+00 : f32
    %1361 = vector.broadcast %cst_559 : f32 to vector<8x16xf32>
    %1362 = arith.maximumf %1360, %1361 : vector<8x16xf32>
    %cst_560 = arith.constant dense<0.000000e+00> : vector<8xf32>
    %1363 = vector.multi_reduction <add>, %1362, %cst_560 [1] : vector<8x16xf32> to vector<8xf32>
    %1364 = vector.shape_cast %1363 : vector<8xf32> to vector<8x1xf32>
    %cst_561 = arith.constant 1.000000e+00 : f32
    %1365 = vector.broadcast %cst_561 : f32 to vector<8x1xf32>
    %1366 = arith.cmpf ogt, %1364, %1365 : vector<8x1xf32>
    %1367 = arith.select %1366, %1358, %1354 : vector<8x1xi1>, vector<8x1xf32>
    %1368 = arith.select %1366, %1355, %1358 : vector<8x1xi1>, vector<8x1xf32>
    %c27_i32_562 = arith.constant 27 : i32
    %1369 = arith.addf %1367, %1368 : vector<8x1xf32>
    %cst_563 = arith.constant 5.000000e-01 : f32
    %1370 = vector.broadcast %cst_563 : f32 to vector<8x1xf32>
    %1371 = arith.mulf %1370, %1369 : vector<8x1xf32>
    %1372 = vector.broadcast %1371 : vector<8x1xf32> to vector<8x16xf32>
    %1373 = arith.subf %1013, %1372 : vector<8x16xf32>
    %cst_564 = arith.constant 0.000000e+00 : f32
    %1374 = vector.broadcast %cst_564 : f32 to vector<8x16xf32>
    %1375 = arith.maximumf %1373, %1374 : vector<8x16xf32>
    %cst_565 = arith.constant dense<0.000000e+00> : vector<8xf32>
    %1376 = vector.multi_reduction <add>, %1375, %cst_565 [1] : vector<8x16xf32> to vector<8xf32>
    %1377 = vector.shape_cast %1376 : vector<8xf32> to vector<8x1xf32>
    %cst_566 = arith.constant 1.000000e+00 : f32
    %1378 = vector.broadcast %cst_566 : f32 to vector<8x1xf32>
    %1379 = arith.cmpf ogt, %1377, %1378 : vector<8x1xf32>
    %1380 = arith.select %1379, %1371, %1367 : vector<8x1xi1>, vector<8x1xf32>
    %1381 = arith.select %1379, %1368, %1371 : vector<8x1xi1>, vector<8x1xf32>
    %c28_i32_567 = arith.constant 28 : i32
    %1382 = arith.addf %1380, %1381 : vector<8x1xf32>
    %cst_568 = arith.constant 5.000000e-01 : f32
    %1383 = vector.broadcast %cst_568 : f32 to vector<8x1xf32>
    %1384 = arith.mulf %1383, %1382 : vector<8x1xf32>
    %1385 = vector.broadcast %1384 : vector<8x1xf32> to vector<8x16xf32>
    %1386 = arith.subf %1013, %1385 : vector<8x16xf32>
    %cst_569 = arith.constant 0.000000e+00 : f32
    %1387 = vector.broadcast %cst_569 : f32 to vector<8x16xf32>
    %1388 = arith.maximumf %1386, %1387 : vector<8x16xf32>
    %cst_570 = arith.constant dense<0.000000e+00> : vector<8xf32>
    %1389 = vector.multi_reduction <add>, %1388, %cst_570 [1] : vector<8x16xf32> to vector<8xf32>
    %1390 = vector.shape_cast %1389 : vector<8xf32> to vector<8x1xf32>
    %cst_571 = arith.constant 1.000000e+00 : f32
    %1391 = vector.broadcast %cst_571 : f32 to vector<8x1xf32>
    %1392 = arith.cmpf ogt, %1390, %1391 : vector<8x1xf32>
    %1393 = arith.select %1392, %1384, %1380 : vector<8x1xi1>, vector<8x1xf32>
    %1394 = arith.select %1392, %1381, %1384 : vector<8x1xi1>, vector<8x1xf32>
    %c29_i32_572 = arith.constant 29 : i32
    %1395 = arith.addf %1393, %1394 : vector<8x1xf32>
    %cst_573 = arith.constant 5.000000e-01 : f32
    %1396 = vector.broadcast %cst_573 : f32 to vector<8x1xf32>
    %1397 = arith.mulf %1396, %1395 : vector<8x1xf32>
    %1398 = vector.broadcast %1397 : vector<8x1xf32> to vector<8x16xf32>
    %1399 = arith.subf %1013, %1398 : vector<8x16xf32>
    %cst_574 = arith.constant 0.000000e+00 : f32
    %1400 = vector.broadcast %cst_574 : f32 to vector<8x16xf32>
    %1401 = arith.maximumf %1399, %1400 : vector<8x16xf32>
    %cst_575 = arith.constant dense<0.000000e+00> : vector<8xf32>
    %1402 = vector.multi_reduction <add>, %1401, %cst_575 [1] : vector<8x16xf32> to vector<8xf32>
    %1403 = vector.shape_cast %1402 : vector<8xf32> to vector<8x1xf32>
    %cst_576 = arith.constant 1.000000e+00 : f32
    %1404 = vector.broadcast %cst_576 : f32 to vector<8x1xf32>
    %1405 = arith.cmpf ogt, %1403, %1404 : vector<8x1xf32>
    %1406 = arith.select %1405, %1397, %1393 : vector<8x1xi1>, vector<8x1xf32>
    %1407 = arith.select %1405, %1394, %1397 : vector<8x1xi1>, vector<8x1xf32>
    %1408 = arith.addf %1406, %1407 : vector<8x1xf32>
    %cst_577 = arith.constant 5.000000e-01 : f32
    %1409 = vector.broadcast %cst_577 : f32 to vector<8x1xf32>
    %1410 = arith.mulf %1409, %1408 : vector<8x1xf32>
    %1411 = vector.broadcast %1410 : vector<8x1xf32> to vector<8x16xf32>
    %1412 = arith.subf %1013, %1411 : vector<8x16xf32>
    %cst_578 = arith.constant 0.000000e+00 : f32
    %1413 = vector.broadcast %cst_578 : f32 to vector<8x16xf32>
    %1414 = arith.maximumf %1412, %1413 : vector<8x16xf32>
    %cst_579 = arith.constant 1.000000e-15 : f32
    %1415 = vector.broadcast %cst_579 : f32 to vector<8x16xf32>
    %1416 = arith.addf %1414, %1415 : vector<8x16xf32>
    %1417 = math.log %1416 : vector<8x16xf32>
    %1418 = arith.mulf %1414, %1417 : vector<8x16xf32>
    %cst_580 = arith.constant dense<0.000000e+00> : vector<8xf32>
    %1419 = vector.multi_reduction <add>, %1418, %cst_580 [1] : vector<8x16xf32> to vector<8xf32>
    %1420 = vector.shape_cast %1419 : vector<8xf32> to vector<8x1xf32>
    %cst_581 = arith.constant dense<0.000000e+00> : vector<1xf32>
    %1421 = vector.multi_reduction <add>, %1420, %cst_581 [0] : vector<8x1xf32> to vector<1xf32>
    %1422 = vector.shape_cast %1421 : vector<1xf32> to vector<1x1xf32>
    %cst_582 = arith.constant 8.000000e+00 : f32
    %1423 = vector.broadcast %cst_582 : f32 to vector<1x1xf32>
    %1424 = arith.divf %1422, %1423 : vector<1x1xf32>
    %1425 = arith.addf %724, %1424 : vector<1x1xf32>
    %cst_583 = arith.constant 1.300000e+00 : f32
    %1426 = vector.broadcast %cst_583 : f32 to vector<8x16xf32>
    %1427 = arith.subf %1426, %1414 : vector<8x16xf32>
    %1428 = arith.mulf %1427, %727 : vector<8x16xf32>
    %1429 = arith.mulf %1414, %23 : vector<8x16xf32>
    %cst_584 = arith.constant dense<0.000000e+00> : vector<8x8xf32>
    %1430 = tpu.matmul %1429, %25, %cst_584 {dimension_numbers = #tpu.dot_dimension_numbers<[1], [0], [0], [1], [0, 0, 1, 1], [], []>} : vector<8x16xf32>, vector<16x8xf32>, vector<8x8xf32> -> vector<8x8xf32>
    %cst_585 = arith.constant dense<0.000000e+00> : vector<8x8xf32>
    %1431 = tpu.matmul %1429, %27, %cst_585 {dimension_numbers = #tpu.dot_dimension_numbers<[1], [0], [0], [1], [0, 0, 1, 1], [], []>} : vector<8x16xf32>, vector<16x8xf32>, vector<8x8xf32> -> vector<8x8xf32>
    %c0_586 = arith.constant 0 : index
    %c8 = arith.constant 8 : index
    %c0_587 = arith.constant 0 : index
    %1432 = vector.load %arg5[%c0_586, %c8, %c0_587] : memref<4x16x8xf32, #tpu.memory_space<vmem>>, vector<1x1x8xf32>
    %1433 = vector.shape_cast %1432 : vector<1x1x8xf32> to vector<1x8xf32>
    %c2_588 = arith.constant 2 : index
    %c8_589 = arith.constant 8 : index
    %c0_590 = arith.constant 0 : index
    %1434 = vector.load %arg5[%c2_588, %c8_589, %c0_590] : memref<4x16x8xf32, #tpu.memory_space<vmem>>, vector<1x1x8xf32>
    %1435 = vector.shape_cast %1434 : vector<1x1x8xf32> to vector<1x8xf32>
    %cst_591 = arith.constant dense<0.000000e+00> : vector<8xf32>
    %1436 = vector.multi_reduction <add>, %1430, %cst_591 [0] : vector<8x8xf32> to vector<8xf32>
    %1437 = vector.shape_cast %1436 : vector<8xf32> to vector<1x8xf32>
    %cst_592 = arith.constant 1.250000e-01 : f32
    %1438 = vector.broadcast %cst_592 : f32 to vector<1x8xf32>
    %1439 = arith.mulf %1437, %1438 : vector<1x8xf32>
    %1440 = arith.mulf %1430, %1430 : vector<8x8xf32>
    %cst_593 = arith.constant dense<0.000000e+00> : vector<8xf32>
    %1441 = vector.multi_reduction <add>, %1440, %cst_593 [0] : vector<8x8xf32> to vector<8xf32>
    %1442 = vector.shape_cast %1441 : vector<8xf32> to vector<1x8xf32>
    %cst_594 = arith.constant 1.250000e-01 : f32
    %1443 = vector.broadcast %cst_594 : f32 to vector<1x8xf32>
    %1444 = arith.mulf %1442, %1443 : vector<1x8xf32>
    %1445 = arith.mulf %1439, %1439 : vector<1x8xf32>
    %1446 = arith.subf %1444, %1445 : vector<1x8xf32>
    %cst_595 = arith.constant 9.99999974E-6 : f32
    %1447 = vector.broadcast %cst_595 : f32 to vector<1x8xf32>
    %1448 = arith.addf %1446, %1447 : vector<1x8xf32>
    %1449 = math.rsqrt %1448 : vector<1x8xf32>
    %1450 = arith.mulf %1433, %1449 : vector<1x8xf32>
    %1451 = arith.mulf %1439, %1450 : vector<1x8xf32>
    %1452 = arith.subf %1435, %1451 : vector<1x8xf32>
    %1453 = vector.broadcast %1450 : vector<1x8xf32> to vector<8x8xf32>
    %1454 = arith.mulf %1430, %1453 : vector<8x8xf32>
    %1455 = vector.broadcast %1452 : vector<1x8xf32> to vector<8x8xf32>
    %1456 = arith.addf %1454, %1455 : vector<8x8xf32>
    %c1_596 = arith.constant 1 : index
    %c8_597 = arith.constant 8 : index
    %c0_598 = arith.constant 0 : index
    %1457 = vector.load %arg5[%c1_596, %c8_597, %c0_598] : memref<4x16x8xf32, #tpu.memory_space<vmem>>, vector<1x1x8xf32>
    %1458 = vector.shape_cast %1457 : vector<1x1x8xf32> to vector<1x8xf32>
    %c3_599 = arith.constant 3 : index
    %c8_600 = arith.constant 8 : index
    %c0_601 = arith.constant 0 : index
    %1459 = vector.load %arg5[%c3_599, %c8_600, %c0_601] : memref<4x16x8xf32, #tpu.memory_space<vmem>>, vector<1x1x8xf32>
    %1460 = vector.shape_cast %1459 : vector<1x1x8xf32> to vector<1x8xf32>
    %cst_602 = arith.constant dense<0.000000e+00> : vector<8xf32>
    %1461 = vector.multi_reduction <add>, %1431, %cst_602 [0] : vector<8x8xf32> to vector<8xf32>
    %1462 = vector.shape_cast %1461 : vector<8xf32> to vector<1x8xf32>
    %cst_603 = arith.constant 1.250000e-01 : f32
    %1463 = vector.broadcast %cst_603 : f32 to vector<1x8xf32>
    %1464 = arith.mulf %1462, %1463 : vector<1x8xf32>
    %1465 = arith.mulf %1431, %1431 : vector<8x8xf32>
    %cst_604 = arith.constant dense<0.000000e+00> : vector<8xf32>
    %1466 = vector.multi_reduction <add>, %1465, %cst_604 [0] : vector<8x8xf32> to vector<8xf32>
    %1467 = vector.shape_cast %1466 : vector<8xf32> to vector<1x8xf32>
    %cst_605 = arith.constant 1.250000e-01 : f32
    %1468 = vector.broadcast %cst_605 : f32 to vector<1x8xf32>
    %1469 = arith.mulf %1467, %1468 : vector<1x8xf32>
    %1470 = arith.mulf %1464, %1464 : vector<1x8xf32>
    %1471 = arith.subf %1469, %1470 : vector<1x8xf32>
    %cst_606 = arith.constant 9.99999974E-6 : f32
    %1472 = vector.broadcast %cst_606 : f32 to vector<1x8xf32>
    %1473 = arith.addf %1471, %1472 : vector<1x8xf32>
    %1474 = math.rsqrt %1473 : vector<1x8xf32>
    %1475 = arith.mulf %1458, %1474 : vector<1x8xf32>
    %1476 = arith.mulf %1464, %1475 : vector<1x8xf32>
    %1477 = arith.subf %1460, %1476 : vector<1x8xf32>
    %1478 = vector.broadcast %1475 : vector<1x8xf32> to vector<8x8xf32>
    %1479 = arith.mulf %1431, %1478 : vector<8x8xf32>
    %1480 = vector.broadcast %1477 : vector<1x8xf32> to vector<8x8xf32>
    %1481 = arith.addf %1479, %1480 : vector<8x8xf32>
    %1482 = arith.negf %1481 : vector<8x8xf32>
    %1483 = math.exp %1482 : vector<8x8xf32>
    %cst_607 = arith.constant 1.000000e+00 : f32
    %1484 = vector.broadcast %cst_607 : f32 to vector<8x8xf32>
    %1485 = arith.addf %1484, %1483 : vector<8x8xf32>
    %1486 = arith.divf %1484, %1485 : vector<8x8xf32>
    %1487 = arith.mulf %1456, %1486 : vector<8x8xf32>
    %c0_608 = arith.constant 0 : index
    %c0_609 = arith.constant 0 : index
    %c0_610 = arith.constant 0 : index
    %c0_611 = arith.constant 0 : index
    %1488 = vector.load %arg4[%c0_608, %c0_609, %c0_610, %c0_611] : memref<2x9x8x8xf32, #tpu.memory_space<vmem>>, vector<1x1x8x8xf32>
    %1489 = vector.shape_cast %1488 : vector<1x1x8x8xf32> to vector<8x8xf32>
    %c1_612 = arith.constant 1 : index
    %c0_613 = arith.constant 0 : index
    %c0_614 = arith.constant 0 : index
    %c0_615 = arith.constant 0 : index
    %1490 = vector.load %arg4[%c1_612, %c0_613, %c0_614, %c0_615] : memref<2x9x8x8xf32, #tpu.memory_space<vmem>>, vector<1x1x8x8xf32>
    %1491 = vector.shape_cast %1490 : vector<1x1x8x8xf32> to vector<8x8xf32>
    %cst_616 = arith.constant dense<0.000000e+00> : vector<8x8xf32>
    %1492 = tpu.matmul %1487, %1489, %cst_616 {dimension_numbers = #tpu.dot_dimension_numbers<[1], [0], [0], [1], [0, 0, 1, 1], [], []>} : vector<8x8xf32>, vector<8x8xf32>, vector<8x8xf32> -> vector<8x8xf32>
    %cst_617 = arith.constant dense<0.000000e+00> : vector<8x8xf32>
    %1493 = tpu.matmul %1487, %1491, %cst_617 {dimension_numbers = #tpu.dot_dimension_numbers<[1], [0], [0], [1], [0, 0, 1, 1], [], []>} : vector<8x8xf32>, vector<8x8xf32>, vector<8x8xf32> -> vector<8x8xf32>
    %c0_618 = arith.constant 0 : index
    %c9 = arith.constant 9 : index
    %c0_619 = arith.constant 0 : index
    %1494 = vector.load %arg5[%c0_618, %c9, %c0_619] : memref<4x16x8xf32, #tpu.memory_space<vmem>>, vector<1x1x8xf32>
    %1495 = vector.shape_cast %1494 : vector<1x1x8xf32> to vector<1x8xf32>
    %c2_620 = arith.constant 2 : index
    %c9_621 = arith.constant 9 : index
    %c0_622 = arith.constant 0 : index
    %1496 = vector.load %arg5[%c2_620, %c9_621, %c0_622] : memref<4x16x8xf32, #tpu.memory_space<vmem>>, vector<1x1x8xf32>
    %1497 = vector.shape_cast %1496 : vector<1x1x8xf32> to vector<1x8xf32>
    %cst_623 = arith.constant dense<0.000000e+00> : vector<8xf32>
    %1498 = vector.multi_reduction <add>, %1492, %cst_623 [0] : vector<8x8xf32> to vector<8xf32>
    %1499 = vector.shape_cast %1498 : vector<8xf32> to vector<1x8xf32>
    %cst_624 = arith.constant 1.250000e-01 : f32
    %1500 = vector.broadcast %cst_624 : f32 to vector<1x8xf32>
    %1501 = arith.mulf %1499, %1500 : vector<1x8xf32>
    %1502 = arith.mulf %1492, %1492 : vector<8x8xf32>
    %cst_625 = arith.constant dense<0.000000e+00> : vector<8xf32>
    %1503 = vector.multi_reduction <add>, %1502, %cst_625 [0] : vector<8x8xf32> to vector<8xf32>
    %1504 = vector.shape_cast %1503 : vector<8xf32> to vector<1x8xf32>
    %cst_626 = arith.constant 1.250000e-01 : f32
    %1505 = vector.broadcast %cst_626 : f32 to vector<1x8xf32>
    %1506 = arith.mulf %1504, %1505 : vector<1x8xf32>
    %1507 = arith.mulf %1501, %1501 : vector<1x8xf32>
    %1508 = arith.subf %1506, %1507 : vector<1x8xf32>
    %cst_627 = arith.constant 9.99999974E-6 : f32
    %1509 = vector.broadcast %cst_627 : f32 to vector<1x8xf32>
    %1510 = arith.addf %1508, %1509 : vector<1x8xf32>
    %1511 = math.rsqrt %1510 : vector<1x8xf32>
    %1512 = arith.mulf %1495, %1511 : vector<1x8xf32>
    %1513 = arith.mulf %1501, %1512 : vector<1x8xf32>
    %1514 = arith.subf %1497, %1513 : vector<1x8xf32>
    %1515 = vector.broadcast %1512 : vector<1x8xf32> to vector<8x8xf32>
    %1516 = arith.mulf %1492, %1515 : vector<8x8xf32>
    %1517 = vector.broadcast %1514 : vector<1x8xf32> to vector<8x8xf32>
    %1518 = arith.addf %1516, %1517 : vector<8x8xf32>
    %c1_628 = arith.constant 1 : index
    %c9_629 = arith.constant 9 : index
    %c0_630 = arith.constant 0 : index
    %1519 = vector.load %arg5[%c1_628, %c9_629, %c0_630] : memref<4x16x8xf32, #tpu.memory_space<vmem>>, vector<1x1x8xf32>
    %1520 = vector.shape_cast %1519 : vector<1x1x8xf32> to vector<1x8xf32>
    %c3_631 = arith.constant 3 : index
    %c9_632 = arith.constant 9 : index
    %c0_633 = arith.constant 0 : index
    %1521 = vector.load %arg5[%c3_631, %c9_632, %c0_633] : memref<4x16x8xf32, #tpu.memory_space<vmem>>, vector<1x1x8xf32>
    %1522 = vector.shape_cast %1521 : vector<1x1x8xf32> to vector<1x8xf32>
    %cst_634 = arith.constant dense<0.000000e+00> : vector<8xf32>
    %1523 = vector.multi_reduction <add>, %1493, %cst_634 [0] : vector<8x8xf32> to vector<8xf32>
    %1524 = vector.shape_cast %1523 : vector<8xf32> to vector<1x8xf32>
    %cst_635 = arith.constant 1.250000e-01 : f32
    %1525 = vector.broadcast %cst_635 : f32 to vector<1x8xf32>
    %1526 = arith.mulf %1524, %1525 : vector<1x8xf32>
    %1527 = arith.mulf %1493, %1493 : vector<8x8xf32>
    %cst_636 = arith.constant dense<0.000000e+00> : vector<8xf32>
    %1528 = vector.multi_reduction <add>, %1527, %cst_636 [0] : vector<8x8xf32> to vector<8xf32>
    %1529 = vector.shape_cast %1528 : vector<8xf32> to vector<1x8xf32>
    %cst_637 = arith.constant 1.250000e-01 : f32
    %1530 = vector.broadcast %cst_637 : f32 to vector<1x8xf32>
    %1531 = arith.mulf %1529, %1530 : vector<1x8xf32>
    %1532 = arith.mulf %1526, %1526 : vector<1x8xf32>
    %1533 = arith.subf %1531, %1532 : vector<1x8xf32>
    %cst_638 = arith.constant 9.99999974E-6 : f32
    %1534 = vector.broadcast %cst_638 : f32 to vector<1x8xf32>
    %1535 = arith.addf %1533, %1534 : vector<1x8xf32>
    %1536 = math.rsqrt %1535 : vector<1x8xf32>
    %1537 = arith.mulf %1520, %1536 : vector<1x8xf32>
    %1538 = arith.mulf %1526, %1537 : vector<1x8xf32>
    %1539 = arith.subf %1522, %1538 : vector<1x8xf32>
    %1540 = vector.broadcast %1537 : vector<1x8xf32> to vector<8x8xf32>
    %1541 = arith.mulf %1493, %1540 : vector<8x8xf32>
    %1542 = vector.broadcast %1539 : vector<1x8xf32> to vector<8x8xf32>
    %1543 = arith.addf %1541, %1542 : vector<8x8xf32>
    %1544 = arith.negf %1543 : vector<8x8xf32>
    %1545 = math.exp %1544 : vector<8x8xf32>
    %cst_639 = arith.constant 1.000000e+00 : f32
    %1546 = vector.broadcast %cst_639 : f32 to vector<8x8xf32>
    %1547 = arith.addf %1546, %1545 : vector<8x8xf32>
    %1548 = arith.divf %1546, %1547 : vector<8x8xf32>
    %1549 = arith.mulf %1518, %1548 : vector<8x8xf32>
    %1550 = arith.addf %1487, %1549 : vector<8x8xf32>
    %cst_640 = arith.constant 0.707106769 : f32
    %1551 = vector.broadcast %cst_640 : f32 to vector<8x8xf32>
    %1552 = arith.mulf %1550, %1551 : vector<8x8xf32>
    %c0_641 = arith.constant 0 : index
    %c5_642 = arith.constant 5 : index
    %c0_643 = arith.constant 0 : index
    %c0_644 = arith.constant 0 : index
    %1553 = vector.load %arg4[%c0_641, %c5_642, %c0_643, %c0_644] : memref<2x9x8x8xf32, #tpu.memory_space<vmem>>, vector<1x1x8x8xf32>
    %1554 = vector.shape_cast %1553 : vector<1x1x8x8xf32> to vector<8x8xf32>
    %c1_645 = arith.constant 1 : index
    %c5_646 = arith.constant 5 : index
    %c0_647 = arith.constant 0 : index
    %c0_648 = arith.constant 0 : index
    %1555 = vector.load %arg4[%c1_645, %c5_646, %c0_647, %c0_648] : memref<2x9x8x8xf32, #tpu.memory_space<vmem>>, vector<1x1x8x8xf32>
    %1556 = vector.shape_cast %1555 : vector<1x1x8x8xf32> to vector<8x8xf32>
    %cst_649 = arith.constant dense<0.000000e+00> : vector<8x8xf32>
    %1557 = tpu.matmul %1552, %1554, %cst_649 {dimension_numbers = #tpu.dot_dimension_numbers<[1], [0], [0], [1], [0, 0, 1, 1], [], []>} : vector<8x8xf32>, vector<8x8xf32>, vector<8x8xf32> -> vector<8x8xf32>
    %cst_650 = arith.constant dense<0.000000e+00> : vector<8x8xf32>
    %1558 = tpu.matmul %1552, %1556, %cst_650 {dimension_numbers = #tpu.dot_dimension_numbers<[1], [0], [0], [1], [0, 0, 1, 1], [], []>} : vector<8x8xf32>, vector<8x8xf32>, vector<8x8xf32> -> vector<8x8xf32>
    %c0_651 = arith.constant 0 : index
    %c10 = arith.constant 10 : index
    %c0_652 = arith.constant 0 : index
    %1559 = vector.load %arg5[%c0_651, %c10, %c0_652] : memref<4x16x8xf32, #tpu.memory_space<vmem>>, vector<1x1x8xf32>
    %1560 = vector.shape_cast %1559 : vector<1x1x8xf32> to vector<1x8xf32>
    %c2_653 = arith.constant 2 : index
    %c10_654 = arith.constant 10 : index
    %c0_655 = arith.constant 0 : index
    %1561 = vector.load %arg5[%c2_653, %c10_654, %c0_655] : memref<4x16x8xf32, #tpu.memory_space<vmem>>, vector<1x1x8xf32>
    %1562 = vector.shape_cast %1561 : vector<1x1x8xf32> to vector<1x8xf32>
    %cst_656 = arith.constant dense<0.000000e+00> : vector<8xf32>
    %1563 = vector.multi_reduction <add>, %1557, %cst_656 [0] : vector<8x8xf32> to vector<8xf32>
    %1564 = vector.shape_cast %1563 : vector<8xf32> to vector<1x8xf32>
    %cst_657 = arith.constant 1.250000e-01 : f32
    %1565 = vector.broadcast %cst_657 : f32 to vector<1x8xf32>
    %1566 = arith.mulf %1564, %1565 : vector<1x8xf32>
    %1567 = arith.mulf %1557, %1557 : vector<8x8xf32>
    %cst_658 = arith.constant dense<0.000000e+00> : vector<8xf32>
    %1568 = vector.multi_reduction <add>, %1567, %cst_658 [0] : vector<8x8xf32> to vector<8xf32>
    %1569 = vector.shape_cast %1568 : vector<8xf32> to vector<1x8xf32>
    %cst_659 = arith.constant 1.250000e-01 : f32
    %1570 = vector.broadcast %cst_659 : f32 to vector<1x8xf32>
    %1571 = arith.mulf %1569, %1570 : vector<1x8xf32>
    %1572 = arith.mulf %1566, %1566 : vector<1x8xf32>
    %1573 = arith.subf %1571, %1572 : vector<1x8xf32>
    %cst_660 = arith.constant 9.99999974E-6 : f32
    %1574 = vector.broadcast %cst_660 : f32 to vector<1x8xf32>
    %1575 = arith.addf %1573, %1574 : vector<1x8xf32>
    %1576 = math.rsqrt %1575 : vector<1x8xf32>
    %1577 = arith.mulf %1560, %1576 : vector<1x8xf32>
    %1578 = arith.mulf %1566, %1577 : vector<1x8xf32>
    %1579 = arith.subf %1562, %1578 : vector<1x8xf32>
    %1580 = vector.broadcast %1577 : vector<1x8xf32> to vector<8x8xf32>
    %1581 = arith.mulf %1557, %1580 : vector<8x8xf32>
    %1582 = vector.broadcast %1579 : vector<1x8xf32> to vector<8x8xf32>
    %1583 = arith.addf %1581, %1582 : vector<8x8xf32>
    %c1_661 = arith.constant 1 : index
    %c10_662 = arith.constant 10 : index
    %c0_663 = arith.constant 0 : index
    %1584 = vector.load %arg5[%c1_661, %c10_662, %c0_663] : memref<4x16x8xf32, #tpu.memory_space<vmem>>, vector<1x1x8xf32>
    %1585 = vector.shape_cast %1584 : vector<1x1x8xf32> to vector<1x8xf32>
    %c3_664 = arith.constant 3 : index
    %c10_665 = arith.constant 10 : index
    %c0_666 = arith.constant 0 : index
    %1586 = vector.load %arg5[%c3_664, %c10_665, %c0_666] : memref<4x16x8xf32, #tpu.memory_space<vmem>>, vector<1x1x8xf32>
    %1587 = vector.shape_cast %1586 : vector<1x1x8xf32> to vector<1x8xf32>
    %cst_667 = arith.constant dense<0.000000e+00> : vector<8xf32>
    %1588 = vector.multi_reduction <add>, %1558, %cst_667 [0] : vector<8x8xf32> to vector<8xf32>
    %1589 = vector.shape_cast %1588 : vector<8xf32> to vector<1x8xf32>
    %cst_668 = arith.constant 1.250000e-01 : f32
    %1590 = vector.broadcast %cst_668 : f32 to vector<1x8xf32>
    %1591 = arith.mulf %1589, %1590 : vector<1x8xf32>
    %1592 = arith.mulf %1558, %1558 : vector<8x8xf32>
    %cst_669 = arith.constant dense<0.000000e+00> : vector<8xf32>
    %1593 = vector.multi_reduction <add>, %1592, %cst_669 [0] : vector<8x8xf32> to vector<8xf32>
    %1594 = vector.shape_cast %1593 : vector<8xf32> to vector<1x8xf32>
    %cst_670 = arith.constant 1.250000e-01 : f32
    %1595 = vector.broadcast %cst_670 : f32 to vector<1x8xf32>
    %1596 = arith.mulf %1594, %1595 : vector<1x8xf32>
    %1597 = arith.mulf %1591, %1591 : vector<1x8xf32>
    %1598 = arith.subf %1596, %1597 : vector<1x8xf32>
    %cst_671 = arith.constant 9.99999974E-6 : f32
    %1599 = vector.broadcast %cst_671 : f32 to vector<1x8xf32>
    %1600 = arith.addf %1598, %1599 : vector<1x8xf32>
    %1601 = math.rsqrt %1600 : vector<1x8xf32>
    %1602 = arith.mulf %1585, %1601 : vector<1x8xf32>
    %1603 = arith.mulf %1591, %1602 : vector<1x8xf32>
    %1604 = arith.subf %1587, %1603 : vector<1x8xf32>
    %1605 = vector.broadcast %1602 : vector<1x8xf32> to vector<8x8xf32>
    %1606 = arith.mulf %1558, %1605 : vector<8x8xf32>
    %1607 = vector.broadcast %1604 : vector<1x8xf32> to vector<8x8xf32>
    %1608 = arith.addf %1606, %1607 : vector<8x8xf32>
    %1609 = arith.negf %1608 : vector<8x8xf32>
    %1610 = math.exp %1609 : vector<8x8xf32>
    %cst_672 = arith.constant 1.000000e+00 : f32
    %1611 = vector.broadcast %cst_672 : f32 to vector<8x8xf32>
    %1612 = arith.addf %1611, %1610 : vector<8x8xf32>
    %1613 = arith.divf %1611, %1612 : vector<8x8xf32>
    %1614 = arith.mulf %1583, %1613 : vector<8x8xf32>
    %1615 = arith.addf %1552, %1614 : vector<8x8xf32>
    %cst_673 = arith.constant 0.707106769 : f32
    %1616 = vector.broadcast %cst_673 : f32 to vector<8x8xf32>
    %1617 = arith.mulf %1615, %1616 : vector<8x8xf32>
    %c0_674 = arith.constant 0 : index
    %c6_675 = arith.constant 6 : index
    %c0_676 = arith.constant 0 : index
    %c0_677 = arith.constant 0 : index
    %1618 = vector.load %arg4[%c0_674, %c6_675, %c0_676, %c0_677] : memref<2x9x8x8xf32, #tpu.memory_space<vmem>>, vector<1x1x8x8xf32>
    %1619 = vector.shape_cast %1618 : vector<1x1x8x8xf32> to vector<8x8xf32>
    %c1_678 = arith.constant 1 : index
    %c6_679 = arith.constant 6 : index
    %c0_680 = arith.constant 0 : index
    %c0_681 = arith.constant 0 : index
    %1620 = vector.load %arg4[%c1_678, %c6_679, %c0_680, %c0_681] : memref<2x9x8x8xf32, #tpu.memory_space<vmem>>, vector<1x1x8x8xf32>
    %1621 = vector.shape_cast %1620 : vector<1x1x8x8xf32> to vector<8x8xf32>
    %cst_682 = arith.constant dense<0.000000e+00> : vector<8x8xf32>
    %1622 = tpu.matmul %1617, %1619, %cst_682 {dimension_numbers = #tpu.dot_dimension_numbers<[1], [0], [0], [1], [0, 0, 1, 1], [], []>} : vector<8x8xf32>, vector<8x8xf32>, vector<8x8xf32> -> vector<8x8xf32>
    %cst_683 = arith.constant dense<0.000000e+00> : vector<8x8xf32>
    %1623 = tpu.matmul %1617, %1621, %cst_683 {dimension_numbers = #tpu.dot_dimension_numbers<[1], [0], [0], [1], [0, 0, 1, 1], [], []>} : vector<8x8xf32>, vector<8x8xf32>, vector<8x8xf32> -> vector<8x8xf32>
    %c0_684 = arith.constant 0 : index
    %c11 = arith.constant 11 : index
    %c0_685 = arith.constant 0 : index
    %1624 = vector.load %arg5[%c0_684, %c11, %c0_685] : memref<4x16x8xf32, #tpu.memory_space<vmem>>, vector<1x1x8xf32>
    %1625 = vector.shape_cast %1624 : vector<1x1x8xf32> to vector<1x8xf32>
    %c2_686 = arith.constant 2 : index
    %c11_687 = arith.constant 11 : index
    %c0_688 = arith.constant 0 : index
    %1626 = vector.load %arg5[%c2_686, %c11_687, %c0_688] : memref<4x16x8xf32, #tpu.memory_space<vmem>>, vector<1x1x8xf32>
    %1627 = vector.shape_cast %1626 : vector<1x1x8xf32> to vector<1x8xf32>
    %cst_689 = arith.constant dense<0.000000e+00> : vector<8xf32>
    %1628 = vector.multi_reduction <add>, %1622, %cst_689 [0] : vector<8x8xf32> to vector<8xf32>
    %1629 = vector.shape_cast %1628 : vector<8xf32> to vector<1x8xf32>
    %cst_690 = arith.constant 1.250000e-01 : f32
    %1630 = vector.broadcast %cst_690 : f32 to vector<1x8xf32>
    %1631 = arith.mulf %1629, %1630 : vector<1x8xf32>
    %1632 = arith.mulf %1622, %1622 : vector<8x8xf32>
    %cst_691 = arith.constant dense<0.000000e+00> : vector<8xf32>
    %1633 = vector.multi_reduction <add>, %1632, %cst_691 [0] : vector<8x8xf32> to vector<8xf32>
    %1634 = vector.shape_cast %1633 : vector<8xf32> to vector<1x8xf32>
    %cst_692 = arith.constant 1.250000e-01 : f32
    %1635 = vector.broadcast %cst_692 : f32 to vector<1x8xf32>
    %1636 = arith.mulf %1634, %1635 : vector<1x8xf32>
    %1637 = arith.mulf %1631, %1631 : vector<1x8xf32>
    %1638 = arith.subf %1636, %1637 : vector<1x8xf32>
    %cst_693 = arith.constant 9.99999974E-6 : f32
    %1639 = vector.broadcast %cst_693 : f32 to vector<1x8xf32>
    %1640 = arith.addf %1638, %1639 : vector<1x8xf32>
    %1641 = math.rsqrt %1640 : vector<1x8xf32>
    %1642 = arith.mulf %1625, %1641 : vector<1x8xf32>
    %1643 = arith.mulf %1631, %1642 : vector<1x8xf32>
    %1644 = arith.subf %1627, %1643 : vector<1x8xf32>
    %1645 = vector.broadcast %1642 : vector<1x8xf32> to vector<8x8xf32>
    %1646 = arith.mulf %1622, %1645 : vector<8x8xf32>
    %1647 = vector.broadcast %1644 : vector<1x8xf32> to vector<8x8xf32>
    %1648 = arith.addf %1646, %1647 : vector<8x8xf32>
    %c1_694 = arith.constant 1 : index
    %c11_695 = arith.constant 11 : index
    %c0_696 = arith.constant 0 : index
    %1649 = vector.load %arg5[%c1_694, %c11_695, %c0_696] : memref<4x16x8xf32, #tpu.memory_space<vmem>>, vector<1x1x8xf32>
    %1650 = vector.shape_cast %1649 : vector<1x1x8xf32> to vector<1x8xf32>
    %c3_697 = arith.constant 3 : index
    %c11_698 = arith.constant 11 : index
    %c0_699 = arith.constant 0 : index
    %1651 = vector.load %arg5[%c3_697, %c11_698, %c0_699] : memref<4x16x8xf32, #tpu.memory_space<vmem>>, vector<1x1x8xf32>
    %1652 = vector.shape_cast %1651 : vector<1x1x8xf32> to vector<1x8xf32>
    %cst_700 = arith.constant dense<0.000000e+00> : vector<8xf32>
    %1653 = vector.multi_reduction <add>, %1623, %cst_700 [0] : vector<8x8xf32> to vector<8xf32>
    %1654 = vector.shape_cast %1653 : vector<8xf32> to vector<1x8xf32>
    %cst_701 = arith.constant 1.250000e-01 : f32
    %1655 = vector.broadcast %cst_701 : f32 to vector<1x8xf32>
    %1656 = arith.mulf %1654, %1655 : vector<1x8xf32>
    %1657 = arith.mulf %1623, %1623 : vector<8x8xf32>
    %cst_702 = arith.constant dense<0.000000e+00> : vector<8xf32>
    %1658 = vector.multi_reduction <add>, %1657, %cst_702 [0] : vector<8x8xf32> to vector<8xf32>
    %1659 = vector.shape_cast %1658 : vector<8xf32> to vector<1x8xf32>
    %cst_703 = arith.constant 1.250000e-01 : f32
    %1660 = vector.broadcast %cst_703 : f32 to vector<1x8xf32>
    %1661 = arith.mulf %1659, %1660 : vector<1x8xf32>
    %1662 = arith.mulf %1656, %1656 : vector<1x8xf32>
    %1663 = arith.subf %1661, %1662 : vector<1x8xf32>
    %cst_704 = arith.constant 9.99999974E-6 : f32
    %1664 = vector.broadcast %cst_704 : f32 to vector<1x8xf32>
    %1665 = arith.addf %1663, %1664 : vector<1x8xf32>
    %1666 = math.rsqrt %1665 : vector<1x8xf32>
    %1667 = arith.mulf %1650, %1666 : vector<1x8xf32>
    %1668 = arith.mulf %1656, %1667 : vector<1x8xf32>
    %1669 = arith.subf %1652, %1668 : vector<1x8xf32>
    %1670 = vector.broadcast %1667 : vector<1x8xf32> to vector<8x8xf32>
    %1671 = arith.mulf %1623, %1670 : vector<8x8xf32>
    %1672 = vector.broadcast %1669 : vector<1x8xf32> to vector<8x8xf32>
    %1673 = arith.addf %1671, %1672 : vector<8x8xf32>
    %1674 = arith.negf %1673 : vector<8x8xf32>
    %1675 = math.exp %1674 : vector<8x8xf32>
    %cst_705 = arith.constant 1.000000e+00 : f32
    %1676 = vector.broadcast %cst_705 : f32 to vector<8x8xf32>
    %1677 = arith.addf %1676, %1675 : vector<8x8xf32>
    %1678 = arith.divf %1676, %1677 : vector<8x8xf32>
    %1679 = arith.mulf %1648, %1678 : vector<8x8xf32>
    %1680 = arith.addf %1617, %1679 : vector<8x8xf32>
    %cst_706 = arith.constant 0.707106769 : f32
    %1681 = vector.broadcast %cst_706 : f32 to vector<8x8xf32>
    %1682 = arith.mulf %1680, %1681 : vector<8x8xf32>
    %cst_707 = arith.constant 0.000000e+00 : f32
    %1683 = vector.broadcast %cst_707 : f32 to vector<8x8xf32>
    %1684 = arith.maximumf %1682, %1683 : vector<8x8xf32>
    %1685 = arith.addf %984, %1684 : vector<8x8xf32>
    %c2_708 = arith.constant 2 : index
    %c0_709 = arith.constant 0 : index
    %c0_710 = arith.constant 0 : index
    %1686 = vector.load %arg6[%c2_708, %c0_709, %c0_710] : memref<3x8x16xf32, #tpu.memory_space<vmem>>, vector<1x8x16xf32>
    %1687 = vector.shape_cast %1686 : vector<1x8x16xf32> to vector<8x16xf32>
    %cst_711 = arith.constant dense<0.000000e+00> : vector<8x16xf32>
    %1688 = tpu.matmul %1682, %1687, %cst_711 {dimension_numbers = #tpu.dot_dimension_numbers<[1], [0], [0], [1], [0, 0, 1, 1], [], []>} : vector<8x8xf32>, vector<8x16xf32>, vector<8x16xf32> -> vector<8x16xf32>
    %c0_712 = arith.constant 0 : index
    %c2_713 = arith.constant 2 : index
    %c0_714 = arith.constant 0 : index
    %1689 = vector.load %arg7[%c0_712, %c2_713, %c0_714] : memref<2x3x16xf32, #tpu.memory_space<vmem>>, vector<1x1x16xf32>
    %1690 = vector.shape_cast %1689 : vector<1x1x16xf32> to vector<1x16xf32>
    %c1_715 = arith.constant 1 : index
    %c2_716 = arith.constant 2 : index
    %c0_717 = arith.constant 0 : index
    %1691 = vector.load %arg7[%c1_715, %c2_716, %c0_717] : memref<2x3x16xf32, #tpu.memory_space<vmem>>, vector<1x1x16xf32>
    %1692 = vector.shape_cast %1691 : vector<1x1x16xf32> to vector<1x16xf32>
    %cst_718 = arith.constant dense<0.000000e+00> : vector<16xf32>
    %1693 = vector.multi_reduction <add>, %1688, %cst_718 [0] : vector<8x16xf32> to vector<16xf32>
    %1694 = vector.shape_cast %1693 : vector<16xf32> to vector<1x16xf32>
    %cst_719 = arith.constant 1.250000e-01 : f32
    %1695 = vector.broadcast %cst_719 : f32 to vector<1x16xf32>
    %1696 = arith.mulf %1694, %1695 : vector<1x16xf32>
    %1697 = arith.mulf %1688, %1688 : vector<8x16xf32>
    %cst_720 = arith.constant dense<0.000000e+00> : vector<16xf32>
    %1698 = vector.multi_reduction <add>, %1697, %cst_720 [0] : vector<8x16xf32> to vector<16xf32>
    %1699 = vector.shape_cast %1698 : vector<16xf32> to vector<1x16xf32>
    %cst_721 = arith.constant 1.250000e-01 : f32
    %1700 = vector.broadcast %cst_721 : f32 to vector<1x16xf32>
    %1701 = arith.mulf %1699, %1700 : vector<1x16xf32>
    %1702 = arith.mulf %1696, %1696 : vector<1x16xf32>
    %1703 = arith.subf %1701, %1702 : vector<1x16xf32>
    %cst_722 = arith.constant 9.99999974E-6 : f32
    %1704 = vector.broadcast %cst_722 : f32 to vector<1x16xf32>
    %1705 = arith.addf %1703, %1704 : vector<1x16xf32>
    %1706 = math.rsqrt %1705 : vector<1x16xf32>
    %1707 = arith.mulf %1690, %1706 : vector<1x16xf32>
    %1708 = arith.mulf %1696, %1707 : vector<1x16xf32>
    %1709 = arith.subf %1692, %1708 : vector<1x16xf32>
    %1710 = vector.broadcast %1707 : vector<1x16xf32> to vector<8x16xf32>
    %1711 = arith.mulf %1688, %1710 : vector<8x16xf32>
    %1712 = vector.broadcast %1709 : vector<1x16xf32> to vector<8x16xf32>
    %1713 = arith.addf %1711, %1712 : vector<8x16xf32>
    %1714 = arith.mulf %1713, %1428 : vector<8x16xf32>
    %cst_723 = arith.constant dense<0xFF800000> : vector<8xf32>
    %1715 = vector.multi_reduction <maximumf>, %1714, %cst_723 [1] : vector<8x16xf32> to vector<8xf32>
    %1716 = vector.shape_cast %1715 : vector<8xf32> to vector<8x1xf32>
    %cst_724 = arith.constant 1.000000e+00 : f32
    %1717 = vector.broadcast %cst_724 : f32 to vector<8x1xf32>
    %1718 = arith.subf %1716, %1717 : vector<8x1xf32>
    %c0_i32_725 = arith.constant 0 : i32
    %1719 = arith.addf %1718, %1716 : vector<8x1xf32>
    %cst_726 = arith.constant 5.000000e-01 : f32
    %1720 = vector.broadcast %cst_726 : f32 to vector<8x1xf32>
    %1721 = arith.mulf %1720, %1719 : vector<8x1xf32>
    %1722 = vector.broadcast %1721 : vector<8x1xf32> to vector<8x16xf32>
    %1723 = arith.subf %1714, %1722 : vector<8x16xf32>
    %cst_727 = arith.constant 0.000000e+00 : f32
    %1724 = vector.broadcast %cst_727 : f32 to vector<8x16xf32>
    %1725 = arith.maximumf %1723, %1724 : vector<8x16xf32>
    %cst_728 = arith.constant dense<0.000000e+00> : vector<8xf32>
    %1726 = vector.multi_reduction <add>, %1725, %cst_728 [1] : vector<8x16xf32> to vector<8xf32>
    %1727 = vector.shape_cast %1726 : vector<8xf32> to vector<8x1xf32>
    %cst_729 = arith.constant 1.000000e+00 : f32
    %1728 = vector.broadcast %cst_729 : f32 to vector<8x1xf32>
    %1729 = arith.cmpf ogt, %1727, %1728 : vector<8x1xf32>
    %1730 = arith.select %1729, %1721, %1718 : vector<8x1xi1>, vector<8x1xf32>
    %1731 = arith.select %1729, %1716, %1721 : vector<8x1xi1>, vector<8x1xf32>
    %c1_i32_730 = arith.constant 1 : i32
    %1732 = arith.addf %1730, %1731 : vector<8x1xf32>
    %cst_731 = arith.constant 5.000000e-01 : f32
    %1733 = vector.broadcast %cst_731 : f32 to vector<8x1xf32>
    %1734 = arith.mulf %1733, %1732 : vector<8x1xf32>
    %1735 = vector.broadcast %1734 : vector<8x1xf32> to vector<8x16xf32>
    %1736 = arith.subf %1714, %1735 : vector<8x16xf32>
    %cst_732 = arith.constant 0.000000e+00 : f32
    %1737 = vector.broadcast %cst_732 : f32 to vector<8x16xf32>
    %1738 = arith.maximumf %1736, %1737 : vector<8x16xf32>
    %cst_733 = arith.constant dense<0.000000e+00> : vector<8xf32>
    %1739 = vector.multi_reduction <add>, %1738, %cst_733 [1] : vector<8x16xf32> to vector<8xf32>
    %1740 = vector.shape_cast %1739 : vector<8xf32> to vector<8x1xf32>
    %cst_734 = arith.constant 1.000000e+00 : f32
    %1741 = vector.broadcast %cst_734 : f32 to vector<8x1xf32>
    %1742 = arith.cmpf ogt, %1740, %1741 : vector<8x1xf32>
    %1743 = arith.select %1742, %1734, %1730 : vector<8x1xi1>, vector<8x1xf32>
    %1744 = arith.select %1742, %1731, %1734 : vector<8x1xi1>, vector<8x1xf32>
    %c2_i32_735 = arith.constant 2 : i32
    %1745 = arith.addf %1743, %1744 : vector<8x1xf32>
    %cst_736 = arith.constant 5.000000e-01 : f32
    %1746 = vector.broadcast %cst_736 : f32 to vector<8x1xf32>
    %1747 = arith.mulf %1746, %1745 : vector<8x1xf32>
    %1748 = vector.broadcast %1747 : vector<8x1xf32> to vector<8x16xf32>
    %1749 = arith.subf %1714, %1748 : vector<8x16xf32>
    %cst_737 = arith.constant 0.000000e+00 : f32
    %1750 = vector.broadcast %cst_737 : f32 to vector<8x16xf32>
    %1751 = arith.maximumf %1749, %1750 : vector<8x16xf32>
    %cst_738 = arith.constant dense<0.000000e+00> : vector<8xf32>
    %1752 = vector.multi_reduction <add>, %1751, %cst_738 [1] : vector<8x16xf32> to vector<8xf32>
    %1753 = vector.shape_cast %1752 : vector<8xf32> to vector<8x1xf32>
    %cst_739 = arith.constant 1.000000e+00 : f32
    %1754 = vector.broadcast %cst_739 : f32 to vector<8x1xf32>
    %1755 = arith.cmpf ogt, %1753, %1754 : vector<8x1xf32>
    %1756 = arith.select %1755, %1747, %1743 : vector<8x1xi1>, vector<8x1xf32>
    %1757 = arith.select %1755, %1744, %1747 : vector<8x1xi1>, vector<8x1xf32>
    %c3_i32_740 = arith.constant 3 : i32
    %1758 = arith.addf %1756, %1757 : vector<8x1xf32>
    %cst_741 = arith.constant 5.000000e-01 : f32
    %1759 = vector.broadcast %cst_741 : f32 to vector<8x1xf32>
    %1760 = arith.mulf %1759, %1758 : vector<8x1xf32>
    %1761 = vector.broadcast %1760 : vector<8x1xf32> to vector<8x16xf32>
    %1762 = arith.subf %1714, %1761 : vector<8x16xf32>
    %cst_742 = arith.constant 0.000000e+00 : f32
    %1763 = vector.broadcast %cst_742 : f32 to vector<8x16xf32>
    %1764 = arith.maximumf %1762, %1763 : vector<8x16xf32>
    %cst_743 = arith.constant dense<0.000000e+00> : vector<8xf32>
    %1765 = vector.multi_reduction <add>, %1764, %cst_743 [1] : vector<8x16xf32> to vector<8xf32>
    %1766 = vector.shape_cast %1765 : vector<8xf32> to vector<8x1xf32>
    %cst_744 = arith.constant 1.000000e+00 : f32
    %1767 = vector.broadcast %cst_744 : f32 to vector<8x1xf32>
    %1768 = arith.cmpf ogt, %1766, %1767 : vector<8x1xf32>
    %1769 = arith.select %1768, %1760, %1756 : vector<8x1xi1>, vector<8x1xf32>
    %1770 = arith.select %1768, %1757, %1760 : vector<8x1xi1>, vector<8x1xf32>
    %c4_i32_745 = arith.constant 4 : i32
    %1771 = arith.addf %1769, %1770 : vector<8x1xf32>
    %cst_746 = arith.constant 5.000000e-01 : f32
    %1772 = vector.broadcast %cst_746 : f32 to vector<8x1xf32>
    %1773 = arith.mulf %1772, %1771 : vector<8x1xf32>
    %1774 = vector.broadcast %1773 : vector<8x1xf32> to vector<8x16xf32>
    %1775 = arith.subf %1714, %1774 : vector<8x16xf32>
    %cst_747 = arith.constant 0.000000e+00 : f32
    %1776 = vector.broadcast %cst_747 : f32 to vector<8x16xf32>
    %1777 = arith.maximumf %1775, %1776 : vector<8x16xf32>
    %cst_748 = arith.constant dense<0.000000e+00> : vector<8xf32>
    %1778 = vector.multi_reduction <add>, %1777, %cst_748 [1] : vector<8x16xf32> to vector<8xf32>
    %1779 = vector.shape_cast %1778 : vector<8xf32> to vector<8x1xf32>
    %cst_749 = arith.constant 1.000000e+00 : f32
    %1780 = vector.broadcast %cst_749 : f32 to vector<8x1xf32>
    %1781 = arith.cmpf ogt, %1779, %1780 : vector<8x1xf32>
    %1782 = arith.select %1781, %1773, %1769 : vector<8x1xi1>, vector<8x1xf32>
    %1783 = arith.select %1781, %1770, %1773 : vector<8x1xi1>, vector<8x1xf32>
    %c5_i32_750 = arith.constant 5 : i32
    %1784 = arith.addf %1782, %1783 : vector<8x1xf32>
    %cst_751 = arith.constant 5.000000e-01 : f32
    %1785 = vector.broadcast %cst_751 : f32 to vector<8x1xf32>
    %1786 = arith.mulf %1785, %1784 : vector<8x1xf32>
    %1787 = vector.broadcast %1786 : vector<8x1xf32> to vector<8x16xf32>
    %1788 = arith.subf %1714, %1787 : vector<8x16xf32>
    %cst_752 = arith.constant 0.000000e+00 : f32
    %1789 = vector.broadcast %cst_752 : f32 to vector<8x16xf32>
    %1790 = arith.maximumf %1788, %1789 : vector<8x16xf32>
    %cst_753 = arith.constant dense<0.000000e+00> : vector<8xf32>
    %1791 = vector.multi_reduction <add>, %1790, %cst_753 [1] : vector<8x16xf32> to vector<8xf32>
    %1792 = vector.shape_cast %1791 : vector<8xf32> to vector<8x1xf32>
    %cst_754 = arith.constant 1.000000e+00 : f32
    %1793 = vector.broadcast %cst_754 : f32 to vector<8x1xf32>
    %1794 = arith.cmpf ogt, %1792, %1793 : vector<8x1xf32>
    %1795 = arith.select %1794, %1786, %1782 : vector<8x1xi1>, vector<8x1xf32>
    %1796 = arith.select %1794, %1783, %1786 : vector<8x1xi1>, vector<8x1xf32>
    %c6_i32_755 = arith.constant 6 : i32
    %1797 = arith.addf %1795, %1796 : vector<8x1xf32>
    %cst_756 = arith.constant 5.000000e-01 : f32
    %1798 = vector.broadcast %cst_756 : f32 to vector<8x1xf32>
    %1799 = arith.mulf %1798, %1797 : vector<8x1xf32>
    %1800 = vector.broadcast %1799 : vector<8x1xf32> to vector<8x16xf32>
    %1801 = arith.subf %1714, %1800 : vector<8x16xf32>
    %cst_757 = arith.constant 0.000000e+00 : f32
    %1802 = vector.broadcast %cst_757 : f32 to vector<8x16xf32>
    %1803 = arith.maximumf %1801, %1802 : vector<8x16xf32>
    %cst_758 = arith.constant dense<0.000000e+00> : vector<8xf32>
    %1804 = vector.multi_reduction <add>, %1803, %cst_758 [1] : vector<8x16xf32> to vector<8xf32>
    %1805 = vector.shape_cast %1804 : vector<8xf32> to vector<8x1xf32>
    %cst_759 = arith.constant 1.000000e+00 : f32
    %1806 = vector.broadcast %cst_759 : f32 to vector<8x1xf32>
    %1807 = arith.cmpf ogt, %1805, %1806 : vector<8x1xf32>
    %1808 = arith.select %1807, %1799, %1795 : vector<8x1xi1>, vector<8x1xf32>
    %1809 = arith.select %1807, %1796, %1799 : vector<8x1xi1>, vector<8x1xf32>
    %c7_i32_760 = arith.constant 7 : i32
    %1810 = arith.addf %1808, %1809 : vector<8x1xf32>
    %cst_761 = arith.constant 5.000000e-01 : f32
    %1811 = vector.broadcast %cst_761 : f32 to vector<8x1xf32>
    %1812 = arith.mulf %1811, %1810 : vector<8x1xf32>
    %1813 = vector.broadcast %1812 : vector<8x1xf32> to vector<8x16xf32>
    %1814 = arith.subf %1714, %1813 : vector<8x16xf32>
    %cst_762 = arith.constant 0.000000e+00 : f32
    %1815 = vector.broadcast %cst_762 : f32 to vector<8x16xf32>
    %1816 = arith.maximumf %1814, %1815 : vector<8x16xf32>
    %cst_763 = arith.constant dense<0.000000e+00> : vector<8xf32>
    %1817 = vector.multi_reduction <add>, %1816, %cst_763 [1] : vector<8x16xf32> to vector<8xf32>
    %1818 = vector.shape_cast %1817 : vector<8xf32> to vector<8x1xf32>
    %cst_764 = arith.constant 1.000000e+00 : f32
    %1819 = vector.broadcast %cst_764 : f32 to vector<8x1xf32>
    %1820 = arith.cmpf ogt, %1818, %1819 : vector<8x1xf32>
    %1821 = arith.select %1820, %1812, %1808 : vector<8x1xi1>, vector<8x1xf32>
    %1822 = arith.select %1820, %1809, %1812 : vector<8x1xi1>, vector<8x1xf32>
    %c8_i32_765 = arith.constant 8 : i32
    %1823 = arith.addf %1821, %1822 : vector<8x1xf32>
    %cst_766 = arith.constant 5.000000e-01 : f32
    %1824 = vector.broadcast %cst_766 : f32 to vector<8x1xf32>
    %1825 = arith.mulf %1824, %1823 : vector<8x1xf32>
    %1826 = vector.broadcast %1825 : vector<8x1xf32> to vector<8x16xf32>
    %1827 = arith.subf %1714, %1826 : vector<8x16xf32>
    %cst_767 = arith.constant 0.000000e+00 : f32
    %1828 = vector.broadcast %cst_767 : f32 to vector<8x16xf32>
    %1829 = arith.maximumf %1827, %1828 : vector<8x16xf32>
    %cst_768 = arith.constant dense<0.000000e+00> : vector<8xf32>
    %1830 = vector.multi_reduction <add>, %1829, %cst_768 [1] : vector<8x16xf32> to vector<8xf32>
    %1831 = vector.shape_cast %1830 : vector<8xf32> to vector<8x1xf32>
    %cst_769 = arith.constant 1.000000e+00 : f32
    %1832 = vector.broadcast %cst_769 : f32 to vector<8x1xf32>
    %1833 = arith.cmpf ogt, %1831, %1832 : vector<8x1xf32>
    %1834 = arith.select %1833, %1825, %1821 : vector<8x1xi1>, vector<8x1xf32>
    %1835 = arith.select %1833, %1822, %1825 : vector<8x1xi1>, vector<8x1xf32>
    %c9_i32_770 = arith.constant 9 : i32
    %1836 = arith.addf %1834, %1835 : vector<8x1xf32>
    %cst_771 = arith.constant 5.000000e-01 : f32
    %1837 = vector.broadcast %cst_771 : f32 to vector<8x1xf32>
    %1838 = arith.mulf %1837, %1836 : vector<8x1xf32>
    %1839 = vector.broadcast %1838 : vector<8x1xf32> to vector<8x16xf32>
    %1840 = arith.subf %1714, %1839 : vector<8x16xf32>
    %cst_772 = arith.constant 0.000000e+00 : f32
    %1841 = vector.broadcast %cst_772 : f32 to vector<8x16xf32>
    %1842 = arith.maximumf %1840, %1841 : vector<8x16xf32>
    %cst_773 = arith.constant dense<0.000000e+00> : vector<8xf32>
    %1843 = vector.multi_reduction <add>, %1842, %cst_773 [1] : vector<8x16xf32> to vector<8xf32>
    %1844 = vector.shape_cast %1843 : vector<8xf32> to vector<8x1xf32>
    %cst_774 = arith.constant 1.000000e+00 : f32
    %1845 = vector.broadcast %cst_774 : f32 to vector<8x1xf32>
    %1846 = arith.cmpf ogt, %1844, %1845 : vector<8x1xf32>
    %1847 = arith.select %1846, %1838, %1834 : vector<8x1xi1>, vector<8x1xf32>
    %1848 = arith.select %1846, %1835, %1838 : vector<8x1xi1>, vector<8x1xf32>
    %c10_i32_775 = arith.constant 10 : i32
    %1849 = arith.addf %1847, %1848 : vector<8x1xf32>
    %cst_776 = arith.constant 5.000000e-01 : f32
    %1850 = vector.broadcast %cst_776 : f32 to vector<8x1xf32>
    %1851 = arith.mulf %1850, %1849 : vector<8x1xf32>
    %1852 = vector.broadcast %1851 : vector<8x1xf32> to vector<8x16xf32>
    %1853 = arith.subf %1714, %1852 : vector<8x16xf32>
    %cst_777 = arith.constant 0.000000e+00 : f32
    %1854 = vector.broadcast %cst_777 : f32 to vector<8x16xf32>
    %1855 = arith.maximumf %1853, %1854 : vector<8x16xf32>
    %cst_778 = arith.constant dense<0.000000e+00> : vector<8xf32>
    %1856 = vector.multi_reduction <add>, %1855, %cst_778 [1] : vector<8x16xf32> to vector<8xf32>
    %1857 = vector.shape_cast %1856 : vector<8xf32> to vector<8x1xf32>
    %cst_779 = arith.constant 1.000000e+00 : f32
    %1858 = vector.broadcast %cst_779 : f32 to vector<8x1xf32>
    %1859 = arith.cmpf ogt, %1857, %1858 : vector<8x1xf32>
    %1860 = arith.select %1859, %1851, %1847 : vector<8x1xi1>, vector<8x1xf32>
    %1861 = arith.select %1859, %1848, %1851 : vector<8x1xi1>, vector<8x1xf32>
    %c11_i32_780 = arith.constant 11 : i32
    %1862 = arith.addf %1860, %1861 : vector<8x1xf32>
    %cst_781 = arith.constant 5.000000e-01 : f32
    %1863 = vector.broadcast %cst_781 : f32 to vector<8x1xf32>
    %1864 = arith.mulf %1863, %1862 : vector<8x1xf32>
    %1865 = vector.broadcast %1864 : vector<8x1xf32> to vector<8x16xf32>
    %1866 = arith.subf %1714, %1865 : vector<8x16xf32>
    %cst_782 = arith.constant 0.000000e+00 : f32
    %1867 = vector.broadcast %cst_782 : f32 to vector<8x16xf32>
    %1868 = arith.maximumf %1866, %1867 : vector<8x16xf32>
    %cst_783 = arith.constant dense<0.000000e+00> : vector<8xf32>
    %1869 = vector.multi_reduction <add>, %1868, %cst_783 [1] : vector<8x16xf32> to vector<8xf32>
    %1870 = vector.shape_cast %1869 : vector<8xf32> to vector<8x1xf32>
    %cst_784 = arith.constant 1.000000e+00 : f32
    %1871 = vector.broadcast %cst_784 : f32 to vector<8x1xf32>
    %1872 = arith.cmpf ogt, %1870, %1871 : vector<8x1xf32>
    %1873 = arith.select %1872, %1864, %1860 : vector<8x1xi1>, vector<8x1xf32>
    %1874 = arith.select %1872, %1861, %1864 : vector<8x1xi1>, vector<8x1xf32>
    %c12_i32_785 = arith.constant 12 : i32
    %1875 = arith.addf %1873, %1874 : vector<8x1xf32>
    %cst_786 = arith.constant 5.000000e-01 : f32
    %1876 = vector.broadcast %cst_786 : f32 to vector<8x1xf32>
    %1877 = arith.mulf %1876, %1875 : vector<8x1xf32>
    %1878 = vector.broadcast %1877 : vector<8x1xf32> to vector<8x16xf32>
    %1879 = arith.subf %1714, %1878 : vector<8x16xf32>
    %cst_787 = arith.constant 0.000000e+00 : f32
    %1880 = vector.broadcast %cst_787 : f32 to vector<8x16xf32>
    %1881 = arith.maximumf %1879, %1880 : vector<8x16xf32>
    %cst_788 = arith.constant dense<0.000000e+00> : vector<8xf32>
    %1882 = vector.multi_reduction <add>, %1881, %cst_788 [1] : vector<8x16xf32> to vector<8xf32>
    %1883 = vector.shape_cast %1882 : vector<8xf32> to vector<8x1xf32>
    %cst_789 = arith.constant 1.000000e+00 : f32
    %1884 = vector.broadcast %cst_789 : f32 to vector<8x1xf32>
    %1885 = arith.cmpf ogt, %1883, %1884 : vector<8x1xf32>
    %1886 = arith.select %1885, %1877, %1873 : vector<8x1xi1>, vector<8x1xf32>
    %1887 = arith.select %1885, %1874, %1877 : vector<8x1xi1>, vector<8x1xf32>
    %c13_i32_790 = arith.constant 13 : i32
    %1888 = arith.addf %1886, %1887 : vector<8x1xf32>
    %cst_791 = arith.constant 5.000000e-01 : f32
    %1889 = vector.broadcast %cst_791 : f32 to vector<8x1xf32>
    %1890 = arith.mulf %1889, %1888 : vector<8x1xf32>
    %1891 = vector.broadcast %1890 : vector<8x1xf32> to vector<8x16xf32>
    %1892 = arith.subf %1714, %1891 : vector<8x16xf32>
    %cst_792 = arith.constant 0.000000e+00 : f32
    %1893 = vector.broadcast %cst_792 : f32 to vector<8x16xf32>
    %1894 = arith.maximumf %1892, %1893 : vector<8x16xf32>
    %cst_793 = arith.constant dense<0.000000e+00> : vector<8xf32>
    %1895 = vector.multi_reduction <add>, %1894, %cst_793 [1] : vector<8x16xf32> to vector<8xf32>
    %1896 = vector.shape_cast %1895 : vector<8xf32> to vector<8x1xf32>
    %cst_794 = arith.constant 1.000000e+00 : f32
    %1897 = vector.broadcast %cst_794 : f32 to vector<8x1xf32>
    %1898 = arith.cmpf ogt, %1896, %1897 : vector<8x1xf32>
    %1899 = arith.select %1898, %1890, %1886 : vector<8x1xi1>, vector<8x1xf32>
    %1900 = arith.select %1898, %1887, %1890 : vector<8x1xi1>, vector<8x1xf32>
    %c14_i32_795 = arith.constant 14 : i32
    %1901 = arith.addf %1899, %1900 : vector<8x1xf32>
    %cst_796 = arith.constant 5.000000e-01 : f32
    %1902 = vector.broadcast %cst_796 : f32 to vector<8x1xf32>
    %1903 = arith.mulf %1902, %1901 : vector<8x1xf32>
    %1904 = vector.broadcast %1903 : vector<8x1xf32> to vector<8x16xf32>
    %1905 = arith.subf %1714, %1904 : vector<8x16xf32>
    %cst_797 = arith.constant 0.000000e+00 : f32
    %1906 = vector.broadcast %cst_797 : f32 to vector<8x16xf32>
    %1907 = arith.maximumf %1905, %1906 : vector<8x16xf32>
    %cst_798 = arith.constant dense<0.000000e+00> : vector<8xf32>
    %1908 = vector.multi_reduction <add>, %1907, %cst_798 [1] : vector<8x16xf32> to vector<8xf32>
    %1909 = vector.shape_cast %1908 : vector<8xf32> to vector<8x1xf32>
    %cst_799 = arith.constant 1.000000e+00 : f32
    %1910 = vector.broadcast %cst_799 : f32 to vector<8x1xf32>
    %1911 = arith.cmpf ogt, %1909, %1910 : vector<8x1xf32>
    %1912 = arith.select %1911, %1903, %1899 : vector<8x1xi1>, vector<8x1xf32>
    %1913 = arith.select %1911, %1900, %1903 : vector<8x1xi1>, vector<8x1xf32>
    %c15_i32_800 = arith.constant 15 : i32
    %1914 = arith.addf %1912, %1913 : vector<8x1xf32>
    %cst_801 = arith.constant 5.000000e-01 : f32
    %1915 = vector.broadcast %cst_801 : f32 to vector<8x1xf32>
    %1916 = arith.mulf %1915, %1914 : vector<8x1xf32>
    %1917 = vector.broadcast %1916 : vector<8x1xf32> to vector<8x16xf32>
    %1918 = arith.subf %1714, %1917 : vector<8x16xf32>
    %cst_802 = arith.constant 0.000000e+00 : f32
    %1919 = vector.broadcast %cst_802 : f32 to vector<8x16xf32>
    %1920 = arith.maximumf %1918, %1919 : vector<8x16xf32>
    %cst_803 = arith.constant dense<0.000000e+00> : vector<8xf32>
    %1921 = vector.multi_reduction <add>, %1920, %cst_803 [1] : vector<8x16xf32> to vector<8xf32>
    %1922 = vector.shape_cast %1921 : vector<8xf32> to vector<8x1xf32>
    %cst_804 = arith.constant 1.000000e+00 : f32
    %1923 = vector.broadcast %cst_804 : f32 to vector<8x1xf32>
    %1924 = arith.cmpf ogt, %1922, %1923 : vector<8x1xf32>
    %1925 = arith.select %1924, %1916, %1912 : vector<8x1xi1>, vector<8x1xf32>
    %1926 = arith.select %1924, %1913, %1916 : vector<8x1xi1>, vector<8x1xf32>
    %c16_i32_805 = arith.constant 16 : i32
    %1927 = arith.addf %1925, %1926 : vector<8x1xf32>
    %cst_806 = arith.constant 5.000000e-01 : f32
    %1928 = vector.broadcast %cst_806 : f32 to vector<8x1xf32>
    %1929 = arith.mulf %1928, %1927 : vector<8x1xf32>
    %1930 = vector.broadcast %1929 : vector<8x1xf32> to vector<8x16xf32>
    %1931 = arith.subf %1714, %1930 : vector<8x16xf32>
    %cst_807 = arith.constant 0.000000e+00 : f32
    %1932 = vector.broadcast %cst_807 : f32 to vector<8x16xf32>
    %1933 = arith.maximumf %1931, %1932 : vector<8x16xf32>
    %cst_808 = arith.constant dense<0.000000e+00> : vector<8xf32>
    %1934 = vector.multi_reduction <add>, %1933, %cst_808 [1] : vector<8x16xf32> to vector<8xf32>
    %1935 = vector.shape_cast %1934 : vector<8xf32> to vector<8x1xf32>
    %cst_809 = arith.constant 1.000000e+00 : f32
    %1936 = vector.broadcast %cst_809 : f32 to vector<8x1xf32>
    %1937 = arith.cmpf ogt, %1935, %1936 : vector<8x1xf32>
    %1938 = arith.select %1937, %1929, %1925 : vector<8x1xi1>, vector<8x1xf32>
    %1939 = arith.select %1937, %1926, %1929 : vector<8x1xi1>, vector<8x1xf32>
    %c17_i32_810 = arith.constant 17 : i32
    %1940 = arith.addf %1938, %1939 : vector<8x1xf32>
    %cst_811 = arith.constant 5.000000e-01 : f32
    %1941 = vector.broadcast %cst_811 : f32 to vector<8x1xf32>
    %1942 = arith.mulf %1941, %1940 : vector<8x1xf32>
    %1943 = vector.broadcast %1942 : vector<8x1xf32> to vector<8x16xf32>
    %1944 = arith.subf %1714, %1943 : vector<8x16xf32>
    %cst_812 = arith.constant 0.000000e+00 : f32
    %1945 = vector.broadcast %cst_812 : f32 to vector<8x16xf32>
    %1946 = arith.maximumf %1944, %1945 : vector<8x16xf32>
    %cst_813 = arith.constant dense<0.000000e+00> : vector<8xf32>
    %1947 = vector.multi_reduction <add>, %1946, %cst_813 [1] : vector<8x16xf32> to vector<8xf32>
    %1948 = vector.shape_cast %1947 : vector<8xf32> to vector<8x1xf32>
    %cst_814 = arith.constant 1.000000e+00 : f32
    %1949 = vector.broadcast %cst_814 : f32 to vector<8x1xf32>
    %1950 = arith.cmpf ogt, %1948, %1949 : vector<8x1xf32>
    %1951 = arith.select %1950, %1942, %1938 : vector<8x1xi1>, vector<8x1xf32>
    %1952 = arith.select %1950, %1939, %1942 : vector<8x1xi1>, vector<8x1xf32>
    %c18_i32_815 = arith.constant 18 : i32
    %1953 = arith.addf %1951, %1952 : vector<8x1xf32>
    %cst_816 = arith.constant 5.000000e-01 : f32
    %1954 = vector.broadcast %cst_816 : f32 to vector<8x1xf32>
    %1955 = arith.mulf %1954, %1953 : vector<8x1xf32>
    %1956 = vector.broadcast %1955 : vector<8x1xf32> to vector<8x16xf32>
    %1957 = arith.subf %1714, %1956 : vector<8x16xf32>
    %cst_817 = arith.constant 0.000000e+00 : f32
    %1958 = vector.broadcast %cst_817 : f32 to vector<8x16xf32>
    %1959 = arith.maximumf %1957, %1958 : vector<8x16xf32>
    %cst_818 = arith.constant dense<0.000000e+00> : vector<8xf32>
    %1960 = vector.multi_reduction <add>, %1959, %cst_818 [1] : vector<8x16xf32> to vector<8xf32>
    %1961 = vector.shape_cast %1960 : vector<8xf32> to vector<8x1xf32>
    %cst_819 = arith.constant 1.000000e+00 : f32
    %1962 = vector.broadcast %cst_819 : f32 to vector<8x1xf32>
    %1963 = arith.cmpf ogt, %1961, %1962 : vector<8x1xf32>
    %1964 = arith.select %1963, %1955, %1951 : vector<8x1xi1>, vector<8x1xf32>
    %1965 = arith.select %1963, %1952, %1955 : vector<8x1xi1>, vector<8x1xf32>
    %c19_i32_820 = arith.constant 19 : i32
    %1966 = arith.addf %1964, %1965 : vector<8x1xf32>
    %cst_821 = arith.constant 5.000000e-01 : f32
    %1967 = vector.broadcast %cst_821 : f32 to vector<8x1xf32>
    %1968 = arith.mulf %1967, %1966 : vector<8x1xf32>
    %1969 = vector.broadcast %1968 : vector<8x1xf32> to vector<8x16xf32>
    %1970 = arith.subf %1714, %1969 : vector<8x16xf32>
    %cst_822 = arith.constant 0.000000e+00 : f32
    %1971 = vector.broadcast %cst_822 : f32 to vector<8x16xf32>
    %1972 = arith.maximumf %1970, %1971 : vector<8x16xf32>
    %cst_823 = arith.constant dense<0.000000e+00> : vector<8xf32>
    %1973 = vector.multi_reduction <add>, %1972, %cst_823 [1] : vector<8x16xf32> to vector<8xf32>
    %1974 = vector.shape_cast %1973 : vector<8xf32> to vector<8x1xf32>
    %cst_824 = arith.constant 1.000000e+00 : f32
    %1975 = vector.broadcast %cst_824 : f32 to vector<8x1xf32>
    %1976 = arith.cmpf ogt, %1974, %1975 : vector<8x1xf32>
    %1977 = arith.select %1976, %1968, %1964 : vector<8x1xi1>, vector<8x1xf32>
    %1978 = arith.select %1976, %1965, %1968 : vector<8x1xi1>, vector<8x1xf32>
    %c20_i32_825 = arith.constant 20 : i32
    %1979 = arith.addf %1977, %1978 : vector<8x1xf32>
    %cst_826 = arith.constant 5.000000e-01 : f32
    %1980 = vector.broadcast %cst_826 : f32 to vector<8x1xf32>
    %1981 = arith.mulf %1980, %1979 : vector<8x1xf32>
    %1982 = vector.broadcast %1981 : vector<8x1xf32> to vector<8x16xf32>
    %1983 = arith.subf %1714, %1982 : vector<8x16xf32>
    %cst_827 = arith.constant 0.000000e+00 : f32
    %1984 = vector.broadcast %cst_827 : f32 to vector<8x16xf32>
    %1985 = arith.maximumf %1983, %1984 : vector<8x16xf32>
    %cst_828 = arith.constant dense<0.000000e+00> : vector<8xf32>
    %1986 = vector.multi_reduction <add>, %1985, %cst_828 [1] : vector<8x16xf32> to vector<8xf32>
    %1987 = vector.shape_cast %1986 : vector<8xf32> to vector<8x1xf32>
    %cst_829 = arith.constant 1.000000e+00 : f32
    %1988 = vector.broadcast %cst_829 : f32 to vector<8x1xf32>
    %1989 = arith.cmpf ogt, %1987, %1988 : vector<8x1xf32>
    %1990 = arith.select %1989, %1981, %1977 : vector<8x1xi1>, vector<8x1xf32>
    %1991 = arith.select %1989, %1978, %1981 : vector<8x1xi1>, vector<8x1xf32>
    %c21_i32_830 = arith.constant 21 : i32
    %1992 = arith.addf %1990, %1991 : vector<8x1xf32>
    %cst_831 = arith.constant 5.000000e-01 : f32
    %1993 = vector.broadcast %cst_831 : f32 to vector<8x1xf32>
    %1994 = arith.mulf %1993, %1992 : vector<8x1xf32>
    %1995 = vector.broadcast %1994 : vector<8x1xf32> to vector<8x16xf32>
    %1996 = arith.subf %1714, %1995 : vector<8x16xf32>
    %cst_832 = arith.constant 0.000000e+00 : f32
    %1997 = vector.broadcast %cst_832 : f32 to vector<8x16xf32>
    %1998 = arith.maximumf %1996, %1997 : vector<8x16xf32>
    %cst_833 = arith.constant dense<0.000000e+00> : vector<8xf32>
    %1999 = vector.multi_reduction <add>, %1998, %cst_833 [1] : vector<8x16xf32> to vector<8xf32>
    %2000 = vector.shape_cast %1999 : vector<8xf32> to vector<8x1xf32>
    %cst_834 = arith.constant 1.000000e+00 : f32
    %2001 = vector.broadcast %cst_834 : f32 to vector<8x1xf32>
    %2002 = arith.cmpf ogt, %2000, %2001 : vector<8x1xf32>
    %2003 = arith.select %2002, %1994, %1990 : vector<8x1xi1>, vector<8x1xf32>
    %2004 = arith.select %2002, %1991, %1994 : vector<8x1xi1>, vector<8x1xf32>
    %c22_i32_835 = arith.constant 22 : i32
    %2005 = arith.addf %2003, %2004 : vector<8x1xf32>
    %cst_836 = arith.constant 5.000000e-01 : f32
    %2006 = vector.broadcast %cst_836 : f32 to vector<8x1xf32>
    %2007 = arith.mulf %2006, %2005 : vector<8x1xf32>
    %2008 = vector.broadcast %2007 : vector<8x1xf32> to vector<8x16xf32>
    %2009 = arith.subf %1714, %2008 : vector<8x16xf32>
    %cst_837 = arith.constant 0.000000e+00 : f32
    %2010 = vector.broadcast %cst_837 : f32 to vector<8x16xf32>
    %2011 = arith.maximumf %2009, %2010 : vector<8x16xf32>
    %cst_838 = arith.constant dense<0.000000e+00> : vector<8xf32>
    %2012 = vector.multi_reduction <add>, %2011, %cst_838 [1] : vector<8x16xf32> to vector<8xf32>
    %2013 = vector.shape_cast %2012 : vector<8xf32> to vector<8x1xf32>
    %cst_839 = arith.constant 1.000000e+00 : f32
    %2014 = vector.broadcast %cst_839 : f32 to vector<8x1xf32>
    %2015 = arith.cmpf ogt, %2013, %2014 : vector<8x1xf32>
    %2016 = arith.select %2015, %2007, %2003 : vector<8x1xi1>, vector<8x1xf32>
    %2017 = arith.select %2015, %2004, %2007 : vector<8x1xi1>, vector<8x1xf32>
    %c23_i32_840 = arith.constant 23 : i32
    %2018 = arith.addf %2016, %2017 : vector<8x1xf32>
    %cst_841 = arith.constant 5.000000e-01 : f32
    %2019 = vector.broadcast %cst_841 : f32 to vector<8x1xf32>
    %2020 = arith.mulf %2019, %2018 : vector<8x1xf32>
    %2021 = vector.broadcast %2020 : vector<8x1xf32> to vector<8x16xf32>
    %2022 = arith.subf %1714, %2021 : vector<8x16xf32>
    %cst_842 = arith.constant 0.000000e+00 : f32
    %2023 = vector.broadcast %cst_842 : f32 to vector<8x16xf32>
    %2024 = arith.maximumf %2022, %2023 : vector<8x16xf32>
    %cst_843 = arith.constant dense<0.000000e+00> : vector<8xf32>
    %2025 = vector.multi_reduction <add>, %2024, %cst_843 [1] : vector<8x16xf32> to vector<8xf32>
    %2026 = vector.shape_cast %2025 : vector<8xf32> to vector<8x1xf32>
    %cst_844 = arith.constant 1.000000e+00 : f32
    %2027 = vector.broadcast %cst_844 : f32 to vector<8x1xf32>
    %2028 = arith.cmpf ogt, %2026, %2027 : vector<8x1xf32>
    %2029 = arith.select %2028, %2020, %2016 : vector<8x1xi1>, vector<8x1xf32>
    %2030 = arith.select %2028, %2017, %2020 : vector<8x1xi1>, vector<8x1xf32>
    %c24_i32_845 = arith.constant 24 : i32
    %2031 = arith.addf %2029, %2030 : vector<8x1xf32>
    %cst_846 = arith.constant 5.000000e-01 : f32
    %2032 = vector.broadcast %cst_846 : f32 to vector<8x1xf32>
    %2033 = arith.mulf %2032, %2031 : vector<8x1xf32>
    %2034 = vector.broadcast %2033 : vector<8x1xf32> to vector<8x16xf32>
    %2035 = arith.subf %1714, %2034 : vector<8x16xf32>
    %cst_847 = arith.constant 0.000000e+00 : f32
    %2036 = vector.broadcast %cst_847 : f32 to vector<8x16xf32>
    %2037 = arith.maximumf %2035, %2036 : vector<8x16xf32>
    %cst_848 = arith.constant dense<0.000000e+00> : vector<8xf32>
    %2038 = vector.multi_reduction <add>, %2037, %cst_848 [1] : vector<8x16xf32> to vector<8xf32>
    %2039 = vector.shape_cast %2038 : vector<8xf32> to vector<8x1xf32>
    %cst_849 = arith.constant 1.000000e+00 : f32
    %2040 = vector.broadcast %cst_849 : f32 to vector<8x1xf32>
    %2041 = arith.cmpf ogt, %2039, %2040 : vector<8x1xf32>
    %2042 = arith.select %2041, %2033, %2029 : vector<8x1xi1>, vector<8x1xf32>
    %2043 = arith.select %2041, %2030, %2033 : vector<8x1xi1>, vector<8x1xf32>
    %c25_i32_850 = arith.constant 25 : i32
    %2044 = arith.addf %2042, %2043 : vector<8x1xf32>
    %cst_851 = arith.constant 5.000000e-01 : f32
    %2045 = vector.broadcast %cst_851 : f32 to vector<8x1xf32>
    %2046 = arith.mulf %2045, %2044 : vector<8x1xf32>
    %2047 = vector.broadcast %2046 : vector<8x1xf32> to vector<8x16xf32>
    %2048 = arith.subf %1714, %2047 : vector<8x16xf32>
    %cst_852 = arith.constant 0.000000e+00 : f32
    %2049 = vector.broadcast %cst_852 : f32 to vector<8x16xf32>
    %2050 = arith.maximumf %2048, %2049 : vector<8x16xf32>
    %cst_853 = arith.constant dense<0.000000e+00> : vector<8xf32>
    %2051 = vector.multi_reduction <add>, %2050, %cst_853 [1] : vector<8x16xf32> to vector<8xf32>
    %2052 = vector.shape_cast %2051 : vector<8xf32> to vector<8x1xf32>
    %cst_854 = arith.constant 1.000000e+00 : f32
    %2053 = vector.broadcast %cst_854 : f32 to vector<8x1xf32>
    %2054 = arith.cmpf ogt, %2052, %2053 : vector<8x1xf32>
    %2055 = arith.select %2054, %2046, %2042 : vector<8x1xi1>, vector<8x1xf32>
    %2056 = arith.select %2054, %2043, %2046 : vector<8x1xi1>, vector<8x1xf32>
    %c26_i32_855 = arith.constant 26 : i32
    %2057 = arith.addf %2055, %2056 : vector<8x1xf32>
    %cst_856 = arith.constant 5.000000e-01 : f32
    %2058 = vector.broadcast %cst_856 : f32 to vector<8x1xf32>
    %2059 = arith.mulf %2058, %2057 : vector<8x1xf32>
    %2060 = vector.broadcast %2059 : vector<8x1xf32> to vector<8x16xf32>
    %2061 = arith.subf %1714, %2060 : vector<8x16xf32>
    %cst_857 = arith.constant 0.000000e+00 : f32
    %2062 = vector.broadcast %cst_857 : f32 to vector<8x16xf32>
    %2063 = arith.maximumf %2061, %2062 : vector<8x16xf32>
    %cst_858 = arith.constant dense<0.000000e+00> : vector<8xf32>
    %2064 = vector.multi_reduction <add>, %2063, %cst_858 [1] : vector<8x16xf32> to vector<8xf32>
    %2065 = vector.shape_cast %2064 : vector<8xf32> to vector<8x1xf32>
    %cst_859 = arith.constant 1.000000e+00 : f32
    %2066 = vector.broadcast %cst_859 : f32 to vector<8x1xf32>
    %2067 = arith.cmpf ogt, %2065, %2066 : vector<8x1xf32>
    %2068 = arith.select %2067, %2059, %2055 : vector<8x1xi1>, vector<8x1xf32>
    %2069 = arith.select %2067, %2056, %2059 : vector<8x1xi1>, vector<8x1xf32>
    %c27_i32_860 = arith.constant 27 : i32
    %2070 = arith.addf %2068, %2069 : vector<8x1xf32>
    %cst_861 = arith.constant 5.000000e-01 : f32
    %2071 = vector.broadcast %cst_861 : f32 to vector<8x1xf32>
    %2072 = arith.mulf %2071, %2070 : vector<8x1xf32>
    %2073 = vector.broadcast %2072 : vector<8x1xf32> to vector<8x16xf32>
    %2074 = arith.subf %1714, %2073 : vector<8x16xf32>
    %cst_862 = arith.constant 0.000000e+00 : f32
    %2075 = vector.broadcast %cst_862 : f32 to vector<8x16xf32>
    %2076 = arith.maximumf %2074, %2075 : vector<8x16xf32>
    %cst_863 = arith.constant dense<0.000000e+00> : vector<8xf32>
    %2077 = vector.multi_reduction <add>, %2076, %cst_863 [1] : vector<8x16xf32> to vector<8xf32>
    %2078 = vector.shape_cast %2077 : vector<8xf32> to vector<8x1xf32>
    %cst_864 = arith.constant 1.000000e+00 : f32
    %2079 = vector.broadcast %cst_864 : f32 to vector<8x1xf32>
    %2080 = arith.cmpf ogt, %2078, %2079 : vector<8x1xf32>
    %2081 = arith.select %2080, %2072, %2068 : vector<8x1xi1>, vector<8x1xf32>
    %2082 = arith.select %2080, %2069, %2072 : vector<8x1xi1>, vector<8x1xf32>
    %c28_i32_865 = arith.constant 28 : i32
    %2083 = arith.addf %2081, %2082 : vector<8x1xf32>
    %cst_866 = arith.constant 5.000000e-01 : f32
    %2084 = vector.broadcast %cst_866 : f32 to vector<8x1xf32>
    %2085 = arith.mulf %2084, %2083 : vector<8x1xf32>
    %2086 = vector.broadcast %2085 : vector<8x1xf32> to vector<8x16xf32>
    %2087 = arith.subf %1714, %2086 : vector<8x16xf32>
    %cst_867 = arith.constant 0.000000e+00 : f32
    %2088 = vector.broadcast %cst_867 : f32 to vector<8x16xf32>
    %2089 = arith.maximumf %2087, %2088 : vector<8x16xf32>
    %cst_868 = arith.constant dense<0.000000e+00> : vector<8xf32>
    %2090 = vector.multi_reduction <add>, %2089, %cst_868 [1] : vector<8x16xf32> to vector<8xf32>
    %2091 = vector.shape_cast %2090 : vector<8xf32> to vector<8x1xf32>
    %cst_869 = arith.constant 1.000000e+00 : f32
    %2092 = vector.broadcast %cst_869 : f32 to vector<8x1xf32>
    %2093 = arith.cmpf ogt, %2091, %2092 : vector<8x1xf32>
    %2094 = arith.select %2093, %2085, %2081 : vector<8x1xi1>, vector<8x1xf32>
    %2095 = arith.select %2093, %2082, %2085 : vector<8x1xi1>, vector<8x1xf32>
    %c29_i32_870 = arith.constant 29 : i32
    %2096 = arith.addf %2094, %2095 : vector<8x1xf32>
    %cst_871 = arith.constant 5.000000e-01 : f32
    %2097 = vector.broadcast %cst_871 : f32 to vector<8x1xf32>
    %2098 = arith.mulf %2097, %2096 : vector<8x1xf32>
    %2099 = vector.broadcast %2098 : vector<8x1xf32> to vector<8x16xf32>
    %2100 = arith.subf %1714, %2099 : vector<8x16xf32>
    %cst_872 = arith.constant 0.000000e+00 : f32
    %2101 = vector.broadcast %cst_872 : f32 to vector<8x16xf32>
    %2102 = arith.maximumf %2100, %2101 : vector<8x16xf32>
    %cst_873 = arith.constant dense<0.000000e+00> : vector<8xf32>
    %2103 = vector.multi_reduction <add>, %2102, %cst_873 [1] : vector<8x16xf32> to vector<8xf32>
    %2104 = vector.shape_cast %2103 : vector<8xf32> to vector<8x1xf32>
    %cst_874 = arith.constant 1.000000e+00 : f32
    %2105 = vector.broadcast %cst_874 : f32 to vector<8x1xf32>
    %2106 = arith.cmpf ogt, %2104, %2105 : vector<8x1xf32>
    %2107 = arith.select %2106, %2098, %2094 : vector<8x1xi1>, vector<8x1xf32>
    %2108 = arith.select %2106, %2095, %2098 : vector<8x1xi1>, vector<8x1xf32>
    %2109 = arith.addf %2107, %2108 : vector<8x1xf32>
    %cst_875 = arith.constant 5.000000e-01 : f32
    %2110 = vector.broadcast %cst_875 : f32 to vector<8x1xf32>
    %2111 = arith.mulf %2110, %2109 : vector<8x1xf32>
    %2112 = vector.broadcast %2111 : vector<8x1xf32> to vector<8x16xf32>
    %2113 = arith.subf %1714, %2112 : vector<8x16xf32>
    %cst_876 = arith.constant 0.000000e+00 : f32
    %2114 = vector.broadcast %cst_876 : f32 to vector<8x16xf32>
    %2115 = arith.maximumf %2113, %2114 : vector<8x16xf32>
    %cst_877 = arith.constant 1.000000e-15 : f32
    %2116 = vector.broadcast %cst_877 : f32 to vector<8x16xf32>
    %2117 = arith.addf %2115, %2116 : vector<8x16xf32>
    %2118 = math.log %2117 : vector<8x16xf32>
    %2119 = arith.mulf %2115, %2118 : vector<8x16xf32>
    %cst_878 = arith.constant dense<0.000000e+00> : vector<8xf32>
    %2120 = vector.multi_reduction <add>, %2119, %cst_878 [1] : vector<8x16xf32> to vector<8xf32>
    %2121 = vector.shape_cast %2120 : vector<8xf32> to vector<8x1xf32>
    %cst_879 = arith.constant dense<0.000000e+00> : vector<1xf32>
    %2122 = vector.multi_reduction <add>, %2121, %cst_879 [0] : vector<8x1xf32> to vector<1xf32>
    %2123 = vector.shape_cast %2122 : vector<1xf32> to vector<1x1xf32>
    %cst_880 = arith.constant 8.000000e+00 : f32
    %2124 = vector.broadcast %cst_880 : f32 to vector<1x1xf32>
    %2125 = arith.divf %2123, %2124 : vector<1x1xf32>
    %2126 = arith.addf %1425, %2125 : vector<1x1xf32>
    %2127 = arith.mulf %2115, %23 : vector<8x16xf32>
    %cst_881 = arith.constant dense<0.000000e+00> : vector<8x8xf32>
    %2128 = tpu.matmul %2127, %25, %cst_881 {dimension_numbers = #tpu.dot_dimension_numbers<[1], [0], [0], [1], [0, 0, 1, 1], [], []>} : vector<8x16xf32>, vector<16x8xf32>, vector<8x8xf32> -> vector<8x8xf32>
    %cst_882 = arith.constant dense<0.000000e+00> : vector<8x8xf32>
    %2129 = tpu.matmul %2127, %27, %cst_882 {dimension_numbers = #tpu.dot_dimension_numbers<[1], [0], [0], [1], [0, 0, 1, 1], [], []>} : vector<8x16xf32>, vector<16x8xf32>, vector<8x8xf32> -> vector<8x8xf32>
    %c0_883 = arith.constant 0 : index
    %c12 = arith.constant 12 : index
    %c0_884 = arith.constant 0 : index
    %2130 = vector.load %arg5[%c0_883, %c12, %c0_884] : memref<4x16x8xf32, #tpu.memory_space<vmem>>, vector<1x1x8xf32>
    %2131 = vector.shape_cast %2130 : vector<1x1x8xf32> to vector<1x8xf32>
    %c2_885 = arith.constant 2 : index
    %c12_886 = arith.constant 12 : index
    %c0_887 = arith.constant 0 : index
    %2132 = vector.load %arg5[%c2_885, %c12_886, %c0_887] : memref<4x16x8xf32, #tpu.memory_space<vmem>>, vector<1x1x8xf32>
    %2133 = vector.shape_cast %2132 : vector<1x1x8xf32> to vector<1x8xf32>
    %cst_888 = arith.constant dense<0.000000e+00> : vector<8xf32>
    %2134 = vector.multi_reduction <add>, %2128, %cst_888 [0] : vector<8x8xf32> to vector<8xf32>
    %2135 = vector.shape_cast %2134 : vector<8xf32> to vector<1x8xf32>
    %cst_889 = arith.constant 1.250000e-01 : f32
    %2136 = vector.broadcast %cst_889 : f32 to vector<1x8xf32>
    %2137 = arith.mulf %2135, %2136 : vector<1x8xf32>
    %2138 = arith.mulf %2128, %2128 : vector<8x8xf32>
    %cst_890 = arith.constant dense<0.000000e+00> : vector<8xf32>
    %2139 = vector.multi_reduction <add>, %2138, %cst_890 [0] : vector<8x8xf32> to vector<8xf32>
    %2140 = vector.shape_cast %2139 : vector<8xf32> to vector<1x8xf32>
    %cst_891 = arith.constant 1.250000e-01 : f32
    %2141 = vector.broadcast %cst_891 : f32 to vector<1x8xf32>
    %2142 = arith.mulf %2140, %2141 : vector<1x8xf32>
    %2143 = arith.mulf %2137, %2137 : vector<1x8xf32>
    %2144 = arith.subf %2142, %2143 : vector<1x8xf32>
    %cst_892 = arith.constant 9.99999974E-6 : f32
    %2145 = vector.broadcast %cst_892 : f32 to vector<1x8xf32>
    %2146 = arith.addf %2144, %2145 : vector<1x8xf32>
    %2147 = math.rsqrt %2146 : vector<1x8xf32>
    %2148 = arith.mulf %2131, %2147 : vector<1x8xf32>
    %2149 = arith.mulf %2137, %2148 : vector<1x8xf32>
    %2150 = arith.subf %2133, %2149 : vector<1x8xf32>
    %2151 = vector.broadcast %2148 : vector<1x8xf32> to vector<8x8xf32>
    %2152 = arith.mulf %2128, %2151 : vector<8x8xf32>
    %2153 = vector.broadcast %2150 : vector<1x8xf32> to vector<8x8xf32>
    %2154 = arith.addf %2152, %2153 : vector<8x8xf32>
    %c1_893 = arith.constant 1 : index
    %c12_894 = arith.constant 12 : index
    %c0_895 = arith.constant 0 : index
    %2155 = vector.load %arg5[%c1_893, %c12_894, %c0_895] : memref<4x16x8xf32, #tpu.memory_space<vmem>>, vector<1x1x8xf32>
    %2156 = vector.shape_cast %2155 : vector<1x1x8xf32> to vector<1x8xf32>
    %c3_896 = arith.constant 3 : index
    %c12_897 = arith.constant 12 : index
    %c0_898 = arith.constant 0 : index
    %2157 = vector.load %arg5[%c3_896, %c12_897, %c0_898] : memref<4x16x8xf32, #tpu.memory_space<vmem>>, vector<1x1x8xf32>
    %2158 = vector.shape_cast %2157 : vector<1x1x8xf32> to vector<1x8xf32>
    %cst_899 = arith.constant dense<0.000000e+00> : vector<8xf32>
    %2159 = vector.multi_reduction <add>, %2129, %cst_899 [0] : vector<8x8xf32> to vector<8xf32>
    %2160 = vector.shape_cast %2159 : vector<8xf32> to vector<1x8xf32>
    %cst_900 = arith.constant 1.250000e-01 : f32
    %2161 = vector.broadcast %cst_900 : f32 to vector<1x8xf32>
    %2162 = arith.mulf %2160, %2161 : vector<1x8xf32>
    %2163 = arith.mulf %2129, %2129 : vector<8x8xf32>
    %cst_901 = arith.constant dense<0.000000e+00> : vector<8xf32>
    %2164 = vector.multi_reduction <add>, %2163, %cst_901 [0] : vector<8x8xf32> to vector<8xf32>
    %2165 = vector.shape_cast %2164 : vector<8xf32> to vector<1x8xf32>
    %cst_902 = arith.constant 1.250000e-01 : f32
    %2166 = vector.broadcast %cst_902 : f32 to vector<1x8xf32>
    %2167 = arith.mulf %2165, %2166 : vector<1x8xf32>
    %2168 = arith.mulf %2162, %2162 : vector<1x8xf32>
    %2169 = arith.subf %2167, %2168 : vector<1x8xf32>
    %cst_903 = arith.constant 9.99999974E-6 : f32
    %2170 = vector.broadcast %cst_903 : f32 to vector<1x8xf32>
    %2171 = arith.addf %2169, %2170 : vector<1x8xf32>
    %2172 = math.rsqrt %2171 : vector<1x8xf32>
    %2173 = arith.mulf %2156, %2172 : vector<1x8xf32>
    %2174 = arith.mulf %2162, %2173 : vector<1x8xf32>
    %2175 = arith.subf %2158, %2174 : vector<1x8xf32>
    %2176 = vector.broadcast %2173 : vector<1x8xf32> to vector<8x8xf32>
    %2177 = arith.mulf %2129, %2176 : vector<8x8xf32>
    %2178 = vector.broadcast %2175 : vector<1x8xf32> to vector<8x8xf32>
    %2179 = arith.addf %2177, %2178 : vector<8x8xf32>
    %2180 = arith.negf %2179 : vector<8x8xf32>
    %2181 = math.exp %2180 : vector<8x8xf32>
    %cst_904 = arith.constant 1.000000e+00 : f32
    %2182 = vector.broadcast %cst_904 : f32 to vector<8x8xf32>
    %2183 = arith.addf %2182, %2181 : vector<8x8xf32>
    %2184 = arith.divf %2182, %2183 : vector<8x8xf32>
    %2185 = arith.mulf %2154, %2184 : vector<8x8xf32>
    %c0_905 = arith.constant 0 : index
    %c0_906 = arith.constant 0 : index
    %c0_907 = arith.constant 0 : index
    %c0_908 = arith.constant 0 : index
    %2186 = vector.load %arg4[%c0_905, %c0_906, %c0_907, %c0_908] : memref<2x9x8x8xf32, #tpu.memory_space<vmem>>, vector<1x1x8x8xf32>
    %2187 = vector.shape_cast %2186 : vector<1x1x8x8xf32> to vector<8x8xf32>
    %c1_909 = arith.constant 1 : index
    %c0_910 = arith.constant 0 : index
    %c0_911 = arith.constant 0 : index
    %c0_912 = arith.constant 0 : index
    %2188 = vector.load %arg4[%c1_909, %c0_910, %c0_911, %c0_912] : memref<2x9x8x8xf32, #tpu.memory_space<vmem>>, vector<1x1x8x8xf32>
    %2189 = vector.shape_cast %2188 : vector<1x1x8x8xf32> to vector<8x8xf32>
    %cst_913 = arith.constant dense<0.000000e+00> : vector<8x8xf32>
    %2190 = tpu.matmul %2185, %2187, %cst_913 {dimension_numbers = #tpu.dot_dimension_numbers<[1], [0], [0], [1], [0, 0, 1, 1], [], []>} : vector<8x8xf32>, vector<8x8xf32>, vector<8x8xf32> -> vector<8x8xf32>
    %cst_914 = arith.constant dense<0.000000e+00> : vector<8x8xf32>
    %2191 = tpu.matmul %2185, %2189, %cst_914 {dimension_numbers = #tpu.dot_dimension_numbers<[1], [0], [0], [1], [0, 0, 1, 1], [], []>} : vector<8x8xf32>, vector<8x8xf32>, vector<8x8xf32> -> vector<8x8xf32>
    %c0_915 = arith.constant 0 : index
    %c13 = arith.constant 13 : index
    %c0_916 = arith.constant 0 : index
    %2192 = vector.load %arg5[%c0_915, %c13, %c0_916] : memref<4x16x8xf32, #tpu.memory_space<vmem>>, vector<1x1x8xf32>
    %2193 = vector.shape_cast %2192 : vector<1x1x8xf32> to vector<1x8xf32>
    %c2_917 = arith.constant 2 : index
    %c13_918 = arith.constant 13 : index
    %c0_919 = arith.constant 0 : index
    %2194 = vector.load %arg5[%c2_917, %c13_918, %c0_919] : memref<4x16x8xf32, #tpu.memory_space<vmem>>, vector<1x1x8xf32>
    %2195 = vector.shape_cast %2194 : vector<1x1x8xf32> to vector<1x8xf32>
    %cst_920 = arith.constant dense<0.000000e+00> : vector<8xf32>
    %2196 = vector.multi_reduction <add>, %2190, %cst_920 [0] : vector<8x8xf32> to vector<8xf32>
    %2197 = vector.shape_cast %2196 : vector<8xf32> to vector<1x8xf32>
    %cst_921 = arith.constant 1.250000e-01 : f32
    %2198 = vector.broadcast %cst_921 : f32 to vector<1x8xf32>
    %2199 = arith.mulf %2197, %2198 : vector<1x8xf32>
    %2200 = arith.mulf %2190, %2190 : vector<8x8xf32>
    %cst_922 = arith.constant dense<0.000000e+00> : vector<8xf32>
    %2201 = vector.multi_reduction <add>, %2200, %cst_922 [0] : vector<8x8xf32> to vector<8xf32>
    %2202 = vector.shape_cast %2201 : vector<8xf32> to vector<1x8xf32>
    %cst_923 = arith.constant 1.250000e-01 : f32
    %2203 = vector.broadcast %cst_923 : f32 to vector<1x8xf32>
    %2204 = arith.mulf %2202, %2203 : vector<1x8xf32>
    %2205 = arith.mulf %2199, %2199 : vector<1x8xf32>
    %2206 = arith.subf %2204, %2205 : vector<1x8xf32>
    %cst_924 = arith.constant 9.99999974E-6 : f32
    %2207 = vector.broadcast %cst_924 : f32 to vector<1x8xf32>
    %2208 = arith.addf %2206, %2207 : vector<1x8xf32>
    %2209 = math.rsqrt %2208 : vector<1x8xf32>
    %2210 = arith.mulf %2193, %2209 : vector<1x8xf32>
    %2211 = arith.mulf %2199, %2210 : vector<1x8xf32>
    %2212 = arith.subf %2195, %2211 : vector<1x8xf32>
    %2213 = vector.broadcast %2210 : vector<1x8xf32> to vector<8x8xf32>
    %2214 = arith.mulf %2190, %2213 : vector<8x8xf32>
    %2215 = vector.broadcast %2212 : vector<1x8xf32> to vector<8x8xf32>
    %2216 = arith.addf %2214, %2215 : vector<8x8xf32>
    %c1_925 = arith.constant 1 : index
    %c13_926 = arith.constant 13 : index
    %c0_927 = arith.constant 0 : index
    %2217 = vector.load %arg5[%c1_925, %c13_926, %c0_927] : memref<4x16x8xf32, #tpu.memory_space<vmem>>, vector<1x1x8xf32>
    %2218 = vector.shape_cast %2217 : vector<1x1x8xf32> to vector<1x8xf32>
    %c3_928 = arith.constant 3 : index
    %c13_929 = arith.constant 13 : index
    %c0_930 = arith.constant 0 : index
    %2219 = vector.load %arg5[%c3_928, %c13_929, %c0_930] : memref<4x16x8xf32, #tpu.memory_space<vmem>>, vector<1x1x8xf32>
    %2220 = vector.shape_cast %2219 : vector<1x1x8xf32> to vector<1x8xf32>
    %cst_931 = arith.constant dense<0.000000e+00> : vector<8xf32>
    %2221 = vector.multi_reduction <add>, %2191, %cst_931 [0] : vector<8x8xf32> to vector<8xf32>
    %2222 = vector.shape_cast %2221 : vector<8xf32> to vector<1x8xf32>
    %cst_932 = arith.constant 1.250000e-01 : f32
    %2223 = vector.broadcast %cst_932 : f32 to vector<1x8xf32>
    %2224 = arith.mulf %2222, %2223 : vector<1x8xf32>
    %2225 = arith.mulf %2191, %2191 : vector<8x8xf32>
    %cst_933 = arith.constant dense<0.000000e+00> : vector<8xf32>
    %2226 = vector.multi_reduction <add>, %2225, %cst_933 [0] : vector<8x8xf32> to vector<8xf32>
    %2227 = vector.shape_cast %2226 : vector<8xf32> to vector<1x8xf32>
    %cst_934 = arith.constant 1.250000e-01 : f32
    %2228 = vector.broadcast %cst_934 : f32 to vector<1x8xf32>
    %2229 = arith.mulf %2227, %2228 : vector<1x8xf32>
    %2230 = arith.mulf %2224, %2224 : vector<1x8xf32>
    %2231 = arith.subf %2229, %2230 : vector<1x8xf32>
    %cst_935 = arith.constant 9.99999974E-6 : f32
    %2232 = vector.broadcast %cst_935 : f32 to vector<1x8xf32>
    %2233 = arith.addf %2231, %2232 : vector<1x8xf32>
    %2234 = math.rsqrt %2233 : vector<1x8xf32>
    %2235 = arith.mulf %2218, %2234 : vector<1x8xf32>
    %2236 = arith.mulf %2224, %2235 : vector<1x8xf32>
    %2237 = arith.subf %2220, %2236 : vector<1x8xf32>
    %2238 = vector.broadcast %2235 : vector<1x8xf32> to vector<8x8xf32>
    %2239 = arith.mulf %2191, %2238 : vector<8x8xf32>
    %2240 = vector.broadcast %2237 : vector<1x8xf32> to vector<8x8xf32>
    %2241 = arith.addf %2239, %2240 : vector<8x8xf32>
    %2242 = arith.negf %2241 : vector<8x8xf32>
    %2243 = math.exp %2242 : vector<8x8xf32>
    %cst_936 = arith.constant 1.000000e+00 : f32
    %2244 = vector.broadcast %cst_936 : f32 to vector<8x8xf32>
    %2245 = arith.addf %2244, %2243 : vector<8x8xf32>
    %2246 = arith.divf %2244, %2245 : vector<8x8xf32>
    %2247 = arith.mulf %2216, %2246 : vector<8x8xf32>
    %2248 = arith.addf %2185, %2247 : vector<8x8xf32>
    %cst_937 = arith.constant 0.707106769 : f32
    %2249 = vector.broadcast %cst_937 : f32 to vector<8x8xf32>
    %2250 = arith.mulf %2248, %2249 : vector<8x8xf32>
    %c0_938 = arith.constant 0 : index
    %c7_939 = arith.constant 7 : index
    %c0_940 = arith.constant 0 : index
    %c0_941 = arith.constant 0 : index
    %2251 = vector.load %arg4[%c0_938, %c7_939, %c0_940, %c0_941] : memref<2x9x8x8xf32, #tpu.memory_space<vmem>>, vector<1x1x8x8xf32>
    %2252 = vector.shape_cast %2251 : vector<1x1x8x8xf32> to vector<8x8xf32>
    %c1_942 = arith.constant 1 : index
    %c7_943 = arith.constant 7 : index
    %c0_944 = arith.constant 0 : index
    %c0_945 = arith.constant 0 : index
    %2253 = vector.load %arg4[%c1_942, %c7_943, %c0_944, %c0_945] : memref<2x9x8x8xf32, #tpu.memory_space<vmem>>, vector<1x1x8x8xf32>
    %2254 = vector.shape_cast %2253 : vector<1x1x8x8xf32> to vector<8x8xf32>
    %cst_946 = arith.constant dense<0.000000e+00> : vector<8x8xf32>
    %2255 = tpu.matmul %2250, %2252, %cst_946 {dimension_numbers = #tpu.dot_dimension_numbers<[1], [0], [0], [1], [0, 0, 1, 1], [], []>} : vector<8x8xf32>, vector<8x8xf32>, vector<8x8xf32> -> vector<8x8xf32>
    %cst_947 = arith.constant dense<0.000000e+00> : vector<8x8xf32>
    %2256 = tpu.matmul %2250, %2254, %cst_947 {dimension_numbers = #tpu.dot_dimension_numbers<[1], [0], [0], [1], [0, 0, 1, 1], [], []>} : vector<8x8xf32>, vector<8x8xf32>, vector<8x8xf32> -> vector<8x8xf32>
    %c0_948 = arith.constant 0 : index
    %c14 = arith.constant 14 : index
    %c0_949 = arith.constant 0 : index
    %2257 = vector.load %arg5[%c0_948, %c14, %c0_949] : memref<4x16x8xf32, #tpu.memory_space<vmem>>, vector<1x1x8xf32>
    %2258 = vector.shape_cast %2257 : vector<1x1x8xf32> to vector<1x8xf32>
    %c2_950 = arith.constant 2 : index
    %c14_951 = arith.constant 14 : index
    %c0_952 = arith.constant 0 : index
    %2259 = vector.load %arg5[%c2_950, %c14_951, %c0_952] : memref<4x16x8xf32, #tpu.memory_space<vmem>>, vector<1x1x8xf32>
    %2260 = vector.shape_cast %2259 : vector<1x1x8xf32> to vector<1x8xf32>
    %cst_953 = arith.constant dense<0.000000e+00> : vector<8xf32>
    %2261 = vector.multi_reduction <add>, %2255, %cst_953 [0] : vector<8x8xf32> to vector<8xf32>
    %2262 = vector.shape_cast %2261 : vector<8xf32> to vector<1x8xf32>
    %cst_954 = arith.constant 1.250000e-01 : f32
    %2263 = vector.broadcast %cst_954 : f32 to vector<1x8xf32>
    %2264 = arith.mulf %2262, %2263 : vector<1x8xf32>
    %2265 = arith.mulf %2255, %2255 : vector<8x8xf32>
    %cst_955 = arith.constant dense<0.000000e+00> : vector<8xf32>
    %2266 = vector.multi_reduction <add>, %2265, %cst_955 [0] : vector<8x8xf32> to vector<8xf32>
    %2267 = vector.shape_cast %2266 : vector<8xf32> to vector<1x8xf32>
    %cst_956 = arith.constant 1.250000e-01 : f32
    %2268 = vector.broadcast %cst_956 : f32 to vector<1x8xf32>
    %2269 = arith.mulf %2267, %2268 : vector<1x8xf32>
    %2270 = arith.mulf %2264, %2264 : vector<1x8xf32>
    %2271 = arith.subf %2269, %2270 : vector<1x8xf32>
    %cst_957 = arith.constant 9.99999974E-6 : f32
    %2272 = vector.broadcast %cst_957 : f32 to vector<1x8xf32>
    %2273 = arith.addf %2271, %2272 : vector<1x8xf32>
    %2274 = math.rsqrt %2273 : vector<1x8xf32>
    %2275 = arith.mulf %2258, %2274 : vector<1x8xf32>
    %2276 = arith.mulf %2264, %2275 : vector<1x8xf32>
    %2277 = arith.subf %2260, %2276 : vector<1x8xf32>
    %2278 = vector.broadcast %2275 : vector<1x8xf32> to vector<8x8xf32>
    %2279 = arith.mulf %2255, %2278 : vector<8x8xf32>
    %2280 = vector.broadcast %2277 : vector<1x8xf32> to vector<8x8xf32>
    %2281 = arith.addf %2279, %2280 : vector<8x8xf32>
    %c1_958 = arith.constant 1 : index
    %c14_959 = arith.constant 14 : index
    %c0_960 = arith.constant 0 : index
    %2282 = vector.load %arg5[%c1_958, %c14_959, %c0_960] : memref<4x16x8xf32, #tpu.memory_space<vmem>>, vector<1x1x8xf32>
    %2283 = vector.shape_cast %2282 : vector<1x1x8xf32> to vector<1x8xf32>
    %c3_961 = arith.constant 3 : index
    %c14_962 = arith.constant 14 : index
    %c0_963 = arith.constant 0 : index
    %2284 = vector.load %arg5[%c3_961, %c14_962, %c0_963] : memref<4x16x8xf32, #tpu.memory_space<vmem>>, vector<1x1x8xf32>
    %2285 = vector.shape_cast %2284 : vector<1x1x8xf32> to vector<1x8xf32>
    %cst_964 = arith.constant dense<0.000000e+00> : vector<8xf32>
    %2286 = vector.multi_reduction <add>, %2256, %cst_964 [0] : vector<8x8xf32> to vector<8xf32>
    %2287 = vector.shape_cast %2286 : vector<8xf32> to vector<1x8xf32>
    %cst_965 = arith.constant 1.250000e-01 : f32
    %2288 = vector.broadcast %cst_965 : f32 to vector<1x8xf32>
    %2289 = arith.mulf %2287, %2288 : vector<1x8xf32>
    %2290 = arith.mulf %2256, %2256 : vector<8x8xf32>
    %cst_966 = arith.constant dense<0.000000e+00> : vector<8xf32>
    %2291 = vector.multi_reduction <add>, %2290, %cst_966 [0] : vector<8x8xf32> to vector<8xf32>
    %2292 = vector.shape_cast %2291 : vector<8xf32> to vector<1x8xf32>
    %cst_967 = arith.constant 1.250000e-01 : f32
    %2293 = vector.broadcast %cst_967 : f32 to vector<1x8xf32>
    %2294 = arith.mulf %2292, %2293 : vector<1x8xf32>
    %2295 = arith.mulf %2289, %2289 : vector<1x8xf32>
    %2296 = arith.subf %2294, %2295 : vector<1x8xf32>
    %cst_968 = arith.constant 9.99999974E-6 : f32
    %2297 = vector.broadcast %cst_968 : f32 to vector<1x8xf32>
    %2298 = arith.addf %2296, %2297 : vector<1x8xf32>
    %2299 = math.rsqrt %2298 : vector<1x8xf32>
    %2300 = arith.mulf %2283, %2299 : vector<1x8xf32>
    %2301 = arith.mulf %2289, %2300 : vector<1x8xf32>
    %2302 = arith.subf %2285, %2301 : vector<1x8xf32>
    %2303 = vector.broadcast %2300 : vector<1x8xf32> to vector<8x8xf32>
    %2304 = arith.mulf %2256, %2303 : vector<8x8xf32>
    %2305 = vector.broadcast %2302 : vector<1x8xf32> to vector<8x8xf32>
    %2306 = arith.addf %2304, %2305 : vector<8x8xf32>
    %2307 = arith.negf %2306 : vector<8x8xf32>
    %2308 = math.exp %2307 : vector<8x8xf32>
    %cst_969 = arith.constant 1.000000e+00 : f32
    %2309 = vector.broadcast %cst_969 : f32 to vector<8x8xf32>
    %2310 = arith.addf %2309, %2308 : vector<8x8xf32>
    %2311 = arith.divf %2309, %2310 : vector<8x8xf32>
    %2312 = arith.mulf %2281, %2311 : vector<8x8xf32>
    %2313 = arith.addf %2250, %2312 : vector<8x8xf32>
    %cst_970 = arith.constant 0.707106769 : f32
    %2314 = vector.broadcast %cst_970 : f32 to vector<8x8xf32>
    %2315 = arith.mulf %2313, %2314 : vector<8x8xf32>
    %c0_971 = arith.constant 0 : index
    %c8_972 = arith.constant 8 : index
    %c0_973 = arith.constant 0 : index
    %c0_974 = arith.constant 0 : index
    %2316 = vector.load %arg4[%c0_971, %c8_972, %c0_973, %c0_974] : memref<2x9x8x8xf32, #tpu.memory_space<vmem>>, vector<1x1x8x8xf32>
    %2317 = vector.shape_cast %2316 : vector<1x1x8x8xf32> to vector<8x8xf32>
    %c1_975 = arith.constant 1 : index
    %c8_976 = arith.constant 8 : index
    %c0_977 = arith.constant 0 : index
    %c0_978 = arith.constant 0 : index
    %2318 = vector.load %arg4[%c1_975, %c8_976, %c0_977, %c0_978] : memref<2x9x8x8xf32, #tpu.memory_space<vmem>>, vector<1x1x8x8xf32>
    %2319 = vector.shape_cast %2318 : vector<1x1x8x8xf32> to vector<8x8xf32>
    %cst_979 = arith.constant dense<0.000000e+00> : vector<8x8xf32>
    %2320 = tpu.matmul %2315, %2317, %cst_979 {dimension_numbers = #tpu.dot_dimension_numbers<[1], [0], [0], [1], [0, 0, 1, 1], [], []>} : vector<8x8xf32>, vector<8x8xf32>, vector<8x8xf32> -> vector<8x8xf32>
    %cst_980 = arith.constant dense<0.000000e+00> : vector<8x8xf32>
    %2321 = tpu.matmul %2315, %2319, %cst_980 {dimension_numbers = #tpu.dot_dimension_numbers<[1], [0], [0], [1], [0, 0, 1, 1], [], []>} : vector<8x8xf32>, vector<8x8xf32>, vector<8x8xf32> -> vector<8x8xf32>
    %c0_981 = arith.constant 0 : index
    %c15 = arith.constant 15 : index
    %c0_982 = arith.constant 0 : index
    %2322 = vector.load %arg5[%c0_981, %c15, %c0_982] : memref<4x16x8xf32, #tpu.memory_space<vmem>>, vector<1x1x8xf32>
    %2323 = vector.shape_cast %2322 : vector<1x1x8xf32> to vector<1x8xf32>
    %c2_983 = arith.constant 2 : index
    %c15_984 = arith.constant 15 : index
    %c0_985 = arith.constant 0 : index
    %2324 = vector.load %arg5[%c2_983, %c15_984, %c0_985] : memref<4x16x8xf32, #tpu.memory_space<vmem>>, vector<1x1x8xf32>
    %2325 = vector.shape_cast %2324 : vector<1x1x8xf32> to vector<1x8xf32>
    %cst_986 = arith.constant dense<0.000000e+00> : vector<8xf32>
    %2326 = vector.multi_reduction <add>, %2320, %cst_986 [0] : vector<8x8xf32> to vector<8xf32>
    %2327 = vector.shape_cast %2326 : vector<8xf32> to vector<1x8xf32>
    %cst_987 = arith.constant 1.250000e-01 : f32
    %2328 = vector.broadcast %cst_987 : f32 to vector<1x8xf32>
    %2329 = arith.mulf %2327, %2328 : vector<1x8xf32>
    %2330 = arith.mulf %2320, %2320 : vector<8x8xf32>
    %cst_988 = arith.constant dense<0.000000e+00> : vector<8xf32>
    %2331 = vector.multi_reduction <add>, %2330, %cst_988 [0] : vector<8x8xf32> to vector<8xf32>
    %2332 = vector.shape_cast %2331 : vector<8xf32> to vector<1x8xf32>
    %cst_989 = arith.constant 1.250000e-01 : f32
    %2333 = vector.broadcast %cst_989 : f32 to vector<1x8xf32>
    %2334 = arith.mulf %2332, %2333 : vector<1x8xf32>
    %2335 = arith.mulf %2329, %2329 : vector<1x8xf32>
    %2336 = arith.subf %2334, %2335 : vector<1x8xf32>
    %cst_990 = arith.constant 9.99999974E-6 : f32
    %2337 = vector.broadcast %cst_990 : f32 to vector<1x8xf32>
    %2338 = arith.addf %2336, %2337 : vector<1x8xf32>
    %2339 = math.rsqrt %2338 : vector<1x8xf32>
    %2340 = arith.mulf %2323, %2339 : vector<1x8xf32>
    %2341 = arith.mulf %2329, %2340 : vector<1x8xf32>
    %2342 = arith.subf %2325, %2341 : vector<1x8xf32>
    %2343 = vector.broadcast %2340 : vector<1x8xf32> to vector<8x8xf32>
    %2344 = arith.mulf %2320, %2343 : vector<8x8xf32>
    %2345 = vector.broadcast %2342 : vector<1x8xf32> to vector<8x8xf32>
    %2346 = arith.addf %2344, %2345 : vector<8x8xf32>
    %c1_991 = arith.constant 1 : index
    %c15_992 = arith.constant 15 : index
    %c0_993 = arith.constant 0 : index
    %2347 = vector.load %arg5[%c1_991, %c15_992, %c0_993] : memref<4x16x8xf32, #tpu.memory_space<vmem>>, vector<1x1x8xf32>
    %2348 = vector.shape_cast %2347 : vector<1x1x8xf32> to vector<1x8xf32>
    %c3_994 = arith.constant 3 : index
    %c15_995 = arith.constant 15 : index
    %c0_996 = arith.constant 0 : index
    %2349 = vector.load %arg5[%c3_994, %c15_995, %c0_996] : memref<4x16x8xf32, #tpu.memory_space<vmem>>, vector<1x1x8xf32>
    %2350 = vector.shape_cast %2349 : vector<1x1x8xf32> to vector<1x8xf32>
    %cst_997 = arith.constant dense<0.000000e+00> : vector<8xf32>
    %2351 = vector.multi_reduction <add>, %2321, %cst_997 [0] : vector<8x8xf32> to vector<8xf32>
    %2352 = vector.shape_cast %2351 : vector<8xf32> to vector<1x8xf32>
    %cst_998 = arith.constant 1.250000e-01 : f32
    %2353 = vector.broadcast %cst_998 : f32 to vector<1x8xf32>
    %2354 = arith.mulf %2352, %2353 : vector<1x8xf32>
    %2355 = arith.mulf %2321, %2321 : vector<8x8xf32>
    %cst_999 = arith.constant dense<0.000000e+00> : vector<8xf32>
    %2356 = vector.multi_reduction <add>, %2355, %cst_999 [0] : vector<8x8xf32> to vector<8xf32>
    %2357 = vector.shape_cast %2356 : vector<8xf32> to vector<1x8xf32>
    %cst_1000 = arith.constant 1.250000e-01 : f32
    %2358 = vector.broadcast %cst_1000 : f32 to vector<1x8xf32>
    %2359 = arith.mulf %2357, %2358 : vector<1x8xf32>
    %2360 = arith.mulf %2354, %2354 : vector<1x8xf32>
    %2361 = arith.subf %2359, %2360 : vector<1x8xf32>
    %cst_1001 = arith.constant 9.99999974E-6 : f32
    %2362 = vector.broadcast %cst_1001 : f32 to vector<1x8xf32>
    %2363 = arith.addf %2361, %2362 : vector<1x8xf32>
    %2364 = math.rsqrt %2363 : vector<1x8xf32>
    %2365 = arith.mulf %2348, %2364 : vector<1x8xf32>
    %2366 = arith.mulf %2354, %2365 : vector<1x8xf32>
    %2367 = arith.subf %2350, %2366 : vector<1x8xf32>
    %2368 = vector.broadcast %2365 : vector<1x8xf32> to vector<8x8xf32>
    %2369 = arith.mulf %2321, %2368 : vector<8x8xf32>
    %2370 = vector.broadcast %2367 : vector<1x8xf32> to vector<8x8xf32>
    %2371 = arith.addf %2369, %2370 : vector<8x8xf32>
    %2372 = arith.negf %2371 : vector<8x8xf32>
    %2373 = math.exp %2372 : vector<8x8xf32>
    %cst_1002 = arith.constant 1.000000e+00 : f32
    %2374 = vector.broadcast %cst_1002 : f32 to vector<8x8xf32>
    %2375 = arith.addf %2374, %2373 : vector<8x8xf32>
    %2376 = arith.divf %2374, %2375 : vector<8x8xf32>
    %2377 = arith.mulf %2346, %2376 : vector<8x8xf32>
    %2378 = arith.addf %2315, %2377 : vector<8x8xf32>
    %cst_1003 = arith.constant 0.707106769 : f32
    %2379 = vector.broadcast %cst_1003 : f32 to vector<8x8xf32>
    %2380 = arith.mulf %2378, %2379 : vector<8x8xf32>
    %cst_1004 = arith.constant 0.000000e+00 : f32
    %2381 = vector.broadcast %cst_1004 : f32 to vector<8x8xf32>
    %2382 = arith.maximumf %2380, %2381 : vector<8x8xf32>
    %2383 = arith.addf %1685, %2382 : vector<8x8xf32>
    %cst_1005 = arith.constant 0.333333343 : f32
    %2384 = vector.broadcast %cst_1005 : f32 to vector<1x1xf32>
    %2385 = arith.mulf %2126, %2384 : vector<1x1xf32>
    %c0_1006 = arith.constant 0 : index
    %c0_1007 = arith.constant 0 : index
    %2386 = vector.load %arg8[%c0_1006, %c0_1007] : memref<8x3xf32, #tpu.memory_space<vmem>>, vector<8x3xf32>
    %cst_1008 = arith.constant dense<0.000000e+00> : vector<8x3xf32>
    %2387 = tpu.matmul %2383, %2386, %cst_1008 {dimension_numbers = #tpu.dot_dimension_numbers<[1], [0], [0], [1], [0, 0, 1, 1], [], []>} : vector<8x8xf32>, vector<8x3xf32>, vector<8x3xf32> -> vector<8x3xf32>
    %c0_1009 = arith.constant 0 : index
    %c0_1010 = arith.constant 0 : index
    %2388 = vector.load %arg9[%c0_1009, %c0_1010] : memref<8x3xf32, #tpu.memory_space<vmem>>, vector<8x3xf32>
    tpu.vector_store %arg9[%c0_1009, %c0_1010], %2387 {strides = array<i32>} : memref<8x3xf32, #tpu.memory_space<vmem>>, vector<8x3xf32>,
    %c0_1011 = arith.constant 0 : index
    %c0_1012 = arith.constant 0 : index
    %c0_1013 = arith.constant 0 : index
    %2389 = vector.load %arg10[%c0_1011, %c0_1012, %c0_1013] : memref<1x1x1xf32, #tpu.memory_space<vmem>>, vector<1x1x1xf32>
    %2390 = vector.shape_cast %2389 : vector<1x1x1xf32> to vector<1x1xf32>
    %2391 = vector.shape_cast %2385 : vector<1x1xf32> to vector<1x1x1xf32>
    tpu.vector_store %arg10[%c0_1011, %c0_1012, %c0_1013], %2391 {strides = array<i32>} : memref<1x1x1xf32, #tpu.memory_space<vmem>>, vector<1x1x1xf32>,
    return
  }
  func.func @transform_0(%arg0: i32) -> (i32, i32) {
    %c0_i32 = arith.constant 0 : i32
    %c0_i32_0 = arith.constant 0 : i32
    return %arg0, %c0_i32 : i32, i32
  }
  func.func @transform_1(%arg0: i32) -> (i32, i32) {
    %c0_i32 = arith.constant 0 : i32
    %c0_i32_0 = arith.constant 0 : i32
    %c0_i32_1 = arith.constant 0 : i32
    return %c0_i32, %c0_i32_0 : i32, i32
  }
  func.func @transform_2(%arg0: i32) -> (i32, i32, i32) {
    %c0_i32 = arith.constant 0 : i32
    %c0_i32_0 = arith.constant 0 : i32
    %c0_i32_1 = arith.constant 0 : i32
    %c0_i32_2 = arith.constant 0 : i32
    return %c0_i32, %c0_i32_0, %c0_i32_1 : i32, i32, i32
  }
  func.func @transform_3(%arg0: i32) -> (i32, i32, i32, i32) {
    %c0_i32 = arith.constant 0 : i32
    %c0_i32_0 = arith.constant 0 : i32
    %c0_i32_1 = arith.constant 0 : i32
    %c0_i32_2 = arith.constant 0 : i32
    %c0_i32_3 = arith.constant 0 : i32
    return %c0_i32, %c0_i32_0, %c0_i32_1, %c0_i32_2 : i32, i32, i32, i32
  }
  func.func @transform_4(%arg0: i32) -> (i32, i32, i32) {
    %c0_i32 = arith.constant 0 : i32
    %c0_i32_0 = arith.constant 0 : i32
    %c0_i32_1 = arith.constant 0 : i32
    %c0_i32_2 = arith.constant 0 : i32
    return %c0_i32, %c0_i32_0, %c0_i32_1 : i32, i32, i32
  }
  func.func @transform_5(%arg0: i32) -> (i32, i32, i32) {
    %c0_i32 = arith.constant 0 : i32
    %c0_i32_0 = arith.constant 0 : i32
    %c0_i32_1 = arith.constant 0 : i32
    %c0_i32_2 = arith.constant 0 : i32
    return %c0_i32, %c0_i32_0, %c0_i32_1 : i32, i32, i32
  }
  func.func @transform_6(%arg0: i32) -> (i32, i32, i32) {
    %c0_i32 = arith.constant 0 : i32
    %c0_i32_0 = arith.constant 0 : i32
    %c0_i32_1 = arith.constant 0 : i32
    %c0_i32_2 = arith.constant 0 : i32
    return %c0_i32, %c0_i32_0, %c0_i32_1 : i32, i32, i32
  }
  func.func @transform_7(%arg0: i32) -> (i32, i32) {
    %c0_i32 = arith.constant 0 : i32
    %c0_i32_0 = arith.constant 0 : i32
    %c0_i32_1 = arith.constant 0 : i32
    return %c0_i32, %c0_i32_0 : i32, i32
  }
  func.func @transform_8(%arg0: i32) -> (i32, i32) {
    %c0_i32 = arith.constant 0 : i32
    %c0_i32_0 = arith.constant 0 : i32
    return %arg0, %c0_i32 : i32, i32
  }
  func.func @transform_9(%arg0: i32) -> (i32, i32, i32) {
    %c0_i32 = arith.constant 0 : i32
    %c0_i32_0 = arith.constant 0 : i32
    %c0_i32_1 = arith.constant 0 : i32
    return %arg0, %c0_i32, %c0_i32_0 : i32, i32, i32
  }
}

</mosaic_0001>

<bundles_post_ra>
// kernel: tabnet_forward.1
= control target key start
LH: loop header
LB: loop body
LE: loop exit
PB: predicated region body
PF: predicated region fallthrough
CT: control target
= control target key end

     0   :  { %s6107_s30 = smov 0   ;;  %s7169_s0 = inlined_call_operand.vmem [shape: f32[16,16], index: 0, kind: input, shape index: {}]   ;;  %s7170_s1 = inlined_call_operand.vmem [shape: f32[2,16], index: 1, kind: input, shape index: {}]   ;;  %s7171_s2 = inlined_call_operand.vmem [shape: f32[2,16,8], index: 2, kind: input, shape index: {}]   ;;  %s7172_s3 = inlined_call_operand.vmem [shape: f32[2,9,8,8], index: 3, kind: input, shape index: {}]   ;;  %s7173_s4 = inlined_call_operand.vmem [shape: f32[4,16,8], index: 4, kind: input, shape index: {}]   ;;  %s7174_s5 = inlined_call_operand.vmem [shape: f32[3,8,16], index: 5, kind: input, shape index: {}]   ;;  %s7175_s6 = inlined_call_operand.vmem [shape: f32[2,3,16], index: 6, kind: input, shape index: {}]   ;;  %s7176_s7 = inlined_call_operand.vmem [shape: f32[8,3], index: 7, kind: input, shape index: {}]   ;;  %s7177_s8 = inlined_call_operand.vmem [shape: f32[16,3], index: 8, kind: output, shape index: {0}]   ;;  %s7178_s9 = inlined_call_operand.vmem [shape: f32[2,1,1], index: 9, kind: output, shape index: {1}]  }
   0x1 LB: > { %s5469_s10 = sadd.s32 4294967295, %s6053_s30   ;;  %p5473_p0 = scmp.ge.s32.totalorder %s6053_s30, 1  ;;  %s6053_s30 = sphi %s6107_s30, %s20_s30  }
   0x2   : > { %p289_p1 = scmp.lt.s32.totalorder %s6053_s30, 3 }
   0x4   : > { %p290_p2 = pnand %p5473_p0, %p289_p1 }
   0x5   : > { %p326_p3 = scmp.lt.s32.totalorder (!%p290_p2), %s5469_s10, 1 }
   0x6   : > { %293 = sbr.rel (%p290_p2) target bundleno = 19240 (0x4b28), region = 52 }
   0xb   : > { %v6118_v0 = vld [vmem:[%s7171_s2 + $0x8] sm:$0xff]  ;;  %v6123_v1 = vld [vmem:[%s7171_s2 + $0x18] sm:$0xff]  ;;  %v6055_v2 = vmov 0.0   ;;  %v6130_v3 = vld [vmem:[%s7171_s2] sm:$0xff]  ;;  %s7180_s10 = smov (!%p326_p3, %s5469_s10), 1  ;;  %vm6056_vm0 = vmmov 0   ;;  %v365_v26 = vlaneseq }
   0xc   : > { %5685 = vmatprep.subr.mxu0 %v6055_v2  ;;  %5692 = vmatprep.subr.mxu1 %v6055_v2  ;;  %v6137_v4 = vld [vmem:[%s7171_s2 + $0x10] sm:$0xff]  ;;  %s5474_s19 = sshll.u32 %s7180_s10, 3  ;;  %vm340_vm1 = vcmask 130048   ;;  %v338_v28 = vld [vmem:[%s7170_s1] sm:$0x1]  ;;  %v5484_v39 = vld [vmem:[%s7172_s3 + $0x48] sm:$0xff]  ;;  %s336_s18 = scalar_lea.vmem %s7178_s9, %s7180_s10 }
   0xd   : > { %5686 = vmatpush3.msra.mxu0 %v6118_v0  ;;  %5693 = vmatpush3.msra.mxu1 %v6123_v1  ;;  %s329_s22 = scalar_lea.vmem %s7169_s0, %s5474_s19  ;;  %v366_v27 = vshrl.u32 %v365_v26, 7  ;;  %v339_v32 = vld [vmem:[%s7170_s1 + $0x1] sm:$0x1]  ;;  %vm526_vm2 = vcmask 64512   ;;  %s333_s28 = scalar_lea.vmem %s7177_s8, %s5474_s19 }
   0xe   : > { %5687 = vmatprep.subr.mxu0 %v6055_v2  ;;  %5694 = vmatprep.subr.mxu1 %v6055_v2  ;;  %v337_v5 = vld [vmem:[%s329_s22] sm:$0xff] }
   0xf   : > { %5688 = vmatpush3.msra.mxu0 %v6130_v3  ;;  %5689 = vmatprep.mubr.msk.f32.mxu0 %vm6056_vm0, %v6055_v2  ;;  %v341_v6 = vsel %vm340_vm1, %v337_v5, 0.0  ;;  %v349_v7 = vmul.f32 %v337_v5, %v337_v5  ;;  %v6162_v29 = vsub.s32 0, %v366_v27  ;;  %v606_v40 = vld [vmem:[%s7172_s3] sm:$0xff] }
  0x10   : > { %5695 = vmatpush3.msra.mxu1 %v6137_v4  ;;  %5696 = vmatprep.mubr.msk.f32.mxu1 %vm6056_vm0, %v6055_v2  ;;  %v342_v8 = vrot.slane %v341_v6, 4 }
  0x11   : > { %5704 = vmatprep.subr.mxu1 %v6055_v2  ;;  %5699 = vmatprep.subr.mxu0 %v6055_v2  ;;  %v350_v9 = vsel %vm340_vm1, %v349_v7, 0.0 }
  0x12   : > { %v343_v10 = vadd.f32 %v342_v8, %v341_v6  ;;  %v351_v11 = vrot.slane %v350_v9, 4 }
  0x14   : > { %v344_v12 = vrot.slane %v343_v10, 2  ;;  %v352_v13 = vadd.f32 %v351_v11, %v350_v9 }
  0x16   : > { %v345_v14 = vadd.f32 %v344_v12, %v343_v10  ;;  %v353_v15 = vrot.slane %v352_v13, 2 }
  0x18   : > { %v346_v16 = vrot.slane %v345_v14, 1  ;;  %v354_v17 = vadd.f32 %v353_v15, %v352_v13 }
  0x1a   : > { %v347_v18 = vadd.f32 %v346_v16, %v345_v14  ;;  %v355_v19 = vrot.slane %v354_v17, 1 }
  0x1c   : > { %v348_v20 = vmul.f32 0.125, %v347_v18  ;;  %v356_v21 = vadd.f32 %v355_v19, %v354_v17 }
  0x1e   : > { %v357_v22 = vmul.f32 0.125, %v356_v21  ;;  %v358_v23 = vmul.f32 %v348_v20, %v348_v20 }
  0x20   : > { %v359_v24 = vsub.f32 %v357_v22, %v358_v23 }
  0x22   : > { %v360_v25 = vadd.f32 1e-05, %v359_v24  ;;  %v5481_v24 = vld [vmem:[%s7173_s4 + $0x10] sm:$0x1] }
  0x24   : > { %5891 = vrsqrt.f32 %v360_v25 }
  0x31   : > { %v5892_v30 = vpop.eup %5891 }
  0x32   : > { %v362_v31 = vmul.f32 %v5892_v30, %v338_v28  ;;  %v5482_v28 = vld [vmem:[%s7173_s4 + $0x30] sm:$0x1] }
  0x34   : > { %v363_v33 = vmul.f32 %v362_v31, %v348_v20  ;;  %v368_v34 = vrot.slane %v362_v31, %v6162_v29 }
  0x36   : > { %v364_v35 = vsub.f32 %v339_v32, %v363_v33  ;;  %v369_v36 = vmul.f32 %v368_v34, %v337_v5 }
  0x38   : > { %v373_v37 = vrot.slane %v364_v35, %v6162_v29 }
  0x3a   : > { %v6169_v38 = vadd.f32 %v373_v37, %v369_v36 }
  0x3c   : > { %5690 = vmatmul.mubr.msk.f32.vlgmr.msra.gmra.mxu0 %vm340_vm1, %v6169_v38  ;;  %5697 = vmatmul.mubr.msk.f32.vlgmr.msra.gmra.mxu1 %vm340_vm1, %v6169_v38 }
  0x3d   : > { %5701 = vmatprep.mubr.msk.f32.mxu0 %vm6056_vm0, %v6055_v2  ;;  %5706 = vmatprep.mubr.msk.f32.mxu1 %vm6056_vm0, %v6055_v2 }
  0x3e   : > { %5705 = vmatpush3.msra.mxu1 %v5484_v39  ;;  %5700 = vmatpush3.msra.mxu0 %v606_v40  ;;  %v523_v40 = vld [vmem:[%s7173_s4] sm:$0x1] }
  0x3f   : > { %5714 = vmatprep.subr.mxu1 %v6055_v2  ;;  %5709 = vmatprep.subr.mxu0 %v6055_v2 }
  0xfc   : > { %v6187_v41 = vpop.f32.mrf.mxu0  ;;  %v519_v42 = vpop.f32.mrf.mxu1 }
  0xfd   : > { %v565_v43 = vsel %vm526_vm2, %v519_v42, 0.0  ;;  %v573_v44 = vmul.f32 %v519_v42, %v519_v42  ;;  %v527_v45 = vsel %vm526_vm2, %v6187_v41, 0.0  ;;  %v535_v46 = vmul.f32 %v6187_v41, %v6187_v41 }
  0xfe   : > { %v566_v47 = vrot.slane %v565_v43, 4  ;;  %v5698_v48 = vpop.f32.mrf.mxu1  ;;  %v5691_v49 = vpop.f32.mrf.mxu0  ;;  %v528_v53 = vrot.slane %v527_v45, 4 }
  0xff   : > { %v574_v50 = vsel %vm526_vm2, %v573_v44, 0.0  ;;  %v536_v54 = vsel %vm526_vm2, %v535_v46, 0.0 }
 0x100   : > { %v567_v51 = vadd.f32 %v566_v47, %v565_v43  ;;  %v575_v52 = vrot.slane %v574_v50, 4  ;;  %v529_v59 = vadd.f32 %v528_v53, %v527_v45  ;;  %v537_v60 = vrot.slane %v536_v54, 4 }
 0x102   : > { %v568_v55 = vrot.slane %v567_v51, 2  ;;  %v576_v56 = vadd.f32 %v575_v52, %v574_v50  ;;  %v530_v6 = vrot.slane %v529_v59, 2  ;;  %v538_v7 = vadd.f32 %v537_v60, %v536_v54  ;;  %v5491_v54 = vld [vmem:[%s7172_s3 + $0x8] sm:$0xff] }
 0x104   : > { %v569_v57 = vadd.f32 %v568_v55, %v567_v51  ;;  %v577_v58 = vrot.slane %v576_v56, 2  ;;  %v531_v12 = vadd.f32 %v530_v6, %v529_v59  ;;  %v539_v13 = vrot.slane %v538_v7, 2 }
 0x106   : > { %v570_v61 = vrot.slane %v569_v57, 1  ;;  %v578_v62 = vadd.f32 %v577_v58, %v576_v56  ;;  %v532_v16 = vrot.slane %v531_v12, 1  ;;  %v540_v17 = vadd.f32 %v539_v13, %v538_v7 }
 0x108   : > { %v571_v63 = vadd.f32 %v570_v61, %v569_v57  ;;  %v579_v5 = vrot.slane %v578_v62, 1  ;;  %v533_v18 = vadd.f32 %v532_v16, %v531_v12  ;;  %v541_v19 = vrot.slane %v540_v17, 1 }
 0x10a   : > { %v572_v8 = vmul.f32 0.125, %v571_v63  ;;  %v580_v9 = vadd.f32 %v579_v5, %v578_v62  ;;  %v534_v20 = vmul.f32 0.125, %v533_v18  ;;  %v542_v21 = vadd.f32 %v541_v19, %v540_v17 }
 0x10c   : > { %v581_v10 = vmul.f32 0.125, %v580_v9  ;;  %v582_v11 = vmul.f32 %v572_v8, %v572_v8  ;;  %v543_v22 = vmul.f32 0.125, %v542_v21  ;;  %v544_v23 = vmul.f32 %v534_v20, %v534_v20 }
 0x10e   : > { %v583_v14 = vsub.f32 %v581_v10, %v582_v11  ;;  %v545_v26 = vsub.f32 %v543_v22, %v544_v23 }
 0x110   : > { %v584_v15 = vadd.f32 1e-05, %v583_v14  ;;  %v546_v32 = vadd.f32 1e-05, %v545_v26 }
 0x112   : > { %5893 = vrsqrt.f32 %v584_v15 }
 0x113   : > { %5895 = vrsqrt.f32 %v546_v32 }
 0x11f   : > { %v5894_v25 = vpop.eup %5893 }
 0x120   : > { %v586_v27 = vmul.f32 %v5894_v25, %v5481_v24  ;;  %v5896_v39 = vpop.eup %5895 }
 0x121   : > { %v548_v43 = vmul.f32 %v5896_v39, %v523_v40  ;;  %v5488_v40 = vld [vmem:[%s7173_s4 + $0x11] sm:$0x1] }
 0x122   : > { %v587_v30 = vmul.f32 %v586_v27, %v572_v8  ;;  %v592_v31 = vrot.slane %v586_v27, %v6162_v29 }
 0x123   : > { %v549_v46 = vmul.f32 %v548_v43, %v534_v20  ;;  %v554_v48 = vrot.slane %v548_v43, %v6162_v29 }
 0x124   : > { %v588_v33 = vsub.f32 %v5482_v28, %v587_v30  ;;  %v593_v34 = vmul.f32 %v592_v31, %v519_v42  ;;  %v5480_v42 = vld [vmem:[%s7173_s4 + $0x20] sm:$0x1] }
 0x125   : > { %v550_v47 = vsub.f32 %v5480_v42, %v549_v46  ;;  %v555_v50 = vmul.f32 %v554_v48, %v6187_v41  ;;  %v5492_v41 = vld [vmem:[%s7172_s3 + $0x50] sm:$0xff] }
 0x126   : > { %v597_v35 = vrot.slane %v588_v33, %v6162_v29  ;;  %v5489_v46 = vld [vmem:[%s7173_s4 + $0x31] sm:$0x1] }
 0x127   : > { %v559_v49 = vrot.slane %v550_v47, %v6162_v29 }
 0x128   : > { %v598_v36 = vadd.f32 %v597_v35, %v593_v34 }
 0x129   : > { %v560_v51 = vadd.f32 %v559_v49, %v555_v50 }
 0x12a   : > { %v5483_v37 = vmul.f32 -1.442695, %v598_v36 }
 0x12c   : > { %5897 = vpow2.f32 %v5483_v37 }
 0x139   : > { %v5898_v44 = vpop.eup %5897 }
 0x13a   : > { %v602_v45 = vadd.f32 1.0, %v5898_v44 }
 0x13c   : > { %5899 = vrcp.f32 %v602_v45 }
 0x149   : > { %v5900_v52 = vpop.eup %5899 }
 0x14a   : > { %v6213_v53 = vmul.f32 %v5900_v52, %v560_v51 }
 0x14c   : > { %5702 = vmatmul.mubr.msk.f32.vlgmr.msra.gmra.mxu0 %vm526_vm2, %v6213_v53  ;;  %5707 = vmatmul.mubr.msk.f32.vlgmr.msra.gmra.mxu1 %vm526_vm2, %v6213_v53 }
 0x14d   : > { %5711 = vmatprep.mubr.msk.f32.mxu0 %vm6056_vm0, %v6055_v2  ;;  %5716 = vmatprep.mubr.msk.f32.mxu1 %vm6056_vm0, %v6055_v2 }
 0x14e   : > { %5715 = vmatpush3.msra.mxu1 %v5492_v41  ;;  %5710 = vmatpush3.msra.mxu0 %v5491_v54 }
 0x14f   : > { %5724 = vmatprep.subr.mxu1 %v6055_v2  ;;  %5719 = vmatprep.subr.mxu0 %v6055_v2 }
 0x20c   : > { %v6231_v55 = vpop.f32.mrf.mxu0  ;;  %v748_v56 = vpop.f32.mrf.mxu1 }
 0x20d   : > { %v790_v57 = vsel %vm526_vm2, %v748_v56, 0.0  ;;  %v798_v58 = vmul.f32 %v748_v56, %v748_v56  ;;  %v754_v59 = vsel %vm526_vm2, %v6231_v55, 0.0  ;;  %v762_v60 = vmul.f32 %v6231_v55, %v6231_v55 }
 0x20e   : > { %v791_v61 = vrot.slane %v790_v57, 4  ;;  %v5703_v62 = vpop.f32.mrf.mxu0  ;;  %v5708_v63 = vpop.f32.mrf.mxu1  ;;  %v755_v8 = vrot.slane %v754_v59, 4 }
 0x20f   : > { %v799_v5 = vsel %vm526_vm2, %v798_v58, 0.0  ;;  %v763_v9 = vsel %vm526_vm2, %v762_v60, 0.0 }
 0x210   : > { %v792_v6 = vadd.f32 %v791_v61, %v790_v57  ;;  %v800_v7 = vrot.slane %v799_v5, 4  ;;  %v756_v14 = vadd.f32 %v755_v8, %v754_v59  ;;  %v764_v15 = vrot.slane %v763_v9, 4  ;;  %v752_v57 = vld [vmem:[%s7173_s4 + $0x1] sm:$0x1] }
 0x212   : > { %v793_v10 = vrot.slane %v792_v6, 2  ;;  %v801_v11 = vadd.f32 %v800_v7, %v799_v5  ;;  %v757_v20 = vrot.slane %v756_v14, 2  ;;  %v765_v21 = vadd.f32 %v764_v15, %v763_v9 }
 0x214   : > { %v794_v12 = vadd.f32 %v793_v10, %v792_v6  ;;  %v802_v13 = vrot.slane %v801_v11, 2  ;;  %v758_v26 = vadd.f32 %v757_v20, %v756_v14  ;;  %v766_v27 = vrot.slane %v765_v21, 2 }
 0x216   : > { %v795_v16 = vrot.slane %v794_v12, 1  ;;  %v803_v17 = vadd.f32 %v802_v13, %v801_v11  ;;  %v759_v31 = vrot.slane %v758_v26, 1  ;;  %v767_v32 = vadd.f32 %v766_v27, %v765_v21 }
 0x218   : > { %v796_v18 = vadd.f32 %v795_v16, %v794_v12  ;;  %v804_v19 = vrot.slane %v803_v17, 1  ;;  %v760_v33 = vadd.f32 %v759_v31, %v758_v26  ;;  %v768_v34 = vrot.slane %v767_v32, 1 }
 0x21a   : > { %v797_v22 = vmul.f32 0.125, %v796_v18  ;;  %v805_v23 = vadd.f32 %v804_v19, %v803_v17  ;;  %v761_v35 = vmul.f32 0.125, %v760_v33  ;;  %v769_v36 = vadd.f32 %v768_v34, %v767_v32 }
 0x21c   : > { %v806_v24 = vmul.f32 0.125, %v805_v23  ;;  %v807_v25 = vmul.f32 %v797_v22, %v797_v22  ;;  %v770_v37 = vmul.f32 0.125, %v769_v36  ;;  %v771_v39 = vmul.f32 %v761_v35, %v761_v35 }
 0x21e   : > { %v808_v28 = vsub.f32 %v806_v24, %v807_v25  ;;  %v772_v44 = vsub.f32 %v770_v37, %v771_v39 }
 0x220   : > { %v809_v30 = vadd.f32 1e-05, %v808_v28  ;;  %v773_v48 = vadd.f32 1e-05, %v772_v44 }
 0x222   : > { %5901 = vrsqrt.f32 %v809_v30 }
 0x223   : > { %5903 = vrsqrt.f32 %v773_v48 }
 0x22f   : > { %v5902_v43 = vpop.eup %5901 }
 0x230   : > { %v811_v45 = vmul.f32 %v5902_v43, %v5488_v40  ;;  %v5904_v54 = vpop.eup %5903 }
 0x231   : > { %v775_v58 = vmul.f32 %v5904_v54, %v752_v57 }
 0x232   : > { %v812_v42 = vmul.f32 %v811_v45, %v797_v22  ;;  %v817_v47 = vrot.slane %v811_v45, %v6162_v29 }
 0x233   : > { %v776_v61 = vmul.f32 %v775_v58, %v761_v35  ;;  %v781_v63 = vrot.slane %v775_v58, %v6162_v29 }
 0x234   : > { %v813_v49 = vsub.f32 %v5489_v46, %v812_v42  ;;  %v818_v50 = vmul.f32 %v817_v47, %v748_v56  ;;  %v5487_v56 = vld [vmem:[%s7173_s4 + $0x21] sm:$0x1] }
 0x235   : > { %v777_v62 = vsub.f32 %v5487_v56, %v776_v61  ;;  %v782_v6 = vmul.f32 %v781_v63, %v6231_v55  ;;  %v5500_v55 = vld [vmem:[%s7172_s3 + $0x58] sm:$0xff] }
 0x236   : > { %v822_v51 = vrot.slane %v813_v49, %v6162_v29 }
 0x237   : > { %v786_v5 = vrot.slane %v777_v62, %v6162_v29  ;;  %v5497_v62 = vld [vmem:[%s7173_s4 + $0x32] sm:$0x1] }
 0x238   : > { %v823_v52 = vadd.f32 %v822_v51, %v818_v50 }
 0x239   : > { %v787_v7 = vadd.f32 %v786_v5, %v782_v6 }
 0x23a   : > { %v5490_v41 = vmul.f32 -1.442695, %v823_v52 }
 0x23c   : > { %5905 = vpow2.f32 %v5490_v41 }
 0x249   : > { %v5906_v59 = vpop.eup %5905 }
 0x24a   : > { %v827_v60 = vadd.f32 1.0, %v5906_v59  ;;  %v5496_v59 = vld [vmem:[%s7173_s4 + $0x12] sm:$0x1] }
 0x24c   : > { %5907 = vrcp.f32 %v827_v60 }
 0x259   : > { %v5908_v8 = vpop.eup %5907 }
 0x25a   : > { %v830_v9 = vmul.f32 %v5908_v8, %v787_v7 }
 0x25c   : > { %v831_v10 = vadd.f32 %v830_v9, %v6213_v53  ;;  %v5499_v53 = vld [vmem:[%s7172_s3 + $0x10] sm:$0xff] }
 0x25e   : > { %v6258_v11 = vmul.f32 0.70710677, %v831_v10 }
 0x260   : > { %5712 = vmatmul.mubr.msk.f32.vlgmr.msra.gmra.mxu0 %vm526_vm2, %v6258_v11  ;;  %5717 = vmatmul.mubr.msk.f32.vlgmr.msra.gmra.mxu1 %vm526_vm2, %v6258_v11 }
 0x261   : > { %5721 = vmatprep.mubr.msk.f32.mxu0 %vm6056_vm0, %v6055_v2  ;;  %5726 = vmatprep.mubr.msk.f32.mxu1 %vm6056_vm0, %v6055_v2 }
 0x262   : > { %5725 = vmatpush3.msra.mxu1 %v5500_v55  ;;  %5720 = vmatpush3.msra.mxu0 %v5499_v53 }
 0x263   : > { %5729 = vmatprep.subr.mxu0 %v6055_v2  ;;  %5734 = vmatprep.subr.mxu1 %v6055_v2 }
 0x320   : > { %v6276_v12 = vpop.f32.mrf.mxu0  ;;  %v976_v13 = vpop.f32.mrf.mxu1 }
 0x321   : > { %v1018_v14 = vsel %vm526_vm2, %v976_v13, 0.0  ;;  %v1026_v15 = vmul.f32 %v976_v13, %v976_v13  ;;  %v982_v16 = vsel %vm526_vm2, %v6276_v12, 0.0  ;;  %v990_v17 = vmul.f32 %v6276_v12, %v6276_v12 }
 0x322   : > { %v1019_v18 = vrot.slane %v1018_v14, 4  ;;  %v5713_v19 = vpop.f32.mrf.mxu0  ;;  %v5718_v20 = vpop.f32.mrf.mxu1  ;;  %v983_v24 = vrot.slane %v982_v16, 4 }
 0x323   : > { %v1027_v21 = vsel %vm526_vm2, %v1026_v15, 0.0  ;;  %v991_v25 = vsel %vm526_vm2, %v990_v17, 0.0 }
 0x324   : > { %v1020_v22 = vadd.f32 %v1019_v18, %v1018_v14  ;;  %v1028_v23 = vrot.slane %v1027_v21, 4  ;;  %v984_v31 = vadd.f32 %v983_v24, %v982_v16  ;;  %v992_v32 = vrot.slane %v991_v25, 4  ;;  %v980_v14 = vld [vmem:[%s7173_s4 + $0x2] sm:$0x1] }
 0x326   : > { %v1021_v26 = vrot.slane %v1020_v22, 2  ;;  %v1029_v27 = vadd.f32 %v1028_v23, %v1027_v21  ;;  %v985_v37 = vrot.slane %v984_v31, 2  ;;  %v993_v39 = vadd.f32 %v992_v32, %v991_v25 }
 0x328   : > { %v1022_v28 = vadd.f32 %v1021_v26, %v1020_v22  ;;  %v1030_v30 = vrot.slane %v1029_v27, 2  ;;  %v986_v46 = vadd.f32 %v985_v37, %v984_v31  ;;  %v994_v42 = vrot.slane %v993_v39, 2 }
 0x32a   : > { %v1023_v33 = vrot.slane %v1022_v28, 1  ;;  %v1031_v34 = vadd.f32 %v1030_v30, %v1029_v27  ;;  %v987_v49 = vrot.slane %v986_v46, 1  ;;  %v995_v50 = vadd.f32 %v994_v42, %v993_v39 }
 0x32c   : > { %v1024_v35 = vadd.f32 %v1023_v33, %v1022_v28  ;;  %v1032_v36 = vrot.slane %v1031_v34, 1  ;;  %v988_v51 = vadd.f32 %v987_v49, %v986_v46  ;;  %v996_v52 = vrot.slane %v995_v50, 1 }
 0x32e   : > { %v1025_v40 = vmul.f32 0.125, %v1024_v35  ;;  %v1033_v43 = vadd.f32 %v1032_v36, %v1031_v34  ;;  %v989_v41 = vmul.f32 0.125, %v988_v51  ;;  %v997_v54 = vadd.f32 %v996_v52, %v995_v50 }
 0x330   : > { %v1034_v44 = vmul.f32 0.125, %v1033_v43  ;;  %v1035_v45 = vmul.f32 %v1025_v40, %v1025_v40  ;;  %v998_v57 = vmul.f32 0.125, %v997_v54  ;;  %v999_v58 = vmul.f32 %v989_v41, %v989_v41 }
 0x332   : > { %v1036_v47 = vsub.f32 %v1034_v44, %v1035_v45  ;;  %v1000_v61 = vsub.f32 %v998_v57, %v999_v58 }
 0x334   : > { %v1037_v48 = vadd.f32 1e-05, %v1036_v47  ;;  %v1001_v6 = vadd.f32 1e-05, %v1000_v61 }
 0x336   : > { %5909 = vrsqrt.f32 %v1037_v48 }
 0x337   : > { %5911 = vrsqrt.f32 %v1001_v6 }
 0x343   : > { %v5910_v60 = vpop.eup %5909 }
 0x344   : > { %v1039_v56 = vmul.f32 %v5910_v60, %v5496_v59  ;;  %v5912_v53 = vpop.eup %5911 }
 0x345   : > { %v1003_v15 = vmul.f32 %v5912_v53, %v980_v14  ;;  %v5504_v53 = vld [vmem:[%s7173_s4 + $0x13] sm:$0x1] }
 0x346   : > { %v1040_v63 = vmul.f32 %v1039_v56, %v1025_v40  ;;  %v1045_v5 = vrot.slane %v1039_v56, %v6162_v29 }
 0x347   : > { %v1004_v18 = vmul.f32 %v1003_v15, %v989_v41  ;;  %v1009_v20 = vrot.slane %v1003_v15, %v6162_v29 }
 0x348   : > { %v1041_v7 = vsub.f32 %v5497_v62, %v1040_v63  ;;  %v1046_v8 = vmul.f32 %v1045_v5, %v976_v13  ;;  %v5495_v13 = vld [vmem:[%s7173_s4 + $0x22] sm:$0x1] }
 0x349   : > { %v1005_v19 = vsub.f32 %v5495_v13, %v1004_v18  ;;  %v1010_v22 = vmul.f32 %v1009_v20, %v6276_v12 }
 0x34a   : > { %v1050_v9 = vrot.slane %v1041_v7, %v6162_v29 }
 0x34b   : > { %v1014_v21 = vrot.slane %v1005_v19, %v6162_v29 }
 0x34c   : > { %v1051_v10 = vadd.f32 %v1050_v9, %v1046_v8 }
 0x34d   : > { %v1015_v23 = vadd.f32 %v1014_v21, %v1010_v22 }
 0x34e   : > { %v5498_v55 = vmul.f32 -1.442695, %v1051_v10 }
 0x350   : > { %5913 = vpow2.f32 %v5498_v55 }
 0x35d   : > { %v5914_v16 = vpop.eup %5913 }
 0x35e   : > { %v1055_v17 = vadd.f32 1.0, %v5914_v16 }
 0x360   : > { %5915 = vrcp.f32 %v1055_v17  ;;  %v5505_v17 = vld [vmem:[%s7173_s4 + $0x33] sm:$0x1] }
 0x36d   : > { %v5916_v24 = vpop.eup %5915 }
 0x36e   : > { %v1058_v25 = vmul.f32 %v5916_v24, %v1015_v23 }
 0x370   : > { %v1059_v26 = vadd.f32 %v1058_v25, %v6258_v11  ;;  %v1289_v11 = vld [vmem:[%s7174_s5] sm:$0xff] }
 0x372   : > { %v6303_v27 = vmul.f32 0.70710677, %v1059_v26  ;;  %v1208_v26 = vld [vmem:[%s7173_s4 + $0x3] sm:$0x1] }
 0x374   : > { %5722 = vmatmul.mubr.msk.f32.vlgmr.msra.gmra.mxu0 %vm526_vm2, %v6303_v27  ;;  %5727 = vmatmul.mubr.msk.f32.vlgmr.msra.gmra.mxu1 %vm526_vm2, %v6303_v27 }
 0x375   : > { %5731 = vmatprep.mubr.msk.f32.mxu0 %vm6056_vm0, %v6055_v2  ;;  %5735 = vmatpush3.msra.mxu1 %v6118_v0 }
 0x376   : > { %5736 = vmatprep.subr.mxu1 %v6055_v2  ;;  %5738 = vmatprep.mubr.msk.f32.mxu1 %vm6056_vm0, %v6055_v2 }
 0x377   : > { %5737 = vmatpush3.msra.mxu1 %v6130_v3  ;;  %5730 = vmatpush3.msra.mxu0 %v1289_v11 }
 0x378   : > { %5748 = vmatprep.subr.mxu1 %v6055_v2  ;;  %5741 = vmatprep.subr.mxu0 %v6055_v2 }
 0x434   : > { %v6321_v12 = vpop.f32.mrf.mxu0  ;;  %v1204_v28 = vpop.f32.mrf.mxu1 }
 0x435   : > { %v1246_v0 = vsel %vm526_vm2, %v1204_v28, 0.0  ;;  %v1254_v30 = vmul.f32 %v1204_v28, %v1204_v28  ;;  %v1210_v31 = vsel %vm526_vm2, %v6321_v12, 0.0  ;;  %v1218_v3 = vmul.f32 %v6321_v12, %v6321_v12 }
 0x436   : > { %v1247_v32 = vrot.slane %v1246_v0, 4  ;;  %v5723_v33 = vpop.f32.mrf.mxu0  ;;  %v5728_v34 = vpop.f32.mrf.mxu1  ;;  %v1211_v39 = vrot.slane %v1210_v31, 4 }
 0x437   : > { %v1255_v35 = vsel %vm526_vm2, %v1254_v30, 0.0  ;;  %v1219_v40 = vsel %vm526_vm2, %v1218_v3, 0.0 }
 0x438   : > { %v1248_v36 = vadd.f32 %v1247_v32, %v1246_v0  ;;  %v1256_v37 = vrot.slane %v1255_v35, 4  ;;  %v1212_v42 = vadd.f32 %v1211_v39, %v1210_v31  ;;  %v1220_v47 = vrot.slane %v1219_v40, 4 }
 0x43a   : > { %v1249_v43 = vrot.slane %v1248_v36, 2  ;;  %v1257_v44 = vadd.f32 %v1256_v37, %v1255_v35  ;;  %v1213_v52 = vrot.slane %v1212_v42, 2  ;;  %v1221_v41 = vadd.f32 %v1220_v47, %v1219_v40 }
 0x43c   : > { %v1250_v45 = vadd.f32 %v1249_v43, %v1248_v36  ;;  %v1258_v46 = vrot.slane %v1257_v44, 2  ;;  %v1214_v60 = vadd.f32 %v1213_v52, %v1212_v42  ;;  %v1222_v61 = vrot.slane %v1221_v41, 2 }
 0x43e   : > { %v1251_v48 = vrot.slane %v1250_v45, 1  ;;  %v1259_v49 = vadd.f32 %v1258_v46, %v1257_v44  ;;  %v1215_v63 = vrot.slane %v1214_v60, 1  ;;  %v1223_v5 = vadd.f32 %v1222_v61, %v1221_v41 }
 0x440   : > { %v1252_v50 = vadd.f32 %v1251_v48, %v1250_v45  ;;  %v1260_v51 = vrot.slane %v1259_v49, 1  ;;  %v1216_v6 = vadd.f32 %v1215_v63, %v1214_v60  ;;  %v1224_v7 = vrot.slane %v1223_v5, 1 }
 0x442   : > { %v1253_v54 = vmul.f32 0.125, %v1252_v50  ;;  %v1261_v57 = vadd.f32 %v1260_v51, %v1259_v49  ;;  %v1217_v8 = vmul.f32 0.125, %v1216_v6  ;;  %v1225_v9 = vadd.f32 %v1224_v7, %v1223_v5  ;;  %v5508_v5 = vld [vmem:[%s7175_s6 + $0x4] sm:$0x1] }
 0x444   : > { %v1262_v58 = vmul.f32 0.125, %v1261_v57  ;;  %v1263_v59 = vmul.f32 %v1253_v54, %v1253_v54  ;;  %v1226_v10 = vmul.f32 0.125, %v1225_v9  ;;  %v1227_v55 = vmul.f32 %v1217_v8, %v1217_v8 }
 0x446   : > { %v1264_v56 = vsub.f32 %v1262_v58, %v1263_v59  ;;  %v1228_v15 = vsub.f32 %v1226_v10, %v1227_v55 }
 0x448   : > { %v1265_v62 = vadd.f32 1e-05, %v1264_v56  ;;  %v1229_v19 = vadd.f32 1e-05, %v1228_v15  ;;  %v1363_v56 = vld [vmem:[%s7175_s6] sm:$0x1] }
 0x44a   : > { %5917 = vrsqrt.f32 %v1265_v62 }
 0x44b   : > { %5919 = vrsqrt.f32 %v1229_v19 }
 0x457   : > { %v5918_v14 = vpop.eup %5917 }
 0x458   : > { %v1267_v16 = vmul.f32 %v5918_v14, %v5504_v53  ;;  %v5920_v25 = vpop.eup %5919 }
 0x459   : > { %v1231_v11 = vmul.f32 %v5920_v25, %v1208_v26 }
 0x45a   : > { %v1268_v18 = vmul.f32 %v1267_v16, %v1253_v54  ;;  %v1273_v13 = vrot.slane %v1267_v16, %v6162_v29 }
 0x45b   : > { %v1232_v31 = vmul.f32 %v1231_v11, %v1217_v8  ;;  %v1237_v32 = vrot.slane %v1231_v11, %v6162_v29 }
 0x45c   : > { %v1269_v20 = vsub.f32 %v5505_v17, %v1268_v18  ;;  %v1274_v21 = vmul.f32 %v1273_v13, %v1204_v28  ;;  %v5503_v28 = vld [vmem:[%s7173_s4 + $0x23] sm:$0x1] }
 0x45d   : > { %v1233_v3 = vsub.f32 %v5503_v28, %v1232_v31  ;;  %v1238_v34 = vmul.f32 %v1237_v32, %v6321_v12 }
 0x45e   : > { %v1278_v22 = vrot.slane %v1269_v20, %v6162_v29 }
 0x45f   : > { %v1242_v33 = vrot.slane %v1233_v3, %v6162_v29 }
 0x460   : > { %v1279_v23 = vadd.f32 %v1278_v22, %v1274_v21 }
 0x461   : > { %v1243_v35 = vadd.f32 %v1242_v33, %v1238_v34 }
 0x462   : > { %v5506_v24 = vmul.f32 -1.442695, %v1279_v23 }
 0x464   : > { %5921 = vpow2.f32 %v5506_v24 }
 0x471   : > { %v5922_v0 = vpop.eup %5921 }
 0x472   : > { %v1283_v30 = vadd.f32 1.0, %v5922_v0 }
 0x474   : > { %5923 = vrcp.f32 %v1283_v30 }
 0x481   : > { %v5924_v36 = vpop.eup %5923 }
 0x482   : > { %v1286_v37 = vmul.f32 %v5924_v36, %v1243_v35 }
 0x484   : > { %v1287_v39 = vadd.f32 %v1286_v37, %v6303_v27 }
 0x486   : > { %v1288_v40 = vmul.f32 0.70710677, %v1287_v39 }
 0x488   : > { %5732 = vmatmul.mubr.msk.f32.vlgmr.msra.gmra.mxu0 %vm526_vm2, %v1288_v40 }
 0x489   : > { %5742 = vmatpush3.msra.mxu0 %v6123_v1  ;;  %5745 = vmatprep.mubr.msk.f32.mxu0 %vm6056_vm0, %v6055_v2 }
 0x48a   : > { %5743 = vmatprep.subr.mxu0 %v6055_v2 }
 0x48b   : > { %5744 = vmatpush3.msra.mxu0 %v6137_v4 }
 0x48c   : > { %5753 = vmatprep.subr.mxu0 %v6055_v2 }
 0x548   : > { %v1359_v12 = vpop.f32.mrf.mxu0 }
 0x549   : > { %v1366_v43 = vsel %vm340_vm1, %v1359_v12, 0.0  ;;  %v1374_v44 = vmul.f32 %v1359_v12, %v1359_v12 }
 0x54a   : > { %v1367_v45 = vrot.slane %v1366_v43, 4  ;;  %v5733_v27 = vpop.f32.mrf.mxu0 }
 0x54b   : > { %v1375_v46 = vsel %vm340_vm1, %v1374_v44, 0.0 }
 0x54c   : > { %v1368_v42 = vadd.f32 %v1367_v45, %v1366_v43  ;;  %v1376_v47 = vrot.slane %v1375_v46, 4 }
 0x54e   : > { %v1369_v1 = vrot.slane %v1368_v42, 2  ;;  %v1377_v48 = vadd.f32 %v1376_v47, %v1375_v46 }
 0x550   : > { %v1370_v49 = vadd.f32 %v1369_v1, %v1368_v42  ;;  %v1378_v50 = vrot.slane %v1377_v48, 2 }
 0x552   : > { %v1371_v51 = vrot.slane %v1370_v49, 1  ;;  %v1379_v52 = vadd.f32 %v1378_v50, %v1377_v48 }
 0x554   : > { %v1372_v41 = vadd.f32 %v1371_v51, %v1370_v49  ;;  %v1380_v4 = vrot.slane %v1379_v52, 1 }
 0x556   : > { %v1373_v54 = vmul.f32 0.125, %v1372_v41  ;;  %v1381_v57 = vadd.f32 %v1380_v4, %v1379_v52 }
 0x558   : > { %v1382_v58 = vmul.f32 0.125, %v1381_v57  ;;  %v1383_v59 = vmul.f32 %v1373_v54, %v1373_v54 }
 0x55a   : > { %v1384_v60 = vsub.f32 %v1382_v58, %v1383_v59 }
 0x55c   : > { %v1385_v61 = vadd.f32 1e-05, %v1384_v60 }
 0x55e   : > { %5925 = vrsqrt.f32 %v1385_v61 }
 0x56b   : > { %v5926_v62 = vpop.eup %5925 }
 0x56c   : > { %v1387_v63 = vmul.f32 %v5926_v62, %v1363_v56 }
 0x56e   : > { %v1388_v6 = vmul.f32 %v1387_v63, %v1373_v54  ;;  %v1393_v7 = vrot.slane %v1387_v63, %v6162_v29 }
 0x570   : > { %v1389_v8 = vsub.f32 %v5508_v5, %v1388_v6  ;;  %v1394_v9 = vmul.f32 %v1393_v7, %v1359_v12 }
 0x572   : > { %v1398_v10 = vrot.slane %v1389_v8, %v6162_v29 }
 0x574   : > { %v6365_v55 = vadd.f32 %v1398_v10, %v1394_v9 }
 0x576   : > { %v1400_v53 = vsel %vm340_vm1, %v6365_v55, -inf }
 0x577   : > { %1401 = vmax.xlane.f32.xlu0 %v1400_v53 }
 0x600   : > { %v1402_v14 = vpop.xlane.xlu0 %1401 }
 0x601   : > { %v5509_v15 = vadd.f32 -1.0, %v1402_v14 }
 0x603   : > { %v1404_v16 = vadd.f32 %v5509_v15, %v1402_v14 }
 0x605   : > { %v1405_v17 = vmul.f32 0.5, %v1404_v16 }
 0x607   : > { %v1406_v18 = vsub.f32 %v6365_v55, %v1405_v17 }
 0x609   : > { %v1407_v13 = vmax.f32 %v1406_v18, 0.0 }
 0x60b   : > { %v1408_v19 = vsel %vm340_vm1, %v1407_v13, 0.0 }
 0x60c   : > { %1409 = vadd.xlane.f32.xlu0 %v1408_v19 }
 0x695   : > { %v1410_v20 = vpop.xlane.xlu0 %1409 }
 0x696   : > { %vm1411_vm3 = vcmp.gt.f32.partialorder %v1410_v20, 1.0 }
 0x697   : > { %v1412_v21 = vsel %vm1411_vm3, %v1405_v17, %v5509_v15  ;;  %v1413_v22 = vsel %vm1411_vm3, %v1402_v14, %v1405_v17 }
 0x698   : > { %v1414_v23 = vadd.f32 %v1413_v22, %v1412_v21 }
 0x69a   : > { %v1415_v24 = vmul.f32 0.5, %v1414_v23 }
 0x69c   : > { %v1416_v25 = vsub.f32 %v6365_v55, %v1415_v24 }
 0x69e   : > { %v1417_v26 = vmax.f32 %v1416_v25, 0.0 }
 0x6a0   : > { %v1418_v11 = vsel %vm340_vm1, %v1417_v26, 0.0 }
 0x6a1   : > { %1419 = vadd.xlane.f32.xlu1 %v1418_v11 }
 0x72a   : > { %v1420_v0 = vpop.xlane.xlu1 %1419 }
 0x72b   : > { %vm1421_vm4 = vcmp.gt.f32.partialorder %v1420_v0, 1.0 }
 0x72c   : > { %v1422_v30 = vsel %vm1421_vm4, %v1415_v24, %v1412_v21  ;;  %v1423_v31 = vsel %vm1421_vm4, %v1413_v22, %v1415_v24 }
 0x72d   : > { %v1424_v28 = vadd.f32 %v1423_v31, %v1422_v30 }
 0x72f   : > { %v1425_v3 = vmul.f32 0.5, %v1424_v28 }
 0x731   : > { %v1426_v32 = vsub.f32 %v6365_v55, %v1425_v3 }
 0x733   : > { %v1427_v33 = vmax.f32 %v1426_v32, 0.0 }
 0x735   : > { %v1428_v34 = vsel %vm340_vm1, %v1427_v33, 0.0 }
 0x736   : > { %1429 = vadd.xlane.f32.xlu1 %v1428_v34 }
 0x7bf   : > { %v1430_v35 = vpop.xlane.xlu1 %1429 }
 0x7c0   : > { %vm1431_vm5 = vcmp.gt.f32.partialorder %v1430_v35, 1.0 }
 0x7c1   : > { %v1432_v36 = vsel %vm1431_vm5, %v1425_v3, %v1422_v30  ;;  %v1433_v37 = vsel %vm1431_vm5, %v1423_v31, %v1425_v3 }
 0x7c2   : > { %v1434_v39 = vadd.f32 %v1433_v37, %v1432_v36 }
 0x7c4   : > { %v1435_v40 = vmul.f32 0.5, %v1434_v39 }
 0x7c6   : > { %v1436_v12 = vsub.f32 %v6365_v55, %v1435_v40 }
 0x7c8   : > { %v1437_v43 = vmax.f32 %v1436_v12, 0.0 }
 0x7ca   : > { %v1438_v44 = vsel %vm340_vm1, %v1437_v43, 0.0 }
 0x7cb   : > { %1439 = vadd.xlane.f32.xlu0 %v1438_v44 }
 0x854   : > { %v1440_v45 = vpop.xlane.xlu0 %1439 }
 0x855   : > { %vm1441_vm6 = vcmp.gt.f32.partialorder %v1440_v45, 1.0 }
 0x856   : > { %v1442_v27 = vsel %vm1441_vm6, %v1435_v40, %v1432_v36  ;;  %v1443_v46 = vsel %vm1441_vm6, %v1433_v37, %v1435_v40 }
 0x857   : > { %v1444_v42 = vadd.f32 %v1443_v46, %v1442_v27 }
 0x859   : > { %v1445_v47 = vmul.f32 0.5, %v1444_v42 }
 0x85b   : > { %v1446_v1 = vsub.f32 %v6365_v55, %v1445_v47 }
 0x85d   : > { %v1447_v48 = vmax.f32 %v1446_v1, 0.0 }
 0x85f   : > { %v1448_v49 = vsel %vm340_vm1, %v1447_v48, 0.0 }
 0x860   : > { %1449 = vadd.xlane.f32.xlu1 %v1448_v49 }
 0x8e9   : > { %v1450_v50 = vpop.xlane.xlu1 %1449 }
 0x8ea   : > { %vm1451_vm7 = vcmp.gt.f32.partialorder %v1450_v50, 1.0 }
 0x8eb   : > { %v1452_v51 = vsel %vm1451_vm7, %v1445_v47, %v1442_v27  ;;  %v1453_v52 = vsel %vm1451_vm7, %v1443_v46, %v1445_v47 }
 0x8ec   : > { %v1454_v41 = vadd.f32 %v1453_v52, %v1452_v51 }
 0x8ee   : > { %v1455_v4 = vmul.f32 0.5, %v1454_v41 }
 0x8f0   : > { %v1456_v54 = vsub.f32 %v6365_v55, %v1455_v4 }
 0x8f2   : > { %v1457_v57 = vmax.f32 %v1456_v54, 0.0 }
 0x8f4   : > { %v1458_v58 = vsel %vm340_vm1, %v1457_v57, 0.0 }
 0x8f5   : > { %1459 = vadd.xlane.f32.xlu0 %v1458_v58 }
 0x97e   : > { %v1460_v59 = vpop.xlane.xlu0 %1459 }
 0x97f   : > { %vm1461_vm8 = vcmp.gt.f32.partialorder %v1460_v59, 1.0 }
 0x980   : > { %v1462_v60 = vsel %vm1461_vm8, %v1455_v4, %v1452_v51  ;;  %v1463_v61 = vsel %vm1461_vm8, %v1453_v52, %v1455_v4 }
 0x981   : > { %v1464_v56 = vadd.f32 %v1463_v61, %v1462_v60 }
 0x983   : > { %v1465_v62 = vmul.f32 0.5, %v1464_v56 }
 0x985   : > { %v1466_v63 = vsub.f32 %v6365_v55, %v1465_v62 }
 0x987   : > { %v1467_v5 = vmax.f32 %v1466_v63, 0.0 }
 0x989   : > { %v1468_v6 = vsel %vm340_vm1, %v1467_v5, 0.0 }
 0x98a   : > { %1469 = vadd.xlane.f32.xlu1 %v1468_v6 }
 0xa13   : > { %v1470_v7 = vpop.xlane.xlu1 %1469 }
 0xa14   : > { %vm1471_vm9 = vcmp.gt.f32.partialorder %v1470_v7, 1.0 }
 0xa15   : > { %v1472_v8 = vsel %vm1471_vm9, %v1465_v62, %v1462_v60  ;;  %v1473_v9 = vsel %vm1471_vm9, %v1463_v61, %v1465_v62 }
 0xa16   : > { %v1474_v10 = vadd.f32 %v1473_v9, %v1472_v8 }
 0xa18   : > { %v1475_v53 = vmul.f32 0.5, %v1474_v10 }
 0xa1a   : > { %v1476_v14 = vsub.f32 %v6365_v55, %v1475_v53 }
 0xa1c   : > { %v1477_v15 = vmax.f32 %v1476_v14, 0.0 }
 0xa1e   : > { %v1478_v16 = vsel %vm340_vm1, %v1477_v15, 0.0 }
 0xa1f   : > { %1479 = vadd.xlane.f32.xlu0 %v1478_v16 }
 0xaa8   : > { %v1480_v17 = vpop.xlane.xlu0 %1479 }
 0xaa9   : > { %vm1481_vm10 = vcmp.gt.f32.partialorder %v1480_v17, 1.0 }
 0xaaa   : > { %v1482_v18 = vsel %vm1481_vm10, %v1475_v53, %v1472_v8  ;;  %v1483_v13 = vsel %vm1481_vm10, %v1473_v9, %v1475_v53 }
 0xaab   : > { %v1484_v19 = vadd.f32 %v1483_v13, %v1482_v18 }
 0xaad   : > { %v1485_v20 = vmul.f32 0.5, %v1484_v19 }
 0xaaf   : > { %v1486_v21 = vsub.f32 %v6365_v55, %v1485_v20 }
 0xab1   : > { %v1487_v22 = vmax.f32 %v1486_v21, 0.0 }
 0xab3   : > { %v1488_v23 = vsel %vm340_vm1, %v1487_v22, 0.0 }
 0xab4   : > { %1489 = vadd.xlane.f32.xlu1 %v1488_v23 }
 0xb3d   : > { %v1490_v24 = vpop.xlane.xlu1 %1489 }
 0xb3e   : > { %vm1491_vm11 = vcmp.gt.f32.partialorder %v1490_v24, 1.0 }
 0xb3f   : > { %v1492_v25 = vsel %vm1491_vm11, %v1485_v20, %v1482_v18  ;;  %v1493_v26 = vsel %vm1491_vm11, %v1483_v13, %v1485_v20 }
 0xb40   : > { %v1494_v11 = vadd.f32 %v1493_v26, %v1492_v25 }
 0xb42   : > { %v1495_v0 = vmul.f32 0.5, %v1494_v11 }
 0xb44   : > { %v1496_v30 = vsub.f32 %v6365_v55, %v1495_v0 }
 0xb46   : > { %v1497_v31 = vmax.f32 %v1496_v30, 0.0 }
 0xb48   : > { %v1498_v28 = vsel %vm340_vm1, %v1497_v31, 0.0 }
 0xb49   : > { %1499 = vadd.xlane.f32.xlu0 %v1498_v28 }
 0xbd2   : > { %v1500_v3 = vpop.xlane.xlu0 %1499 }
 0xbd3   : > { %vm1501_vm12 = vcmp.gt.f32.partialorder %v1500_v3, 1.0 }
 0xbd4   : > { %v1502_v32 = vsel %vm1501_vm12, %v1495_v0, %v1492_v25  ;;  %v1503_v33 = vsel %vm1501_vm12, %v1493_v26, %v1495_v0 }
 0xbd5   : > { %v1504_v34 = vadd.f32 %v1503_v33, %v1502_v32 }
 0xbd7   : > { %v1505_v35 = vmul.f32 0.5, %v1504_v34 }
 0xbd9   : > { %v1506_v36 = vsub.f32 %v6365_v55, %v1505_v35 }
 0xbdb   : > { %v1507_v37 = vmax.f32 %v1506_v36, 0.0 }
 0xbdd   : > { %v1508_v39 = vsel %vm340_vm1, %v1507_v37, 0.0 }
 0xbde   : > { %1509 = vadd.xlane.f32.xlu1 %v1508_v39 }
 0xc67   : > { %v1510_v40 = vpop.xlane.xlu1 %1509 }
 0xc68   : > { %vm1511_vm13 = vcmp.gt.f32.partialorder %v1510_v40, 1.0 }
 0xc69   : > { %v1512_v12 = vsel %vm1511_vm13, %v1505_v35, %v1502_v32  ;;  %v1513_v43 = vsel %vm1511_vm13, %v1503_v33, %v1505_v35 }
 0xc6a   : > { %v1514_v44 = vadd.f32 %v1513_v43, %v1512_v12 }
 0xc6c   : > { %v1515_v45 = vmul.f32 0.5, %v1514_v44 }
 0xc6e   : > { %v1516_v27 = vsub.f32 %v6365_v55, %v1515_v45 }
 0xc70   : > { %v1517_v46 = vmax.f32 %v1516_v27, 0.0 }
 0xc72   : > { %v1518_v42 = vsel %vm340_vm1, %v1517_v46, 0.0 }
 0xc73   : > { %1519 = vadd.xlane.f32.xlu0 %v1518_v42 }
 0xcfc   : > { %v1520_v47 = vpop.xlane.xlu0 %1519 }
 0xcfd   : > { %vm1521_vm14 = vcmp.gt.f32.partialorder %v1520_v47, 1.0 }
 0xcfe   : > { %v1522_v1 = vsel %vm1521_vm14, %v1515_v45, %v1512_v12  ;;  %v1523_v48 = vsel %vm1521_vm14, %v1513_v43, %v1515_v45 }
 0xcff   : > { %v1524_v49 = vadd.f32 %v1523_v48, %v1522_v1 }
 0xd01   : > { %v1525_v50 = vmul.f32 0.5, %v1524_v49 }
 0xd03   : > { %v1526_v51 = vsub.f32 %v6365_v55, %v1525_v50 }
 0xd05   : > { %v1527_v52 = vmax.f32 %v1526_v51, 0.0 }
 0xd07   : > { %v1528_v41 = vsel %vm340_vm1, %v1527_v52, 0.0 }
 0xd08   : > { %1529 = vadd.xlane.f32.xlu1 %v1528_v41 }
 0xd91   : > { %v1530_v4 = vpop.xlane.xlu1 %1529 }
 0xd92   : > { %vm1531_vm15 = vcmp.gt.f32.partialorder %v1530_v4, 1.0 }
 0xd93   : > { %v1532_v54 = vsel %vm1531_vm15, %v1525_v50, %v1522_v1  ;;  %v1533_v57 = vsel %vm1531_vm15, %v1523_v48, %v1525_v50 }
 0xd94   : > { %v1534_v58 = vadd.f32 %v1533_v57, %v1532_v54 }
 0xd96   : > { %v1535_v59 = vmul.f32 0.5, %v1534_v58 }
 0xd98   : > { %v1536_v60 = vsub.f32 %v6365_v55, %v1535_v59 }
 0xd9a   : > { %v1537_v61 = vmax.f32 %v1536_v60, 0.0 }
 0xd9c   : > { %v1538_v56 = vsel %vm340_vm1, %v1537_v61, 0.0 }
 0xd9d   : > { %1539 = vadd.xlane.f32.xlu0 %v1538_v56 }
 0xe26   : > { %v1540_v62 = vpop.xlane.xlu0 %1539 }
 0xe27   : > { %vm1541_vm3 = vcmp.gt.f32.partialorder %v1540_v62, 1.0 }
 0xe28   : > { %v1542_v63 = vsel %vm1541_vm3, %v1535_v59, %v1532_v54  ;;  %v1543_v5 = vsel %vm1541_vm3, %v1533_v57, %v1535_v59 }
 0xe29   : > { %v1544_v6 = vadd.f32 %v1543_v5, %v1542_v63 }
 0xe2b   : > { %v1545_v7 = vmul.f32 0.5, %v1544_v6 }
 0xe2d   : > { %v1546_v8 = vsub.f32 %v6365_v55, %v1545_v7 }
 0xe2f   : > { %v1547_v9 = vmax.f32 %v1546_v8, 0.0 }
 0xe31   : > { %v1548_v10 = vsel %vm340_vm1, %v1547_v9, 0.0 }
 0xe32   : > { %1549 = vadd.xlane.f32.xlu1 %v1548_v10 }
 0xebb   : > { %v1550_v53 = vpop.xlane.xlu1 %1549 }
 0xebc   : > { %vm1551_vm4 = vcmp.gt.f32.partialorder %v1550_v53, 1.0 }
 0xebd   : > { %v1552_v14 = vsel %vm1551_vm4, %v1545_v7, %v1542_v63  ;;  %v1553_v15 = vsel %vm1551_vm4, %v1543_v5, %v1545_v7 }
 0xebe   : > { %v1554_v16 = vadd.f32 %v1553_v15, %v1552_v14 }
 0xec0   : > { %v1555_v17 = vmul.f32 0.5, %v1554_v16 }
 0xec2   : > { %v1556_v18 = vsub.f32 %v6365_v55, %v1555_v17 }
 0xec4   : > { %v1557_v13 = vmax.f32 %v1556_v18, 0.0 }
 0xec6   : > { %v1558_v19 = vsel %vm340_vm1, %v1557_v13, 0.0 }
 0xec7   : > { %1559 = vadd.xlane.f32.xlu0 %v1558_v19 }
 0xf50   : > { %v1560_v20 = vpop.xlane.xlu0 %1559 }
 0xf51   : > { %vm1561_vm5 = vcmp.gt.f32.partialorder %v1560_v20, 1.0 }
 0xf52   : > { %v1562_v21 = vsel %vm1561_vm5, %v1555_v17, %v1552_v14  ;;  %v1563_v22 = vsel %vm1561_vm5, %v1553_v15, %v1555_v17 }
 0xf53   : > { %v1564_v23 = vadd.f32 %v1563_v22, %v1562_v21 }
 0xf55   : > { %v1565_v24 = vmul.f32 0.5, %v1564_v23 }
 0xf57   : > { %v1566_v25 = vsub.f32 %v6365_v55, %v1565_v24 }
 0xf59   : > { %v1567_v26 = vmax.f32 %v1566_v25, 0.0 }
 0xf5b   : > { %v1568_v11 = vsel %vm340_vm1, %v1567_v26, 0.0 }
 0xf5c   : > { %1569 = vadd.xlane.f32.xlu1 %v1568_v11 }
 0xfe5   : > { %v1570_v0 = vpop.xlane.xlu1 %1569 }
 0xfe6   : > { %vm1571_vm6 = vcmp.gt.f32.partialorder %v1570_v0, 1.0 }
 0xfe7   : > { %v1572_v30 = vsel %vm1571_vm6, %v1565_v24, %v1562_v21  ;;  %v1573_v31 = vsel %vm1571_vm6, %v1563_v22, %v1565_v24 }
 0xfe8   : > { %v1574_v28 = vadd.f32 %v1573_v31, %v1572_v30 }
 0xfea   : > { %v1575_v3 = vmul.f32 0.5, %v1574_v28 }
 0xfec   : > { %v1576_v32 = vsub.f32 %v6365_v55, %v1575_v3 }
 0xfee   : > { %v1577_v33 = vmax.f32 %v1576_v32, 0.0 }
 0xff0   : > { %v1578_v34 = vsel %vm340_vm1, %v1577_v33, 0.0 }
 0xff1   : > { %1579 = vadd.xlane.f32.xlu0 %v1578_v34 }
0x107a   : > { %v1580_v35 = vpop.xlane.xlu0 %1579 }
0x107b   : > { %vm1581_vm7 = vcmp.gt.f32.partialorder %v1580_v35, 1.0 }
0x107c   : > { %v1582_v36 = vsel %vm1581_vm7, %v1575_v3, %v1572_v30  ;;  %v1583_v37 = vsel %vm1581_vm7, %v1573_v31, %v1575_v3 }
0x107d   : > { %v1584_v39 = vadd.f32 %v1583_v37, %v1582_v36 }
0x107f   : > { %v1585_v40 = vmul.f32 0.5, %v1584_v39 }
0x1081   : > { %v1586_v12 = vsub.f32 %v6365_v55, %v1585_v40 }
0x1083   : > { %v1587_v43 = vmax.f32 %v1586_v12, 0.0 }
0x1085   : > { %v1588_v44 = vsel %vm340_vm1, %v1587_v43, 0.0 }
0x1086   : > { %1589 = vadd.xlane.f32.xlu1 %v1588_v44 }
0x110f   : > { %v1590_v45 = vpop.xlane.xlu1 %1589 }
0x1110   : > { %vm1591_vm8 = vcmp.gt.f32.partialorder %v1590_v45, 1.0 }
0x1111   : > { %v1592_v27 = vsel %vm1591_vm8, %v1585_v40, %v1582_v36  ;;  %v1593_v46 = vsel %vm1591_vm8, %v1583_v37, %v1585_v40 }
0x1112   : > { %v1594_v42 = vadd.f32 %v1593_v46, %v1592_v27 }
0x1114   : > { %v1595_v47 = vmul.f32 0.5, %v1594_v42 }
0x1116   : > { %v1596_v1 = vsub.f32 %v6365_v55, %v1595_v47 }
0x1118   : > { %v1597_v48 = vmax.f32 %v1596_v1, 0.0 }
0x111a   : > { %v1598_v49 = vsel %vm340_vm1, %v1597_v48, 0.0 }
0x111b   : > { %1599 = vadd.xlane.f32.xlu0 %v1598_v49 }
0x11a4   : > { %v1600_v50 = vpop.xlane.xlu0 %1599 }
0x11a5   : > { %vm1601_vm9 = vcmp.gt.f32.partialorder %v1600_v50, 1.0 }
0x11a6   : > { %v1602_v51 = vsel %vm1601_vm9, %v1595_v47, %v1592_v27  ;;  %v1603_v52 = vsel %vm1601_vm9, %v1593_v46, %v1595_v47 }
0x11a7   : > { %v1604_v41 = vadd.f32 %v1603_v52, %v1602_v51 }
0x11a9   : > { %v1605_v4 = vmul.f32 0.5, %v1604_v41 }
0x11ab   : > { %v1606_v54 = vsub.f32 %v6365_v55, %v1605_v4 }
0x11ad   : > { %v1607_v57 = vmax.f32 %v1606_v54, 0.0 }
0x11af   : > { %v1608_v58 = vsel %vm340_vm1, %v1607_v57, 0.0 }
0x11b0   : > { %1609 = vadd.xlane.f32.xlu1 %v1608_v58 }
0x1239   : > { %v1610_v59 = vpop.xlane.xlu1 %1609 }
0x123a   : > { %vm1611_vm10 = vcmp.gt.f32.partialorder %v1610_v59, 1.0 }
0x123b   : > { %v1612_v60 = vsel %vm1611_vm10, %v1605_v4, %v1602_v51  ;;  %v1613_v61 = vsel %vm1611_vm10, %v1603_v52, %v1605_v4 }
0x123c   : > { %v1614_v56 = vadd.f32 %v1613_v61, %v1612_v60 }
0x123e   : > { %v1615_v62 = vmul.f32 0.5, %v1614_v56 }
0x1240   : > { %v1616_v63 = vsub.f32 %v6365_v55, %v1615_v62 }
0x1242   : > { %v1617_v5 = vmax.f32 %v1616_v63, 0.0 }
0x1244   : > { %v1618_v6 = vsel %vm340_vm1, %v1617_v5, 0.0 }
0x1245   : > { %1619 = vadd.xlane.f32.xlu0 %v1618_v6 }
0x12ce   : > { %v1620_v7 = vpop.xlane.xlu0 %1619 }
0x12cf   : > { %vm1621_vm11 = vcmp.gt.f32.partialorder %v1620_v7, 1.0 }
0x12d0   : > { %v1622_v8 = vsel %vm1621_vm11, %v1615_v62, %v1612_v60  ;;  %v1623_v9 = vsel %vm1621_vm11, %v1613_v61, %v1615_v62 }
0x12d1   : > { %v1624_v10 = vadd.f32 %v1623_v9, %v1622_v8 }
0x12d3   : > { %v1625_v53 = vmul.f32 0.5, %v1624_v10 }
0x12d5   : > { %v1626_v14 = vsub.f32 %v6365_v55, %v1625_v53 }
0x12d7   : > { %v1627_v15 = vmax.f32 %v1626_v14, 0.0 }
0x12d9   : > { %v1628_v16 = vsel %vm340_vm1, %v1627_v15, 0.0 }
0x12da   : > { %1629 = vadd.xlane.f32.xlu1 %v1628_v16 }
0x1363   : > { %v1630_v17 = vpop.xlane.xlu1 %1629 }
0x1364   : > { %vm1631_vm12 = vcmp.gt.f32.partialorder %v1630_v17, 1.0 }
0x1365   : > { %v1632_v18 = vsel %vm1631_vm12, %v1625_v53, %v1622_v8  ;;  %v1633_v13 = vsel %vm1631_vm12, %v1623_v9, %v1625_v53 }
0x1366   : > { %v1634_v19 = vadd.f32 %v1633_v13, %v1632_v18 }
0x1368   : > { %v1635_v20 = vmul.f32 0.5, %v1634_v19 }
0x136a   : > { %v1636_v21 = vsub.f32 %v6365_v55, %v1635_v20 }
0x136c   : > { %v1637_v22 = vmax.f32 %v1636_v21, 0.0  ;;  %v6034_v21 = vld [vmem:[%s7172_s3] sm:$0xff] }
0x136e   : > { %v1638_v23 = vsel %vm340_vm1, %v1637_v22, 0.0 }
0x136f   : > { %1639 = vadd.xlane.f32.xlu0 %v1638_v23 }
0x13f8   : > { %v1640_v24 = vpop.xlane.xlu0 %1639 }
0x13f9   : > { %vm1641_vm13 = vcmp.gt.f32.partialorder %v1640_v24, 1.0 }
0x13fa   : > { %v1642_v25 = vsel %vm1641_vm13, %v1635_v20, %v1632_v18  ;;  %v1643_v26 = vsel %vm1641_vm13, %v1633_v13, %v1635_v20  ;;  %v6033_v20 = vld [vmem:[%s7172_s3 + $0x48] sm:$0xff] }
0x13fb   : > { %v1644_v11 = vadd.f32 %v1643_v26, %v1642_v25 }
0x13fd   : > { %v1645_v0 = vmul.f32 0.5, %v1644_v11 }
0x13ff   : > { %v1646_v30 = vsub.f32 %v6365_v55, %v1645_v0 }
0x1401   : > { %v1647_v31 = vmax.f32 %v1646_v30, 0.0 }
0x1403   : > { %v1648_v28 = vsel %vm340_vm1, %v1647_v31, 0.0 }
0x1404   : > { %1649 = vadd.xlane.f32.xlu1 %v1648_v28 }
0x148d   : > { %v1650_v3 = vpop.xlane.xlu1 %1649 }
0x148e   : > { %vm1651_vm14 = vcmp.gt.f32.partialorder %v1650_v3, 1.0 }
0x148f   : > { %v1652_v32 = vsel %vm1651_vm14, %v1645_v0, %v1642_v25  ;;  %v1653_v33 = vsel %vm1651_vm14, %v1643_v26, %v1645_v0 }
0x1490   : > { %v1654_v34 = vadd.f32 %v1653_v33, %v1652_v32 }
0x1492   : > { %v1655_v35 = vmul.f32 0.5, %v1654_v34 }
0x1494   : > { %v1656_v36 = vsub.f32 %v6365_v55, %v1655_v35 }
0x1496   : > { %v1657_v37 = vmax.f32 %v1656_v36, 0.0 }
0x1498   : > { %v1658_v39 = vsel %vm340_vm1, %v1657_v37, 0.0 }
0x1499   : > { %1659 = vadd.xlane.f32.xlu0 %v1658_v39 }
0x1522   : > { %v1660_v40 = vpop.xlane.xlu0 %1659 }
0x1523   : > { %vm1661_vm15 = vcmp.gt.f32.partialorder %v1660_v40, 1.0 }
0x1524   : > { %v1662_v12 = vsel %vm1661_vm15, %v1655_v35, %v1652_v32  ;;  %v1663_v43 = vsel %vm1661_vm15, %v1653_v33, %v1655_v35 }
0x1525   : > { %v1664_v44 = vadd.f32 %v1663_v43, %v1662_v12 }
0x1527   : > { %v1665_v45 = vmul.f32 0.5, %v1664_v44 }
0x1529   : > { %v1666_v27 = vsub.f32 %v6365_v55, %v1665_v45 }
0x152b   : > { %v1667_v46 = vmax.f32 %v1666_v27, 0.0 }
0x152d   : > { %v1668_v42 = vsel %vm340_vm1, %v1667_v46, 0.0 }
0x152e   : > { %1669 = vadd.xlane.f32.xlu1 %v1668_v42 }
0x15b7   : > { %v1670_v47 = vpop.xlane.xlu1 %1669 }
0x15b8   : > { %vm1671_vm3 = vcmp.gt.f32.partialorder %v1670_v47, 1.0 }
0x15b9   : > { %v1672_v1 = vsel %vm1671_vm3, %v1665_v45, %v1662_v12  ;;  %v1673_v48 = vsel %vm1671_vm3, %v1663_v43, %v1665_v45 }
0x15ba   : > { %v1674_v49 = vadd.f32 %v1673_v48, %v1672_v1 }
0x15bc   : > { %v1675_v50 = vmul.f32 0.5, %v1674_v49 }
0x15be   : > { %v1676_v51 = vsub.f32 %v6365_v55, %v1675_v50 }
0x15c0   : > { %v1677_v52 = vmax.f32 %v1676_v51, 0.0 }
0x15c2   : > { %v1678_v41 = vsel %vm340_vm1, %v1677_v52, 0.0 }
0x15c3   : > { %1679 = vadd.xlane.f32.xlu0 %v1678_v41 }
0x164c   : > { %v1680_v4 = vpop.xlane.xlu0 %1679 }
0x164d   : > { %vm1681_vm4 = vcmp.gt.f32.partialorder %v1680_v4, 1.0 }
0x164e   : > { %v1682_v54 = vsel %vm1681_vm4, %v1675_v50, %v1672_v1  ;;  %v1683_v57 = vsel %vm1681_vm4, %v1673_v48, %v1675_v50 }
0x164f   : > { %v1684_v58 = vadd.f32 %v1683_v57, %v1682_v54 }
0x1651   : > { %v1685_v59 = vmul.f32 0.5, %v1684_v58 }
0x1653   : > { %v1686_v60 = vsub.f32 %v6365_v55, %v1685_v59 }
0x1655   : > { %v1687_v61 = vmax.f32 %v1686_v60, 0.0 }
0x1657   : > { %v1688_v56 = vsel %vm340_vm1, %v1687_v61, 0.0 }
0x1658   : > { %1689 = vadd.xlane.f32.xlu1 %v1688_v56  ;;  %v5513_v56 = vld [vmem:[%s7173_s4 + $0x14] sm:$0x1] }
0x16e1   : > { %v1690_v62 = vpop.xlane.xlu1 %1689 }
0x16e2   : > { %vm1691_vm5 = vcmp.gt.f32.partialorder %v1690_v62, 1.0 }
0x16e3   : > { %v1692_v63 = vsel %vm1691_vm5, %v1685_v59, %v1682_v54  ;;  %v1693_v5 = vsel %vm1691_vm5, %v1683_v57, %v1685_v59 }
0x16e4   : > { %v1694_v6 = vadd.f32 %v1693_v5, %v1692_v63 }
0x16e6   : > { %v1695_v7 = vmul.f32 0.5, %v1694_v6  ;;  %v5514_v6 = vld [vmem:[%s7173_s4 + $0x34] sm:$0x1] }
0x16e8   : > { %v1696_v8 = vsub.f32 %v6365_v55, %v1695_v7 }
0x16ea   : > { %v1697_v9 = vmax.f32 %v1696_v8, 0.0 }
0x16ec   : > { %v1698_v10 = vsel %vm340_vm1, %v1697_v9, 0.0 }
0x16ed   : > { %1699 = vadd.xlane.f32.xlu0 %v1698_v10 }
0x1776   : > { %v1700_v53 = vpop.xlane.xlu0 %1699 }
0x1777   : > { %vm1701_vm6 = vcmp.gt.f32.partialorder %v1700_v53, 1.0 }
0x1778   : > { %v1702_v14 = vsel %vm1701_vm6, %v1695_v7, %v1692_v63  ;;  %v1703_v15 = vsel %vm1701_vm6, %v1693_v5, %v1695_v7 }
0x1779   : > { %v1704_v16 = vadd.f32 %v1703_v15, %v1702_v14 }
0x177b   : > { %v1705_v17 = vmul.f32 0.5, %v1704_v16 }
0x177d   : > { %v1706_v18 = vsub.f32 %v6365_v55, %v1705_v17 }
0x177f   : > { %v6430_v13 = vmax.f32 %v1706_v18, 0.0  ;;  %v1869_v18 = vld [vmem:[%s7173_s4 + $0x4] sm:$0x1] }
0x1781   : > { %v1725_v19 = vmul.f32 %v6430_v13, %v6169_v38 }
0x1783   : > { %5739 = vmatmul.mubr.msk.f32.vlgmr.msra.gmra.mxu1 %vm340_vm1, %v1725_v19  ;;  %5746 = vmatmul.mubr.msk.f32.vlgmr.msra.gmra.mxu0 %vm340_vm1, %v1725_v19 }
0x1784   : > { %5754 = vmatpush3.msra.mxu0 %v6033_v20  ;;  %5749 = vmatpush3.msra.mxu1 %v6034_v21 }
0x1785   : > { %5750 = vmatprep.mubr.msk.f32.mxu1 %vm6056_vm0, %v6055_v2  ;;  %5755 = vmatprep.mubr.msk.f32.mxu0 %vm6056_vm0, %v6055_v2 }
0x1786   : > { %5763 = vmatprep.subr.mxu0 %v6055_v2  ;;  %5758 = vmatprep.subr.mxu1 %v6055_v2 }
0x1843   : > { %v6448_v55 = vpop.f32.mrf.mxu1  ;;  %v1865_v22 = vpop.f32.mrf.mxu0 }
0x1844   : > { %v1907_v23 = vsel %vm526_vm2, %v1865_v22, 0.0  ;;  %v1915_v24 = vmul.f32 %v1865_v22, %v1865_v22  ;;  %v1871_v25 = vsel %vm526_vm2, %v6448_v55, 0.0  ;;  %v1879_v26 = vmul.f32 %v6448_v55, %v6448_v55 }
0x1845   : > { %v1908_v11 = vrot.slane %v1907_v23, 4  ;;  %v5740_v0 = vpop.f32.mrf.mxu1  ;;  %v5747_v30 = vpop.f32.mrf.mxu0  ;;  %v1872_v32 = vrot.slane %v1871_v25, 4 }
0x1846   : > { %v1916_v31 = vsel %vm526_vm2, %v1915_v24, 0.0  ;;  %v1880_v33 = vsel %vm526_vm2, %v1879_v26, 0.0 }
0x1847   : > { %v1909_v28 = vadd.f32 %v1908_v11, %v1907_v23  ;;  %v1917_v3 = vrot.slane %v1916_v31, 4  ;;  %v1873_v39 = vadd.f32 %v1872_v32, %v1871_v25  ;;  %v1881_v40 = vrot.slane %v1880_v33, 4 }
0x1849   : > { %v1910_v34 = vrot.slane %v1909_v28, 2  ;;  %v1918_v35 = vadd.f32 %v1917_v3, %v1916_v31  ;;  %v1874_v27 = vrot.slane %v1873_v39, 2  ;;  %v1882_v46 = vadd.f32 %v1881_v40, %v1880_v33 }
0x184b   : > { %v1911_v36 = vadd.f32 %v1910_v34, %v1909_v28  ;;  %v1919_v37 = vrot.slane %v1918_v35, 2  ;;  %v1875_v49 = vadd.f32 %v1874_v27, %v1873_v39  ;;  %v1883_v50 = vrot.slane %v1882_v46, 2  ;;  %v5522_v28 = vld [vmem:[%s7172_s3 + $0x18] sm:$0xff] }
0x184d   : > { %v1912_v12 = vrot.slane %v1911_v36, 1  ;;  %v1920_v43 = vadd.f32 %v1919_v37, %v1918_v35  ;;  %v1876_v41 = vrot.slane %v1875_v49, 1  ;;  %v1884_v4 = vadd.f32 %v1883_v50, %v1882_v46 }
0x184f   : > { %v1913_v44 = vadd.f32 %v1912_v12, %v1911_v36  ;;  %v1921_v45 = vrot.slane %v1920_v43, 1  ;;  %v1877_v54 = vadd.f32 %v1876_v41, %v1875_v49  ;;  %v1885_v57 = vrot.slane %v1884_v4, 1 }
0x1851   : > { %v1914_v42 = vmul.f32 0.125, %v1913_v44  ;;  %v1922_v47 = vadd.f32 %v1921_v45, %v1920_v43  ;;  %v1878_v58 = vmul.f32 0.125, %v1877_v54  ;;  %v1886_v59 = vadd.f32 %v1885_v57, %v1884_v4 }
0x1853   : > { %v1923_v1 = vmul.f32 0.125, %v1922_v47  ;;  %v1924_v48 = vmul.f32 %v1914_v42, %v1914_v42  ;;  %v1887_v60 = vmul.f32 0.125, %v1886_v59  ;;  %v1888_v61 = vmul.f32 %v1878_v58, %v1878_v58 }
0x1855   : > { %v1925_v51 = vsub.f32 %v1923_v1, %v1924_v48  ;;  %v1889_v63 = vsub.f32 %v1887_v60, %v1888_v61 }
0x1857   : > { %v1926_v52 = vadd.f32 1e-05, %v1925_v51  ;;  %v1890_v9 = vadd.f32 1e-05, %v1889_v63 }
0x1859   : > { %5927 = vrsqrt.f32 %v1926_v52 }
0x185a   : > { %5929 = vrsqrt.f32 %v1890_v9 }
0x1866   : > { %v5928_v62 = vpop.eup %5927 }
0x1867   : > { %v1928_v5 = vmul.f32 %v5928_v62, %v5513_v56  ;;  %v5930_v17 = vpop.eup %5929 }
0x1868   : > { %v1892_v19 = vmul.f32 %v5930_v17, %v1869_v18 }
0x1869   : > { %v1929_v7 = vmul.f32 %v1928_v5, %v1914_v42  ;;  %v1934_v8 = vrot.slane %v1928_v5, %v6162_v29 }
0x186a   : > { %v1893_v23 = vmul.f32 %v1892_v19, %v1878_v58  ;;  %v1898_v25 = vrot.slane %v1892_v19, %v6162_v29  ;;  %v5520_v19 = vld [vmem:[%s7173_s4 + $0x35] sm:$0x1] }
0x186b   : > { %v1930_v10 = vsub.f32 %v5514_v6, %v1929_v7  ;;  %v1935_v53 = vmul.f32 %v1934_v8, %v1865_v22  ;;  %v5512_v22 = vld [vmem:[%s7173_s4 + $0x24] sm:$0x1] }
0x186c   : > { %v1894_v24 = vsub.f32 %v5512_v22, %v1893_v23  ;;  %v1899_v11 = vmul.f32 %v1898_v25, %v6448_v55  ;;  %v5523_v55 = vld [vmem:[%s7172_s3 + $0x60] sm:$0xff] }
0x186d   : > { %v1939_v14 = vrot.slane %v1930_v10, %v6162_v29 }
0x186e   : > { %v1903_v26 = vrot.slane %v1894_v24, %v6162_v29 }
0x186f   : > { %v1940_v15 = vadd.f32 %v1939_v14, %v1935_v53 }
0x1870   : > { %v1904_v0 = vadd.f32 %v1903_v26, %v1899_v11 }
0x1871   : > { %v5515_v16 = vmul.f32 -1.442695, %v1940_v15  ;;  %v5519_v15 = vld [vmem:[%s7173_s4 + $0x15] sm:$0x1] }
0x1873   : > { %5931 = vpow2.f32 %v5515_v16 }
0x1880   : > { %v5932_v20 = vpop.eup %5931 }
0x1881   : > { %v1944_v21 = vadd.f32 1.0, %v5932_v20 }
0x1883   : > { %5933 = vrcp.f32 %v1944_v21 }
0x1890   : > { %v5934_v30 = vpop.eup %5933 }
0x1891   : > { %v6474_v31 = vmul.f32 %v5934_v30, %v1904_v0  ;;  %v2091_v30 = vld [vmem:[%s7173_s4 + $0x5] sm:$0x1] }
0x1893   : > { %5751 = vmatmul.mubr.msk.f32.vlgmr.msra.gmra.mxu1 %vm526_vm2, %v6474_v31  ;;  %5756 = vmatmul.mubr.msk.f32.vlgmr.msra.gmra.mxu0 %vm526_vm2, %v6474_v31 }
0x1894   : > { %5760 = vmatprep.mubr.msk.f32.mxu1 %vm6056_vm0, %v6055_v2  ;;  %5765 = vmatprep.mubr.msk.f32.mxu0 %vm6056_vm0, %v6055_v2 }
0x1895   : > { %5764 = vmatpush3.msra.mxu0 %v5523_v55  ;;  %5759 = vmatpush3.msra.mxu1 %v5522_v28 }
0x1896   : > { %5773 = vmatprep.subr.mxu0 %v6055_v2  ;;  %5768 = vmatprep.subr.mxu1 %v6055_v2 }
0x1953   : > { %v6492_v3 = vpop.f32.mrf.mxu1  ;;  %v2087_v32 = vpop.f32.mrf.mxu0 }
0x1954   : > { %v2129_v33 = vsel %vm526_vm2, %v2087_v32, 0.0  ;;  %v2137_v34 = vmul.f32 %v2087_v32, %v2087_v32  ;;  %v2093_v35 = vsel %vm526_vm2, %v6492_v3, 0.0  ;;  %v2101_v36 = vmul.f32 %v6492_v3, %v6492_v3 }
0x1955   : > { %v2130_v37 = vrot.slane %v2129_v33, 4  ;;  %v5752_v39 = vpop.f32.mrf.mxu1  ;;  %v5757_v40 = vpop.f32.mrf.mxu0  ;;  %v2094_v45 = vrot.slane %v2093_v35, 4 }
0x1956   : > { %v2138_v12 = vsel %vm526_vm2, %v2137_v34, 0.0  ;;  %v2102_v27 = vsel %vm526_vm2, %v2101_v36, 0.0 }
0x1957   : > { %v2131_v43 = vadd.f32 %v2130_v37, %v2129_v33  ;;  %v2139_v44 = vrot.slane %v2138_v12, 4  ;;  %v2095_v48 = vadd.f32 %v2094_v45, %v2093_v35  ;;  %v2103_v49 = vrot.slane %v2102_v27, 4 }
0x1959   : > { %v2132_v46 = vrot.slane %v2131_v43, 2  ;;  %v2140_v42 = vadd.f32 %v2139_v44, %v2138_v12  ;;  %v2096_v4 = vrot.slane %v2095_v48, 2  ;;  %v2104_v54 = vadd.f32 %v2103_v49, %v2102_v27 }
0x195b   : > { %v2133_v47 = vadd.f32 %v2132_v46, %v2131_v43  ;;  %v2141_v1 = vrot.slane %v2140_v42, 2  ;;  %v2097_v61 = vadd.f32 %v2096_v4, %v2095_v48  ;;  %v2105_v56 = vrot.slane %v2104_v54, 2 }
0x195d   : > { %v2134_v50 = vrot.slane %v2133_v47, 1  ;;  %v2142_v51 = vadd.f32 %v2141_v1, %v2140_v42  ;;  %v2098_v5 = vrot.slane %v2097_v61, 1  ;;  %v2106_v6 = vadd.f32 %v2105_v56, %v2104_v54 }
0x195f   : > { %v2135_v52 = vadd.f32 %v2134_v50, %v2133_v47  ;;  %v2143_v41 = vrot.slane %v2142_v51, 1  ;;  %v2099_v7 = vadd.f32 %v2098_v5, %v2097_v61  ;;  %v2107_v8 = vrot.slane %v2106_v6, 1 }
0x1961   : > { %v2136_v57 = vmul.f32 0.125, %v2135_v52  ;;  %v2144_v58 = vadd.f32 %v2143_v41, %v2142_v51  ;;  %v2100_v9 = vmul.f32 0.125, %v2099_v7  ;;  %v2108_v10 = vadd.f32 %v2107_v8, %v2106_v6 }
0x1963   : > { %v2145_v59 = vmul.f32 0.125, %v2144_v58  ;;  %v2146_v60 = vmul.f32 %v2136_v57, %v2136_v57  ;;  %v2109_v53 = vmul.f32 0.125, %v2108_v10  ;;  %v2110_v14 = vmul.f32 %v2100_v9, %v2100_v9 }
0x1965   : > { %v2147_v62 = vsub.f32 %v2145_v59, %v2146_v60  ;;  %v2111_v17 = vsub.f32 %v2109_v53, %v2110_v14 }
0x1967   : > { %v2148_v63 = vadd.f32 1e-05, %v2147_v62  ;;  %v2112_v23 = vadd.f32 1e-05, %v2111_v17 }
0x1969   : > { %5935 = vrsqrt.f32 %v2148_v63 }
0x196a   : > { %5937 = vrsqrt.f32 %v2112_v23 }
0x1976   : > { %v5936_v16 = vpop.eup %5935 }
0x1977   : > { %v2150_v18 = vmul.f32 %v5936_v16, %v5519_v15  ;;  %v5938_v0 = vpop.eup %5937 }
0x1978   : > { %v2114_v55 = vmul.f32 %v5938_v0, %v2091_v30  ;;  %v5527_v0 = vld [vmem:[%s7173_s4 + $0x16] sm:$0x1] }
0x1979   : > { %v2151_v20 = vmul.f32 %v2150_v18, %v2136_v57  ;;  %v2156_v21 = vrot.slane %v2150_v18, %v6162_v29 }
0x197a   : > { %v2115_v34 = vmul.f32 %v2114_v55, %v2100_v9  ;;  %v2120_v36 = vrot.slane %v2114_v55, %v6162_v29 }
0x197b   : > { %v2152_v22 = vsub.f32 %v5520_v19, %v2151_v20  ;;  %v2157_v24 = vmul.f32 %v2156_v21, %v2087_v32  ;;  %v5518_v32 = vld [vmem:[%s7173_s4 + $0x25] sm:$0x1] }
0x197c   : > { %v2116_v35 = vsub.f32 %v5518_v32, %v2115_v34  ;;  %v2121_v39 = vmul.f32 %v2120_v36, %v6492_v3  ;;  %v5531_v3 = vld [vmem:[%s7172_s3 + $0x68] sm:$0xff] }
0x197d   : > { %v2161_v25 = vrot.slane %v2152_v22, %v6162_v29 }
0x197e   : > { %v2125_v37 = vrot.slane %v2116_v35, %v6162_v29 }
0x197f   : > { %v2162_v26 = vadd.f32 %v2161_v25, %v2157_v24 }
0x1980   : > { %v2126_v40 = vadd.f32 %v2125_v37, %v2121_v39 }
0x1981   : > { %v5521_v11 = vmul.f32 -1.442695, %v2162_v26 }
0x1983   : > { %5939 = vpow2.f32 %v5521_v11 }
0x1990   : > { %v5940_v28 = vpop.eup %5939 }
0x1991   : > { %v2166_v33 = vadd.f32 1.0, %v5940_v28 }
0x1993   : > { %5941 = vrcp.f32 %v2166_v33  ;;  %v5528_v33 = vld [vmem:[%s7173_s4 + $0x36] sm:$0x1] }
0x19a0   : > { %v5942_v12 = vpop.eup %5941 }
0x19a1   : > { %v2169_v43 = vmul.f32 %v5942_v12, %v2126_v40 }
0x19a3   : > { %v2170_v44 = vadd.f32 %v2169_v43, %v6474_v31  ;;  %v5530_v31 = vld [vmem:[%s7172_s3 + $0x20] sm:$0xff] }
0x19a5   : > { %v6519_v45 = vmul.f32 0.70710677, %v2170_v44  ;;  %v2319_v44 = vld [vmem:[%s7173_s4 + $0x6] sm:$0x1] }
0x19a7   : > { %5761 = vmatmul.mubr.msk.f32.vlgmr.msra.gmra.mxu1 %vm526_vm2, %v6519_v45  ;;  %5766 = vmatmul.mubr.msk.f32.vlgmr.msra.gmra.mxu0 %vm526_vm2, %v6519_v45 }
0x19a8   : > { %5770 = vmatprep.mubr.msk.f32.mxu1 %vm6056_vm0, %v6055_v2  ;;  %5775 = vmatprep.mubr.msk.f32.mxu0 %vm6056_vm0, %v6055_v2 }
0x19a9   : > { %5774 = vmatpush3.msra.mxu0 %v5531_v3  ;;  %5769 = vmatpush3.msra.mxu1 %v5530_v31 }
0x19aa   : > { %5778 = vmatprep.subr.mxu1 %v6055_v2  ;;  %5783 = vmatprep.subr.mxu0 %v6055_v2 }
0x1a67   : > { %v6537_v27 = vpop.f32.mrf.mxu1  ;;  %v2315_v46 = vpop.f32.mrf.mxu0 }
0x1a68   : > { %v2357_v42 = vsel %vm526_vm2, %v2315_v46, 0.0  ;;  %v2365_v47 = vmul.f32 %v2315_v46, %v2315_v46  ;;  %v2321_v1 = vsel %vm526_vm2, %v6537_v27, 0.0  ;;  %v2329_v48 = vmul.f32 %v6537_v27, %v6537_v27 }
0x1a69   : > { %v2358_v49 = vrot.slane %v2357_v42, 4  ;;  %v5762_v50 = vpop.f32.mrf.mxu1  ;;  %v5767_v51 = vpop.f32.mrf.mxu0  ;;  %v2322_v54 = vrot.slane %v2321_v1, 4 }
0x1a6a   : > { %v2366_v52 = vsel %vm526_vm2, %v2365_v47, 0.0  ;;  %v2330_v57 = vsel %vm526_vm2, %v2329_v48, 0.0 }
0x1a6b   : > { %v2359_v41 = vadd.f32 %v2358_v49, %v2357_v42  ;;  %v2367_v4 = vrot.slane %v2366_v52, 4  ;;  %v2323_v56 = vadd.f32 %v2322_v54, %v2321_v1  ;;  %v2331_v62 = vrot.slane %v2330_v57, 4 }
0x1a6d   : > { %v2360_v58 = vrot.slane %v2359_v41, 2  ;;  %v2368_v59 = vadd.f32 %v2367_v4, %v2366_v52  ;;  %v2324_v8 = vrot.slane %v2323_v56, 2  ;;  %v2332_v9 = vadd.f32 %v2331_v62, %v2330_v57  ;;  %v5538_v57 = vld [vmem:[%s7174_s5 + $0x8] sm:$0xff] }
0x1a6f   : > { %v2361_v60 = vadd.f32 %v2360_v58, %v2359_v41  ;;  %v2369_v61 = vrot.slane %v2368_v59, 2  ;;  %v2325_v16 = vadd.f32 %v2324_v8, %v2323_v56  ;;  %v2333_v17 = vrot.slane %v2332_v9, 2 }
0x1a71   : > { %v2362_v63 = vrot.slane %v2361_v60, 1  ;;  %v2370_v5 = vadd.f32 %v2369_v61, %v2368_v59  ;;  %v2326_v20 = vrot.slane %v2325_v16, 1  ;;  %v2334_v21 = vadd.f32 %v2333_v17, %v2332_v9 }
0x1a73   : > { %v2363_v6 = vadd.f32 %v2362_v63, %v2361_v60  ;;  %v2371_v7 = vrot.slane %v2370_v5, 1  ;;  %v2327_v23 = vadd.f32 %v2326_v20, %v2325_v16  ;;  %v2335_v22 = vrot.slane %v2334_v21, 1 }
0x1a75   : > { %v2364_v10 = vmul.f32 0.125, %v2363_v6  ;;  %v2372_v53 = vadd.f32 %v2371_v7, %v2370_v5  ;;  %v2328_v24 = vmul.f32 0.125, %v2327_v23  ;;  %v2336_v25 = vadd.f32 %v2335_v22, %v2334_v21 }
0x1a77   : > { %v2373_v14 = vmul.f32 0.125, %v2372_v53  ;;  %v2374_v15 = vmul.f32 %v2364_v10, %v2364_v10  ;;  %v2337_v26 = vmul.f32 0.125, %v2336_v25  ;;  %v2338_v11 = vmul.f32 %v2328_v24, %v2328_v24 }
0x1a79   : > { %v2375_v18 = vsub.f32 %v2373_v14, %v2374_v15  ;;  %v2339_v55 = vsub.f32 %v2337_v26, %v2338_v11 }
0x1a7b   : > { %v2376_v19 = vadd.f32 1e-05, %v2375_v18  ;;  %v2340_v35 = vadd.f32 1e-05, %v2339_v55 }
0x1a7d   : > { %5943 = vrsqrt.f32 %v2376_v19 }
0x1a7e   : > { %5945 = vrsqrt.f32 %v2340_v35 }
0x1a8a   : > { %v5944_v30 = vpop.eup %5943 }
0x1a8b   : > { %v2378_v28 = vmul.f32 %v5944_v30, %v5527_v0  ;;  %v5946_v43 = vpop.eup %5945 }
0x1a8c   : > { %v2342_v3 = vmul.f32 %v5946_v43, %v2319_v44  ;;  %v5535_v44 = vld [vmem:[%s7173_s4 + $0x17] sm:$0x1] }
0x1a8d   : > { %v2379_v34 = vmul.f32 %v2378_v28, %v2364_v10  ;;  %v2384_v32 = vrot.slane %v2378_v28, %v6162_v29 }
0x1a8e   : > { %v2343_v47 = vmul.f32 %v2342_v3, %v2328_v24  ;;  %v2348_v48 = vrot.slane %v2342_v3, %v6162_v29 }
0x1a8f   : > { %v2380_v36 = vsub.f32 %v5528_v33, %v2379_v34  ;;  %v2385_v37 = vmul.f32 %v2384_v32, %v2315_v46  ;;  %v5526_v46 = vld [vmem:[%s7173_s4 + $0x26] sm:$0x1] }
0x1a90   : > { %v2344_v1 = vsub.f32 %v5526_v46, %v2343_v47  ;;  %v2349_v50 = vmul.f32 %v2348_v48, %v6537_v27  ;;  %v6035_v27 = vld [vmem:[%s7171_s2 + $0x8] sm:$0xff]  ;;  %v5536_v47 = vld [vmem:[%s7173_s4 + $0x37] sm:$0x1] }
0x1a91   : > { %v2389_v39 = vrot.slane %v2380_v36, %v6162_v29 }
0x1a92   : > { %v2353_v49 = vrot.slane %v2344_v1, %v6162_v29 }
0x1a93   : > { %v2390_v40 = vadd.f32 %v2389_v39, %v2385_v37 }
0x1a94   : > { %v2354_v51 = vadd.f32 %v2353_v49, %v2349_v50 }
0x1a95   : > { %v5529_v12 = vmul.f32 -1.442695, %v2390_v40 }
0x1a97   : > { %5947 = vpow2.f32 %v5529_v12 }
0x1aa4   : > { %v5948_v31 = vpop.eup %5947 }
0x1aa5   : > { %v2394_v42 = vadd.f32 1.0, %v5948_v31 }
0x1aa7   : > { %5949 = vrcp.f32 %v2394_v42 }
0x1ab4   : > { %v5950_v52 = vpop.eup %5949 }
0x1ab5   : > { %v2397_v41 = vmul.f32 %v5950_v52, %v2354_v51 }
0x1ab7   : > { %v2398_v4 = vadd.f32 %v2397_v41, %v6519_v45  ;;  %v6036_v45 = vld [vmem:[%s7171_s2] sm:$0xff] }
0x1ab9   : > { %v6564_v54 = vmul.f32 0.70710677, %v2398_v4 }
0x1abb   : > { %5771 = vmatmul.mubr.msk.f32.vlgmr.msra.gmra.mxu1 %vm526_vm2, %v6564_v54  ;;  %5776 = vmatmul.mubr.msk.f32.vlgmr.msra.gmra.mxu0 %vm526_vm2, %v6564_v54 }
0x1abc   : > { %5780 = vmatprep.mubr.msk.f32.mxu1 %vm6056_vm0, %v6055_v2  ;;  %5784 = vmatpush3.msra.mxu0 %v6035_v27  ;;  %v2547_v27 = vld [vmem:[%s7173_s4 + $0x7] sm:$0x1] }
0x1abd   : > { %5785 = vmatprep.subr.mxu0 %v6055_v2  ;;  %5787 = vmatprep.mubr.msk.f32.mxu0 %vm6056_vm0, %v6055_v2 }
0x1abe   : > { %5786 = vmatpush3.msra.mxu0 %v6036_v45  ;;  %5779 = vmatpush3.msra.mxu1 %v5538_v57 }
0x1abf   : > { %5797 = vmatprep.subr.mxu0 %v6055_v2  ;;  %5790 = vmatprep.subr.mxu1 %v6055_v2 }
0x1b7b   : > { %v6586_v58 = vpop.f32.mrf.mxu1  ;;  %v2543_v59 = vpop.f32.mrf.mxu0 }
0x1b7c   : > { %v2585_v60 = vsel %vm526_vm2, %v2543_v59, 0.0  ;;  %v2593_v61 = vmul.f32 %v2543_v59, %v2543_v59  ;;  %v2549_v56 = vsel %vm526_vm2, %v6586_v58, 0.0  ;;  %v2557_v62 = vmul.f32 %v6586_v58, %v6586_v58 }
0x1b7d   : > { %v2586_v63 = vrot.slane %v2585_v60, 4  ;;  %v5772_v5 = vpop.f32.mrf.mxu1  ;;  %v5777_v6 = vpop.f32.mrf.mxu0  ;;  %v2550_v10 = vrot.slane %v2549_v56, 4 }
0x1b7e   : > { %v2594_v7 = vsel %vm526_vm2, %v2593_v61, 0.0  ;;  %v2558_v53 = vsel %vm526_vm2, %v2557_v62, 0.0 }
0x1b7f   : > { %v2587_v8 = vadd.f32 %v2586_v63, %v2585_v60  ;;  %v2595_v9 = vrot.slane %v2594_v7, 4  ;;  %v2551_v18 = vadd.f32 %v2550_v10, %v2549_v56  ;;  %v2559_v19 = vrot.slane %v2558_v53, 4 }
0x1b81   : > { %v2588_v14 = vrot.slane %v2587_v8, 2  ;;  %v2596_v15 = vadd.f32 %v2595_v9, %v2594_v7  ;;  %v2552_v24 = vrot.slane %v2551_v18, 2  ;;  %v2560_v25 = vadd.f32 %v2559_v19, %v2558_v53  ;;  %v6037_v53 = vld [vmem:[%s7171_s2 + $0x18] sm:$0xff] }
0x1b83   : > { %v2589_v16 = vadd.f32 %v2588_v14, %v2587_v8  ;;  %v2597_v17 = vrot.slane %v2596_v15, 2  ;;  %v2553_v55 = vadd.f32 %v2552_v24, %v2551_v18  ;;  %v2561_v28 = vrot.slane %v2560_v25, 2 }
0x1b85   : > { %v2590_v20 = vrot.slane %v2589_v16, 1  ;;  %v2598_v21 = vadd.f32 %v2597_v17, %v2596_v15  ;;  %v2554_v32 = vrot.slane %v2553_v55, 1  ;;  %v2562_v35 = vadd.f32 %v2561_v28, %v2560_v25 }
0x1b87   : > { %v2591_v23 = vadd.f32 %v2590_v20, %v2589_v16  ;;  %v2599_v22 = vrot.slane %v2598_v21, 1  ;;  %v2555_v36 = vadd.f32 %v2554_v32, %v2553_v55  ;;  %v2563_v37 = vrot.slane %v2562_v35, 1 }
0x1b89   : > { %v2592_v26 = vmul.f32 0.125, %v2591_v23  ;;  %v2600_v11 = vadd.f32 %v2599_v22, %v2598_v21  ;;  %v2556_v39 = vmul.f32 0.125, %v2555_v36  ;;  %v2564_v40 = vadd.f32 %v2563_v37, %v2562_v35  ;;  %v2705_v35 = vld [vmem:[%s7175_s6 + $0x1] sm:$0x1] }
0x1b8b   : > { %v2601_v0 = vmul.f32 0.125, %v2600_v11  ;;  %v2602_v30 = vmul.f32 %v2592_v26, %v2592_v26  ;;  %v2565_v12 = vmul.f32 0.125, %v2564_v40  ;;  %v2566_v43 = vmul.f32 %v2556_v39, %v2556_v39 }
0x1b8d   : > { %v2603_v33 = vsub.f32 %v2601_v0, %v2602_v30  ;;  %v2567_v31 = vsub.f32 %v2565_v12, %v2566_v43 }
0x1b8f   : > { %v2604_v34 = vadd.f32 1e-05, %v2603_v33  ;;  %v2568_v48 = vadd.f32 1e-05, %v2567_v31  ;;  %v1724_v31 = vsub.f32 1.3, %v6430_v13 }
0x1b91   : > { %5951 = vrsqrt.f32 %v2604_v34 }
0x1b92   : > { %5953 = vrsqrt.f32 %v2568_v48 }
0x1b9e   : > { %v5952_v3 = vpop.eup %5951 }
0x1b9f   : > { %v2606_v42 = vmul.f32 %v5952_v3, %v5535_v44  ;;  %v5954_v4 = vpop.eup %5953 }
0x1ba0   : > { %v2570_v45 = vmul.f32 %v5954_v4, %v2547_v27 }
0x1ba1   : > { %v2607_v46 = vmul.f32 %v2606_v42, %v2592_v26  ;;  %v2612_v1 = vrot.slane %v2606_v42, %v6162_v29 }
0x1ba2   : > { %v2571_v61 = vmul.f32 %v2570_v45, %v2556_v39  ;;  %v2576_v62 = vrot.slane %v2570_v45, %v6162_v29  ;;  %v5540_v39 = vld [vmem:[%s7175_s6 + $0x5] sm:$0x1] }
0x1ba3   : > { %v2608_v49 = vsub.f32 %v5536_v47, %v2607_v46  ;;  %v2613_v50 = vmul.f32 %v2612_v1, %v2543_v59  ;;  %v5534_v59 = vld [vmem:[%s7173_s4 + $0x27] sm:$0x1] }
0x1ba4   : > { %v2572_v56 = vsub.f32 %v5534_v59, %v2571_v61  ;;  %v2577_v5 = vmul.f32 %v2576_v62, %v6586_v58  ;;  %v6038_v58 = vld [vmem:[%s7171_s2 + $0x10] sm:$0xff] }
0x1ba5   : > { %v2617_v51 = vrot.slane %v2608_v49, %v6162_v29 }
0x1ba6   : > { %v2581_v63 = vrot.slane %v2572_v56, %v6162_v29 }
0x1ba7   : > { %v2618_v52 = vadd.f32 %v2617_v51, %v2613_v50 }
0x1ba8   : > { %v2582_v6 = vadd.f32 %v2581_v63, %v2577_v5 }
0x1ba9   : > { %v5537_v41 = vmul.f32 -1.442695, %v2618_v52 }
0x1bab   : > { %5955 = vpow2.f32 %v5537_v41 }
0x1bb8   : > { %v5956_v57 = vpop.eup %5955 }
0x1bb9   : > { %v2622_v60 = vadd.f32 1.0, %v5956_v57 }
0x1bbb   : > { %5957 = vrcp.f32 %v2622_v60 }
0x1bc8   : > { %v5958_v7 = vpop.eup %5957 }
0x1bc9   : > { %v2625_v8 = vmul.f32 %v5958_v7, %v2582_v6 }
0x1bcb   : > { %v2626_v9 = vadd.f32 %v2625_v8, %v6564_v54 }
0x1bcd   : > { %v6613_v10 = vmul.f32 0.70710677, %v2626_v9 }
0x1bcf   : > { %5781 = vmatmul.mubr.msk.f32.vlgmr.msra.gmra.mxu1 %vm526_vm2, %v6613_v10 }
0x1bd0   : > { %5791 = vmatpush3.msra.mxu1 %v6037_v53  ;;  %5794 = vmatprep.mubr.msk.f32.mxu1 %vm6056_vm0, %v6055_v2 }
0x1bd1   : > { %5792 = vmatprep.subr.mxu1 %v6055_v2 }
0x1bd2   : > { %5793 = vmatpush3.msra.mxu1 %v6038_v58 }
0x1bd3   : > { %5802 = vmatprep.subr.mxu1 %v6055_v2 }
0x1c8f   : > { %v2701_v54 = vpop.f32.mrf.mxu1 }
0x1c90   : > { %v2707_v14 = vsel %vm340_vm1, %v2701_v54, 0.0  ;;  %v2715_v15 = vmul.f32 %v2701_v54, %v2701_v54 }
0x1c91   : > { %v2708_v16 = vrot.slane %v2707_v14, 4  ;;  %v5782_v17 = vpop.f32.mrf.mxu1 }
0x1c92   : > { %v2716_v18 = vsel %vm340_vm1, %v2715_v15, 0.0 }
0x1c93   : > { %v2709_v19 = vadd.f32 %v2708_v16, %v2707_v14  ;;  %v2717_v20 = vrot.slane %v2716_v18, 4 }
0x1c95   : > { %v2710_v21 = vrot.slane %v2709_v19, 2  ;;  %v2718_v23 = vadd.f32 %v2717_v20, %v2716_v18 }
0x1c97   : > { %v2711_v22 = vadd.f32 %v2710_v21, %v2709_v19  ;;  %v2719_v24 = vrot.slane %v2718_v23, 2 }
0x1c99   : > { %v2712_v25 = vrot.slane %v2711_v22, 1  ;;  %v2720_v26 = vadd.f32 %v2719_v24, %v2718_v23 }
0x1c9b   : > { %v2713_v11 = vadd.f32 %v2712_v25, %v2711_v22  ;;  %v2721_v0 = vrot.slane %v2720_v26, 1 }
0x1c9d   : > { %v2714_v30 = vmul.f32 0.125, %v2713_v11  ;;  %v2722_v55 = vadd.f32 %v2721_v0, %v2720_v26 }
0x1c9f   : > { %v2723_v28 = vmul.f32 0.125, %v2722_v55  ;;  %v2724_v33 = vmul.f32 %v2714_v30, %v2714_v30 }
0x1ca1   : > { %v2725_v34 = vsub.f32 %v2723_v28, %v2724_v33 }
0x1ca3   : > { %v2726_v32 = vadd.f32 1e-05, %v2725_v34 }
0x1ca5   : > { %5959 = vrsqrt.f32 %v2726_v32 }
0x1cb2   : > { %v5960_v36 = vpop.eup %5959 }
0x1cb3   : > { %v2728_v37 = vmul.f32 %v5960_v36, %v2705_v35 }
0x1cb5   : > { %v2729_v40 = vmul.f32 %v2728_v37, %v2714_v30  ;;  %v2734_v12 = vrot.slane %v2728_v37, %v6162_v29 }
0x1cb7   : > { %v2730_v43 = vsub.f32 %v5540_v39, %v2729_v40  ;;  %v2735_v44 = vmul.f32 %v2734_v12, %v2701_v54 }
0x1cb9   : > { %v2739_v3 = vrot.slane %v2730_v43, %v6162_v29 }
0x1cbb   : > { %v2740_v42 = vadd.f32 %v2739_v3, %v2735_v44 }
0x1cbd   : > { %v6640_v47 = vmul.f32 %v2740_v42, %v1724_v31 }
0x1cbf   : > { %v2742_v46 = vsel %vm340_vm1, %v6640_v47, -inf }
0x1cc0   : > { %2743 = vmax.xlane.f32.xlu1 %v2742_v46 }
0x1d49   : > { %v2744_v1 = vpop.xlane.xlu1 %2743 }
0x1d4a   : > { %v5541_v48 = vadd.f32 -1.0, %v2744_v1 }
0x1d4c   : > { %v2746_v49 = vadd.f32 %v5541_v48, %v2744_v1 }
0x1d4e   : > { %v2747_v50 = vmul.f32 0.5, %v2746_v49 }
0x1d50   : > { %v2748_v51 = vsub.f32 %v6640_v47, %v2747_v50 }
0x1d52   : > { %v2749_v52 = vmax.f32 %v2748_v51, 0.0 }
0x1d54   : > { %v2750_v41 = vsel %vm340_vm1, %v2749_v52, 0.0 }
0x1d55   : > { %2751 = vadd.xlane.f32.xlu0 %v2750_v41 }
0x1dde   : > { %v2752_v4 = vpop.xlane.xlu0 %2751 }
0x1ddf   : > { %vm2753_vm7 = vcmp.gt.f32.partialorder %v2752_v4, 1.0 }
0x1de0   : > { %v2754_v27 = vsel %vm2753_vm7, %v2747_v50, %v5541_v48  ;;  %v2755_v45 = vsel %vm2753_vm7, %v2744_v1, %v2747_v50 }
0x1de1   : > { %v2756_v57 = vadd.f32 %v2755_v45, %v2754_v27 }
0x1de3   : > { %v2757_v60 = vmul.f32 0.5, %v2756_v57 }
0x1de5   : > { %v2758_v61 = vsub.f32 %v6640_v47, %v2757_v60 }
0x1de7   : > { %v2759_v59 = vmax.f32 %v2758_v61, 0.0 }
0x1de9   : > { %v2760_v56 = vsel %vm340_vm1, %v2759_v59, 0.0 }
0x1dea   : > { %2761 = vadd.xlane.f32.xlu1 %v2760_v56 }
0x1e73   : > { %v2762_v62 = vpop.xlane.xlu1 %2761 }
0x1e74   : > { %vm2763_vm8 = vcmp.gt.f32.partialorder %v2762_v62, 1.0 }
0x1e75   : > { %v2764_v63 = vsel %vm2763_vm8, %v2757_v60, %v2754_v27  ;;  %v2765_v5 = vsel %vm2763_vm8, %v2755_v45, %v2757_v60 }
0x1e76   : > { %v2766_v6 = vadd.f32 %v2765_v5, %v2764_v63 }
0x1e78   : > { %v2767_v7 = vmul.f32 0.5, %v2766_v6 }
0x1e7a   : > { %v2768_v8 = vsub.f32 %v6640_v47, %v2767_v7 }
0x1e7c   : > { %v2769_v9 = vmax.f32 %v2768_v8, 0.0 }
0x1e7e   : > { %v2770_v53 = vsel %vm340_vm1, %v2769_v9, 0.0 }
0x1e7f   : > { %2771 = vadd.xlane.f32.xlu0 %v2770_v53 }
0x1f08   : > { %v2772_v58 = vpop.xlane.xlu0 %2771 }
0x1f09   : > { %vm2773_vm9 = vcmp.gt.f32.partialorder %v2772_v58, 1.0 }
0x1f0a   : > { %v2774_v54 = vsel %vm2773_vm9, %v2767_v7, %v2764_v63  ;;  %v2775_v14 = vsel %vm2773_vm9, %v2765_v5, %v2767_v7 }
0x1f0b   : > { %v2776_v15 = vadd.f32 %v2775_v14, %v2774_v54 }
0x1f0d   : > { %v2777_v16 = vmul.f32 0.5, %v2776_v15 }
0x1f0f   : > { %v2778_v17 = vsub.f32 %v6640_v47, %v2777_v16 }
0x1f11   : > { %v2779_v18 = vmax.f32 %v2778_v17, 0.0 }
0x1f13   : > { %v2780_v19 = vsel %vm340_vm1, %v2779_v18, 0.0 }
0x1f14   : > { %2781 = vadd.xlane.f32.xlu1 %v2780_v19 }
0x1f9d   : > { %v2782_v20 = vpop.xlane.xlu1 %2781 }
0x1f9e   : > { %vm2783_vm10 = vcmp.gt.f32.partialorder %v2782_v20, 1.0 }
0x1f9f   : > { %v2784_v21 = vsel %vm2783_vm10, %v2777_v16, %v2774_v54  ;;  %v2785_v23 = vsel %vm2783_vm10, %v2775_v14, %v2777_v16 }
0x1fa0   : > { %v2786_v22 = vadd.f32 %v2785_v23, %v2784_v21 }
0x1fa2   : > { %v2787_v24 = vmul.f32 0.5, %v2786_v22 }
0x1fa4   : > { %v2788_v25 = vsub.f32 %v6640_v47, %v2787_v24 }
0x1fa6   : > { %v2789_v26 = vmax.f32 %v2788_v25, 0.0 }
0x1fa8   : > { %v2790_v11 = vsel %vm340_vm1, %v2789_v26, 0.0 }
0x1fa9   : > { %2791 = vadd.xlane.f32.xlu0 %v2790_v11 }
0x2032   : > { %v2792_v0 = vpop.xlane.xlu0 %2791 }
0x2033   : > { %vm2793_vm11 = vcmp.gt.f32.partialorder %v2792_v0, 1.0 }
0x2034   : > { %v2794_v30 = vsel %vm2793_vm11, %v2787_v24, %v2784_v21  ;;  %v2795_v55 = vsel %vm2793_vm11, %v2785_v23, %v2787_v24 }
0x2035   : > { %v2796_v28 = vadd.f32 %v2795_v55, %v2794_v30 }
0x2037   : > { %v2797_v33 = vmul.f32 0.5, %v2796_v28 }
0x2039   : > { %v2798_v34 = vsub.f32 %v6640_v47, %v2797_v33 }
0x203b   : > { %v2799_v32 = vmax.f32 %v2798_v34, 0.0 }
0x203d   : > { %v2800_v35 = vsel %vm340_vm1, %v2799_v32, 0.0 }
0x203e   : > { %2801 = vadd.xlane.f32.xlu1 %v2800_v35 }
0x20c7   : > { %v2802_v36 = vpop.xlane.xlu1 %2801 }
0x20c8   : > { %vm2803_vm12 = vcmp.gt.f32.partialorder %v2802_v36, 1.0 }
0x20c9   : > { %v2804_v37 = vsel %vm2803_vm12, %v2797_v33, %v2794_v30  ;;  %v2805_v39 = vsel %vm2803_vm12, %v2795_v55, %v2797_v33 }
0x20ca   : > { %v2806_v40 = vadd.f32 %v2805_v39, %v2804_v37 }
0x20cc   : > { %v2807_v12 = vmul.f32 0.5, %v2806_v40 }
0x20ce   : > { %v2808_v43 = vsub.f32 %v6640_v47, %v2807_v12 }
0x20d0   : > { %v2809_v44 = vmax.f32 %v2808_v43, 0.0 }
0x20d2   : > { %v2810_v3 = vsel %vm340_vm1, %v2809_v44, 0.0 }
0x20d3   : > { %2811 = vadd.xlane.f32.xlu0 %v2810_v3 }
0x215c   : > { %v2812_v42 = vpop.xlane.xlu0 %2811 }
0x215d   : > { %vm2813_vm13 = vcmp.gt.f32.partialorder %v2812_v42, 1.0 }
0x215e   : > { %v2814_v46 = vsel %vm2813_vm13, %v2807_v12, %v2804_v37  ;;  %v2815_v1 = vsel %vm2813_vm13, %v2805_v39, %v2807_v12 }
0x215f   : > { %v2816_v48 = vadd.f32 %v2815_v1, %v2814_v46 }
0x2161   : > { %v2817_v49 = vmul.f32 0.5, %v2816_v48 }
0x2163   : > { %v2818_v50 = vsub.f32 %v6640_v47, %v2817_v49 }
0x2165   : > { %v2819_v51 = vmax.f32 %v2818_v50, 0.0 }
0x2167   : > { %v2820_v52 = vsel %vm340_vm1, %v2819_v51, 0.0 }
0x2168   : > { %2821 = vadd.xlane.f32.xlu1 %v2820_v52 }
0x21f1   : > { %v2822_v41 = vpop.xlane.xlu1 %2821 }
0x21f2   : > { %vm2823_vm14 = vcmp.gt.f32.partialorder %v2822_v41, 1.0 }
0x21f3   : > { %v2824_v4 = vsel %vm2823_vm14, %v2817_v49, %v2814_v46  ;;  %v2825_v27 = vsel %vm2823_vm14, %v2815_v1, %v2817_v49 }
0x21f4   : > { %v2826_v45 = vadd.f32 %v2825_v27, %v2824_v4 }
0x21f6   : > { %v2827_v57 = vmul.f32 0.5, %v2826_v45 }
0x21f8   : > { %v2828_v60 = vsub.f32 %v6640_v47, %v2827_v57 }
0x21fa   : > { %v2829_v61 = vmax.f32 %v2828_v60, 0.0 }
0x21fc   : > { %v2830_v59 = vsel %vm340_vm1, %v2829_v61, 0.0 }
0x21fd   : > { %2831 = vadd.xlane.f32.xlu0 %v2830_v59 }
0x2286   : > { %v2832_v56 = vpop.xlane.xlu0 %2831 }
0x2287   : > { %vm2833_vm15 = vcmp.gt.f32.partialorder %v2832_v56, 1.0 }
0x2288   : > { %v2834_v62 = vsel %vm2833_vm15, %v2827_v57, %v2824_v4  ;;  %v2835_v63 = vsel %vm2833_vm15, %v2825_v27, %v2827_v57 }
0x2289   : > { %v2836_v5 = vadd.f32 %v2835_v63, %v2834_v62 }
0x228b   : > { %v2837_v6 = vmul.f32 0.5, %v2836_v5 }
0x228d   : > { %v2838_v7 = vsub.f32 %v6640_v47, %v2837_v6 }
0x228f   : > { %v2839_v8 = vmax.f32 %v2838_v7, 0.0 }
0x2291   : > { %v2840_v9 = vsel %vm340_vm1, %v2839_v8, 0.0 }
0x2292   : > { %2841 = vadd.xlane.f32.xlu1 %v2840_v9 }
0x231b   : > { %v2842_v53 = vpop.xlane.xlu1 %2841 }
0x231c   : > { %vm2843_vm3 = vcmp.gt.f32.partialorder %v2842_v53, 1.0 }
0x231d   : > { %v2844_v58 = vsel %vm2843_vm3, %v2837_v6, %v2834_v62  ;;  %v2845_v54 = vsel %vm2843_vm3, %v2835_v63, %v2837_v6 }
0x231e   : > { %v2846_v14 = vadd.f32 %v2845_v54, %v2844_v58 }
0x2320   : > { %v2847_v15 = vmul.f32 0.5, %v2846_v14 }
0x2322   : > { %v2848_v16 = vsub.f32 %v6640_v47, %v2847_v15 }
0x2324   : > { %v2849_v17 = vmax.f32 %v2848_v16, 0.0 }
0x2326   : > { %v2850_v18 = vsel %vm340_vm1, %v2849_v17, 0.0 }
0x2327   : > { %2851 = vadd.xlane.f32.xlu0 %v2850_v18 }
0x23b0   : > { %v2852_v19 = vpop.xlane.xlu0 %2851 }
0x23b1   : > { %vm2853_vm4 = vcmp.gt.f32.partialorder %v2852_v19, 1.0 }
0x23b2   : > { %v2854_v20 = vsel %vm2853_vm4, %v2847_v15, %v2844_v58  ;;  %v2855_v21 = vsel %vm2853_vm4, %v2845_v54, %v2847_v15 }
0x23b3   : > { %v2856_v23 = vadd.f32 %v2855_v21, %v2854_v20 }
0x23b5   : > { %v2857_v22 = vmul.f32 0.5, %v2856_v23 }
0x23b7   : > { %v2858_v24 = vsub.f32 %v6640_v47, %v2857_v22 }
0x23b9   : > { %v2859_v25 = vmax.f32 %v2858_v24, 0.0 }
0x23bb   : > { %v2860_v26 = vsel %vm340_vm1, %v2859_v25, 0.0 }
0x23bc   : > { %2861 = vadd.xlane.f32.xlu1 %v2860_v26 }
0x2445   : > { %v2862_v11 = vpop.xlane.xlu1 %2861 }
0x2446   : > { %vm2863_vm5 = vcmp.gt.f32.partialorder %v2862_v11, 1.0 }
0x2447   : > { %v2864_v0 = vsel %vm2863_vm5, %v2857_v22, %v2854_v20  ;;  %v2865_v30 = vsel %vm2863_vm5, %v2855_v21, %v2857_v22 }
0x2448   : > { %v2866_v55 = vadd.f32 %v2865_v30, %v2864_v0 }
0x244a   : > { %v2867_v28 = vmul.f32 0.5, %v2866_v55 }
0x244c   : > { %v2868_v33 = vsub.f32 %v6640_v47, %v2867_v28 }
0x244e   : > { %v2869_v34 = vmax.f32 %v2868_v33, 0.0 }
0x2450   : > { %v2870_v32 = vsel %vm340_vm1, %v2869_v34, 0.0 }
0x2451   : > { %2871 = vadd.xlane.f32.xlu0 %v2870_v32 }
0x24da   : > { %v2872_v35 = vpop.xlane.xlu0 %2871 }
0x24db   : > { %vm2873_vm6 = vcmp.gt.f32.partialorder %v2872_v35, 1.0 }
0x24dc   : > { %v2874_v36 = vsel %vm2873_vm6, %v2867_v28, %v2864_v0  ;;  %v2875_v37 = vsel %vm2873_vm6, %v2865_v30, %v2867_v28 }
0x24dd   : > { %v2876_v39 = vadd.f32 %v2875_v37, %v2874_v36 }
0x24df   : > { %v2877_v40 = vmul.f32 0.5, %v2876_v39 }
0x24e1   : > { %v2878_v12 = vsub.f32 %v6640_v47, %v2877_v40 }
0x24e3   : > { %v2879_v43 = vmax.f32 %v2878_v12, 0.0 }
0x24e5   : > { %v2880_v44 = vsel %vm340_vm1, %v2879_v43, 0.0 }
0x24e6   : > { %2881 = vadd.xlane.f32.xlu1 %v2880_v44 }
0x256f   : > { %v2882_v3 = vpop.xlane.xlu1 %2881 }
0x2570   : > { %vm2883_vm7 = vcmp.gt.f32.partialorder %v2882_v3, 1.0 }
0x2571   : > { %v2884_v42 = vsel %vm2883_vm7, %v2877_v40, %v2874_v36  ;;  %v2885_v46 = vsel %vm2883_vm7, %v2875_v37, %v2877_v40 }
0x2572   : > { %v2886_v1 = vadd.f32 %v2885_v46, %v2884_v42 }
0x2574   : > { %v2887_v48 = vmul.f32 0.5, %v2886_v1 }
0x2576   : > { %v2888_v49 = vsub.f32 %v6640_v47, %v2887_v48 }
0x2578   : > { %v2889_v50 = vmax.f32 %v2888_v49, 0.0 }
0x257a   : > { %v2890_v51 = vsel %vm340_vm1, %v2889_v50, 0.0 }
0x257b   : > { %2891 = vadd.xlane.f32.xlu0 %v2890_v51 }
0x2604   : > { %v2892_v52 = vpop.xlane.xlu0 %2891 }
0x2605   : > { %vm2893_vm8 = vcmp.gt.f32.partialorder %v2892_v52, 1.0 }
0x2606   : > { %v2894_v41 = vsel %vm2893_vm8, %v2887_v48, %v2884_v42  ;;  %v2895_v4 = vsel %vm2893_vm8, %v2885_v46, %v2887_v48 }
0x2607   : > { %v2896_v27 = vadd.f32 %v2895_v4, %v2894_v41 }
0x2609   : > { %v2897_v45 = vmul.f32 0.5, %v2896_v27 }
0x260b   : > { %v2898_v57 = vsub.f32 %v6640_v47, %v2897_v45 }
0x260d   : > { %v2899_v60 = vmax.f32 %v2898_v57, 0.0 }
0x260f   : > { %v2900_v61 = vsel %vm340_vm1, %v2899_v60, 0.0 }
0x2610   : > { %2901 = vadd.xlane.f32.xlu1 %v2900_v61 }
0x2699   : > { %v2902_v59 = vpop.xlane.xlu1 %2901 }
0x269a   : > { %vm2903_vm9 = vcmp.gt.f32.partialorder %v2902_v59, 1.0 }
0x269b   : > { %v2904_v56 = vsel %vm2903_vm9, %v2897_v45, %v2894_v41  ;;  %v2905_v62 = vsel %vm2903_vm9, %v2895_v4, %v2897_v45 }
0x269c   : > { %v2906_v63 = vadd.f32 %v2905_v62, %v2904_v56 }
0x269e   : > { %v2907_v5 = vmul.f32 0.5, %v2906_v63 }
0x26a0   : > { %v2908_v6 = vsub.f32 %v6640_v47, %v2907_v5 }
0x26a2   : > { %v2909_v7 = vmax.f32 %v2908_v6, 0.0 }
0x26a4   : > { %v2910_v8 = vsel %vm340_vm1, %v2909_v7, 0.0 }
0x26a5   : > { %2911 = vadd.xlane.f32.xlu0 %v2910_v8 }
0x272e   : > { %v2912_v9 = vpop.xlane.xlu0 %2911 }
0x272f   : > { %vm2913_vm10 = vcmp.gt.f32.partialorder %v2912_v9, 1.0 }
0x2730   : > { %v2914_v53 = vsel %vm2913_vm10, %v2907_v5, %v2904_v56  ;;  %v2915_v58 = vsel %vm2913_vm10, %v2905_v62, %v2907_v5 }
0x2731   : > { %v2916_v54 = vadd.f32 %v2915_v58, %v2914_v53 }
0x2733   : > { %v2917_v14 = vmul.f32 0.5, %v2916_v54 }
0x2735   : > { %v2918_v15 = vsub.f32 %v6640_v47, %v2917_v14 }
0x2737   : > { %v2919_v16 = vmax.f32 %v2918_v15, 0.0 }
0x2739   : > { %v2920_v17 = vsel %vm340_vm1, %v2919_v16, 0.0 }
0x273a   : > { %2921 = vadd.xlane.f32.xlu1 %v2920_v17 }
0x27c3   : > { %v2922_v18 = vpop.xlane.xlu1 %2921 }
0x27c4   : > { %vm2923_vm11 = vcmp.gt.f32.partialorder %v2922_v18, 1.0 }
0x27c5   : > { %v2924_v19 = vsel %vm2923_vm11, %v2917_v14, %v2914_v53  ;;  %v2925_v20 = vsel %vm2923_vm11, %v2915_v58, %v2917_v14 }
0x27c6   : > { %v2926_v21 = vadd.f32 %v2925_v20, %v2924_v19 }
0x27c8   : > { %v2927_v23 = vmul.f32 0.5, %v2926_v21 }
0x27ca   : > { %v2928_v22 = vsub.f32 %v6640_v47, %v2927_v23 }
0x27cc   : > { %v2929_v24 = vmax.f32 %v2928_v22, 0.0 }
0x27ce   : > { %v2930_v25 = vsel %vm340_vm1, %v2929_v24, 0.0 }
0x27cf   : > { %2931 = vadd.xlane.f32.xlu0 %v2930_v25 }
0x2858   : > { %v2932_v26 = vpop.xlane.xlu0 %2931 }
0x2859   : > { %vm2933_vm12 = vcmp.gt.f32.partialorder %v2932_v26, 1.0 }
0x285a   : > { %v2934_v11 = vsel %vm2933_vm12, %v2927_v23, %v2924_v19  ;;  %v2935_v0 = vsel %vm2933_vm12, %v2925_v20, %v2927_v23 }
0x285b   : > { %v2936_v30 = vadd.f32 %v2935_v0, %v2934_v11 }
0x285d   : > { %v2937_v55 = vmul.f32 0.5, %v2936_v30 }
0x285f   : > { %v2938_v28 = vsub.f32 %v6640_v47, %v2937_v55 }
0x2861   : > { %v2939_v33 = vmax.f32 %v2938_v28, 0.0 }
0x2863   : > { %v2940_v34 = vsel %vm340_vm1, %v2939_v33, 0.0 }
0x2864   : > { %2941 = vadd.xlane.f32.xlu1 %v2940_v34 }
0x28ed   : > { %v2942_v32 = vpop.xlane.xlu1 %2941 }
0x28ee   : > { %vm2943_vm13 = vcmp.gt.f32.partialorder %v2942_v32, 1.0 }
0x28ef   : > { %v2944_v35 = vsel %vm2943_vm13, %v2937_v55, %v2934_v11  ;;  %v2945_v36 = vsel %vm2943_vm13, %v2935_v0, %v2937_v55 }
0x28f0   : > { %v2946_v37 = vadd.f32 %v2945_v36, %v2944_v35 }
0x28f2   : > { %v2947_v39 = vmul.f32 0.5, %v2946_v37 }
0x28f4   : > { %v2948_v40 = vsub.f32 %v6640_v47, %v2947_v39 }
0x28f6   : > { %v2949_v12 = vmax.f32 %v2948_v40, 0.0 }
0x28f8   : > { %v2950_v43 = vsel %vm340_vm1, %v2949_v12, 0.0 }
0x28f9   : > { %2951 = vadd.xlane.f32.xlu0 %v2950_v43 }
0x2982   : > { %v2952_v44 = vpop.xlane.xlu0 %2951 }
0x2983   : > { %vm2953_vm14 = vcmp.gt.f32.partialorder %v2952_v44, 1.0 }
0x2984   : > { %v2954_v3 = vsel %vm2953_vm14, %v2947_v39, %v2944_v35  ;;  %v2955_v42 = vsel %vm2953_vm14, %v2945_v36, %v2947_v39 }
0x2985   : > { %v2956_v46 = vadd.f32 %v2955_v42, %v2954_v3 }
0x2987   : > { %v2957_v1 = vmul.f32 0.5, %v2956_v46 }
0x2989   : > { %v2958_v48 = vsub.f32 %v6640_v47, %v2957_v1 }
0x298b   : > { %v2959_v49 = vmax.f32 %v2958_v48, 0.0 }
0x298d   : > { %v2960_v50 = vsel %vm340_vm1, %v2959_v49, 0.0 }
0x298e   : > { %2961 = vadd.xlane.f32.xlu1 %v2960_v50 }
0x2a17   : > { %v2962_v51 = vpop.xlane.xlu1 %2961 }
0x2a18   : > { %vm2963_vm15 = vcmp.gt.f32.partialorder %v2962_v51, 1.0 }
0x2a19   : > { %v2964_v52 = vsel %vm2963_vm15, %v2957_v1, %v2954_v3  ;;  %v2965_v41 = vsel %vm2963_vm15, %v2955_v42, %v2957_v1 }
0x2a1a   : > { %v2966_v4 = vadd.f32 %v2965_v41, %v2964_v52 }
0x2a1c   : > { %v2967_v27 = vmul.f32 0.5, %v2966_v4 }
0x2a1e   : > { %v2968_v45 = vsub.f32 %v6640_v47, %v2967_v27 }
0x2a20   : > { %v2969_v57 = vmax.f32 %v2968_v45, 0.0 }
0x2a22   : > { %v2970_v60 = vsel %vm340_vm1, %v2969_v57, 0.0 }
0x2a23   : > { %2971 = vadd.xlane.f32.xlu0 %v2970_v60 }
0x2aac   : > { %v2972_v61 = vpop.xlane.xlu0 %2971 }
0x2aad   : > { %vm2973_vm3 = vcmp.gt.f32.partialorder %v2972_v61, 1.0 }
0x2aae   : > { %v2974_v59 = vsel %vm2973_vm3, %v2967_v27, %v2964_v52  ;;  %v2975_v56 = vsel %vm2973_vm3, %v2965_v41, %v2967_v27 }
0x2aaf   : > { %v2976_v62 = vadd.f32 %v2975_v56, %v2974_v59 }
0x2ab1   : > { %v2977_v63 = vmul.f32 0.5, %v2976_v62 }
0x2ab3   : > { %v2978_v5 = vsub.f32 %v6640_v47, %v2977_v63 }
0x2ab5   : > { %v2979_v6 = vmax.f32 %v2978_v5, 0.0 }
0x2ab7   : > { %v2980_v7 = vsel %vm340_vm1, %v2979_v6, 0.0 }
0x2ab8   : > { %2981 = vadd.xlane.f32.xlu1 %v2980_v7  ;;  %v6039_v7 = vld [vmem:[%s7172_s3 + $0x48] sm:$0xff] }
0x2b41   : > { %v2982_v8 = vpop.xlane.xlu1 %2981 }
0x2b42   : > { %vm2983_vm4 = vcmp.gt.f32.partialorder %v2982_v8, 1.0  ;;  %v6040_v8 = vld [vmem:[%s7172_s3] sm:$0xff] }
0x2b43   : > { %v2984_v9 = vsel %vm2983_vm4, %v2977_v63, %v2974_v59  ;;  %v2985_v53 = vsel %vm2983_vm4, %v2975_v56, %v2977_v63 }
0x2b44   : > { %v2986_v58 = vadd.f32 %v2985_v53, %v2984_v9 }
0x2b46   : > { %v2987_v54 = vmul.f32 0.5, %v2986_v58 }
0x2b48   : > { %v2988_v14 = vsub.f32 %v6640_v47, %v2987_v54 }
0x2b4a   : > { %v2989_v15 = vmax.f32 %v2988_v14, 0.0 }
0x2b4c   : > { %v2990_v16 = vsel %vm340_vm1, %v2989_v15, 0.0 }
0x2b4d   : > { %2991 = vadd.xlane.f32.xlu0 %v2990_v16 }
0x2bd6   : > { %v2992_v17 = vpop.xlane.xlu0 %2991 }
0x2bd7   : > { %vm2993_vm5 = vcmp.gt.f32.partialorder %v2992_v17, 1.0 }
0x2bd8   : > { %v2994_v18 = vsel %vm2993_vm5, %v2987_v54, %v2984_v9  ;;  %v2995_v19 = vsel %vm2993_vm5, %v2985_v53, %v2987_v54 }
0x2bd9   : > { %v2996_v20 = vadd.f32 %v2995_v19, %v2994_v18 }
0x2bdb   : > { %v2997_v21 = vmul.f32 0.5, %v2996_v20 }
0x2bdd   : > { %v2998_v23 = vsub.f32 %v6640_v47, %v2997_v21 }
0x2bdf   : > { %v2999_v22 = vmax.f32 %v2998_v23, 0.0 }
0x2be1   : > { %v3000_v24 = vsel %vm340_vm1, %v2999_v22, 0.0 }
0x2be2   : > { %3001 = vadd.xlane.f32.xlu1 %v3000_v24 }
0x2c6b   : > { %v3002_v25 = vpop.xlane.xlu1 %3001 }
0x2c6c   : > { %vm3003_vm6 = vcmp.gt.f32.partialorder %v3002_v25, 1.0 }
0x2c6d   : > { %v3004_v26 = vsel %vm3003_vm6, %v2997_v21, %v2994_v18  ;;  %v3005_v11 = vsel %vm3003_vm6, %v2995_v19, %v2997_v21 }
0x2c6e   : > { %v3006_v0 = vadd.f32 %v3005_v11, %v3004_v26 }
0x2c70   : > { %v3007_v30 = vmul.f32 0.5, %v3006_v0 }
0x2c72   : > { %v3008_v55 = vsub.f32 %v6640_v47, %v3007_v30 }
0x2c74   : > { %v3009_v28 = vmax.f32 %v3008_v55, 0.0 }
0x2c76   : > { %v3010_v33 = vsel %vm340_vm1, %v3009_v28, 0.0 }
0x2c77   : > { %3011 = vadd.xlane.f32.xlu0 %v3010_v33 }
0x2d00   : > { %v3012_v34 = vpop.xlane.xlu0 %3011 }
0x2d01   : > { %vm3013_vm7 = vcmp.gt.f32.partialorder %v3012_v34, 1.0 }
0x2d02   : > { %v3014_v32 = vsel %vm3013_vm7, %v3007_v30, %v3004_v26  ;;  %v3015_v35 = vsel %vm3013_vm7, %v3005_v11, %v3007_v30 }
0x2d03   : > { %v3016_v36 = vadd.f32 %v3015_v35, %v3014_v32 }
0x2d05   : > { %v3017_v37 = vmul.f32 0.5, %v3016_v36 }
0x2d07   : > { %v3018_v39 = vsub.f32 %v6640_v47, %v3017_v37 }
0x2d09   : > { %v3019_v40 = vmax.f32 %v3018_v39, 0.0 }
0x2d0b   : > { %v3020_v12 = vsel %vm340_vm1, %v3019_v40, 0.0 }
0x2d0c   : > { %3021 = vadd.xlane.f32.xlu1 %v3020_v12 }
0x2d95   : > { %v3022_v43 = vpop.xlane.xlu1 %3021 }
0x2d96   : > { %vm3023_vm8 = vcmp.gt.f32.partialorder %v3022_v43, 1.0 }
0x2d97   : > { %v3024_v44 = vsel %vm3023_vm8, %v3017_v37, %v3014_v32  ;;  %v3025_v3 = vsel %vm3023_vm8, %v3015_v35, %v3017_v37 }
0x2d98   : > { %v3026_v42 = vadd.f32 %v3025_v3, %v3024_v44 }
0x2d9a   : > { %v3027_v46 = vmul.f32 0.5, %v3026_v42 }
0x2d9c   : > { %v3028_v1 = vsub.f32 %v6640_v47, %v3027_v46 }
0x2d9e   : > { %v3029_v48 = vmax.f32 %v3028_v1, 0.0 }
0x2da0   : > { %v3030_v49 = vsel %vm340_vm1, %v3029_v48, 0.0 }
0x2da1   : > { %3031 = vadd.xlane.f32.xlu0 %v3030_v49 }
0x2e2a   : > { %v3032_v50 = vpop.xlane.xlu0 %3031 }
0x2e2b   : > { %vm3033_vm9 = vcmp.gt.f32.partialorder %v3032_v50, 1.0 }
0x2e2c   : > { %v3034_v51 = vsel %vm3033_vm9, %v3027_v46, %v3024_v44  ;;  %v3035_v52 = vsel %vm3033_vm9, %v3025_v3, %v3027_v46 }
0x2e2d   : > { %v3036_v41 = vadd.f32 %v3035_v52, %v3034_v51 }
0x2e2f   : > { %v3037_v4 = vmul.f32 0.5, %v3036_v41 }
0x2e31   : > { %v3038_v27 = vsub.f32 %v6640_v47, %v3037_v4 }
0x2e33   : > { %v3039_v45 = vmax.f32 %v3038_v27, 0.0 }
0x2e35   : > { %v3040_v57 = vsel %vm340_vm1, %v3039_v45, 0.0  ;;  %v5546_v45 = vld [vmem:[%s7173_s4 + $0x38] sm:$0x1] }
0x2e36   : > { %3041 = vadd.xlane.f32.xlu1 %v3040_v57 }
0x2ebf   : > { %v3042_v60 = vpop.xlane.xlu1 %3041 }
0x2ec0   : > { %vm3043_vm10 = vcmp.gt.f32.partialorder %v3042_v60, 1.0 }
0x2ec1   : > { %v3044_v61 = vsel %vm3043_vm10, %v3037_v4, %v3034_v51  ;;  %v3045_v59 = vsel %vm3043_vm10, %v3035_v52, %v3037_v4  ;;  %v5545_v52 = vld [vmem:[%s7173_s4 + $0x18] sm:$0x1] }
0x2ec2   : > { %v3046_v56 = vadd.f32 %v3045_v59, %v3044_v61 }
0x2ec4   : > { %v3047_v62 = vmul.f32 0.5, %v3046_v56 }
0x2ec6   : > { %v3048_v63 = vsub.f32 %v6640_v47, %v3047_v62 }
0x2ec8   : > { %v6705_v5 = vmax.f32 %v3048_v63, 0.0 }
0x2eca   : > { %v3067_v6 = vmul.f32 %v6705_v5, %v6169_v38 }
0x2ecc   : > { %5788 = vmatmul.mubr.msk.f32.vlgmr.msra.gmra.mxu0 %vm340_vm1, %v3067_v6  ;;  %5795 = vmatmul.mubr.msk.f32.vlgmr.msra.gmra.mxu1 %vm340_vm1, %v3067_v6 }
0x2ecd   : > { %5803 = vmatpush3.msra.mxu1 %v6039_v7  ;;  %5798 = vmatpush3.msra.mxu0 %v6040_v8  ;;  %v3211_v8 = vld [vmem:[%s7173_s4 + $0x8] sm:$0x1] }
0x2ece   : > { %5799 = vmatprep.mubr.msk.f32.mxu0 %vm6056_vm0, %v6055_v2  ;;  %5804 = vmatprep.mubr.msk.f32.mxu1 %vm6056_vm0, %v6055_v2 }
0x2ecf   : > { %5812 = vmatprep.subr.mxu1 %v6055_v2  ;;  %5807 = vmatprep.subr.mxu0 %v6055_v2 }
0x2f8c   : > { %v6723_v47 = vpop.f32.mrf.mxu0  ;;  %v3207_v9 = vpop.f32.mrf.mxu1 }
0x2f8d   : > { %v3249_v53 = vsel %vm526_vm2, %v3207_v9, 0.0  ;;  %v3257_v58 = vmul.f32 %v3207_v9, %v3207_v9  ;;  %v3213_v54 = vsel %vm526_vm2, %v6723_v47, 0.0  ;;  %v3221_v14 = vmul.f32 %v6723_v47, %v6723_v47 }
0x2f8e   : > { %v3250_v15 = vrot.slane %v3249_v53, 4  ;;  %v5789_v16 = vpop.f32.mrf.mxu0  ;;  %v5796_v17 = vpop.f32.mrf.mxu1  ;;  %v3214_v21 = vrot.slane %v3213_v54, 4 }
0x2f8f   : > { %v3258_v18 = vsel %vm526_vm2, %v3257_v58, 0.0  ;;  %v3222_v23 = vsel %vm526_vm2, %v3221_v14, 0.0 }
0x2f90   : > { %v3251_v19 = vadd.f32 %v3250_v15, %v3249_v53  ;;  %v3259_v20 = vrot.slane %v3258_v18, 4  ;;  %v3215_v11 = vadd.f32 %v3214_v21, %v3213_v54  ;;  %v3223_v0 = vrot.slane %v3222_v23, 4 }
0x2f92   : > { %v3252_v22 = vrot.slane %v3251_v19, 2  ;;  %v3260_v24 = vadd.f32 %v3259_v20, %v3258_v18  ;;  %v3216_v34 = vrot.slane %v3215_v11, 2  ;;  %v3224_v32 = vadd.f32 %v3223_v0, %v3222_v23  ;;  %v5554_v23 = vld [vmem:[%s7172_s3 + $0x28] sm:$0xff] }
0x2f94   : > { %v3253_v25 = vadd.f32 %v3252_v22, %v3251_v19  ;;  %v3261_v26 = vrot.slane %v3260_v24, 2  ;;  %v3217_v40 = vadd.f32 %v3216_v34, %v3215_v11  ;;  %v3225_v12 = vrot.slane %v3224_v32, 2 }
0x2f96   : > { %v3254_v30 = vrot.slane %v3253_v25, 1  ;;  %v3262_v55 = vadd.f32 %v3261_v26, %v3260_v24  ;;  %v3218_v3 = vrot.slane %v3217_v40, 1  ;;  %v3226_v42 = vadd.f32 %v3225_v12, %v3224_v32 }
0x2f98   : > { %v3255_v28 = vadd.f32 %v3254_v30, %v3253_v25  ;;  %v3263_v33 = vrot.slane %v3262_v55, 1  ;;  %v3219_v46 = vadd.f32 %v3218_v3, %v3217_v40  ;;  %v3227_v1 = vrot.slane %v3226_v42, 1 }
0x2f9a   : > { %v3256_v35 = vmul.f32 0.125, %v3255_v28  ;;  %v3264_v36 = vadd.f32 %v3263_v33, %v3262_v55  ;;  %v3220_v48 = vmul.f32 0.125, %v3219_v46  ;;  %v3228_v49 = vadd.f32 %v3227_v1, %v3226_v42 }
0x2f9c   : > { %v3265_v37 = vmul.f32 0.125, %v3264_v36  ;;  %v3266_v39 = vmul.f32 %v3256_v35, %v3256_v35  ;;  %v3229_v50 = vmul.f32 0.125, %v3228_v49  ;;  %v3230_v51 = vmul.f32 %v3220_v48, %v3220_v48 }
0x2f9e   : > { %v3267_v43 = vsub.f32 %v3265_v37, %v3266_v39  ;;  %v3231_v4 = vsub.f32 %v3229_v50, %v3230_v51 }
0x2fa0   : > { %v3268_v44 = vadd.f32 1e-05, %v3267_v43  ;;  %v3232_v61 = vadd.f32 1e-05, %v3231_v4 }
0x2fa2   : > { %5961 = vrsqrt.f32 %v3268_v44 }
0x2fa3   : > { %5963 = vrsqrt.f32 %v3232_v61 }
0x2faf   : > { %v5962_v41 = vpop.eup %5961 }
0x2fb0   : > { %v3270_v27 = vmul.f32 %v5962_v41, %v5545_v52  ;;  %v5964_v7 = vpop.eup %5963 }
0x2fb1   : > { %v3234_v53 = vmul.f32 %v5964_v7, %v3211_v8  ;;  %v5551_v8 = vld [vmem:[%s7173_s4 + $0x19] sm:$0x1] }
0x2fb2   : > { %v3271_v57 = vmul.f32 %v3270_v27, %v3256_v35  ;;  %v3276_v60 = vrot.slane %v3270_v27, %v6162_v29 }
0x2fb3   : > { %v3235_v14 = vmul.f32 %v3234_v53, %v3220_v48  ;;  %v3240_v16 = vrot.slane %v3234_v53, %v6162_v29 }
0x2fb4   : > { %v3272_v59 = vsub.f32 %v5546_v45, %v3271_v57  ;;  %v3277_v56 = vmul.f32 %v3276_v60, %v3207_v9  ;;  %v5544_v9 = vld [vmem:[%s7173_s4 + $0x28] sm:$0x1] }
0x2fb5   : > { %v3236_v15 = vsub.f32 %v5544_v9, %v3235_v14  ;;  %v3241_v18 = vmul.f32 %v3240_v16, %v6723_v47  ;;  %v5555_v47 = vld [vmem:[%s7172_s3 + $0x70] sm:$0xff]  ;;  %v5552_v14 = vld [vmem:[%s7173_s4 + $0x39] sm:$0x1] }
0x2fb6   : > { %v3281_v62 = vrot.slane %v3272_v59, %v6162_v29 }
0x2fb7   : > { %v3245_v17 = vrot.slane %v3236_v15, %v6162_v29 }
0x2fb8   : > { %v3282_v63 = vadd.f32 %v3281_v62, %v3277_v56 }
0x2fb9   : > { %v3246_v19 = vadd.f32 %v3245_v17, %v3241_v18 }
0x2fba   : > { %v5547_v6 = vmul.f32 -1.442695, %v3282_v63 }
0x2fbc   : > { %5965 = vpow2.f32 %v5547_v6 }
0x2fc9   : > { %v5966_v58 = vpop.eup %5965 }
0x2fca   : > { %v3286_v54 = vadd.f32 1.0, %v5966_v58 }
0x2fcc   : > { %5967 = vrcp.f32 %v3286_v54 }
0x2fd9   : > { %v5968_v20 = vpop.eup %5967 }
0x2fda   : > { %v6749_v21 = vmul.f32 %v5968_v20, %v3246_v19 }
0x2fdc   : > { %5800 = vmatmul.mubr.msk.f32.vlgmr.msra.gmra.mxu0 %vm526_vm2, %v6749_v21  ;;  %5805 = vmatmul.mubr.msk.f32.vlgmr.msra.gmra.mxu1 %vm526_vm2, %v6749_v21 }
0x2fdd   : > { %5809 = vmatprep.mubr.msk.f32.mxu0 %vm6056_vm0, %v6055_v2  ;;  %5814 = vmatprep.mubr.msk.f32.mxu1 %vm6056_vm0, %v6055_v2 }
0x2fde   : > { %5813 = vmatpush3.msra.mxu1 %v5555_v47  ;;  %5808 = vmatpush3.msra.mxu0 %v5554_v23 }
0x2fdf   : > { %5822 = vmatprep.subr.mxu1 %v6055_v2  ;;  %5817 = vmatprep.subr.mxu0 %v6055_v2 }
0x309c   : > { %v6767_v22 = vpop.f32.mrf.mxu0  ;;  %v3429_v24 = vpop.f32.mrf.mxu1 }
0x309d   : > { %v3471_v25 = vsel %vm526_vm2, %v3429_v24, 0.0  ;;  %v3479_v26 = vmul.f32 %v3429_v24, %v3429_v24  ;;  %v3435_v11 = vsel %vm526_vm2, %v6767_v22, 0.0  ;;  %v3443_v0 = vmul.f32 %v6767_v22, %v6767_v22 }
0x309e   : > { %v3472_v30 = vrot.slane %v3471_v25, 4  ;;  %v5801_v55 = vpop.f32.mrf.mxu0  ;;  %v5806_v28 = vpop.f32.mrf.mxu1  ;;  %v3436_v35 = vrot.slane %v3435_v11, 4 }
0x309f   : > { %v3480_v33 = vsel %vm526_vm2, %v3479_v26, 0.0  ;;  %v3444_v36 = vsel %vm526_vm2, %v3443_v0, 0.0 }
0x30a0   : > { %v3473_v34 = vadd.f32 %v3472_v30, %v3471_v25  ;;  %v3481_v32 = vrot.slane %v3480_v33, 4  ;;  %v3437_v43 = vadd.f32 %v3436_v35, %v3435_v11  ;;  %v3445_v44 = vrot.slane %v3444_v36, 4  ;;  %v3433_v25 = vld [vmem:[%s7173_s4 + $0x9] sm:$0x1] }
0x30a2   : > { %v3474_v37 = vrot.slane %v3473_v34, 2  ;;  %v3482_v39 = vadd.f32 %v3481_v32, %v3480_v33  ;;  %v3438_v48 = vrot.slane %v3437_v43, 2  ;;  %v3446_v49 = vadd.f32 %v3445_v44, %v3444_v36 }
0x30a4   : > { %v3475_v40 = vadd.f32 %v3474_v37, %v3473_v34  ;;  %v3483_v12 = vrot.slane %v3482_v39, 2  ;;  %v3439_v4 = vadd.f32 %v3438_v48, %v3437_v43  ;;  %v3447_v27 = vrot.slane %v3446_v49, 2 }
0x30a6   : > { %v3476_v3 = vrot.slane %v3475_v40, 1  ;;  %v3484_v42 = vadd.f32 %v3483_v12, %v3482_v39  ;;  %v3440_v60 = vrot.slane %v3439_v4, 1  ;;  %v3448_v61 = vadd.f32 %v3447_v27, %v3446_v49 }
0x30a8   : > { %v3477_v46 = vadd.f32 %v3476_v3, %v3475_v40  ;;  %v3485_v1 = vrot.slane %v3484_v42, 1  ;;  %v3441_v59 = vadd.f32 %v3440_v60, %v3439_v4  ;;  %v3449_v56 = vrot.slane %v3448_v61, 1 }
0x30aa   : > { %v3478_v50 = vmul.f32 0.125, %v3477_v46  ;;  %v3486_v51 = vadd.f32 %v3485_v1, %v3484_v42  ;;  %v3442_v62 = vmul.f32 0.125, %v3441_v59  ;;  %v3450_v63 = vadd.f32 %v3449_v56, %v3448_v61 }
0x30ac   : > { %v3487_v52 = vmul.f32 0.125, %v3486_v51  ;;  %v3488_v41 = vmul.f32 %v3478_v50, %v3478_v50  ;;  %v3451_v6 = vmul.f32 0.125, %v3450_v63  ;;  %v3452_v7 = vmul.f32 %v3442_v62, %v3442_v62 }
0x30ae   : > { %v3489_v45 = vsub.f32 %v3487_v52, %v3488_v41  ;;  %v3453_v58 = vsub.f32 %v3451_v6, %v3452_v7 }
0x30b0   : > { %v3490_v57 = vadd.f32 1e-05, %v3489_v45  ;;  %v3454_v16 = vadd.f32 1e-05, %v3453_v58 }
0x30b2   : > { %5969 = vrsqrt.f32 %v3490_v57 }
0x30b3   : > { %5971 = vrsqrt.f32 %v3454_v16 }
0x30bf   : > { %v5970_v53 = vpop.eup %5969 }
0x30c0   : > { %v3492_v54 = vmul.f32 %v5970_v53, %v5551_v8  ;;  %v5972_v23 = vpop.eup %5971 }
0x30c1   : > { %v3456_v26 = vmul.f32 %v5972_v23, %v3433_v25 }
0x30c2   : > { %v3493_v9 = vmul.f32 %v3492_v54, %v3478_v50  ;;  %v3498_v15 = vrot.slane %v3492_v54, %v6162_v29 }
0x30c3   : > { %v3457_v30 = vmul.f32 %v3456_v26, %v3442_v62  ;;  %v3462_v28 = vrot.slane %v3456_v26, %v6162_v29 }
0x30c4   : > { %v3494_v17 = vsub.f32 %v5552_v14, %v3493_v9  ;;  %v3499_v18 = vmul.f32 %v3498_v15, %v3429_v24  ;;  %v5550_v24 = vld [vmem:[%s7173_s4 + $0x29] sm:$0x1] }
0x30c5   : > { %v3458_v55 = vsub.f32 %v5550_v24, %v3457_v30  ;;  %v3463_v34 = vmul.f32 %v3462_v28, %v6767_v22  ;;  %v5563_v22 = vld [vmem:[%s7172_s3 + $0x78] sm:$0xff] }
0x30c6   : > { %v3503_v19 = vrot.slane %v3494_v17, %v6162_v29 }
0x30c7   : > { %v3467_v33 = vrot.slane %v3458_v55, %v6162_v29  ;;  %v5560_v55 = vld [vmem:[%s7173_s4 + $0x3a] sm:$0x1] }
0x30c8   : > { %v3504_v20 = vadd.f32 %v3503_v19, %v3499_v18 }
0x30c9   : > { %v3468_v32 = vadd.f32 %v3467_v33, %v3463_v34 }
0x30ca   : > { %v5553_v47 = vmul.f32 -1.442695, %v3504_v20 }
0x30cc   : > { %5973 = vpow2.f32 %v5553_v47 }
0x30d9   : > { %v5974_v11 = vpop.eup %5973 }
0x30da   : > { %v3508_v0 = vadd.f32 1.0, %v5974_v11  ;;  %v5559_v11 = vld [vmem:[%s7173_s4 + $0x1a] sm:$0x1] }
0x30dc   : > { %5975 = vrcp.f32 %v3508_v0 }
0x30e9   : > { %v5976_v35 = vpop.eup %5975 }
0x30ea   : > { %v3511_v36 = vmul.f32 %v5976_v35, %v3468_v32 }
0x30ec   : > { %v3512_v37 = vadd.f32 %v3511_v36, %v6749_v21  ;;  %v5562_v21 = vld [vmem:[%s7172_s3 + $0x30] sm:$0xff] }
0x30ee   : > { %v6794_v39 = vmul.f32 0.70710677, %v3512_v37 }
0x30f0   : > { %5810 = vmatmul.mubr.msk.f32.vlgmr.msra.gmra.mxu0 %vm526_vm2, %v6794_v39  ;;  %5815 = vmatmul.mubr.msk.f32.vlgmr.msra.gmra.mxu1 %vm526_vm2, %v6794_v39 }
0x30f1   : > { %5819 = vmatprep.mubr.msk.f32.mxu0 %vm6056_vm0, %v6055_v2  ;;  %5824 = vmatprep.mubr.msk.f32.mxu1 %vm6056_vm0, %v6055_v2 }
0x30f2   : > { %5823 = vmatpush3.msra.mxu1 %v5563_v22  ;;  %5818 = vmatpush3.msra.mxu0 %v5562_v21 }
0x30f3   : > { %5827 = vmatprep.subr.mxu0 %v6055_v2  ;;  %5832 = vmatprep.subr.mxu1 %v6055_v2 }
0x31b0   : > { %v6812_v40 = vpop.f32.mrf.mxu0  ;;  %v3657_v12 = vpop.f32.mrf.mxu1 }
0x31b1   : > { %v3699_v43 = vsel %vm526_vm2, %v3657_v12, 0.0  ;;  %v3707_v44 = vmul.f32 %v3657_v12, %v3657_v12  ;;  %v3663_v3 = vsel %vm526_vm2, %v6812_v40, 0.0  ;;  %v3671_v42 = vmul.f32 %v6812_v40, %v6812_v40 }
0x31b2   : > { %v3700_v46 = vrot.slane %v3699_v43, 4  ;;  %v5811_v1 = vpop.f32.mrf.mxu0  ;;  %v5816_v48 = vpop.f32.mrf.mxu1  ;;  %v3664_v52 = vrot.slane %v3663_v3, 4 }
0x31b3   : > { %v3708_v49 = vsel %vm526_vm2, %v3707_v44, 0.0  ;;  %v3672_v41 = vsel %vm526_vm2, %v3671_v42, 0.0 }
0x31b4   : > { %v3701_v50 = vadd.f32 %v3700_v46, %v3699_v43  ;;  %v3709_v51 = vrot.slane %v3708_v49, 4  ;;  %v3665_v60 = vadd.f32 %v3664_v52, %v3663_v3  ;;  %v3673_v61 = vrot.slane %v3672_v41, 4  ;;  %v3661_v43 = vld [vmem:[%s7173_s4 + $0xa] sm:$0x1] }
0x31b6   : > { %v3702_v4 = vrot.slane %v3701_v50, 2  ;;  %v3710_v27 = vadd.f32 %v3709_v51, %v3708_v49  ;;  %v3666_v6 = vrot.slane %v3665_v60, 2  ;;  %v3674_v7 = vadd.f32 %v3673_v61, %v3672_v41 }
0x31b8   : > { %v3703_v45 = vadd.f32 %v3702_v4, %v3701_v50  ;;  %v3711_v57 = vrot.slane %v3710_v27, 2  ;;  %v3667_v14 = vadd.f32 %v3666_v6, %v3665_v60  ;;  %v3675_v9 = vrot.slane %v3674_v7, 2 }
0x31ba   : > { %v3704_v59 = vrot.slane %v3703_v45, 1  ;;  %v3712_v56 = vadd.f32 %v3711_v57, %v3710_v27  ;;  %v3668_v17 = vrot.slane %v3667_v14, 1  ;;  %v3676_v18 = vadd.f32 %v3675_v9, %v3674_v7 }
0x31bc   : > { %v3705_v62 = vadd.f32 %v3704_v59, %v3703_v45  ;;  %v3713_v63 = vrot.slane %v3712_v56, 1  ;;  %v3669_v19 = vadd.f32 %v3668_v17, %v3667_v14  ;;  %v3677_v20 = vrot.slane %v3676_v18, 1  ;;  %v5570_v45 = vld [vmem:[%s7174_s5 + $0x10] sm:$0xff] }
0x31be   : > { %v3706_v8 = vmul.f32 0.125, %v3705_v62  ;;  %v3714_v53 = vadd.f32 %v3713_v63, %v3712_v56  ;;  %v3670_v47 = vmul.f32 0.125, %v3669_v19  ;;  %v3678_v23 = vadd.f32 %v3677_v20, %v3676_v18 }
0x31c0   : > { %v3715_v58 = vmul.f32 0.125, %v3714_v53  ;;  %v3716_v54 = vmul.f32 %v3706_v8, %v3706_v8  ;;  %v3679_v25 = vmul.f32 0.125, %v3678_v23  ;;  %v3680_v26 = vmul.f32 %v3670_v47, %v3670_v47 }
0x31c2   : > { %v3717_v15 = vsub.f32 %v3715_v58, %v3716_v54  ;;  %v3681_v30 = vsub.f32 %v3679_v25, %v3680_v26 }
0x31c4   : > { %v3718_v16 = vadd.f32 1e-05, %v3717_v15  ;;  %v3682_v34 = vadd.f32 1e-05, %v3681_v30 }
0x31c6   : > { %5977 = vrsqrt.f32 %v3718_v16 }
0x31c7   : > { %5979 = vrsqrt.f32 %v3682_v34 }
0x31d3   : > { %v5978_v0 = vpop.eup %5977 }
0x31d4   : > { %v3720_v24 = vmul.f32 %v5978_v0, %v5559_v11  ;;  %v5980_v21 = vpop.eup %5979 }
0x31d5   : > { %v3684_v44 = vmul.f32 %v5980_v21, %v3661_v43 }
0x31d6   : > { %v3721_v28 = vmul.f32 %v3720_v24, %v3706_v8  ;;  %v3726_v33 = vrot.slane %v3720_v24, %v6162_v29 }
0x31d7   : > { %v3685_v46 = vmul.f32 %v3684_v44, %v3670_v47  ;;  %v3690_v48 = vrot.slane %v3684_v44, %v6162_v29 }
0x31d8   : > { %v3722_v32 = vsub.f32 %v5560_v55, %v3721_v28  ;;  %v3727_v35 = vmul.f32 %v3726_v33, %v3657_v12  ;;  %v5558_v12 = vld [vmem:[%s7173_s4 + $0x2a] sm:$0x1] }
0x31d9   : > { %v3686_v1 = vsub.f32 %v5558_v12, %v3685_v46  ;;  %v3691_v50 = vmul.f32 %v3690_v48, %v6812_v40  ;;  %v6041_v40 = vld [vmem:[%s7171_s2 + $0x8] sm:$0xff]  ;;  %v5568_v48 = vld [vmem:[%s7173_s4 + $0x3b] sm:$0x1] }
0x31da   : > { %v3731_v36 = vrot.slane %v3722_v32, %v6162_v29 }
0x31db   : > { %v3695_v49 = vrot.slane %v3686_v1, %v6162_v29 }
0x31dc   : > { %v3732_v37 = vadd.f32 %v3731_v36, %v3727_v35 }
0x31dd   : > { %v3696_v51 = vadd.f32 %v3695_v49, %v3691_v50 }
0x31de   : > { %v5561_v22 = vmul.f32 -1.442695, %v3732_v37 }
0x31e0   : > { %5981 = vpow2.f32 %v5561_v22 }
0x31ed   : > { %v5982_v3 = vpop.eup %5981 }
0x31ee   : > { %v3736_v42 = vadd.f32 1.0, %v5982_v3 }
0x31f0   : > { %5983 = vrcp.f32 %v3736_v42  ;;  %v5567_v42 = vld [vmem:[%s7173_s4 + $0x1b] sm:$0x1] }
0x31fd   : > { %v5984_v52 = vpop.eup %5983 }
0x31fe   : > { %v3739_v41 = vmul.f32 %v5984_v52, %v3696_v51 }
0x3200   : > { %v3740_v4 = vadd.f32 %v3739_v41, %v6794_v39  ;;  %v6042_v39 = vld [vmem:[%s7171_s2] sm:$0xff] }
0x3202   : > { %v6839_v27 = vmul.f32 0.70710677, %v3740_v4 }
0x3204   : > { %5820 = vmatmul.mubr.msk.f32.vlgmr.msra.gmra.mxu0 %vm526_vm2, %v6839_v27  ;;  %5825 = vmatmul.mubr.msk.f32.vlgmr.msra.gmra.mxu1 %vm526_vm2, %v6839_v27 }
0x3205   : > { %5829 = vmatprep.mubr.msk.f32.mxu0 %vm6056_vm0, %v6055_v2  ;;  %5833 = vmatpush3.msra.mxu1 %v6041_v40 }
0x3206   : > { %5834 = vmatprep.subr.mxu1 %v6055_v2  ;;  %5836 = vmatprep.mubr.msk.f32.mxu1 %vm6056_vm0, %v6055_v2 }
0x3207   : > { %5835 = vmatpush3.msra.mxu1 %v6042_v39  ;;  %5828 = vmatpush3.msra.mxu0 %v5570_v45 }
0x3208   : > { %5846 = vmatprep.subr.mxu1 %v6055_v2  ;;  %5839 = vmatprep.subr.mxu0 %v6055_v2 }
0x32c4   : > { %v6861_v57 = vpop.f32.mrf.mxu0  ;;  %v3885_v60 = vpop.f32.mrf.mxu1 }
0x32c5   : > { %v3927_v61 = vsel %vm526_vm2, %v3885_v60, 0.0  ;;  %v3935_v59 = vmul.f32 %v3885_v60, %v3885_v60  ;;  %v3891_v56 = vsel %vm526_vm2, %v6861_v57, 0.0  ;;  %v3899_v62 = vmul.f32 %v6861_v57, %v6861_v57 }
0x32c6   : > { %v3928_v63 = vrot.slane %v3927_v61, 4  ;;  %v5821_v6 = vpop.f32.mrf.mxu0  ;;  %v5826_v7 = vpop.f32.mrf.mxu1  ;;  %v3892_v54 = vrot.slane %v3891_v56, 4 }
0x32c7   : > { %v3936_v8 = vsel %vm526_vm2, %v3935_v59, 0.0  ;;  %v3900_v14 = vsel %vm526_vm2, %v3899_v62, 0.0 }
0x32c8   : > { %v3929_v53 = vadd.f32 %v3928_v63, %v3927_v61  ;;  %v3937_v58 = vrot.slane %v3936_v8, 4  ;;  %v3893_v18 = vadd.f32 %v3892_v54, %v3891_v56  ;;  %v3901_v19 = vrot.slane %v3900_v14, 4  ;;  %v3889_v61 = vld [vmem:[%s7173_s4 + $0xb] sm:$0x1] }
0x32ca   : > { %v3930_v9 = vrot.slane %v3929_v53, 2  ;;  %v3938_v15 = vadd.f32 %v3937_v58, %v3936_v8  ;;  %v3894_v26 = vrot.slane %v3893_v18, 2  ;;  %v3902_v11 = vadd.f32 %v3901_v19, %v3900_v14 }
0x32cc   : > { %v3931_v16 = vadd.f32 %v3930_v9, %v3929_v53  ;;  %v3939_v17 = vrot.slane %v3938_v15, 2  ;;  %v3895_v28 = vadd.f32 %v3894_v26, %v3893_v18  ;;  %v3903_v33 = vrot.slane %v3902_v11, 2  ;;  %v6043_v18 = vld [vmem:[%s7171_s2 + $0x18] sm:$0xff] }
0x32ce   : > { %v3932_v20 = vrot.slane %v3931_v16, 1  ;;  %v3940_v47 = vadd.f32 %v3939_v17, %v3938_v15  ;;  %v3896_v35 = vrot.slane %v3895_v28, 1  ;;  %v3904_v36 = vadd.f32 %v3903_v33, %v3902_v11 }
0x32d0   : > { %v3933_v23 = vadd.f32 %v3932_v20, %v3931_v16  ;;  %v3941_v25 = vrot.slane %v3940_v47, 1  ;;  %v3897_v37 = vadd.f32 %v3896_v35, %v3895_v28  ;;  %v3905_v22 = vrot.slane %v3904_v36, 1 }
0x32d1   : > { %v2628_v16 = vmax.f32 %v6613_v10, 0.0 }
0x32d2   : > { %v3934_v0 = vmul.f32 0.125, %v3933_v23  ;;  %v3942_v30 = vadd.f32 %v3941_v25, %v3940_v47  ;;  %v3898_v21 = vmul.f32 0.125, %v3897_v37  ;;  %v3906_v43 = vadd.f32 %v3905_v22, %v3904_v36 }
0x32d4   : > { %v3943_v24 = vmul.f32 0.125, %v3942_v30  ;;  %v3944_v55 = vmul.f32 %v3934_v0, %v3934_v0  ;;  %v3907_v44 = vmul.f32 0.125, %v3906_v43  ;;  %v3908_v3 = vmul.f32 %v3898_v21, %v3898_v21 }
0x32d6   : > { %v3945_v34 = vsub.f32 %v3943_v24, %v3944_v55  ;;  %v3909_v12 = vsub.f32 %v3907_v44, %v3908_v3  ;;  %v4047_v44 = vld [vmem:[%s7175_s6 + $0x2] sm:$0x1] }
0x32d8   : > { %v3946_v32 = vadd.f32 1e-05, %v3945_v34  ;;  %v3910_v51 = vadd.f32 1e-05, %v3909_v12 }
0x32da   : > { %5985 = vrsqrt.f32 %v3946_v32 }
0x32db   : > { %5987 = vrsqrt.f32 %v3910_v51 }
0x32e7   : > { %v5986_v46 = vpop.eup %5985 }
0x32e8   : > { %v3948_v1 = vmul.f32 %v5986_v46, %v5567_v42  ;;  %v5988_v45 = vpop.eup %5987  ;;  %v5572_v46 = vld [vmem:[%s7175_s6 + $0x6] sm:$0x1] }
0x32e9   : > { %v3912_v59 = vmul.f32 %v5988_v45, %v3889_v61 }
0x32ea   : > { %v3949_v49 = vmul.f32 %v3948_v1, %v3934_v0  ;;  %v3954_v50 = vrot.slane %v3948_v1, %v6162_v29 }
0x32eb   : > { %v3913_v63 = vmul.f32 %v3912_v59, %v3898_v21  ;;  %v3918_v7 = vrot.slane %v3912_v59, %v6162_v29 }
0x32ec   : > { %v3950_v52 = vsub.f32 %v5568_v48, %v3949_v49  ;;  %v3955_v41 = vmul.f32 %v3954_v50, %v3885_v60  ;;  %v5566_v60 = vld [vmem:[%s7173_s4 + $0x2b] sm:$0x1]  ;;  %v3065_v48 = vsub.f32 1.3, %v6705_v5 }
0x32ed   : > { %v3914_v6 = vsub.f32 %v5566_v60, %v3913_v63  ;;  %v3919_v53 = vmul.f32 %v3918_v7, %v6861_v57 }
0x32ee   : > { %v3959_v4 = vrot.slane %v3950_v52, %v6162_v29  ;;  %v3066_v52 = vmul.f32 %v3065_v48, %v1724_v31 }
0x32ef   : > { %v3923_v8 = vrot.slane %v3914_v6, %v6162_v29 }
0x32f0   : > { %v3960_v40 = vadd.f32 %v3959_v4, %v3955_v41 }
0x32f1   : > { %v3924_v58 = vadd.f32 %v3923_v8, %v3919_v53 }
0x32f2   : > { %v5569_v39 = vmul.f32 -1.442695, %v3960_v40 }
0x32f4   : > { %5989 = vpow2.f32 %v5569_v39 }
0x3301   : > { %v5990_v56 = vpop.eup %5989 }
0x3302   : > { %v3964_v62 = vadd.f32 1.0, %v5990_v56 }
0x3304   : > { %5991 = vrcp.f32 %v3964_v62 }
0x3311   : > { %v5992_v54 = vpop.eup %5991 }
0x3312   : > { %v3967_v14 = vmul.f32 %v5992_v54, %v3924_v58 }
0x3314   : > { %v3968_v9 = vadd.f32 %v3967_v14, %v6839_v27  ;;  %v6044_v27 = vld [vmem:[%s7171_s2 + $0x10] sm:$0xff] }
0x3316   : > { %v3969_v15 = vmul.f32 0.70710677, %v3968_v9 }
0x3318   : > { %v3970_v17 = vmax.f32 %v3969_v15, 0.0  ;;  %5830 = vmatmul.mubr.msk.f32.vlgmr.msra.gmra.mxu0 %vm526_vm2, %v3969_v15 }
0x3319   : > { %5840 = vmatpush3.msra.mxu0 %v6043_v18  ;;  %5843 = vmatprep.mubr.msk.f32.mxu0 %vm6056_vm0, %v6055_v2 }
0x331a   : > { %5841 = vmatprep.subr.mxu0 %v6055_v2  ;;  %v6896_v57 = vadd.f32 %v3970_v17, %v2628_v16 }
0x331b   : > { %5842 = vmatpush3.msra.mxu0 %v6044_v27 }
0x331c   : > { %5851 = vmatprep.subr.mxu0 %v6055_v2 }
0x33d8   : > { %v4043_v10 = vpop.f32.mrf.mxu0 }
0x33d9   : > { %v4049_v19 = vsel %vm340_vm1, %v4043_v10, 0.0  ;;  %v4057_v20 = vmul.f32 %v4043_v10, %v4043_v10 }
0x33da   : > { %v4050_v47 = vrot.slane %v4049_v19, 4  ;;  %v5831_v23 = vpop.f32.mrf.mxu0 }
0x33db   : > { %v4058_v25 = vsel %vm340_vm1, %v4057_v20, 0.0 }
0x33dc   : > { %v4051_v26 = vadd.f32 %v4050_v47, %v4049_v19  ;;  %v4059_v11 = vrot.slane %v4058_v25, 4 }
0x33de   : > { %v4052_v0 = vrot.slane %v4051_v26, 2  ;;  %v4060_v30 = vadd.f32 %v4059_v11, %v4058_v25 }
0x33e0   : > { %v4053_v24 = vadd.f32 %v4052_v0, %v4051_v26  ;;  %v4061_v55 = vrot.slane %v4060_v30, 2 }
0x33e2   : > { %v4054_v28 = vrot.slane %v4053_v24, 1  ;;  %v4062_v33 = vadd.f32 %v4061_v55, %v4060_v30 }
0x33e4   : > { %v4055_v34 = vadd.f32 %v4054_v28, %v4053_v24  ;;  %v4063_v32 = vrot.slane %v4062_v33, 1 }
0x33e6   : > { %v4056_v35 = vmul.f32 0.125, %v4055_v34  ;;  %v4064_v36 = vadd.f32 %v4063_v32, %v4062_v33 }
0x33e8   : > { %v4065_v37 = vmul.f32 0.125, %v4064_v36  ;;  %v4066_v22 = vmul.f32 %v4056_v35, %v4056_v35 }
0x33ea   : > { %v4067_v21 = vsub.f32 %v4065_v37, %v4066_v22 }
0x33ec   : > { %v4068_v43 = vadd.f32 1e-05, %v4067_v21 }
0x33ee   : > { %5993 = vrsqrt.f32 %v4068_v43 }
0x33fb   : > { %v5994_v3 = vpop.eup %5993 }
0x33fc   : > { %v4070_v42 = vmul.f32 %v5994_v3, %v4047_v44 }
0x33fe   : > { %v4071_v12 = vmul.f32 %v4070_v42, %v4056_v35  ;;  %v4076_v1 = vrot.slane %v4070_v42, %v6162_v29 }
0x3400   : > { %v4072_v49 = vsub.f32 %v5572_v46, %v4071_v12  ;;  %v4077_v50 = vmul.f32 %v4076_v1, %v4043_v10 }
0x3402   : > { %v4081_v51 = vrot.slane %v4072_v49, %v6162_v29 }
0x3404   : > { %v4082_v41 = vadd.f32 %v4081_v51, %v4077_v50 }
0x3406   : > { %v6915_v4 = vmul.f32 %v4082_v41, %v3066_v52 }
0x3408   : > { %v4084_v40 = vsel %vm340_vm1, %v6915_v4, -inf }
0x3409   : > { %4085 = vmax.xlane.f32.xlu0 %v4084_v40 }
0x3492   : > { %v4086_v39 = vpop.xlane.xlu0 %4085 }
0x3493   : > { %v5573_v45 = vadd.f32 -1.0, %v4086_v39 }
0x3495   : > { %v4088_v61 = vadd.f32 %v5573_v45, %v4086_v39 }
0x3497   : > { %v4089_v59 = vmul.f32 0.5, %v4088_v61 }
0x3499   : > { %v4090_v56 = vsub.f32 %v6915_v4, %v4089_v59 }
0x349b   : > { %v4091_v62 = vmax.f32 %v4090_v56, 0.0 }
0x349d   : > { %v4092_v63 = vsel %vm340_vm1, %v4091_v62, 0.0 }
0x349e   : > { %4093 = vadd.xlane.f32.xlu1 %v4092_v63 }
0x3527   : > { %v4094_v60 = vpop.xlane.xlu1 %4093 }
0x3528   : > { %vm4095_vm11 = vcmp.gt.f32.partialorder %v4094_v60, 1.0 }
0x3529   : > { %v4096_v31 = vsel %vm4095_vm11, %v4089_v59, %v5573_v45  ;;  %v4097_v6 = vsel %vm4095_vm11, %v4086_v39, %v4089_v59 }
0x352a   : > { %v4098_v7 = vadd.f32 %v4097_v6, %v4096_v31 }
0x352c   : > { %v4099_v8 = vmul.f32 0.5, %v4098_v7 }
0x352e   : > { %v4100_v53 = vsub.f32 %v6915_v4, %v4099_v8 }
0x3530   : > { %v4101_v58 = vmax.f32 %v4100_v53, 0.0 }
0x3532   : > { %v4102_v54 = vsel %vm340_vm1, %v4101_v58, 0.0 }
0x3533   : > { %4103 = vadd.xlane.f32.xlu0 %v4102_v54 }
0x35bc   : > { %v4104_v14 = vpop.xlane.xlu0 %4103 }
0x35bd   : > { %vm4105_vm12 = vcmp.gt.f32.partialorder %v4104_v14, 1.0 }
0x35be   : > { %v4106_v9 = vsel %vm4105_vm12, %v4099_v8, %v4096_v31  ;;  %v4107_v15 = vsel %vm4105_vm12, %v4097_v6, %v4099_v8 }
0x35bf   : > { %v4108_v16 = vadd.f32 %v4107_v15, %v4106_v9 }
0x35c1   : > { %v4109_v17 = vmul.f32 0.5, %v4108_v16 }
0x35c3   : > { %v4110_v18 = vsub.f32 %v6915_v4, %v4109_v17 }
0x35c5   : > { %v4111_v27 = vmax.f32 %v4110_v18, 0.0 }
0x35c7   : > { %v4112_v10 = vsel %vm340_vm1, %v4111_v27, 0.0 }
0x35c8   : > { %4113 = vadd.xlane.f32.xlu1 %v4112_v10 }
0x3651   : > { %v4114_v19 = vpop.xlane.xlu1 %4113 }
0x3652   : > { %vm4115_vm13 = vcmp.gt.f32.partialorder %v4114_v19, 1.0 }
0x3653   : > { %v4116_v20 = vsel %vm4115_vm13, %v4109_v17, %v4106_v9  ;;  %v4117_v47 = vsel %vm4115_vm13, %v4107_v15, %v4109_v17 }
0x3654   : > { %v4118_v23 = vadd.f32 %v4117_v47, %v4116_v20 }
0x3656   : > { %v4119_v25 = vmul.f32 0.5, %v4118_v23 }
0x3658   : > { %v4120_v26 = vsub.f32 %v6915_v4, %v4119_v25 }
0x365a   : > { %v4121_v11 = vmax.f32 %v4120_v26, 0.0 }
0x365c   : > { %v4122_v0 = vsel %vm340_vm1, %v4121_v11, 0.0 }
0x365d   : > { %4123 = vadd.xlane.f32.xlu0 %v4122_v0 }
0x36e6   : > { %v4124_v30 = vpop.xlane.xlu0 %4123 }
0x36e7   : > { %vm4125_vm14 = vcmp.gt.f32.partialorder %v4124_v30, 1.0 }
0x36e8   : > { %v4126_v24 = vsel %vm4125_vm14, %v4119_v25, %v4116_v20  ;;  %v4127_v55 = vsel %vm4125_vm14, %v4117_v47, %v4119_v25 }
0x36e9   : > { %v4128_v28 = vadd.f32 %v4127_v55, %v4126_v24 }
0x36eb   : > { %v4129_v33 = vmul.f32 0.5, %v4128_v28 }
0x36ed   : > { %v4130_v34 = vsub.f32 %v6915_v4, %v4129_v33 }
0x36ef   : > { %v4131_v32 = vmax.f32 %v4130_v34, 0.0 }
0x36f1   : > { %v4132_v35 = vsel %vm340_vm1, %v4131_v32, 0.0 }
0x36f2   : > { %4133 = vadd.xlane.f32.xlu1 %v4132_v35 }
0x377b   : > { %v4134_v36 = vpop.xlane.xlu1 %4133 }
0x377c   : > { %vm4135_vm15 = vcmp.gt.f32.partialorder %v4134_v36, 1.0 }
0x377d   : > { %v4136_v37 = vsel %vm4135_vm15, %v4129_v33, %v4126_v24  ;;  %v4137_v22 = vsel %vm4135_vm15, %v4127_v55, %v4129_v33 }
0x377e   : > { %v4138_v21 = vadd.f32 %v4137_v22, %v4136_v37 }
0x3780   : > { %v4139_v43 = vmul.f32 0.5, %v4138_v21 }
0x3782   : > { %v4140_v44 = vsub.f32 %v6915_v4, %v4139_v43 }
0x3784   : > { %v4141_v3 = vmax.f32 %v4140_v44, 0.0 }
0x3786   : > { %v4142_v42 = vsel %vm340_vm1, %v4141_v3, 0.0 }
0x3787   : > { %4143 = vadd.xlane.f32.xlu0 %v4142_v42 }
0x3810   : > { %v4144_v46 = vpop.xlane.xlu0 %4143 }
0x3811   : > { %vm4145_vm3 = vcmp.gt.f32.partialorder %v4144_v46, 1.0 }
0x3812   : > { %v4146_v12 = vsel %vm4145_vm3, %v4139_v43, %v4136_v37  ;;  %v4147_v1 = vsel %vm4145_vm3, %v4137_v22, %v4139_v43 }
0x3813   : > { %v4148_v48 = vadd.f32 %v4147_v1, %v4146_v12 }
0x3815   : > { %v4149_v49 = vmul.f32 0.5, %v4148_v48 }
0x3817   : > { %v4150_v50 = vsub.f32 %v6915_v4, %v4149_v49 }
0x3819   : > { %v4151_v51 = vmax.f32 %v4150_v50, 0.0 }
0x381b   : > { %v4152_v52 = vsel %vm340_vm1, %v4151_v51, 0.0 }
0x381c   : > { %4153 = vadd.xlane.f32.xlu1 %v4152_v52 }
0x38a5   : > { %v4154_v41 = vpop.xlane.xlu1 %4153 }
0x38a6   : > { %vm4155_vm4 = vcmp.gt.f32.partialorder %v4154_v41, 1.0 }
0x38a7   : > { %v4156_v40 = vsel %vm4155_vm4, %v4149_v49, %v4146_v12  ;;  %v4157_v39 = vsel %vm4155_vm4, %v4147_v1, %v4149_v49 }
0x38a8   : > { %v4158_v45 = vadd.f32 %v4157_v39, %v4156_v40 }
0x38aa   : > { %v4159_v61 = vmul.f32 0.5, %v4158_v45 }
0x38ac   : > { %v4160_v59 = vsub.f32 %v6915_v4, %v4159_v61 }
0x38ae   : > { %v4161_v56 = vmax.f32 %v4160_v59, 0.0 }
0x38b0   : > { %v4162_v62 = vsel %vm340_vm1, %v4161_v56, 0.0 }
0x38b1   : > { %4163 = vadd.xlane.f32.xlu0 %v4162_v62 }
0x393a   : > { %v4164_v63 = vpop.xlane.xlu0 %4163 }
0x393b   : > { %vm4165_vm5 = vcmp.gt.f32.partialorder %v4164_v63, 1.0 }
0x393c   : > { %v4166_v60 = vsel %vm4165_vm5, %v4159_v61, %v4156_v40  ;;  %v4167_v31 = vsel %vm4165_vm5, %v4157_v39, %v4159_v61 }
0x393d   : > { %v4168_v6 = vadd.f32 %v4167_v31, %v4166_v60 }
0x393f   : > { %v4169_v7 = vmul.f32 0.5, %v4168_v6 }
0x3941   : > { %v4170_v8 = vsub.f32 %v6915_v4, %v4169_v7 }
0x3943   : > { %v4171_v53 = vmax.f32 %v4170_v8, 0.0 }
0x3945   : > { %v4172_v58 = vsel %vm340_vm1, %v4171_v53, 0.0 }
0x3946   : > { %4173 = vadd.xlane.f32.xlu1 %v4172_v58 }
0x39cf   : > { %v4174_v54 = vpop.xlane.xlu1 %4173 }
0x39d0   : > { %vm4175_vm6 = vcmp.gt.f32.partialorder %v4174_v54, 1.0 }
0x39d1   : > { %v4176_v14 = vsel %vm4175_vm6, %v4169_v7, %v4166_v60  ;;  %v4177_v9 = vsel %vm4175_vm6, %v4167_v31, %v4169_v7 }
0x39d2   : > { %v4178_v15 = vadd.f32 %v4177_v9, %v4176_v14 }
0x39d4   : > { %v4179_v16 = vmul.f32 0.5, %v4178_v15 }
0x39d6   : > { %v4180_v17 = vsub.f32 %v6915_v4, %v4179_v16 }
0x39d8   : > { %v4181_v18 = vmax.f32 %v4180_v17, 0.0 }
0x39da   : > { %v4182_v27 = vsel %vm340_vm1, %v4181_v18, 0.0 }
0x39db   : > { %4183 = vadd.xlane.f32.xlu0 %v4182_v27 }
0x3a64   : > { %v4184_v10 = vpop.xlane.xlu0 %4183 }
0x3a65   : > { %vm4185_vm7 = vcmp.gt.f32.partialorder %v4184_v10, 1.0 }
0x3a66   : > { %v4186_v19 = vsel %vm4185_vm7, %v4179_v16, %v4176_v14  ;;  %v4187_v20 = vsel %vm4185_vm7, %v4177_v9, %v4179_v16 }
0x3a67   : > { %v4188_v47 = vadd.f32 %v4187_v20, %v4186_v19 }
0x3a69   : > { %v4189_v23 = vmul.f32 0.5, %v4188_v47 }
0x3a6b   : > { %v4190_v25 = vsub.f32 %v6915_v4, %v4189_v23 }
0x3a6d   : > { %v4191_v26 = vmax.f32 %v4190_v25, 0.0 }
0x3a6f   : > { %v4192_v11 = vsel %vm340_vm1, %v4191_v26, 0.0 }
0x3a70   : > { %4193 = vadd.xlane.f32.xlu1 %v4192_v11 }
0x3af9   : > { %v4194_v0 = vpop.xlane.xlu1 %4193 }
0x3afa   : > { %vm4195_vm8 = vcmp.gt.f32.partialorder %v4194_v0, 1.0 }
0x3afb   : > { %v4196_v30 = vsel %vm4195_vm8, %v4189_v23, %v4186_v19  ;;  %v4197_v24 = vsel %vm4195_vm8, %v4187_v20, %v4189_v23 }
0x3afc   : > { %v4198_v55 = vadd.f32 %v4197_v24, %v4196_v30 }
0x3afe   : > { %v4199_v28 = vmul.f32 0.5, %v4198_v55 }
0x3b00   : > { %v4200_v33 = vsub.f32 %v6915_v4, %v4199_v28 }
0x3b02   : > { %v4201_v34 = vmax.f32 %v4200_v33, 0.0 }
0x3b04   : > { %v4202_v32 = vsel %vm340_vm1, %v4201_v34, 0.0 }
0x3b05   : > { %4203 = vadd.xlane.f32.xlu0 %v4202_v32 }
0x3b8e   : > { %v4204_v35 = vpop.xlane.xlu0 %4203 }
0x3b8f   : > { %vm4205_vm9 = vcmp.gt.f32.partialorder %v4204_v35, 1.0 }
0x3b90   : > { %v4206_v36 = vsel %vm4205_vm9, %v4199_v28, %v4196_v30  ;;  %v4207_v37 = vsel %vm4205_vm9, %v4197_v24, %v4199_v28 }
0x3b91   : > { %v4208_v22 = vadd.f32 %v4207_v37, %v4206_v36 }
0x3b93   : > { %v4209_v21 = vmul.f32 0.5, %v4208_v22 }
0x3b95   : > { %v4210_v43 = vsub.f32 %v6915_v4, %v4209_v21 }
0x3b97   : > { %v4211_v44 = vmax.f32 %v4210_v43, 0.0 }
0x3b99   : > { %v4212_v3 = vsel %vm340_vm1, %v4211_v44, 0.0 }
0x3b9a   : > { %4213 = vadd.xlane.f32.xlu1 %v4212_v3 }
0x3c23   : > { %v4214_v42 = vpop.xlane.xlu1 %4213 }
0x3c24   : > { %vm4215_vm10 = vcmp.gt.f32.partialorder %v4214_v42, 1.0 }
0x3c25   : > { %v4216_v46 = vsel %vm4215_vm10, %v4209_v21, %v4206_v36  ;;  %v4217_v12 = vsel %vm4215_vm10, %v4207_v37, %v4209_v21 }
0x3c26   : > { %v4218_v1 = vadd.f32 %v4217_v12, %v4216_v46 }
0x3c28   : > { %v4219_v48 = vmul.f32 0.5, %v4218_v1 }
0x3c2a   : > { %v4220_v49 = vsub.f32 %v6915_v4, %v4219_v48 }
0x3c2c   : > { %v4221_v50 = vmax.f32 %v4220_v49, 0.0 }
0x3c2e   : > { %v4222_v51 = vsel %vm340_vm1, %v4221_v50, 0.0 }
0x3c2f   : > { %4223 = vadd.xlane.f32.xlu0 %v4222_v51 }
0x3cb8   : > { %v4224_v52 = vpop.xlane.xlu0 %4223 }
0x3cb9   : > { %vm4225_vm11 = vcmp.gt.f32.partialorder %v4224_v52, 1.0 }
0x3cba   : > { %v4226_v41 = vsel %vm4225_vm11, %v4219_v48, %v4216_v46  ;;  %v4227_v40 = vsel %vm4225_vm11, %v4217_v12, %v4219_v48 }
0x3cbb   : > { %v4228_v39 = vadd.f32 %v4227_v40, %v4226_v41 }
0x3cbd   : > { %v4229_v45 = vmul.f32 0.5, %v4228_v39 }
0x3cbf   : > { %v4230_v61 = vsub.f32 %v6915_v4, %v4229_v45 }
0x3cc1   : > { %v4231_v59 = vmax.f32 %v4230_v61, 0.0 }
0x3cc3   : > { %v4232_v56 = vsel %vm340_vm1, %v4231_v59, 0.0 }
0x3cc4   : > { %4233 = vadd.xlane.f32.xlu1 %v4232_v56 }
0x3d4d   : > { %v4234_v62 = vpop.xlane.xlu1 %4233 }
0x3d4e   : > { %vm4235_vm12 = vcmp.gt.f32.partialorder %v4234_v62, 1.0 }
0x3d4f   : > { %v4236_v63 = vsel %vm4235_vm12, %v4229_v45, %v4226_v41  ;;  %v4237_v60 = vsel %vm4235_vm12, %v4227_v40, %v4229_v45 }
0x3d50   : > { %v4238_v31 = vadd.f32 %v4237_v60, %v4236_v63 }
0x3d52   : > { %v4239_v6 = vmul.f32 0.5, %v4238_v31 }
0x3d54   : > { %v4240_v7 = vsub.f32 %v6915_v4, %v4239_v6 }
0x3d56   : > { %v4241_v8 = vmax.f32 %v4240_v7, 0.0 }
0x3d58   : > { %v4242_v53 = vsel %vm340_vm1, %v4241_v8, 0.0 }
0x3d59   : > { %4243 = vadd.xlane.f32.xlu0 %v4242_v53 }
0x3de2   : > { %v4244_v58 = vpop.xlane.xlu0 %4243 }
0x3de3   : > { %vm4245_vm13 = vcmp.gt.f32.partialorder %v4244_v58, 1.0 }
0x3de4   : > { %v4246_v54 = vsel %vm4245_vm13, %v4239_v6, %v4236_v63  ;;  %v4247_v14 = vsel %vm4245_vm13, %v4237_v60, %v4239_v6 }
0x3de5   : > { %v4248_v9 = vadd.f32 %v4247_v14, %v4246_v54 }
0x3de7   : > { %v4249_v15 = vmul.f32 0.5, %v4248_v9 }
0x3de9   : > { %v4250_v16 = vsub.f32 %v6915_v4, %v4249_v15 }
0x3deb   : > { %v4251_v17 = vmax.f32 %v4250_v16, 0.0 }
0x3ded   : > { %v4252_v18 = vsel %vm340_vm1, %v4251_v17, 0.0 }
0x3dee   : > { %4253 = vadd.xlane.f32.xlu1 %v4252_v18 }
0x3e77   : > { %v4254_v27 = vpop.xlane.xlu1 %4253 }
0x3e78   : > { %vm4255_vm14 = vcmp.gt.f32.partialorder %v4254_v27, 1.0 }
0x3e79   : > { %v4256_v10 = vsel %vm4255_vm14, %v4249_v15, %v4246_v54  ;;  %v4257_v19 = vsel %vm4255_vm14, %v4247_v14, %v4249_v15 }
0x3e7a   : > { %v4258_v20 = vadd.f32 %v4257_v19, %v4256_v10 }
0x3e7c   : > { %v4259_v47 = vmul.f32 0.5, %v4258_v20 }
0x3e7e   : > { %v4260_v23 = vsub.f32 %v6915_v4, %v4259_v47 }
0x3e80   : > { %v4261_v25 = vmax.f32 %v4260_v23, 0.0 }
0x3e82   : > { %v4262_v26 = vsel %vm340_vm1, %v4261_v25, 0.0 }
0x3e83   : > { %4263 = vadd.xlane.f32.xlu0 %v4262_v26 }
0x3f0c   : > { %v4264_v11 = vpop.xlane.xlu0 %4263 }
0x3f0d   : > { %vm4265_vm15 = vcmp.gt.f32.partialorder %v4264_v11, 1.0 }
0x3f0e   : > { %v4266_v0 = vsel %vm4265_vm15, %v4259_v47, %v4256_v10  ;;  %v4267_v30 = vsel %vm4265_vm15, %v4257_v19, %v4259_v47 }
0x3f0f   : > { %v4268_v24 = vadd.f32 %v4267_v30, %v4266_v0 }
0x3f11   : > { %v4269_v55 = vmul.f32 0.5, %v4268_v24 }
0x3f13   : > { %v4270_v28 = vsub.f32 %v6915_v4, %v4269_v55 }
0x3f15   : > { %v4271_v33 = vmax.f32 %v4270_v28, 0.0 }
0x3f17   : > { %v4272_v34 = vsel %vm340_vm1, %v4271_v33, 0.0 }
0x3f18   : > { %4273 = vadd.xlane.f32.xlu1 %v4272_v34 }
0x3fa1   : > { %v4274_v32 = vpop.xlane.xlu1 %4273 }
0x3fa2   : > { %vm4275_vm3 = vcmp.gt.f32.partialorder %v4274_v32, 1.0 }
0x3fa3   : > { %v4276_v35 = vsel %vm4275_vm3, %v4269_v55, %v4266_v0  ;;  %v4277_v36 = vsel %vm4275_vm3, %v4267_v30, %v4269_v55 }
0x3fa4   : > { %v4278_v37 = vadd.f32 %v4277_v36, %v4276_v35 }
0x3fa6   : > { %v4279_v22 = vmul.f32 0.5, %v4278_v37 }
0x3fa8   : > { %v4280_v21 = vsub.f32 %v6915_v4, %v4279_v22 }
0x3faa   : > { %v4281_v43 = vmax.f32 %v4280_v21, 0.0 }
0x3fac   : > { %v4282_v44 = vsel %vm340_vm1, %v4281_v43, 0.0 }
0x3fad   : > { %4283 = vadd.xlane.f32.xlu0 %v4282_v44 }
0x4036   : > { %v4284_v3 = vpop.xlane.xlu0 %4283 }
0x4037   : > { %vm4285_vm4 = vcmp.gt.f32.partialorder %v4284_v3, 1.0 }
0x4038   : > { %v4286_v42 = vsel %vm4285_vm4, %v4279_v22, %v4276_v35  ;;  %v4287_v46 = vsel %vm4285_vm4, %v4277_v36, %v4279_v22 }
0x4039   : > { %v4288_v12 = vadd.f32 %v4287_v46, %v4286_v42 }
0x403b   : > { %v4289_v1 = vmul.f32 0.5, %v4288_v12 }
0x403d   : > { %v4290_v48 = vsub.f32 %v6915_v4, %v4289_v1 }
0x403f   : > { %v4291_v49 = vmax.f32 %v4290_v48, 0.0 }
0x4041   : > { %v4292_v50 = vsel %vm340_vm1, %v4291_v49, 0.0 }
0x4042   : > { %4293 = vadd.xlane.f32.xlu1 %v4292_v50  ;;  %v1708_v50 = vadd.f32 1e-15, %v6430_v13 }
0x4044   : > { %5995 = vlog2.f32 %v1708_v50 }
0x40cb   : > { %v4294_v51 = vpop.xlane.xlu1 %4293 }
0x40cc   : > { %vm4295_vm5 = vcmp.gt.f32.partialorder %v4294_v51, 1.0 }
0x40cd   : > { %v4296_v52 = vsel %vm4295_vm5, %v4289_v1, %v4286_v42  ;;  %v4297_v41 = vsel %vm4295_vm5, %v4287_v46, %v4289_v1 }
0x40ce   : > { %v4298_v40 = vadd.f32 %v4297_v41, %v4296_v52 }
0x40d0   : > { %v4299_v39 = vmul.f32 0.5, %v4298_v40 }
0x40d2   : > { %v4300_v45 = vsub.f32 %v6915_v4, %v4299_v39 }
0x40d4   : > { %v4301_v61 = vmax.f32 %v4300_v45, 0.0 }
0x40d6   : > { %v4302_v59 = vsel %vm340_vm1, %v4301_v61, 0.0 }
0x40d7   : > { %4303 = vadd.xlane.f32.xlu0 %v4302_v59 }
0x4160   : > { %v4304_v56 = vpop.xlane.xlu0 %4303 }
0x4161   : > { %vm4305_vm6 = vcmp.gt.f32.partialorder %v4304_v56, 1.0 }
0x4162   : > { %v4306_v62 = vsel %vm4305_vm6, %v4299_v39, %v4296_v52  ;;  %v4307_v63 = vsel %vm4305_vm6, %v4297_v41, %v4299_v39  ;;  %v5996_v39 = vpop.eup %5995 }
0x4163   : > { %v4308_v60 = vadd.f32 %v4307_v63, %v4306_v62  ;;  %v1710_v59 = vmul.f32 0.6931472, %v5996_v39 }
0x4165   : > { %v4309_v31 = vmul.f32 0.5, %v4308_v60 }
0x4167   : > { %v4310_v6 = vsub.f32 %v6915_v4, %v4309_v31 }
0x4169   : > { %v4311_v7 = vmax.f32 %v4310_v6, 0.0 }
0x416b   : > { %v4312_v8 = vsel %vm340_vm1, %v4311_v7, 0.0 }
0x416c   : > { %4313 = vadd.xlane.f32.xlu1 %v4312_v8 }
0x41f5   : > { %v4314_v53 = vpop.xlane.xlu1 %4313 }
0x41f6   : > { %vm4315_vm7 = vcmp.gt.f32.partialorder %v4314_v53, 1.0 }
0x41f7   : > { %v4316_v58 = vsel %vm4315_vm7, %v4309_v31, %v4306_v62  ;;  %v4317_v54 = vsel %vm4315_vm7, %v4307_v63, %v4309_v31  ;;  %v1711_v63 = vmul.f32 %v1710_v59, %v6430_v13  ;;  %v3050_v31 = vadd.f32 1e-15, %v6705_v5 }
0x41f8   : > { %v4318_v14 = vadd.f32 %v4317_v54, %v4316_v58 }
0x41f9   : > { %v1712_v60 = vsel %vm340_vm1, %v1711_v63, 0.0  ;;  %5997 = vlog2.f32 %v3050_v31 }
0x41fa   : > { %v4319_v9 = vmul.f32 0.5, %v4318_v14 }
0x41fc   : > { %v4320_v15 = vsub.f32 %v6915_v4, %v4319_v9 }
0x41fe   : > { %v4321_v16 = vmax.f32 %v4320_v15, 0.0 }
0x4200   : > { %v4322_v17 = vsel %vm340_vm1, %v4321_v16, 0.0 }
0x4201   : > { %4323 = vadd.xlane.f32.xlu0 %v4322_v17 }
0x428a   : > { %v4324_v18 = vpop.xlane.xlu0 %4323 }
0x428b   : > { %vm4325_vm8 = vcmp.gt.f32.partialorder %v4324_v18, 1.0 }
0x428c   : > { %v4326_v27 = vsel %vm4325_vm8, %v4319_v9, %v4316_v58  ;;  %v4327_v10 = vsel %vm4325_vm8, %v4317_v54, %v4319_v9  ;;  %v5998_v58 = vpop.eup %5997 }
0x428d   : > { %v4328_v19 = vadd.f32 %v4327_v10, %v4326_v27  ;;  %v3052_v9 = vmul.f32 0.6931472, %v5998_v58 }
0x428f   : > { %v4329_v20 = vmul.f32 0.5, %v4328_v19  ;;  %v3053_v16 = vmul.f32 %v3052_v9, %v6705_v5  ;;  %v6045_v5 = vld [vmem:[%s7172_s3 + $0x48] sm:$0xff] }
0x4291   : > { %v4330_v47 = vsub.f32 %v6915_v4, %v4329_v20  ;;  %v3054_v17 = vsel %vm340_vm1, %v3053_v16, 0.0 }
0x4293   : > { %v4331_v23 = vmax.f32 %v4330_v47, 0.0 }
0x4295   : > { %v4332_v25 = vsel %vm340_vm1, %v4331_v23, 0.0 }
0x4296   : > { %4333 = vadd.xlane.f32.xlu1 %v4332_v25 }
0x431f   : > { %v4334_v26 = vpop.xlane.xlu1 %4333 }
0x4320   : > { %vm4335_vm9 = vcmp.gt.f32.partialorder %v4334_v26, 1.0 }
0x4321   : > { %v4336_v11 = vsel %vm4335_vm9, %v4329_v20, %v4326_v27  ;;  %v4337_v0 = vsel %vm4335_vm9, %v4327_v10, %v4329_v20 }
0x4322   : > { %v4338_v30 = vadd.f32 %v4337_v0, %v4336_v11 }
0x4324   : > { %v4339_v24 = vmul.f32 0.5, %v4338_v30 }
0x4326   : > { %v4340_v55 = vsub.f32 %v6915_v4, %v4339_v24 }
0x4328   : > { %v4341_v28 = vmax.f32 %v4340_v55, 0.0 }
0x432a   : > { %v4342_v33 = vsel %vm340_vm1, %v4341_v28, 0.0 }
0x432b   : > { %4343 = vadd.xlane.f32.xlu0 %v4342_v33 }
0x43b4   : > { %v4344_v34 = vpop.xlane.xlu0 %4343 }
0x43b5   : > { %vm4345_vm10 = vcmp.gt.f32.partialorder %v4344_v34, 1.0 }
0x43b6   : > { %v4346_v32 = vsel %vm4345_vm10, %v4339_v24, %v4336_v11  ;;  %v4347_v35 = vsel %vm4345_vm10, %v4337_v0, %v4339_v24  ;;  %v6046_v11 = vld [vmem:[%s7172_s3] sm:$0xff] }
0x43b7   : > { %v4348_v36 = vadd.f32 %v4347_v35, %v4346_v32 }
0x43b9   : > { %v4349_v37 = vmul.f32 0.5, %v4348_v36 }
0x43bb   : > { %v4350_v22 = vsub.f32 %v6915_v4, %v4349_v37 }
0x43bd   : > { %v4351_v21 = vmax.f32 %v4350_v22, 0.0 }
0x43bf   : > { %v4352_v43 = vsel %vm340_vm1, %v4351_v21, 0.0 }
0x43c0   : > { %4353 = vadd.xlane.f32.xlu1 %v4352_v43 }
0x4449   : > { %v4354_v44 = vpop.xlane.xlu1 %4353 }
0x444a   : > { %vm4355_vm11 = vcmp.gt.f32.partialorder %v4354_v44, 1.0 }
0x444b   : > { %v4356_v3 = vsel %vm4355_vm11, %v4349_v37, %v4346_v32  ;;  %v4357_v42 = vsel %vm4355_vm11, %v4347_v35, %v4349_v37 }
0x444c   : > { %v4358_v46 = vadd.f32 %v4357_v42, %v4356_v3 }
0x444e   : > { %v4359_v12 = vmul.f32 0.5, %v4358_v46 }
0x4450   : > { %v4360_v1 = vsub.f32 %v6915_v4, %v4359_v12 }
0x4452   : > { %v4361_v48 = vmax.f32 %v4360_v1, 0.0 }
0x4454   : > { %v4362_v49 = vsel %vm340_vm1, %v4361_v48, 0.0 }
0x4455   : > { %4363 = vadd.xlane.f32.xlu0 %v4362_v49 }
0x44de   : > { %v4364_v51 = vpop.xlane.xlu0 %4363 }
0x44df   : > { %vm4365_vm12 = vcmp.gt.f32.partialorder %v4364_v51, 1.0 }
0x44e0   : > { %v4366_v52 = vsel %vm4365_vm12, %v4359_v12, %v4356_v3  ;;  %v4367_v41 = vsel %vm4365_vm12, %v4357_v42, %v4359_v12 }
0x44e1   : > { %v4368_v40 = vadd.f32 %v4367_v41, %v4366_v52 }
0x44e3   : > { %v4369_v45 = vmul.f32 0.5, %v4368_v40 }
0x44e5   : > { %v4370_v61 = vsub.f32 %v6915_v4, %v4369_v45 }
0x44e7   : > { %v4371_v56 = vmax.f32 %v4370_v61, 0.0 }
0x44e9   : > { %v4372_v62 = vsel %vm340_vm1, %v4371_v56, 0.0 }
0x44ea   : > { %4373 = vadd.xlane.f32.xlu1 %v4372_v62 }
0x44ee   : > { %1713 = vadd.xlane.f32.xlu1 %v1712_v60 }
0x4573   : > { %v4374_v6 = vpop.xlane.xlu1 %4373 }
0x4574   : > { %vm4375_vm13 = vcmp.gt.f32.partialorder %v4374_v6, 1.0 }
0x4575   : > { %v4376_v7 = vsel %vm4375_vm13, %v4369_v45, %v4366_v52  ;;  %v4377_v8 = vsel %vm4375_vm13, %v4367_v41, %v4369_v45 }
0x4576   : > { %v4378_v53 = vadd.f32 %v4377_v8, %v4376_v7 }
0x4577   : > { %v1714_v55 = vpop.xlane.xlu1 %1713 }
0x4578   : > { %v4379_v54 = vmul.f32 0.5, %v4378_v53  ;;  %v1715_v33 = vrot.slane %v1714_v55, 4 }
0x457a   : > { %v4380_v14 = vsub.f32 %v6915_v4, %v4379_v54  ;;  %v1716_v32 = vadd.f32 %v1715_v33, %v1714_v55 }
0x457c   : > { %v4381_v15 = vmax.f32 %v4380_v14, 0.0  ;;  %v1717_v36 = vrot.slane %v1716_v32, 2 }
0x457e   : > { %v4382_v13 = vsel %vm340_vm1, %v4381_v15, 0.0  ;;  %v1718_v22 = vadd.f32 %v1717_v36, %v1716_v32 }
0x457f   : > { %4383 = vadd.xlane.f32.xlu0 %v4382_v13 }
0x4580   : > { %v1719_v3 = vrot.slane %v1718_v22, 1 }
0x4582   : > { %v1720_v1 = vadd.f32 %v1719_v3, %v1718_v22 }
0x4583   : > { %3055 = vadd.xlane.f32.xlu0 %v3054_v17 }
0x4584   : > { %v1722_v51 = vmul.f32 0.125, %v1720_v1 }
0x4608   : > { %v4384_v18 = vpop.xlane.xlu0 %4383 }
0x4609   : > { %vm4385_vm14 = vcmp.gt.f32.partialorder %v4384_v18, 1.0 }
0x460a   : > { %v4386_v27 = vsel %vm4385_vm14, %v4379_v54, %v4376_v7  ;;  %v4387_v10 = vsel %vm4385_vm14, %v4377_v8, %v4379_v54 }
0x460b   : > { %v4388_v19 = vadd.f32 %v4387_v10, %v4386_v27 }
0x460c   : > { %v3056_v24 = vpop.xlane.xlu0 %3055 }
0x460d   : > { %v4389_v20 = vmul.f32 0.5, %v4388_v19  ;;  %v3057_v28 = vrot.slane %v3056_v24, 4 }
0x460f   : > { %v4390_v47 = vsub.f32 %v6915_v4, %v4389_v20  ;;  %v3058_v34 = vadd.f32 %v3057_v28, %v3056_v24 }
0x4611   : > { %v4391_v23 = vmax.f32 %v4390_v47, 0.0  ;;  %v3059_v35 = vrot.slane %v3058_v34, 2 }
0x4613   : > { %v4407_v25 = vmul.f32 %v4391_v23, %v6169_v38  ;;  %v4392_v26 = vadd.f32 1e-15, %v4391_v23  ;;  %v3060_v37 = vadd.f32 %v3059_v35, %v3058_v34 }
0x4615   : > { %5837 = vmatmul.mubr.msk.f32.vlgmr.msra.gmra.mxu1 %vm340_vm1, %v4407_v25  ;;  %5844 = vmatmul.mubr.msk.f32.vlgmr.msra.gmra.mxu0 %vm340_vm1, %v4407_v25  ;;  %5999 = vlog2.f32 %v4392_v26  ;;  %v3061_v43 = vrot.slane %v3060_v37, 1 }
0x4616   : > { %5852 = vmatpush3.msra.mxu0 %v6045_v5  ;;  %5847 = vmatpush3.msra.mxu1 %v6046_v11 }
0x4617   : > { %5848 = vmatprep.mubr.msk.f32.mxu1 %vm6056_vm0, %v6055_v2  ;;  %5853 = vmatprep.mubr.msk.f32.mxu0 %vm6056_vm0, %v6055_v2  ;;  %v3062_v46 = vadd.f32 %v3061_v43, %v3060_v37  ;;  %v5577_v37 = vld [vmem:[%s7173_s4 + $0x1c] sm:$0x1] }
0x4618   : > { %5861 = vmatprep.subr.mxu0 %v6055_v2  ;;  %5856 = vmatprep.subr.mxu1 %v6055_v2 }
0x4619   : > { %v3063_v49 = vmul.f32 0.125, %v3062_v46 }
0x461b   : > { %v3064_v41 = vadd.f32 %v3063_v49, %v1722_v51 }
0x4622   : > { %v6000_v38 = vpop.eup %5999 }
0x4623   : > { %v4394_v4 = vmul.f32 0.6931472, %v6000_v38 }
0x4625   : > { %v4395_v0 = vmul.f32 %v4394_v4, %v4391_v23 }
0x4627   : > { %v4396_v30 = vsel %vm340_vm1, %v4395_v0, 0.0  ;;  %vm5389_vm1 = vcmask 0  }
0x4628   : > { %4397 = vadd.xlane.f32.xlu1 %v4396_v30 }
0x46b1   : > { %v4398_v21 = vpop.xlane.xlu1 %4397 }
0x46b2   : > { %v4399_v44 = vrot.slane %v4398_v21, 4 }
0x46b4   : > { %v4400_v42 = vadd.f32 %v4399_v44, %v4398_v21  ;;  %v5578_v44 = vld [vmem:[%s7173_s4 + $0x3c] sm:$0x1] }
0x46b6   : > { %v4401_v12 = vrot.slane %v4400_v42, 2 }
0x46b8   : > { %v4402_v48 = vadd.f32 %v4401_v12, %v4400_v42 }
0x46ba   : > { %v4403_v50 = vrot.slane %v4402_v48, 1 }
0x46bc   : > { %v4404_v52 = vadd.f32 %v4403_v50, %v4402_v48 }
0x46be   : > { %v4405_v40 = vmul.f32 0.125, %v4404_v52  ;;  %v4551_v52 = vld [vmem:[%s7173_s4 + $0xc] sm:$0x1] }
0x46c0   : > { %v4406_v39 = vadd.f32 %v4405_v40, %v3064_v41 }
0x46c2   : > { %v5312_v45 = vmul.f32 0.33333334, %v4406_v39 }
0x46c4   : > { %5390 = vst.msk [vmem:[%s336_s18] sm:$0x1] %vm5389_vm1, %v5312_v45 }
0x46d5   : > { %v7006_v61 = vpop.f32.mrf.mxu1  ;;  %v4547_v59 = vpop.f32.mrf.mxu0 }
0x46d6   : > { %v4589_v56 = vsel %vm526_vm2, %v4547_v59, 0.0  ;;  %v4597_v62 = vmul.f32 %v4547_v59, %v4547_v59  ;;  %v4553_v63 = vsel %vm526_vm2, %v7006_v61, 0.0  ;;  %v4561_v60 = vmul.f32 %v7006_v61, %v7006_v61 }
0x46d7   : > { %v4590_v31 = vrot.slane %v4589_v56, 4  ;;  %v5838_v6 = vpop.f32.mrf.mxu1  ;;  %v5845_v7 = vpop.f32.mrf.mxu0  ;;  %v4554_v54 = vrot.slane %v4553_v63, 4 }
0x46d8   : > { %v4598_v8 = vsel %vm526_vm2, %v4597_v62, 0.0  ;;  %v4562_v14 = vsel %vm526_vm2, %v4561_v60, 0.0 }
0x46d9   : > { %v4591_v53 = vadd.f32 %v4590_v31, %v4589_v56  ;;  %v4599_v58 = vrot.slane %v4598_v8, 4  ;;  %v4555_v17 = vadd.f32 %v4554_v54, %v4553_v63  ;;  %v4563_v18 = vrot.slane %v4562_v14, 4 }
0x46db   : > { %v4592_v9 = vrot.slane %v4591_v53, 2  ;;  %v4600_v15 = vadd.f32 %v4599_v58, %v4598_v8  ;;  %v4556_v47 = vrot.slane %v4555_v17, 2  ;;  %v4564_v23 = vadd.f32 %v4563_v18, %v4562_v14  ;;  %v5586_v8 = vld [vmem:[%s7172_s3 + $0x38] sm:$0xff] }
0x46dd   : > { %v4593_v13 = vadd.f32 %v4592_v9, %v4591_v53  ;;  %v4601_v16 = vrot.slane %v4600_v15, 2  ;;  %v4557_v38 = vadd.f32 %v4556_v47, %v4555_v17  ;;  %v4565_v4 = vrot.slane %v4564_v23, 2 }
0x46df   : > { %v4594_v27 = vrot.slane %v4593_v13, 1  ;;  %v4602_v10 = vadd.f32 %v4601_v16, %v4600_v15  ;;  %v4558_v24 = vrot.slane %v4557_v38, 1  ;;  %v4566_v55 = vadd.f32 %v4565_v4, %v4564_v23 }
0x46e1   : > { %v4595_v19 = vadd.f32 %v4594_v27, %v4593_v13  ;;  %v4603_v20 = vrot.slane %v4602_v10, 1  ;;  %v4559_v28 = vadd.f32 %v4558_v24, %v4557_v38  ;;  %v4567_v33 = vrot.slane %v4566_v55, 1 }
0x46e3   : > { %v4596_v25 = vmul.f32 0.125, %v4595_v19  ;;  %v4604_v26 = vadd.f32 %v4603_v20, %v4602_v10  ;;  %v4560_v34 = vmul.f32 0.125, %v4559_v28  ;;  %v4568_v32 = vadd.f32 %v4567_v33, %v4566_v55 }
0x46e5   : > { %v4605_v5 = vmul.f32 0.125, %v4604_v26  ;;  %v4606_v11 = vmul.f32 %v4596_v25, %v4596_v25  ;;  %v4569_v35 = vmul.f32 0.125, %v4568_v32  ;;  %v4570_v36 = vmul.f32 %v4560_v34, %v4560_v34 }
0x46e7   : > { %v4607_v0 = vsub.f32 %v4605_v5, %v4606_v11  ;;  %v4571_v21 = vsub.f32 %v4569_v35, %v4570_v36 }
0x46e9   : > { %v4608_v30 = vadd.f32 1e-05, %v4607_v0  ;;  %v4572_v46 = vadd.f32 1e-05, %v4571_v21 }
0x46eb   : > { %6001 = vrsqrt.f32 %v4608_v30 }
0x46ec   : > { %6003 = vrsqrt.f32 %v4572_v46 }
0x46f8   : > { %v6002_v22 = vpop.eup %6001 }
0x46f9   : > { %v4610_v43 = vmul.f32 %v6002_v22, %v5577_v37  ;;  %v6004_v51 = vpop.eup %6003 }
0x46fa   : > { %v4574_v41 = vmul.f32 %v6004_v51, %v4551_v52  ;;  %v5584_v52 = vld [vmem:[%s7173_s4 + $0x3d] sm:$0x1] }
0x46fb   : > { %v4611_v3 = vmul.f32 %v4610_v43, %v4596_v25  ;;  %v4616_v42 = vrot.slane %v4610_v43, %v6162_v29 }
0x46fc   : > { %v4575_v45 = vmul.f32 %v4574_v41, %v4560_v34  ;;  %v4580_v62 = vrot.slane %v4574_v41, %v6162_v29 }
0x46fd   : > { %v4612_v12 = vsub.f32 %v5578_v44, %v4611_v3  ;;  %v4617_v1 = vmul.f32 %v4616_v42, %v4547_v59  ;;  %v5576_v59 = vld [vmem:[%s7173_s4 + $0x2c] sm:$0x1] }
0x46fe   : > { %v4576_v56 = vsub.f32 %v5576_v59, %v4575_v45  ;;  %v4581_v60 = vmul.f32 %v4580_v62, %v7006_v61  ;;  %v5587_v61 = vld [vmem:[%s7172_s3 + $0x80] sm:$0xff] }
0x46ff   : > { %v4621_v48 = vrot.slane %v4612_v12, %v6162_v29 }
0x4700   : > { %v4585_v63 = vrot.slane %v4576_v56, %v6162_v29 }
0x4701   : > { %v4622_v49 = vadd.f32 %v4621_v48, %v4617_v1  ;;  %v5583_v48 = vld [vmem:[%s7173_s4 + $0x1d] sm:$0x1] }
0x4702   : > { %v4586_v31 = vadd.f32 %v4585_v63, %v4581_v60 }
0x4703   : > { %v5579_v50 = vmul.f32 -1.442695, %v4622_v49 }
0x4705   : > { %6005 = vpow2.f32 %v5579_v50 }
0x4712   : > { %v6006_v40 = vpop.eup %6005 }
0x4713   : > { %v4626_v39 = vadd.f32 1.0, %v6006_v40 }
0x4715   : > { %6007 = vrcp.f32 %v4626_v39 }
0x4722   : > { %v6008_v6 = vpop.eup %6007 }
0x4723   : > { %v7032_v7 = vmul.f32 %v6008_v6, %v4586_v31  ;;  %v4773_v31 = vld [vmem:[%s7173_s4 + $0xd] sm:$0x1] }
0x4725   : > { %5849 = vmatmul.mubr.msk.f32.vlgmr.msra.gmra.mxu1 %vm526_vm2, %v7032_v7  ;;  %5854 = vmatmul.mubr.msk.f32.vlgmr.msra.gmra.mxu0 %vm526_vm2, %v7032_v7 }
0x4726   : > { %5858 = vmatprep.mubr.msk.f32.mxu1 %vm6056_vm0, %v6055_v2  ;;  %5863 = vmatprep.mubr.msk.f32.mxu0 %vm6056_vm0, %v6055_v2 }
0x4727   : > { %5862 = vmatpush3.msra.mxu0 %v5587_v61  ;;  %5857 = vmatpush3.msra.mxu1 %v5586_v8 }
0x4728   : > { %5871 = vmatprep.subr.mxu0 %v6055_v2  ;;  %5866 = vmatprep.subr.mxu1 %v6055_v2 }
0x47e5   : > { %v7050_v53 = vpop.f32.mrf.mxu1  ;;  %v4769_v58 = vpop.f32.mrf.mxu0 }
0x47e6   : > { %v4811_v54 = vsel %vm526_vm2, %v4769_v58, 0.0  ;;  %v4819_v14 = vmul.f32 %v4769_v58, %v4769_v58  ;;  %v4775_v9 = vsel %vm526_vm2, %v7050_v53, 0.0  ;;  %v4783_v15 = vmul.f32 %v7050_v53, %v7050_v53 }
0x47e7   : > { %v4812_v13 = vrot.slane %v4811_v54, 4  ;;  %v5850_v16 = vpop.f32.mrf.mxu1  ;;  %v5855_v17 = vpop.f32.mrf.mxu0  ;;  %v4776_v19 = vrot.slane %v4775_v9, 4 }
0x47e8   : > { %v4820_v18 = vsel %vm526_vm2, %v4819_v14, 0.0  ;;  %v4784_v20 = vsel %vm526_vm2, %v4783_v15, 0.0 }
0x47e9   : > { %v4813_v27 = vadd.f32 %v4812_v13, %v4811_v54  ;;  %v4821_v10 = vrot.slane %v4820_v18, 4  ;;  %v4777_v5 = vadd.f32 %v4776_v19, %v4775_v9  ;;  %v4785_v11 = vrot.slane %v4784_v20, 4 }
0x47eb   : > { %v4814_v47 = vrot.slane %v4813_v27, 2  ;;  %v4822_v23 = vadd.f32 %v4821_v10, %v4820_v18  ;;  %v4778_v24 = vrot.slane %v4777_v5, 2  ;;  %v4786_v55 = vadd.f32 %v4785_v11, %v4784_v20 }
0x47ed   : > { %v4815_v25 = vadd.f32 %v4814_v47, %v4813_v27  ;;  %v4823_v26 = vrot.slane %v4822_v23, 2  ;;  %v4779_v35 = vadd.f32 %v4778_v24, %v4777_v5  ;;  %v4787_v36 = vrot.slane %v4786_v55, 2 }
0x47ef   : > { %v4816_v38 = vrot.slane %v4815_v25, 1  ;;  %v4824_v4 = vadd.f32 %v4823_v26, %v4822_v23  ;;  %v4780_v21 = vrot.slane %v4779_v35, 1  ;;  %v4788_v43 = vadd.f32 %v4787_v36, %v4786_v55 }
0x47f1   : > { %v4817_v0 = vadd.f32 %v4816_v38, %v4815_v25  ;;  %v4825_v30 = vrot.slane %v4824_v4, 1  ;;  %v4781_v44 = vadd.f32 %v4780_v21, %v4779_v35  ;;  %v4789_v3 = vrot.slane %v4788_v43, 1 }
0x47f3   : > { %v4818_v28 = vmul.f32 0.125, %v4817_v0  ;;  %v4826_v33 = vadd.f32 %v4825_v30, %v4824_v4  ;;  %v4782_v42 = vmul.f32 0.125, %v4781_v44  ;;  %v4790_v46 = vadd.f32 %v4789_v3, %v4788_v43 }
0x47f5   : > { %v4827_v34 = vmul.f32 0.125, %v4826_v33  ;;  %v4828_v32 = vmul.f32 %v4818_v28, %v4818_v28  ;;  %v4791_v12 = vmul.f32 0.125, %v4790_v46  ;;  %v4792_v1 = vmul.f32 %v4782_v42, %v4782_v42 }
0x47f7   : > { %v4829_v37 = vsub.f32 %v4827_v34, %v4828_v32  ;;  %v4793_v50 = vsub.f32 %v4791_v12, %v4792_v1 }
0x47f9   : > { %v4830_v22 = vadd.f32 1e-05, %v4829_v37  ;;  %v4794_v39 = vadd.f32 1e-05, %v4793_v50 }
0x47fb   : > { %6009 = vrsqrt.f32 %v4830_v22 }
0x47fc   : > { %6011 = vrsqrt.f32 %v4794_v39 }
0x4808   : > { %v6010_v49 = vpop.eup %6009 }
0x4809   : > { %v4832_v51 = vmul.f32 %v6010_v49, %v5583_v48  ;;  %v6012_v60 = vpop.eup %6011 }
0x480a   : > { %v4796_v6 = vmul.f32 %v6012_v60, %v4773_v31 }
0x480b   : > { %v4833_v41 = vmul.f32 %v4832_v51, %v4818_v28  ;;  %v4838_v40 = vrot.slane %v4832_v51, %v6162_v29 }
0x480c   : > { %v4797_v54 = vmul.f32 %v4796_v6, %v4782_v42  ;;  %v4802_v9 = vrot.slane %v4796_v6, %v6162_v29 }
0x480d   : > { %v4834_v45 = vsub.f32 %v5584_v52, %v4833_v41  ;;  %v4839_v59 = vmul.f32 %v4838_v40, %v4769_v58  ;;  %v5582_v58 = vld [vmem:[%s7173_s4 + $0x2d] sm:$0x1] }
0x480e   : > { %v4798_v14 = vsub.f32 %v5582_v58, %v4797_v54  ;;  %v4803_v13 = vmul.f32 %v4802_v9, %v7050_v53  ;;  %v5595_v53 = vld [vmem:[%s7172_s3 + $0x88] sm:$0xff] }
0x480f   : > { %v4843_v56 = vrot.slane %v4834_v45, %v6162_v29 }
0x4810   : > { %v4807_v15 = vrot.slane %v4798_v14, %v6162_v29 }
0x4811   : > { %v4844_v62 = vadd.f32 %v4843_v56, %v4839_v59 }
0x4812   : > { %v4808_v16 = vadd.f32 %v4807_v15, %v4803_v13 }
0x4813   : > { %v5585_v63 = vmul.f32 -1.442695, %v4844_v62 }
0x4815   : > { %6013 = vpow2.f32 %v5585_v63  ;;  %v5591_v63 = vld [vmem:[%s7173_s4 + $0x1e] sm:$0x1] }
0x4822   : > { %v6014_v61 = vpop.eup %6013 }
0x4823   : > { %v4848_v8 = vadd.f32 1.0, %v6014_v61  ;;  %v5592_v61 = vld [vmem:[%s7173_s4 + $0x3e] sm:$0x1] }
0x4825   : > { %6015 = vrcp.f32 %v4848_v8 }
0x4832   : > { %v6016_v17 = vpop.eup %6015 }
0x4833   : > { %v4851_v18 = vmul.f32 %v6016_v17, %v4808_v16 }
0x4835   : > { %v4852_v27 = vadd.f32 %v4851_v18, %v7032_v7  ;;  %v5594_v7 = vld [vmem:[%s7172_s3 + $0x40] sm:$0xff]  ;;  %v5001_v18 = vld [vmem:[%s7173_s4 + $0xe] sm:$0x1] }
0x4837   : > { %v7077_v10 = vmul.f32 0.70710677, %v4852_v27 }
0x4839   : > { %5859 = vmatmul.mubr.msk.f32.vlgmr.msra.gmra.mxu1 %vm526_vm2, %v7077_v10  ;;  %5864 = vmatmul.mubr.msk.f32.vlgmr.msra.gmra.mxu0 %vm526_vm2, %v7077_v10 }
0x483a   : > { %5868 = vmatprep.mubr.msk.f32.mxu1 %vm6056_vm0, %v6055_v2  ;;  %5873 = vmatprep.mubr.msk.f32.mxu0 %vm6056_vm0, %v6055_v2 }
0x483b   : > { %5872 = vmatpush3.msra.mxu0 %v5595_v53  ;;  %5867 = vmatpush3.msra.mxu1 %v5594_v7 }
0x483c   : > { %5876 = vmatprep.subr.mxu1 %v6055_v2 }
0x48f9   : > { %v7094_v19 = vpop.f32.mrf.mxu1  ;;  %v4997_v20 = vpop.f32.mrf.mxu0 }
0x48fa   : > { %v5039_v47 = vsel %vm526_vm2, %v4997_v20, 0.0  ;;  %v5047_v23 = vmul.f32 %v4997_v20, %v4997_v20  ;;  %v5003_v25 = vsel %vm526_vm2, %v7094_v19, 0.0  ;;  %v5011_v26 = vmul.f32 %v7094_v19, %v7094_v19 }
0x48fb   : > { %v5040_v5 = vrot.slane %v5039_v47, 4  ;;  %v5860_v11 = vpop.f32.mrf.mxu1  ;;  %v5865_v38 = vpop.f32.mrf.mxu0  ;;  %v5004_v24 = vrot.slane %v5003_v25, 4 }
0x48fc   : > { %v5048_v4 = vsel %vm526_vm2, %v5047_v23, 0.0  ;;  %v5012_v55 = vsel %vm526_vm2, %v5011_v26, 0.0 }
0x48fd   : > { %v5041_v0 = vadd.f32 %v5040_v5, %v5039_v47  ;;  %v5049_v30 = vrot.slane %v5048_v4, 4  ;;  %v5005_v35 = vadd.f32 %v5004_v24, %v5003_v25  ;;  %v5013_v36 = vrot.slane %v5012_v55, 4 }
0x48ff   : > { %v5042_v28 = vrot.slane %v5041_v0, 2  ;;  %v5050_v33 = vadd.f32 %v5049_v30, %v5048_v4  ;;  %v5006_v44 = vrot.slane %v5005_v35, 2  ;;  %v5014_v3 = vadd.f32 %v5013_v36, %v5012_v55 }
0x4901   : > { %v5043_v34 = vadd.f32 %v5042_v28, %v5041_v0  ;;  %v5051_v32 = vrot.slane %v5050_v33, 2  ;;  %v5007_v48 = vadd.f32 %v5006_v44, %v5005_v35  ;;  %v5015_v49 = vrot.slane %v5014_v3, 2 }
0x4903   : > { %v5044_v37 = vrot.slane %v5043_v34, 1  ;;  %v5052_v22 = vadd.f32 %v5051_v32, %v5050_v33  ;;  %v5008_v52 = vrot.slane %v5007_v48, 1  ;;  %v5016_v41 = vadd.f32 %v5015_v49, %v5014_v3 }
0x4905   : > { %v5045_v21 = vadd.f32 %v5044_v37, %v5043_v34  ;;  %v5053_v43 = vrot.slane %v5052_v22, 1  ;;  %v5009_v40 = vadd.f32 %v5008_v52, %v5007_v48  ;;  %v5017_v39 = vrot.slane %v5016_v41, 1 }
0x4907   : > { %v5046_v42 = vmul.f32 0.125, %v5045_v21  ;;  %v5054_v46 = vadd.f32 %v5053_v43, %v5052_v22  ;;  %v5010_v45 = vmul.f32 0.125, %v5009_v40  ;;  %v5018_v59 = vadd.f32 %v5017_v39, %v5016_v41 }
0x4909   : > { %v5055_v12 = vmul.f32 0.125, %v5054_v46  ;;  %v5056_v1 = vmul.f32 %v5046_v42, %v5046_v42  ;;  %v5019_v56 = vmul.f32 0.125, %v5018_v59  ;;  %v5020_v62 = vmul.f32 %v5010_v45, %v5010_v45 }
0x490b   : > { %v5057_v50 = vsub.f32 %v5055_v12, %v5056_v1  ;;  %v5021_v31 = vsub.f32 %v5019_v56, %v5020_v62 }
0x490d   : > { %v5058_v51 = vadd.f32 1e-05, %v5057_v50  ;;  %v5022_v58 = vadd.f32 1e-05, %v5021_v31 }
0x490f   : > { %6017 = vrsqrt.f32 %v5058_v51 }
0x4910   : > { %6019 = vrsqrt.f32 %v5022_v58 }
0x491c   : > { %v6018_v60 = vpop.eup %6017 }
0x491d   : > { %v5060_v6 = vmul.f32 %v6018_v60, %v5591_v63  ;;  %v6020_v17 = vpop.eup %6019 }
0x491e   : > { %v5024_v27 = vmul.f32 %v6020_v17, %v5001_v18  ;;  %v5600_v18 = vld [vmem:[%s7173_s4 + $0x3f] sm:$0x1] }
0x491f   : > { %v5061_v8 = vmul.f32 %v5060_v6, %v5046_v42  ;;  %v5066_v54 = vrot.slane %v5060_v6, %v6162_v29 }
0x4920   : > { %v5025_v47 = vmul.f32 %v5024_v27, %v5010_v45  ;;  %v5030_v25 = vrot.slane %v5024_v27, %v6162_v29 }
0x4921   : > { %v5062_v14 = vsub.f32 %v5592_v61, %v5061_v8  ;;  %v5067_v9 = vmul.f32 %v5066_v54, %v4997_v20  ;;  %v5590_v20 = vld [vmem:[%s7173_s4 + $0x2e] sm:$0x1] }
0x4922   : > { %v5026_v23 = vsub.f32 %v5590_v20, %v5025_v47  ;;  %v5031_v5 = vmul.f32 %v5030_v25, %v7094_v19  ;;  %v5313_v19 = vld [vmem:[%s7176_s7] sm:$0xff] }
0x4923   : > { %v5071_v15 = vrot.slane %v5062_v14, %v6162_v29 }
0x4924   : > { %v5035_v26 = vrot.slane %v5026_v23, %v6162_v29 }
0x4925   : > { %v5072_v13 = vadd.f32 %v5071_v15, %v5067_v9  ;;  %v5599_v15 = vld [vmem:[%s7173_s4 + $0x1f] sm:$0x1] }
0x4926   : > { %v5036_v11 = vadd.f32 %v5035_v26, %v5031_v5 }
0x4927   : > { %v5593_v16 = vmul.f32 -1.442695, %v5072_v13 }
0x4929   : > { %6021 = vpow2.f32 %v5593_v16 }
0x4936   : > { %v6022_v53 = vpop.eup %6021 }
0x4937   : > { %v5076_v7 = vadd.f32 1.0, %v6022_v53 }
0x4939   : > { %6023 = vrcp.f32 %v5076_v7 }
0x4946   : > { %v6024_v38 = vpop.eup %6023 }
0x4947   : > { %v5079_v4 = vmul.f32 %v6024_v38, %v5036_v11  ;;  %v5229_v11 = vld [vmem:[%s7173_s4 + $0xf] sm:$0x1] }
0x4949   : > { %v5080_v0 = vadd.f32 %v5079_v4, %v7077_v10 }
0x494b   : > { %v7121_v30 = vmul.f32 0.70710677, %v5080_v0 }
0x494d   : > { %5869 = vmatmul.mubr.msk.f32.vlgmr.msra.gmra.mxu1 %vm526_vm2, %v7121_v30  ;;  %5874 = vmatmul.mubr.msk.f32.vlgmr.msra.gmra.mxu0 %vm526_vm2, %v7121_v30 }
0x494e   : > { %5878 = vmatprep.mubr.msk.f32.mxu1 %vm6056_vm0, %v6055_v2  ;;  %5877 = vmatpush3.msra.mxu1 %v5313_v19  ;;  %vm5387_vm0 = vcmask 23552  }
0x4a0d   : > { %v7132_v24 = vpop.f32.mrf.mxu1  ;;  %v5225_v55 = vpop.f32.mrf.mxu0 }
0x4a0e   : > { %v5267_v10 = vsel %vm526_vm2, %v5225_v55, 0.0  ;;  %v5275_v28 = vmul.f32 %v5225_v55, %v5225_v55  ;;  %v5231_v33 = vsel %vm526_vm2, %v7132_v24, 0.0  ;;  %v5239_v34 = vmul.f32 %v7132_v24, %v7132_v24 }
0x4a0f   : > { %v5268_v32 = vrot.slane %v5267_v10, 4  ;;  %v5870_v35 = vpop.f32.mrf.mxu1  ;;  %v5875_v2 = vpop.f32.mrf.mxu0  ;;  %v5232_v21 = vrot.slane %v5231_v33, 4 }
0x4a10   : > { %v5276_v36 = vsel %vm526_vm2, %v5275_v28, 0.0  ;;  %v5240_v43 = vsel %vm526_vm2, %v5239_v34, 0.0 }
0x4a11   : > { %v5269_v37 = vadd.f32 %v5268_v32, %v5267_v10  ;;  %v5277_v22 = vrot.slane %v5276_v36, 4  ;;  %v5233_v12 = vadd.f32 %v5232_v21, %v5231_v33  ;;  %v5241_v1 = vrot.slane %v5240_v43, 4 }
0x4a13   : > { %v5270_v44 = vrot.slane %v5269_v37, 2  ;;  %v5278_v3 = vadd.f32 %v5277_v22, %v5276_v36  ;;  %v5234_v52 = vrot.slane %v5233_v12, 2  ;;  %v5242_v41 = vadd.f32 %v5241_v1, %v5240_v43 }
0x4a15   : > { %v5271_v42 = vadd.f32 %v5270_v44, %v5269_v37  ;;  %v5279_v46 = vrot.slane %v5278_v3, 2  ;;  %v5235_v56 = vadd.f32 %v5234_v52, %v5233_v12  ;;  %v5243_v62 = vrot.slane %v5242_v41, 2 }
0x4a17   : > { %v5272_v48 = vrot.slane %v5271_v42, 1  ;;  %v5280_v49 = vadd.f32 %v5279_v46, %v5278_v3  ;;  %v5236_v31 = vrot.slane %v5235_v56, 1  ;;  %v5244_v6 = vadd.f32 %v5243_v62, %v5242_v41 }
0x4a19   : > { %v5273_v50 = vadd.f32 %v5272_v48, %v5271_v42  ;;  %v5281_v51 = vrot.slane %v5280_v49, 1  ;;  %v5237_v61 = vadd.f32 %v5236_v31, %v5235_v56  ;;  %v5245_v8 = vrot.slane %v5244_v6, 1 }
0x4a1b   : > { %v5274_v40 = vmul.f32 0.125, %v5273_v50  ;;  %v5282_v39 = vadd.f32 %v5281_v51, %v5280_v49  ;;  %v5238_v54 = vmul.f32 0.125, %v5237_v61  ;;  %v5246_v58 = vadd.f32 %v5245_v8, %v5244_v6 }
0x4a1d   : > { %v5283_v45 = vmul.f32 0.125, %v5282_v39  ;;  %v5284_v59 = vmul.f32 %v5274_v40, %v5274_v40  ;;  %v5247_v14 = vmul.f32 0.125, %v5246_v58  ;;  %v5248_v9 = vmul.f32 %v5238_v54, %v5238_v54 }
0x4a1f   : > { %v5285_v63 = vsub.f32 %v5283_v45, %v5284_v59  ;;  %v5249_v16 = vsub.f32 %v5247_v14, %v5248_v9 }
0x4a21   : > { %v5286_v60 = vadd.f32 1e-05, %v5285_v63  ;;  %v5250_v7 = vadd.f32 1e-05, %v5249_v16 }
0x4a23   : > { %6025 = vrsqrt.f32 %v5286_v60 }
0x4a24   : > { %6027 = vrsqrt.f32 %v5250_v7 }
0x4a30   : > { %v6026_v13 = vpop.eup %6025 }
0x4a31   : > { %v5288_v17 = vmul.f32 %v6026_v13, %v5599_v15  ;;  %v6028_v5 = vpop.eup %6027 }
0x4a32   : > { %v5252_v38 = vmul.f32 %v6028_v5, %v5229_v11 }
0x4a33   : > { %v5289_v27 = vmul.f32 %v5288_v17, %v5274_v40  ;;  %v5294_v53 = vrot.slane %v5288_v17, %v6162_v29 }
0x4a34   : > { %v5253_v19 = vmul.f32 %v5252_v38, %v5238_v54  ;;  %v5258_v28 = vrot.slane %v5252_v38, %v6162_v29 }
0x4a35   : > { %v5290_v47 = vsub.f32 %v5600_v18, %v5289_v27  ;;  %v5295_v20 = vmul.f32 %v5294_v53, %v5225_v55  ;;  %v5598_v55 = vld [vmem:[%s7173_s4 + $0x2f] sm:$0x1] }
0x4a36   : > { %v5254_v10 = vsub.f32 %v5598_v55, %v5253_v19  ;;  %v5259_v34 = vmul.f32 %v5258_v28, %v7132_v24 }
0x4a37   : > { %v5299_v23 = vrot.slane %v5290_v47, %v6162_v29 }
0x4a38   : > { %v5263_v33 = vrot.slane %v5254_v10, %v6162_v29 }
0x4a39   : > { %v5300_v25 = vadd.f32 %v5299_v23, %v5295_v20 }
0x4a3a   : > { %v5264_v32 = vadd.f32 %v5263_v33, %v5259_v34 }
0x4a3b   : > { %v5601_v26 = vmul.f32 -1.442695, %v5300_v25 }
0x4a3d   : > { %6029 = vpow2.f32 %v5601_v26 }
0x4a4a   : > { %v6030_v4 = vpop.eup %6029 }
0x4a4b   : > { %v5304_v0 = vadd.f32 1.0, %v6030_v4 }
0x4a4d   : > { %6031 = vrcp.f32 %v5304_v0 }
0x4a5a   : > { %v6032_v35 = vpop.eup %6031 }
0x4a5b   : > { %v5307_v2 = vmul.f32 %v6032_v35, %v5264_v32 }
0x4a5d   : > { %v5308_v36 = vadd.f32 %v5307_v2, %v7121_v30 }
0x4a5f   : > { %v5309_v37 = vmul.f32 0.70710677, %v5308_v36 }
0x4a61   : > { %v5310_v22 = vmax.f32 %v5309_v37, 0.0 }
0x4a63   : > { %v5311_v21 = vadd.f32 %v5310_v22, %v6896_v57 }
0x4a65   : > { %5879 = vmatmul.mubr.msk.f32.vlgmr.msra.gmra.mxu1 %vm526_vm2, %v5311_v21 }
0x4b25   : > { %v5383_v29 = vpop.f32.mrf.mxu1 }
0x4b26   : > { %5388 = vst.msk [vmem:[%s333_s28] sm:$0xff] %vm5387_vm0, %v5383_v29 }
0x4b27   : > { %v5880_v24 = vpop.f32.mrf.mxu1 }
0x4b28 PF: > { %s20_s30 = sadd.s32 1, %s6053_s30  }
0x4b29   : > { %p17_p4 = scmp.ge.s32.totalorder %s20_s30, 4  }
0x4b2b   :  { %19 = sbr.rel (!%p17_p4) target bundleno = 1 (0x1), region = 118 }

</bundles_post_ra>
